<compile_context>
chip_gen: v7x
topology: tpu7x:2x2x1
jax: 0.10.0
libtpu: 0.0.40
codegen_flags: <defaults>
</compile_context>

<pallas_src>
import functools

import jax
import jax.numpy as jnp
from jax.experimental import pallas as pl
from jax.experimental.pallas import tpu as pltpu

_VMEM = pl.BlockSpec(memory_space=pltpu.MemorySpace.VMEM)

# Layer geometry for an 8x8 board, four 3x3 / stride-1 / padding-2 convs with
# 2x2 max-pool (floor semantics) after the first three:
#   Hin -> padded HP = Hin + 4 -> conv out HO = Hin + 2 -> pooled HQ = HO // 2
_HP1, _HO1, _HQ1 = 12, 10, 5     # conv1: 8 -> 10 -> 5
_HP2, _HO2, _HQ2 = 9, 7, 3       # conv2: 5 ->  7 -> 3
_HP3, _HO3, _HQ3 = 7, 5, 2       # conv3: 3 ->  5 -> 2
_HP4, _HO4 = 6, 4                # conv4: 2 ->  4   (no pool)

# Slack rows appended to each padded canvas so the whole-batch tap slice
# (row offset up to 2*HP + 2) never reads out of bounds; slack rows are zero.
_SL1, _SL2, _SL3, _SL4 = 32, 24, 16, 16


# ------------------------------ fused kernel ------------------------------- #
def _fused_forward_kernel(
    n_batch,
    # inputs
    pin1_ref, gi_ref,
    w1_ref, b1_ref, w2_ref, b2_ref, w3_ref, b3_ref, w4_ref, b4_ref,
    bn_scale_ref, bn_shift_ref,
    fc1w_ref, fc1b_ref, fc2w_ref, fc2b_ref,
    wx_ref, wy_ref, bout_ref,
    # output
    out_ref,
    # scratch
    ys1, pin2, ys2, pin3, ys3, pin4, head_scr,
):
    f32 = jnp.float32
    N = n_batch

    # -- zero the padded canvases (conv zero-padding + slack rows) --
    pin2[...] = jnp.zeros_like(pin2)
    pin3[...] = jnp.zeros_like(pin3)
    pin4[...] = jnp.zeros_like(pin4)

    def conv_taps(pin_ref, w_ref, b_ref, hp, cin):
        """relu(conv3x3 + b) over the WHOLE batch canvas in 9 matmuls.

        Result row r = n*hp*hp + i*hp + j holds output pixel (i, j) of image n
        for i < hp-2 and j < hp-2; every other row is garbage that the pooling
        / head stages never read (and is finite, since all padding is zero)."""
        m = N * hp * hp
        cout = w_ref.shape[1]
        acc = jnp.zeros((m, cout), f32)
        for ky in range(3):
            for kx in range(3):
                off = ky * hp + kx
                k = ky * 3 + kx
                win = pin_ref[off:off + m, :]
                acc = acc + jnp.dot(win, w_ref[k * cin:(k + 1) * cin, :],
                                    preferred_element_type=f32)
        return jnp.maximum(acc + b_ref[...], 0.0)

    def conv1_vpu():
        """conv1 (Cin=1): 9 whole-batch broadcast FMAs on the VPU, no MXU.

        pin1 already holds the board value replicated across the 32 lanes, so
        each tap is a lane-dense multiply by that tap's per-channel weights."""
        m = N * _HP1 * _HP1
        acc = jnp.zeros((m, 32), f32)
        for ky in range(3):
            for kx in range(3):
                off = ky * _HP1 + kx
                k = ky * 3 + kx
                acc = acc + pin1_ref[off:off + m, :] * w1_ref[k:k + 1, :]
        return jnp.maximum(acc + b1_ref[...], 0.0)

    def pool_row(ys_ref, row0, row1, hq):
        """2x2 / stride-2 max-pool of one output-row pair -> (hq, C)."""
        a = ys_ref[pl.ds(row0, hq, stride=2), :]
        b = ys_ref[pl.ds(row0 + 1, hq, stride=2), :]
        c = ys_ref[pl.ds(row1, hq, stride=2), :]
        d = ys_ref[pl.ds(row1 + 1, hq, stride=2), :]
        return jnp.maximum(jnp.maximum(a, b), jnp.maximum(c, d))

    # ---------------- conv1 + ReLU + pool -> pin2 ----------------
    ys1[...] = conv1_vpu()
    for n in range(N):
        for i2 in range(_HQ1):
            row0 = n * _HP1 * _HP1 + (2 * i2) * _HP1
            pooled = pool_row(ys1, row0, row0 + _HP1, _HQ1)
            dst = n * _HP2 * _HP2 + (2 + i2) * _HP2 + 2
            pin2[dst:dst + _HQ1, :] = pooled

    # ---------------- conv2 + ReLU + pool -> pin3 ----------------
    ys2[...] = conv_taps(pin2, w2_ref, b2_ref, _HP2, 32)
    for n in range(N):
        for i2 in range(_HQ2):
            row0 = n * _HP2 * _HP2 + (2 * i2) * _HP2
            pooled = pool_row(ys2, row0, row0 + _HP2, _HQ2)
            dst = n * _HP3 * _HP3 + (2 + i2) * _HP3 + 2
            pin3[dst:dst + _HQ2, :] = pooled

    # ------------- conv3 + ReLU + pool + BN affine -> pin4 -------------
    ys3[...] = conv_taps(pin3, w3_ref, b3_ref, _HP3, 64)
    scale = bn_scale_ref[...]
    shift = bn_shift_ref[...]
    for n in range(N):
        for i2 in range(_HQ3):
            row0 = n * _HP3 * _HP3 + (2 * i2) * _HP3
            pooled = pool_row(ys3, row0, row0 + _HP3, _HQ3)
            pooled = pooled * scale + shift          # eval-mode BatchNorm2d
            dst = n * _HP4 * _HP4 + (2 + i2) * _HP4 + 2
            pin4[dst:dst + _HQ3, :] = pooled

    # ------------- conv4 + ReLU + (NCHW flatten . out_w[:512]) -------------
    # TODO(synk): Dropout(p=0.3) is the identity here (inference / eval mode).
    y4 = conv_taps(pin4, w4_ref, b4_ref, _HP4, 128)      # (N*36, 32)
    wx = wx_ref[...]                                     # (HO4*HP4, 32)
    for n in range(N):
        base = n * _HP4 * _HP4
        y4n = y4[base:base + _HO4 * _HP4, :]             # (24, 32)
        head_scr[n:n + 1, :] = jnp.sum(y4n * wx, axis=0, keepdims=True)

    # ---------------------------- FC head ----------------------------
    h = jnp.maximum(
        jnp.dot(gi_ref[...], fc1w_ref[...], preferred_element_type=f32)
        + fc1b_ref[...], 0.0)                            # (N, 16)
    h = jnp.maximum(
        jnp.dot(h, fc2w_ref[...], preferred_element_type=f32)
        + fc2b_ref[...], 0.0)                            # (N, 64)
    contrib_y = jnp.dot(h, wy_ref[...], preferred_element_type=f32)   # (N, 1)
    contrib_x = jnp.sum(head_scr[...], axis=1, keepdims=True)         # (N, 1)
    out_ref[...] = jnp.tanh(contrib_x + contrib_y + bout_ref[...])


# ------------------------------ parameters --------------------------------- #
def init_params(key):
    ks = jax.random.split(key, 18)
    f32 = jnp.float32

    def nrm(k, shape, s=0.1):
        return (s * jax.random.normal(k, shape)).astype(f32)

    return {
        "conv1_w": nrm(ks[0], (32, 1, 3, 3)),   "conv1_b": nrm(ks[1], (32,)),
        "conv2_w": nrm(ks[2], (64, 32, 3, 3)),  "conv2_b": nrm(ks[3], (64,)),
        "conv3_w": nrm(ks[4], (128, 64, 3, 3)), "conv3_b": nrm(ks[5], (128,)),
        "conv4_w": nrm(ks[6], (32, 128, 3, 3)), "conv4_b": nrm(ks[7], (32,)),
        "bn1_gamma": 1.0 + nrm(ks[8], (128,)),
        "bn1_beta": nrm(ks[9], (128,)),
        "bn1_mean": nrm(ks[10], (128,)),
        "bn1_var": 1.0 + 0.1 * jnp.abs(jax.random.normal(ks[11], (128,))).astype(f32),
        "fc1_w": nrm(ks[12], (16, 5)),   "fc1_b": nrm(ks[13], (16,)),
        "fc2_w": nrm(ks[14], (64, 16)),  "fc2_b": nrm(ks[15], (64,)),
        "out_w": nrm(ks[16], (1, 576)),  "out_b": jnp.zeros((1,), f32),
    }


def prepare_params(params):
    """One-time re-layout of weights into kernel-ready form (hoisted out of
    the hot path): conv weights -> (9*Cin, Cout) tap-major matrices, BN folded
    to a per-channel affine, FC weights transposed, and the 576-wide output
    weight split/permuted so the in-kernel flatten needs no transpose/concat."""
    f32 = jnp.float32

    def conv_mat(w):  # (Cout, Cin, 3, 3) -> (9*Cin, Cout), row order (ky, kx, ci)
        cout, cin = w.shape[0], w.shape[1]
        return jnp.transpose(w, (2, 3, 1, 0)).reshape(9 * cin, cout).astype(f32)

    inv_std = 1.0 / jnp.sqrt(params["bn1_var"].astype(f32) + 1e-5)
    scale = params["bn1_gamma"].astype(f32) * inv_std
    shift = params["bn1_beta"].astype(f32) - params["bn1_mean"].astype(f32) * scale

    out_w = params["out_w"].astype(f32)              # (1, 576)
    wx = out_w[0, :512].reshape(32, 4, 4)            # torch flatten order (c, i, j)
    wx = jnp.transpose(wx, (1, 2, 0))                # (i, j, c)
    wx = jnp.pad(wx, ((0, 0), (0, _HP4 - _HO4), (0, 0)))  # pad j: 4 -> 6
    wx = wx.reshape(_HO4 * _HP4, 32)                 # rows r = i*6 + j

    return {
        "w1": conv_mat(params["conv1_w"]),           # (9, 32)
        "b1": params["conv1_b"].reshape(1, 32).astype(f32),
        "w2": conv_mat(params["conv2_w"]),           # (288, 64)
        "b2": params["conv2_b"].reshape(1, 64).astype(f32),
        "w3": conv_mat(params["conv3_w"]),           # (576, 128)
        "b3": params["conv3_b"].reshape(1, 128).astype(f32),
        "w4": conv_mat(params["conv4_w"]),           # (1152, 32)
        "b4": params["conv4_b"].reshape(1, 32).astype(f32),
        "bn_scale": scale.reshape(1, 128),
        "bn_shift": shift.reshape(1, 128),
        "fc1w": params["fc1_w"].T.astype(f32),       # (5, 16)
        "fc1b": params["fc1_b"].reshape(1, 16).astype(f32),
        "fc2w": params["fc2_w"].T.astype(f32),       # (16, 64)
        "fc2b": params["fc2_b"].reshape(1, 64).astype(f32),
        "wx": wx,                                    # (24, 32)
        "wy": out_w[:, 512:].T,                      # (64, 1)
        "bout": params["out_b"].reshape(1, 1).astype(f32),
    }


# -------------------------------- forward ---------------------------------- #
def veiled_chess_net_forward(prepared, board_nchw, game_info):
    # board_nchw: (N, 1, 8, 8) NCHW, game_info: (N, 5)
    n = board_nchw.shape[0]

    # Layout plumbing only (conv math stays in the kernel): zero-pad the board
    # into the extended-width conv1 canvas (rows = (n, i, j) over the padded
    # 12x12 plane, plus zero slack rows) and replicate it across the 32 lanes
    # so conv1's VPU taps read lane-dense data with no in-kernel scatter.
    b = board_nchw.astype(jnp.float32).reshape(n, 8, 8)
    b = jnp.pad(b, ((0, 0), (2, 2), (2, 2)))                    # (n, 12, 12)
    pin1 = b.reshape(n * _HP1 * _HP1, 1)
    pin1 = jnp.pad(pin1, ((0, _SL1), (0, 0)))                   # zero slack rows
    pin1 = jnp.broadcast_to(pin1, (n * _HP1 * _HP1 + _SL1, 32))
    gi = game_info.astype(jnp.float32)

    scratch = [
        pltpu.VMEM((n * _HP1 * _HP1, 32), jnp.float32),          # conv1 output
        pltpu.VMEM((n * _HP2 * _HP2 + _SL2, 32), jnp.float32),   # conv2 canvas
        pltpu.VMEM((n * _HP2 * _HP2, 64), jnp.float32),          # conv2 output
        pltpu.VMEM((n * _HP3 * _HP3 + _SL3, 64), jnp.float32),   # conv3 canvas
        pltpu.VMEM((n * _HP3 * _HP3, 128), jnp.float32),         # conv3 output
        pltpu.VMEM((n * _HP4 * _HP4 + _SL4, 128), jnp.float32),  # conv4 canvas
        pltpu.VMEM((n, 32), jnp.float32),                        # head partials
    ]

    return pl.pallas_call(
        functools.partial(_fused_forward_kernel, n),
        out_shape=jax.ShapeDtypeStruct((n, 1), jnp.float32),
        in_specs=[_VMEM] * 19,
        out_specs=_VMEM,
        scratch_shapes=scratch,
    )(pin1, gi,
      prepared["w1"], prepared["b1"], prepared["w2"], prepared["b2"],
      prepared["w3"], prepared["b3"], prepared["w4"], prepared["b4"],
      prepared["bn_scale"], prepared["bn_shift"],
      prepared["fc1w"], prepared["fc1b"], prepared["fc2w"], prepared["fc2b"],
      prepared["wx"], prepared["wy"], prepared["bout"])


if __name__ == "__main__":
    key = jax.random.PRNGKey(0)
    k_p, k_b, k_g = jax.random.split(key, 3)

    params = init_params(k_p)
    prepared = prepare_params(params)

    board = jax.random.normal(k_b, (2, 1, 8, 8), dtype=jnp.float32)   # NCHW
    game_info = jax.random.normal(k_g, (2, 5), dtype=jnp.float32)

    fwd = jax.jit(veiled_chess_net_forward)
    out = jax.block_until_ready(fwd(prepared, board, game_info))

    assert out.shape == (2, 1), out.shape
    assert bool(jnp.all(jnp.isfinite(out)))
    assert bool(jnp.all(jnp.abs(out) <= 1.0))
    print("KERNEL_OK")
</pallas_src>

<mosaic_0001>
module attributes {stable_mosaic.version = 11 : i64} {
  func.func @_fused_forward_kernel(%arg0: memref<320x32xf32, #tpu.memory_space<vmem>>, %arg1: memref<2x5xf32, #tpu.memory_space<vmem>>, %arg2: memref<9x32xf32, #tpu.memory_space<vmem>>, %arg3: memref<1x32xf32, #tpu.memory_space<vmem>>, %arg4: memref<288x64xf32, #tpu.memory_space<vmem>>, %arg5: memref<1x64xf32, #tpu.memory_space<vmem>>, %arg6: memref<576x128xf32, #tpu.memory_space<vmem>>, %arg7: memref<1x128xf32, #tpu.memory_space<vmem>>, %arg8: memref<1152x32xf32, #tpu.memory_space<vmem>>, %arg9: memref<1x32xf32, #tpu.memory_space<vmem>>, %arg10: memref<1x128xf32, #tpu.memory_space<vmem>>, %arg11: memref<1x128xf32, #tpu.memory_space<vmem>>, %arg12: memref<5x16xf32, #tpu.memory_space<vmem>>, %arg13: memref<1x16xf32, #tpu.memory_space<vmem>>, %arg14: memref<16x64xf32, #tpu.memory_space<vmem>>, %arg15: memref<1x64xf32, #tpu.memory_space<vmem>>, %arg16: memref<24x32xf32, #tpu.memory_space<vmem>>, %arg17: memref<64x1xf32, #tpu.memory_space<vmem>>, %arg18: memref<1x1xf32, #tpu.memory_space<vmem>>, %arg19: memref<2x1xf32, #tpu.memory_space<vmem>>, %arg20: memref<288x32xf32, #tpu.memory_space<vmem>>, %arg21: memref<186x32xf32, #tpu.memory_space<vmem>>, %arg22: memref<162x64xf32, #tpu.memory_space<vmem>>, %arg23: memref<114x64xf32, #tpu.memory_space<vmem>>, %arg24: memref<98x128xf32, #tpu.memory_space<vmem>>, %arg25: memref<88x128xf32, #tpu.memory_space<vmem>>, %arg26: memref<2x32xf32, #tpu.memory_space<vmem>>) attributes {dimension_semantics = [], scalar_prefetch = 0 : i64, scratch_operands = 7 : i64, tpu.core_type = #tpu.core_type<tc>} {
    %cst = arith.constant 0.000000e+00 : f32
    %0 = vector.broadcast %cst : f32 to vector<186x32xf32>
    %c0 = arith.constant 0 : index
    %c0_0 = arith.constant 0 : index
    %1 = vector.load %arg21[%c0, %c0_0] : memref<186x32xf32, #tpu.memory_space<vmem>>, vector<186x32xf32>
    tpu.vector_store %arg21[%c0, %c0_0], %0 {strides = array<i32>} : memref<186x32xf32, #tpu.memory_space<vmem>>, vector<186x32xf32>,
    %cst_1 = arith.constant 0.000000e+00 : f32
    %2 = vector.broadcast %cst_1 : f32 to vector<114x64xf32>
    %c0_2 = arith.constant 0 : index
    %c0_3 = arith.constant 0 : index
    %3 = vector.load %arg23[%c0_2, %c0_3] : memref<114x64xf32, #tpu.memory_space<vmem>>, vector<114x64xf32>
    tpu.vector_store %arg23[%c0_2, %c0_3], %2 {strides = array<i32>} : memref<114x64xf32, #tpu.memory_space<vmem>>, vector<114x64xf32>,
    %cst_4 = arith.constant 0.000000e+00 : f32
    %4 = vector.broadcast %cst_4 : f32 to vector<88x128xf32>
    %c0_5 = arith.constant 0 : index
    %c0_6 = arith.constant 0 : index
    %5 = vector.load %arg25[%c0_5, %c0_6] : memref<88x128xf32, #tpu.memory_space<vmem>>, vector<88x128xf32>
    tpu.vector_store %arg25[%c0_5, %c0_6], %4 {strides = array<i32>} : memref<88x128xf32, #tpu.memory_space<vmem>>, vector<88x128xf32>,
    %cst_7 = arith.constant 0.000000e+00 : f32
    %6 = vector.broadcast %cst_7 : f32 to vector<288x32xf32>
    %c0_8 = arith.constant 0 : index
    %c0_9 = arith.constant 0 : index
    %7 = vector.load %arg0[%c0_8, %c0_9] : memref<320x32xf32, #tpu.memory_space<vmem>>, vector<288x32xf32>
    %c0_10 = arith.constant 0 : index
    %c0_11 = arith.constant 0 : index
    %8 = vector.load %arg2[%c0_10, %c0_11] : memref<9x32xf32, #tpu.memory_space<vmem>>, vector<1x32xf32>
    %9 = vector.broadcast %8 : vector<1x32xf32> to vector<288x32xf32>
    %10 = arith.mulf %7, %9 : vector<288x32xf32>
    %11 = arith.addf %6, %10 : vector<288x32xf32>
    %c1 = arith.constant 1 : index
    %c0_12 = arith.constant 0 : index
    %12 = vector.load %arg0[%c1, %c0_12] : memref<320x32xf32, #tpu.memory_space<vmem>>, vector<288x32xf32>
    %c1_13 = arith.constant 1 : index
    %c0_14 = arith.constant 0 : index
    %13 = vector.load %arg2[%c1_13, %c0_14] : memref<9x32xf32, #tpu.memory_space<vmem>>, vector<1x32xf32>
    %14 = vector.broadcast %13 : vector<1x32xf32> to vector<288x32xf32>
    %15 = arith.mulf %12, %14 : vector<288x32xf32>
    %16 = arith.addf %11, %15 : vector<288x32xf32>
    %c2 = arith.constant 2 : index
    %c0_15 = arith.constant 0 : index
    %17 = vector.load %arg0[%c2, %c0_15] : memref<320x32xf32, #tpu.memory_space<vmem>>, vector<288x32xf32>
    %c2_16 = arith.constant 2 : index
    %c0_17 = arith.constant 0 : index
    %18 = vector.load %arg2[%c2_16, %c0_17] : memref<9x32xf32, #tpu.memory_space<vmem>>, vector<1x32xf32>
    %19 = vector.broadcast %18 : vector<1x32xf32> to vector<288x32xf32>
    %20 = arith.mulf %17, %19 : vector<288x32xf32>
    %21 = arith.addf %16, %20 : vector<288x32xf32>
    %c12 = arith.constant 12 : index
    %c0_18 = arith.constant 0 : index
    %22 = vector.load %arg0[%c12, %c0_18] : memref<320x32xf32, #tpu.memory_space<vmem>>, vector<288x32xf32>
    %c3 = arith.constant 3 : index
    %c0_19 = arith.constant 0 : index
    %23 = vector.load %arg2[%c3, %c0_19] : memref<9x32xf32, #tpu.memory_space<vmem>>, vector<1x32xf32>
    %24 = vector.broadcast %23 : vector<1x32xf32> to vector<288x32xf32>
    %25 = arith.mulf %22, %24 : vector<288x32xf32>
    %26 = arith.addf %21, %25 : vector<288x32xf32>
    %c13 = arith.constant 13 : index
    %c0_20 = arith.constant 0 : index
    %27 = vector.load %arg0[%c13, %c0_20] : memref<320x32xf32, #tpu.memory_space<vmem>>, vector<288x32xf32>
    %c4 = arith.constant 4 : index
    %c0_21 = arith.constant 0 : index
    %28 = vector.load %arg2[%c4, %c0_21] : memref<9x32xf32, #tpu.memory_space<vmem>>, vector<1x32xf32>
    %29 = vector.broadcast %28 : vector<1x32xf32> to vector<288x32xf32>
    %30 = arith.mulf %27, %29 : vector<288x32xf32>
    %31 = arith.addf %26, %30 : vector<288x32xf32>
    %c14 = arith.constant 14 : index
    %c0_22 = arith.constant 0 : index
    %32 = vector.load %arg0[%c14, %c0_22] : memref<320x32xf32, #tpu.memory_space<vmem>>, vector<288x32xf32>
    %c5 = arith.constant 5 : index
    %c0_23 = arith.constant 0 : index
    %33 = vector.load %arg2[%c5, %c0_23] : memref<9x32xf32, #tpu.memory_space<vmem>>, vector<1x32xf32>
    %34 = vector.broadcast %33 : vector<1x32xf32> to vector<288x32xf32>
    %35 = arith.mulf %32, %34 : vector<288x32xf32>
    %36 = arith.addf %31, %35 : vector<288x32xf32>
    %c24 = arith.constant 24 : index
    %c0_24 = arith.constant 0 : index
    %37 = vector.load %arg0[%c24, %c0_24] : memref<320x32xf32, #tpu.memory_space<vmem>>, vector<288x32xf32>
    %c6 = arith.constant 6 : index
    %c0_25 = arith.constant 0 : index
    %38 = vector.load %arg2[%c6, %c0_25] : memref<9x32xf32, #tpu.memory_space<vmem>>, vector<1x32xf32>
    %39 = vector.broadcast %38 : vector<1x32xf32> to vector<288x32xf32>
    %40 = arith.mulf %37, %39 : vector<288x32xf32>
    %41 = arith.addf %36, %40 : vector<288x32xf32>
    %c25 = arith.constant 25 : index
    %c0_26 = arith.constant 0 : index
    %42 = vector.load %arg0[%c25, %c0_26] : memref<320x32xf32, #tpu.memory_space<vmem>>, vector<288x32xf32>
    %c7 = arith.constant 7 : index
    %c0_27 = arith.constant 0 : index
    %43 = vector.load %arg2[%c7, %c0_27] : memref<9x32xf32, #tpu.memory_space<vmem>>, vector<1x32xf32>
    %44 = vector.broadcast %43 : vector<1x32xf32> to vector<288x32xf32>
    %45 = arith.mulf %42, %44 : vector<288x32xf32>
    %46 = arith.addf %41, %45 : vector<288x32xf32>
    %c26 = arith.constant 26 : index
    %c0_28 = arith.constant 0 : index
    %47 = vector.load %arg0[%c26, %c0_28] : memref<320x32xf32, #tpu.memory_space<vmem>>, vector<288x32xf32>
    %c8 = arith.constant 8 : index
    %c0_29 = arith.constant 0 : index
    %48 = vector.load %arg2[%c8, %c0_29] : memref<9x32xf32, #tpu.memory_space<vmem>>, vector<1x32xf32>
    %49 = vector.broadcast %48 : vector<1x32xf32> to vector<288x32xf32>
    %50 = arith.mulf %47, %49 : vector<288x32xf32>
    %51 = arith.addf %46, %50 : vector<288x32xf32>
    %c0_30 = arith.constant 0 : index
    %c0_31 = arith.constant 0 : index
    %52 = vector.load %arg3[%c0_30, %c0_31] : memref<1x32xf32, #tpu.memory_space<vmem>>, vector<1x32xf32>
    %53 = vector.broadcast %52 : vector<1x32xf32> to vector<288x32xf32>
    %54 = arith.addf %51, %53 : vector<288x32xf32>
    %cst_32 = arith.constant 0.000000e+00 : f32
    %55 = vector.broadcast %cst_32 : f32 to vector<288x32xf32>
    %56 = arith.maximumf %54, %55 : vector<288x32xf32>
    %c0_33 = arith.constant 0 : index
    %c0_34 = arith.constant 0 : index
    %57 = vector.load %arg20[%c0_33, %c0_34] : memref<288x32xf32, #tpu.memory_space<vmem>>, vector<288x32xf32>
    tpu.vector_store %arg20[%c0_33, %c0_34], %56 {strides = array<i32>} : memref<288x32xf32, #tpu.memory_space<vmem>>, vector<288x32xf32>,
    %c0_35 = arith.constant 0 : index
    %c0_36 = arith.constant 0 : index
    %58 = tpu.strided_load %arg20[%c0_35, %c0_36] {strides = array<i32: 2, 1>} : memref<288x32xf32, #tpu.memory_space<vmem>>, vector<5x32xf32>
    %c1_37 = arith.constant 1 : index
    %c0_38 = arith.constant 0 : index
    %59 = tpu.strided_load %arg20[%c1_37, %c0_38] {strides = array<i32: 2, 1>} : memref<288x32xf32, #tpu.memory_space<vmem>>, vector<5x32xf32>
    %c12_39 = arith.constant 12 : index
    %c0_40 = arith.constant 0 : index
    %60 = tpu.strided_load %arg20[%c12_39, %c0_40] {strides = array<i32: 2, 1>} : memref<288x32xf32, #tpu.memory_space<vmem>>, vector<5x32xf32>
    %c13_41 = arith.constant 13 : index
    %c0_42 = arith.constant 0 : index
    %61 = tpu.strided_load %arg20[%c13_41, %c0_42] {strides = array<i32: 2, 1>} : memref<288x32xf32, #tpu.memory_space<vmem>>, vector<5x32xf32>
    %62 = arith.maximumf %58, %59 : vector<5x32xf32>
    %63 = arith.maximumf %60, %61 : vector<5x32xf32>
    %64 = arith.maximumf %62, %63 : vector<5x32xf32>
    %c20 = arith.constant 20 : index
    %c0_43 = arith.constant 0 : index
    %65 = vector.load %arg21[%c20, %c0_43] : memref<186x32xf32, #tpu.memory_space<vmem>>, vector<5x32xf32>
    tpu.vector_store %arg21[%c20, %c0_43], %64 {strides = array<i32>} : memref<186x32xf32, #tpu.memory_space<vmem>>, vector<5x32xf32>,
    %c24_44 = arith.constant 24 : index
    %c0_45 = arith.constant 0 : index
    %66 = tpu.strided_load %arg20[%c24_44, %c0_45] {strides = array<i32: 2, 1>} : memref<288x32xf32, #tpu.memory_space<vmem>>, vector<5x32xf32>
    %c25_46 = arith.constant 25 : index
    %c0_47 = arith.constant 0 : index
    %67 = tpu.strided_load %arg20[%c25_46, %c0_47] {strides = array<i32: 2, 1>} : memref<288x32xf32, #tpu.memory_space<vmem>>, vector<5x32xf32>
    %c36 = arith.constant 36 : index
    %c0_48 = arith.constant 0 : index
    %68 = tpu.strided_load %arg20[%c36, %c0_48] {strides = array<i32: 2, 1>} : memref<288x32xf32, #tpu.memory_space<vmem>>, vector<5x32xf32>
    %c37 = arith.constant 37 : index
    %c0_49 = arith.constant 0 : index
    %69 = tpu.strided_load %arg20[%c37, %c0_49] {strides = array<i32: 2, 1>} : memref<288x32xf32, #tpu.memory_space<vmem>>, vector<5x32xf32>
    %70 = arith.maximumf %66, %67 : vector<5x32xf32>
    %71 = arith.maximumf %68, %69 : vector<5x32xf32>
    %72 = arith.maximumf %70, %71 : vector<5x32xf32>
    %c29 = arith.constant 29 : index
    %c0_50 = arith.constant 0 : index
    %73 = vector.load %arg21[%c29, %c0_50] : memref<186x32xf32, #tpu.memory_space<vmem>>, vector<5x32xf32>
    tpu.vector_store %arg21[%c29, %c0_50], %72 {strides = array<i32>} : memref<186x32xf32, #tpu.memory_space<vmem>>, vector<5x32xf32>,
    %c48 = arith.constant 48 : index
    %c0_51 = arith.constant 0 : index
    %74 = tpu.strided_load %arg20[%c48, %c0_51] {strides = array<i32: 2, 1>} : memref<288x32xf32, #tpu.memory_space<vmem>>, vector<5x32xf32>
    %c49 = arith.constant 49 : index
    %c0_52 = arith.constant 0 : index
    %75 = tpu.strided_load %arg20[%c49, %c0_52] {strides = array<i32: 2, 1>} : memref<288x32xf32, #tpu.memory_space<vmem>>, vector<5x32xf32>
    %c60 = arith.constant 60 : index
    %c0_53 = arith.constant 0 : index
    %76 = tpu.strided_load %arg20[%c60, %c0_53] {strides = array<i32: 2, 1>} : memref<288x32xf32, #tpu.memory_space<vmem>>, vector<5x32xf32>
    %c61 = arith.constant 61 : index
    %c0_54 = arith.constant 0 : index
    %77 = tpu.strided_load %arg20[%c61, %c0_54] {strides = array<i32: 2, 1>} : memref<288x32xf32, #tpu.memory_space<vmem>>, vector<5x32xf32>
    %78 = arith.maximumf %74, %75 : vector<5x32xf32>
    %79 = arith.maximumf %76, %77 : vector<5x32xf32>
    %80 = arith.maximumf %78, %79 : vector<5x32xf32>
    %c38 = arith.constant 38 : index
    %c0_55 = arith.constant 0 : index
    %81 = vector.load %arg21[%c38, %c0_55] : memref<186x32xf32, #tpu.memory_space<vmem>>, vector<5x32xf32>
    tpu.vector_store %arg21[%c38, %c0_55], %80 {strides = array<i32>} : memref<186x32xf32, #tpu.memory_space<vmem>>, vector<5x32xf32>,
    %c72 = arith.constant 72 : index
    %c0_56 = arith.constant 0 : index
    %82 = tpu.strided_load %arg20[%c72, %c0_56] {strides = array<i32: 2, 1>} : memref<288x32xf32, #tpu.memory_space<vmem>>, vector<5x32xf32>
    %c73 = arith.constant 73 : index
    %c0_57 = arith.constant 0 : index
    %83 = tpu.strided_load %arg20[%c73, %c0_57] {strides = array<i32: 2, 1>} : memref<288x32xf32, #tpu.memory_space<vmem>>, vector<5x32xf32>
    %c84 = arith.constant 84 : index
    %c0_58 = arith.constant 0 : index
    %84 = tpu.strided_load %arg20[%c84, %c0_58] {strides = array<i32: 2, 1>} : memref<288x32xf32, #tpu.memory_space<vmem>>, vector<5x32xf32>
    %c85 = arith.constant 85 : index
    %c0_59 = arith.constant 0 : index
    %85 = tpu.strided_load %arg20[%c85, %c0_59] {strides = array<i32: 2, 1>} : memref<288x32xf32, #tpu.memory_space<vmem>>, vector<5x32xf32>
    %86 = arith.maximumf %82, %83 : vector<5x32xf32>
    %87 = arith.maximumf %84, %85 : vector<5x32xf32>
    %88 = arith.maximumf %86, %87 : vector<5x32xf32>
    %c47 = arith.constant 47 : index
    %c0_60 = arith.constant 0 : index
    %89 = vector.load %arg21[%c47, %c0_60] : memref<186x32xf32, #tpu.memory_space<vmem>>, vector<5x32xf32>
    tpu.vector_store %arg21[%c47, %c0_60], %88 {strides = array<i32>} : memref<186x32xf32, #tpu.memory_space<vmem>>, vector<5x32xf32>,
    %c96 = arith.constant 96 : index
    %c0_61 = arith.constant 0 : index
    %90 = tpu.strided_load %arg20[%c96, %c0_61] {strides = array<i32: 2, 1>} : memref<288x32xf32, #tpu.memory_space<vmem>>, vector<5x32xf32>
    %c97 = arith.constant 97 : index
    %c0_62 = arith.constant 0 : index
    %91 = tpu.strided_load %arg20[%c97, %c0_62] {strides = array<i32: 2, 1>} : memref<288x32xf32, #tpu.memory_space<vmem>>, vector<5x32xf32>
    %c108 = arith.constant 108 : index
    %c0_63 = arith.constant 0 : index
    %92 = tpu.strided_load %arg20[%c108, %c0_63] {strides = array<i32: 2, 1>} : memref<288x32xf32, #tpu.memory_space<vmem>>, vector<5x32xf32>
    %c109 = arith.constant 109 : index
    %c0_64 = arith.constant 0 : index
    %93 = tpu.strided_load %arg20[%c109, %c0_64] {strides = array<i32: 2, 1>} : memref<288x32xf32, #tpu.memory_space<vmem>>, vector<5x32xf32>
    %94 = arith.maximumf %90, %91 : vector<5x32xf32>
    %95 = arith.maximumf %92, %93 : vector<5x32xf32>
    %96 = arith.maximumf %94, %95 : vector<5x32xf32>
    %c56 = arith.constant 56 : index
    %c0_65 = arith.constant 0 : index
    %97 = vector.load %arg21[%c56, %c0_65] : memref<186x32xf32, #tpu.memory_space<vmem>>, vector<5x32xf32>
    tpu.vector_store %arg21[%c56, %c0_65], %96 {strides = array<i32>} : memref<186x32xf32, #tpu.memory_space<vmem>>, vector<5x32xf32>,
    %c144 = arith.constant 144 : index
    %c0_66 = arith.constant 0 : index
    %98 = tpu.strided_load %arg20[%c144, %c0_66] {strides = array<i32: 2, 1>} : memref<288x32xf32, #tpu.memory_space<vmem>>, vector<5x32xf32>
    %c145 = arith.constant 145 : index
    %c0_67 = arith.constant 0 : index
    %99 = tpu.strided_load %arg20[%c145, %c0_67] {strides = array<i32: 2, 1>} : memref<288x32xf32, #tpu.memory_space<vmem>>, vector<5x32xf32>
    %c156 = arith.constant 156 : index
    %c0_68 = arith.constant 0 : index
    %100 = tpu.strided_load %arg20[%c156, %c0_68] {strides = array<i32: 2, 1>} : memref<288x32xf32, #tpu.memory_space<vmem>>, vector<5x32xf32>
    %c157 = arith.constant 157 : index
    %c0_69 = arith.constant 0 : index
    %101 = tpu.strided_load %arg20[%c157, %c0_69] {strides = array<i32: 2, 1>} : memref<288x32xf32, #tpu.memory_space<vmem>>, vector<5x32xf32>
    %102 = arith.maximumf %98, %99 : vector<5x32xf32>
    %103 = arith.maximumf %100, %101 : vector<5x32xf32>
    %104 = arith.maximumf %102, %103 : vector<5x32xf32>
    %c101 = arith.constant 101 : index
    %c0_70 = arith.constant 0 : index
    %105 = vector.load %arg21[%c101, %c0_70] : memref<186x32xf32, #tpu.memory_space<vmem>>, vector<5x32xf32>
    tpu.vector_store %arg21[%c101, %c0_70], %104 {strides = array<i32>} : memref<186x32xf32, #tpu.memory_space<vmem>>, vector<5x32xf32>,
    %c168 = arith.constant 168 : index
    %c0_71 = arith.constant 0 : index
    %106 = tpu.strided_load %arg20[%c168, %c0_71] {strides = array<i32: 2, 1>} : memref<288x32xf32, #tpu.memory_space<vmem>>, vector<5x32xf32>
    %c169 = arith.constant 169 : index
    %c0_72 = arith.constant 0 : index
    %107 = tpu.strided_load %arg20[%c169, %c0_72] {strides = array<i32: 2, 1>} : memref<288x32xf32, #tpu.memory_space<vmem>>, vector<5x32xf32>
    %c180 = arith.constant 180 : index
    %c0_73 = arith.constant 0 : index
    %108 = tpu.strided_load %arg20[%c180, %c0_73] {strides = array<i32: 2, 1>} : memref<288x32xf32, #tpu.memory_space<vmem>>, vector<5x32xf32>
    %c181 = arith.constant 181 : index
    %c0_74 = arith.constant 0 : index
    %109 = tpu.strided_load %arg20[%c181, %c0_74] {strides = array<i32: 2, 1>} : memref<288x32xf32, #tpu.memory_space<vmem>>, vector<5x32xf32>
    %110 = arith.maximumf %106, %107 : vector<5x32xf32>
    %111 = arith.maximumf %108, %109 : vector<5x32xf32>
    %112 = arith.maximumf %110, %111 : vector<5x32xf32>
    %c110 = arith.constant 110 : index
    %c0_75 = arith.constant 0 : index
    %113 = vector.load %arg21[%c110, %c0_75] : memref<186x32xf32, #tpu.memory_space<vmem>>, vector<5x32xf32>
    tpu.vector_store %arg21[%c110, %c0_75], %112 {strides = array<i32>} : memref<186x32xf32, #tpu.memory_space<vmem>>, vector<5x32xf32>,
    %c192 = arith.constant 192 : index
    %c0_76 = arith.constant 0 : index
    %114 = tpu.strided_load %arg20[%c192, %c0_76] {strides = array<i32: 2, 1>} : memref<288x32xf32, #tpu.memory_space<vmem>>, vector<5x32xf32>
    %c193 = arith.constant 193 : index
    %c0_77 = arith.constant 0 : index
    %115 = tpu.strided_load %arg20[%c193, %c0_77] {strides = array<i32: 2, 1>} : memref<288x32xf32, #tpu.memory_space<vmem>>, vector<5x32xf32>
    %c204 = arith.constant 204 : index
    %c0_78 = arith.constant 0 : index
    %116 = tpu.strided_load %arg20[%c204, %c0_78] {strides = array<i32: 2, 1>} : memref<288x32xf32, #tpu.memory_space<vmem>>, vector<5x32xf32>
    %c205 = arith.constant 205 : index
    %c0_79 = arith.constant 0 : index
    %117 = tpu.strided_load %arg20[%c205, %c0_79] {strides = array<i32: 2, 1>} : memref<288x32xf32, #tpu.memory_space<vmem>>, vector<5x32xf32>
    %118 = arith.maximumf %114, %115 : vector<5x32xf32>
    %119 = arith.maximumf %116, %117 : vector<5x32xf32>
    %120 = arith.maximumf %118, %119 : vector<5x32xf32>
    %c119 = arith.constant 119 : index
    %c0_80 = arith.constant 0 : index
    %121 = vector.load %arg21[%c119, %c0_80] : memref<186x32xf32, #tpu.memory_space<vmem>>, vector<5x32xf32>
    tpu.vector_store %arg21[%c119, %c0_80], %120 {strides = array<i32>} : memref<186x32xf32, #tpu.memory_space<vmem>>, vector<5x32xf32>,
    %c216 = arith.constant 216 : index
    %c0_81 = arith.constant 0 : index
    %122 = tpu.strided_load %arg20[%c216, %c0_81] {strides = array<i32: 2, 1>} : memref<288x32xf32, #tpu.memory_space<vmem>>, vector<5x32xf32>
    %c217 = arith.constant 217 : index
    %c0_82 = arith.constant 0 : index
    %123 = tpu.strided_load %arg20[%c217, %c0_82] {strides = array<i32: 2, 1>} : memref<288x32xf32, #tpu.memory_space<vmem>>, vector<5x32xf32>
    %c228 = arith.constant 228 : index
    %c0_83 = arith.constant 0 : index
    %124 = tpu.strided_load %arg20[%c228, %c0_83] {strides = array<i32: 2, 1>} : memref<288x32xf32, #tpu.memory_space<vmem>>, vector<5x32xf32>
    %c229 = arith.constant 229 : index
    %c0_84 = arith.constant 0 : index
    %125 = tpu.strided_load %arg20[%c229, %c0_84] {strides = array<i32: 2, 1>} : memref<288x32xf32, #tpu.memory_space<vmem>>, vector<5x32xf32>
    %126 = arith.maximumf %122, %123 : vector<5x32xf32>
    %127 = arith.maximumf %124, %125 : vector<5x32xf32>
    %128 = arith.maximumf %126, %127 : vector<5x32xf32>
    %c128 = arith.constant 128 : index
    %c0_85 = arith.constant 0 : index
    %129 = vector.load %arg21[%c128, %c0_85] : memref<186x32xf32, #tpu.memory_space<vmem>>, vector<5x32xf32>
    tpu.vector_store %arg21[%c128, %c0_85], %128 {strides = array<i32>} : memref<186x32xf32, #tpu.memory_space<vmem>>, vector<5x32xf32>,
    %c240 = arith.constant 240 : index
    %c0_86 = arith.constant 0 : index
    %130 = tpu.strided_load %arg20[%c240, %c0_86] {strides = array<i32: 2, 1>} : memref<288x32xf32, #tpu.memory_space<vmem>>, vector<5x32xf32>
    %c241 = arith.constant 241 : index
    %c0_87 = arith.constant 0 : index
    %131 = tpu.strided_load %arg20[%c241, %c0_87] {strides = array<i32: 2, 1>} : memref<288x32xf32, #tpu.memory_space<vmem>>, vector<5x32xf32>
    %c252 = arith.constant 252 : index
    %c0_88 = arith.constant 0 : index
    %132 = tpu.strided_load %arg20[%c252, %c0_88] {strides = array<i32: 2, 1>} : memref<288x32xf32, #tpu.memory_space<vmem>>, vector<5x32xf32>
    %c253 = arith.constant 253 : index
    %c0_89 = arith.constant 0 : index
    %133 = tpu.strided_load %arg20[%c253, %c0_89] {strides = array<i32: 2, 1>} : memref<288x32xf32, #tpu.memory_space<vmem>>, vector<5x32xf32>
    %134 = arith.maximumf %130, %131 : vector<5x32xf32>
    %135 = arith.maximumf %132, %133 : vector<5x32xf32>
    %136 = arith.maximumf %134, %135 : vector<5x32xf32>
    %c137 = arith.constant 137 : index
    %c0_90 = arith.constant 0 : index
    %137 = vector.load %arg21[%c137, %c0_90] : memref<186x32xf32, #tpu.memory_space<vmem>>, vector<5x32xf32>
    tpu.vector_store %arg21[%c137, %c0_90], %136 {strides = array<i32>} : memref<186x32xf32, #tpu.memory_space<vmem>>, vector<5x32xf32>,
    %cst_91 = arith.constant 0.000000e+00 : f32
    %138 = vector.broadcast %cst_91 : f32 to vector<162x64xf32>
    %c0_92 = arith.constant 0 : index
    %c0_93 = arith.constant 0 : index
    %139 = vector.load %arg21[%c0_92, %c0_93] : memref<186x32xf32, #tpu.memory_space<vmem>>, vector<162x32xf32>
    %c0_94 = arith.constant 0 : index
    %c0_95 = arith.constant 0 : index
    %140 = vector.load %arg4[%c0_94, %c0_95] : memref<288x64xf32, #tpu.memory_space<vmem>>, vector<32x64xf32>
    %cst_96 = arith.constant dense<0.000000e+00> : vector<162x64xf32>
    %141 = tpu.matmul %139, %140, %cst_96 {dimension_numbers = #tpu.dot_dimension_numbers<[1], [0], [0], [1], [0, 0, 1, 1], [], []>} : vector<162x32xf32>, vector<32x64xf32>, vector<162x64xf32> -> vector<162x64xf32>
    %142 = arith.addf %138, %141 : vector<162x64xf32>
    %c1_97 = arith.constant 1 : index
    %c0_98 = arith.constant 0 : index
    %143 = vector.load %arg21[%c1_97, %c0_98] : memref<186x32xf32, #tpu.memory_space<vmem>>, vector<162x32xf32>
    %c32 = arith.constant 32 : index
    %c0_99 = arith.constant 0 : index
    %144 = vector.load %arg4[%c32, %c0_99] : memref<288x64xf32, #tpu.memory_space<vmem>>, vector<32x64xf32>
    %cst_100 = arith.constant dense<0.000000e+00> : vector<162x64xf32>
    %145 = tpu.matmul %143, %144, %cst_100 {dimension_numbers = #tpu.dot_dimension_numbers<[1], [0], [0], [1], [0, 0, 1, 1], [], []>} : vector<162x32xf32>, vector<32x64xf32>, vector<162x64xf32> -> vector<162x64xf32>
    %146 = arith.addf %142, %145 : vector<162x64xf32>
    %c2_101 = arith.constant 2 : index
    %c0_102 = arith.constant 0 : index
    %147 = vector.load %arg21[%c2_101, %c0_102] : memref<186x32xf32, #tpu.memory_space<vmem>>, vector<162x32xf32>
    %c64 = arith.constant 64 : index
    %c0_103 = arith.constant 0 : index
    %148 = vector.load %arg4[%c64, %c0_103] : memref<288x64xf32, #tpu.memory_space<vmem>>, vector<32x64xf32>
    %cst_104 = arith.constant dense<0.000000e+00> : vector<162x64xf32>
    %149 = tpu.matmul %147, %148, %cst_104 {dimension_numbers = #tpu.dot_dimension_numbers<[1], [0], [0], [1], [0, 0, 1, 1], [], []>} : vector<162x32xf32>, vector<32x64xf32>, vector<162x64xf32> -> vector<162x64xf32>
    %150 = arith.addf %146, %149 : vector<162x64xf32>
    %c9 = arith.constant 9 : index
    %c0_105 = arith.constant 0 : index
    %151 = vector.load %arg21[%c9, %c0_105] : memref<186x32xf32, #tpu.memory_space<vmem>>, vector<162x32xf32>
    %c96_106 = arith.constant 96 : index
    %c0_107 = arith.constant 0 : index
    %152 = vector.load %arg4[%c96_106, %c0_107] : memref<288x64xf32, #tpu.memory_space<vmem>>, vector<32x64xf32>
    %cst_108 = arith.constant dense<0.000000e+00> : vector<162x64xf32>
    %153 = tpu.matmul %151, %152, %cst_108 {dimension_numbers = #tpu.dot_dimension_numbers<[1], [0], [0], [1], [0, 0, 1, 1], [], []>} : vector<162x32xf32>, vector<32x64xf32>, vector<162x64xf32> -> vector<162x64xf32>
    %154 = arith.addf %150, %153 : vector<162x64xf32>
    %c10 = arith.constant 10 : index
    %c0_109 = arith.constant 0 : index
    %155 = vector.load %arg21[%c10, %c0_109] : memref<186x32xf32, #tpu.memory_space<vmem>>, vector<162x32xf32>
    %c128_110 = arith.constant 128 : index
    %c0_111 = arith.constant 0 : index
    %156 = vector.load %arg4[%c128_110, %c0_111] : memref<288x64xf32, #tpu.memory_space<vmem>>, vector<32x64xf32>
    %cst_112 = arith.constant dense<0.000000e+00> : vector<162x64xf32>
    %157 = tpu.matmul %155, %156, %cst_112 {dimension_numbers = #tpu.dot_dimension_numbers<[1], [0], [0], [1], [0, 0, 1, 1], [], []>} : vector<162x32xf32>, vector<32x64xf32>, vector<162x64xf32> -> vector<162x64xf32>
    %158 = arith.addf %154, %157 : vector<162x64xf32>
    %c11 = arith.constant 11 : index
    %c0_113 = arith.constant 0 : index
    %159 = vector.load %arg21[%c11, %c0_113] : memref<186x32xf32, #tpu.memory_space<vmem>>, vector<162x32xf32>
    %c160 = arith.constant 160 : index
    %c0_114 = arith.constant 0 : index
    %160 = vector.load %arg4[%c160, %c0_114] : memref<288x64xf32, #tpu.memory_space<vmem>>, vector<32x64xf32>
    %cst_115 = arith.constant dense<0.000000e+00> : vector<162x64xf32>
    %161 = tpu.matmul %159, %160, %cst_115 {dimension_numbers = #tpu.dot_dimension_numbers<[1], [0], [0], [1], [0, 0, 1, 1], [], []>} : vector<162x32xf32>, vector<32x64xf32>, vector<162x64xf32> -> vector<162x64xf32>
    %162 = arith.addf %158, %161 : vector<162x64xf32>
    %c18 = arith.constant 18 : index
    %c0_116 = arith.constant 0 : index
    %163 = vector.load %arg21[%c18, %c0_116] : memref<186x32xf32, #tpu.memory_space<vmem>>, vector<162x32xf32>
    %c192_117 = arith.constant 192 : index
    %c0_118 = arith.constant 0 : index
    %164 = vector.load %arg4[%c192_117, %c0_118] : memref<288x64xf32, #tpu.memory_space<vmem>>, vector<32x64xf32>
    %cst_119 = arith.constant dense<0.000000e+00> : vector<162x64xf32>
    %165 = tpu.matmul %163, %164, %cst_119 {dimension_numbers = #tpu.dot_dimension_numbers<[1], [0], [0], [1], [0, 0, 1, 1], [], []>} : vector<162x32xf32>, vector<32x64xf32>, vector<162x64xf32> -> vector<162x64xf32>
    %166 = arith.addf %162, %165 : vector<162x64xf32>
    %c19 = arith.constant 19 : index
    %c0_120 = arith.constant 0 : index
    %167 = vector.load %arg21[%c19, %c0_120] : memref<186x32xf32, #tpu.memory_space<vmem>>, vector<162x32xf32>
    %c224 = arith.constant 224 : index
    %c0_121 = arith.constant 0 : index
    %168 = vector.load %arg4[%c224, %c0_121] : memref<288x64xf32, #tpu.memory_space<vmem>>, vector<32x64xf32>
    %cst_122 = arith.constant dense<0.000000e+00> : vector<162x64xf32>
    %169 = tpu.matmul %167, %168, %cst_122 {dimension_numbers = #tpu.dot_dimension_numbers<[1], [0], [0], [1], [0, 0, 1, 1], [], []>} : vector<162x32xf32>, vector<32x64xf32>, vector<162x64xf32> -> vector<162x64xf32>
    %170 = arith.addf %166, %169 : vector<162x64xf32>
    %c20_123 = arith.constant 20 : index
    %c0_124 = arith.constant 0 : index
    %171 = vector.load %arg21[%c20_123, %c0_124] : memref<186x32xf32, #tpu.memory_space<vmem>>, vector<162x32xf32>
    %c256 = arith.constant 256 : index
    %c0_125 = arith.constant 0 : index
    %172 = vector.load %arg4[%c256, %c0_125] : memref<288x64xf32, #tpu.memory_space<vmem>>, vector<32x64xf32>
    %cst_126 = arith.constant dense<0.000000e+00> : vector<162x64xf32>
    %173 = tpu.matmul %171, %172, %cst_126 {dimension_numbers = #tpu.dot_dimension_numbers<[1], [0], [0], [1], [0, 0, 1, 1], [], []>} : vector<162x32xf32>, vector<32x64xf32>, vector<162x64xf32> -> vector<162x64xf32>
    %174 = arith.addf %170, %173 : vector<162x64xf32>
    %c0_127 = arith.constant 0 : index
    %c0_128 = arith.constant 0 : index
    %175 = vector.load %arg5[%c0_127, %c0_128] : memref<1x64xf32, #tpu.memory_space<vmem>>, vector<1x64xf32>
    %176 = vector.broadcast %175 : vector<1x64xf32> to vector<162x64xf32>
    %177 = arith.addf %174, %176 : vector<162x64xf32>
    %cst_129 = arith.constant 0.000000e+00 : f32
    %178 = vector.broadcast %cst_129 : f32 to vector<162x64xf32>
    %179 = arith.maximumf %177, %178 : vector<162x64xf32>
    %c0_130 = arith.constant 0 : index
    %c0_131 = arith.constant 0 : index
    %180 = vector.load %arg22[%c0_130, %c0_131] : memref<162x64xf32, #tpu.memory_space<vmem>>, vector<162x64xf32>
    tpu.vector_store %arg22[%c0_130, %c0_131], %179 {strides = array<i32>} : memref<162x64xf32, #tpu.memory_space<vmem>>, vector<162x64xf32>,
    %c0_132 = arith.constant 0 : index
    %c0_133 = arith.constant 0 : index
    %181 = tpu.strided_load %arg22[%c0_132, %c0_133] {strides = array<i32: 2, 1>} : memref<162x64xf32, #tpu.memory_space<vmem>>, vector<3x64xf32>
    %c1_134 = arith.constant 1 : index
    %c0_135 = arith.constant 0 : index
    %182 = tpu.strided_load %arg22[%c1_134, %c0_135] {strides = array<i32: 2, 1>} : memref<162x64xf32, #tpu.memory_space<vmem>>, vector<3x64xf32>
    %c9_136 = arith.constant 9 : index
    %c0_137 = arith.constant 0 : index
    %183 = tpu.strided_load %arg22[%c9_136, %c0_137] {strides = array<i32: 2, 1>} : memref<162x64xf32, #tpu.memory_space<vmem>>, vector<3x64xf32>
    %c10_138 = arith.constant 10 : index
    %c0_139 = arith.constant 0 : index
    %184 = tpu.strided_load %arg22[%c10_138, %c0_139] {strides = array<i32: 2, 1>} : memref<162x64xf32, #tpu.memory_space<vmem>>, vector<3x64xf32>
    %185 = arith.maximumf %181, %182 : vector<3x64xf32>
    %186 = arith.maximumf %183, %184 : vector<3x64xf32>
    %187 = arith.maximumf %185, %186 : vector<3x64xf32>
    %c16 = arith.constant 16 : index
    %c0_140 = arith.constant 0 : index
    %188 = vector.load %arg23[%c16, %c0_140] : memref<114x64xf32, #tpu.memory_space<vmem>>, vector<3x64xf32>
    tpu.vector_store %arg23[%c16, %c0_140], %187 {strides = array<i32>} : memref<114x64xf32, #tpu.memory_space<vmem>>, vector<3x64xf32>,
    %c18_141 = arith.constant 18 : index
    %c0_142 = arith.constant 0 : index
    %189 = tpu.strided_load %arg22[%c18_141, %c0_142] {strides = array<i32: 2, 1>} : memref<162x64xf32, #tpu.memory_space<vmem>>, vector<3x64xf32>
    %c19_143 = arith.constant 19 : index
    %c0_144 = arith.constant 0 : index
    %190 = tpu.strided_load %arg22[%c19_143, %c0_144] {strides = array<i32: 2, 1>} : memref<162x64xf32, #tpu.memory_space<vmem>>, vector<3x64xf32>
    %c27 = arith.constant 27 : index
    %c0_145 = arith.constant 0 : index
    %191 = tpu.strided_load %arg22[%c27, %c0_145] {strides = array<i32: 2, 1>} : memref<162x64xf32, #tpu.memory_space<vmem>>, vector<3x64xf32>
    %c28 = arith.constant 28 : index
    %c0_146 = arith.constant 0 : index
    %192 = tpu.strided_load %arg22[%c28, %c0_146] {strides = array<i32: 2, 1>} : memref<162x64xf32, #tpu.memory_space<vmem>>, vector<3x64xf32>
    %193 = arith.maximumf %189, %190 : vector<3x64xf32>
    %194 = arith.maximumf %191, %192 : vector<3x64xf32>
    %195 = arith.maximumf %193, %194 : vector<3x64xf32>
    %c23 = arith.constant 23 : index
    %c0_147 = arith.constant 0 : index
    %196 = vector.load %arg23[%c23, %c0_147] : memref<114x64xf32, #tpu.memory_space<vmem>>, vector<3x64xf32>
    tpu.vector_store %arg23[%c23, %c0_147], %195 {strides = array<i32>} : memref<114x64xf32, #tpu.memory_space<vmem>>, vector<3x64xf32>,
    %c36_148 = arith.constant 36 : index
    %c0_149 = arith.constant 0 : index
    %197 = tpu.strided_load %arg22[%c36_148, %c0_149] {strides = array<i32: 2, 1>} : memref<162x64xf32, #tpu.memory_space<vmem>>, vector<3x64xf32>
    %c37_150 = arith.constant 37 : index
    %c0_151 = arith.constant 0 : index
    %198 = tpu.strided_load %arg22[%c37_150, %c0_151] {strides = array<i32: 2, 1>} : memref<162x64xf32, #tpu.memory_space<vmem>>, vector<3x64xf32>
    %c45 = arith.constant 45 : index
    %c0_152 = arith.constant 0 : index
    %199 = tpu.strided_load %arg22[%c45, %c0_152] {strides = array<i32: 2, 1>} : memref<162x64xf32, #tpu.memory_space<vmem>>, vector<3x64xf32>
    %c46 = arith.constant 46 : index
    %c0_153 = arith.constant 0 : index
    %200 = tpu.strided_load %arg22[%c46, %c0_153] {strides = array<i32: 2, 1>} : memref<162x64xf32, #tpu.memory_space<vmem>>, vector<3x64xf32>
    %201 = arith.maximumf %197, %198 : vector<3x64xf32>
    %202 = arith.maximumf %199, %200 : vector<3x64xf32>
    %203 = arith.maximumf %201, %202 : vector<3x64xf32>
    %c30 = arith.constant 30 : index
    %c0_154 = arith.constant 0 : index
    %204 = vector.load %arg23[%c30, %c0_154] : memref<114x64xf32, #tpu.memory_space<vmem>>, vector<3x64xf32>
    tpu.vector_store %arg23[%c30, %c0_154], %203 {strides = array<i32>} : memref<114x64xf32, #tpu.memory_space<vmem>>, vector<3x64xf32>,
    %c81 = arith.constant 81 : index
    %c0_155 = arith.constant 0 : index
    %205 = tpu.strided_load %arg22[%c81, %c0_155] {strides = array<i32: 2, 1>} : memref<162x64xf32, #tpu.memory_space<vmem>>, vector<3x64xf32>
    %c82 = arith.constant 82 : index
    %c0_156 = arith.constant 0 : index
    %206 = tpu.strided_load %arg22[%c82, %c0_156] {strides = array<i32: 2, 1>} : memref<162x64xf32, #tpu.memory_space<vmem>>, vector<3x64xf32>
    %c90 = arith.constant 90 : index
    %c0_157 = arith.constant 0 : index
    %207 = tpu.strided_load %arg22[%c90, %c0_157] {strides = array<i32: 2, 1>} : memref<162x64xf32, #tpu.memory_space<vmem>>, vector<3x64xf32>
    %c91 = arith.constant 91 : index
    %c0_158 = arith.constant 0 : index
    %208 = tpu.strided_load %arg22[%c91, %c0_158] {strides = array<i32: 2, 1>} : memref<162x64xf32, #tpu.memory_space<vmem>>, vector<3x64xf32>
    %209 = arith.maximumf %205, %206 : vector<3x64xf32>
    %210 = arith.maximumf %207, %208 : vector<3x64xf32>
    %211 = arith.maximumf %209, %210 : vector<3x64xf32>
    %c65 = arith.constant 65 : index
    %c0_159 = arith.constant 0 : index
    %212 = vector.load %arg23[%c65, %c0_159] : memref<114x64xf32, #tpu.memory_space<vmem>>, vector<3x64xf32>
    tpu.vector_store %arg23[%c65, %c0_159], %211 {strides = array<i32>} : memref<114x64xf32, #tpu.memory_space<vmem>>, vector<3x64xf32>,
    %c99 = arith.constant 99 : index
    %c0_160 = arith.constant 0 : index
    %213 = tpu.strided_load %arg22[%c99, %c0_160] {strides = array<i32: 2, 1>} : memref<162x64xf32, #tpu.memory_space<vmem>>, vector<3x64xf32>
    %c100 = arith.constant 100 : index
    %c0_161 = arith.constant 0 : index
    %214 = tpu.strided_load %arg22[%c100, %c0_161] {strides = array<i32: 2, 1>} : memref<162x64xf32, #tpu.memory_space<vmem>>, vector<3x64xf32>
    %c108_162 = arith.constant 108 : index
    %c0_163 = arith.constant 0 : index
    %215 = tpu.strided_load %arg22[%c108_162, %c0_163] {strides = array<i32: 2, 1>} : memref<162x64xf32, #tpu.memory_space<vmem>>, vector<3x64xf32>
    %c109_164 = arith.constant 109 : index
    %c0_165 = arith.constant 0 : index
    %216 = tpu.strided_load %arg22[%c109_164, %c0_165] {strides = array<i32: 2, 1>} : memref<162x64xf32, #tpu.memory_space<vmem>>, vector<3x64xf32>
    %217 = arith.maximumf %213, %214 : vector<3x64xf32>
    %218 = arith.maximumf %215, %216 : vector<3x64xf32>
    %219 = arith.maximumf %217, %218 : vector<3x64xf32>
    %c72_166 = arith.constant 72 : index
    %c0_167 = arith.constant 0 : index
    %220 = vector.load %arg23[%c72_166, %c0_167] : memref<114x64xf32, #tpu.memory_space<vmem>>, vector<3x64xf32>
    tpu.vector_store %arg23[%c72_166, %c0_167], %219 {strides = array<i32>} : memref<114x64xf32, #tpu.memory_space<vmem>>, vector<3x64xf32>,
    %c117 = arith.constant 117 : index
    %c0_168 = arith.constant 0 : index
    %221 = tpu.strided_load %arg22[%c117, %c0_168] {strides = array<i32: 2, 1>} : memref<162x64xf32, #tpu.memory_space<vmem>>, vector<3x64xf32>
    %c118 = arith.constant 118 : index
    %c0_169 = arith.constant 0 : index
    %222 = tpu.strided_load %arg22[%c118, %c0_169] {strides = array<i32: 2, 1>} : memref<162x64xf32, #tpu.memory_space<vmem>>, vector<3x64xf32>
    %c126 = arith.constant 126 : index
    %c0_170 = arith.constant 0 : index
    %223 = tpu.strided_load %arg22[%c126, %c0_170] {strides = array<i32: 2, 1>} : memref<162x64xf32, #tpu.memory_space<vmem>>, vector<3x64xf32>
    %c127 = arith.constant 127 : index
    %c0_171 = arith.constant 0 : index
    %224 = tpu.strided_load %arg22[%c127, %c0_171] {strides = array<i32: 2, 1>} : memref<162x64xf32, #tpu.memory_space<vmem>>, vector<3x64xf32>
    %225 = arith.maximumf %221, %222 : vector<3x64xf32>
    %226 = arith.maximumf %223, %224 : vector<3x64xf32>
    %227 = arith.maximumf %225, %226 : vector<3x64xf32>
    %c79 = arith.constant 79 : index
    %c0_172 = arith.constant 0 : index
    %228 = vector.load %arg23[%c79, %c0_172] : memref<114x64xf32, #tpu.memory_space<vmem>>, vector<3x64xf32>
    tpu.vector_store %arg23[%c79, %c0_172], %227 {strides = array<i32>} : memref<114x64xf32, #tpu.memory_space<vmem>>, vector<3x64xf32>,
    %cst_173 = arith.constant 0.000000e+00 : f32
    %229 = vector.broadcast %cst_173 : f32 to vector<98x128xf32>
    %c0_174 = arith.constant 0 : index
    %c0_175 = arith.constant 0 : index
    %230 = vector.load %arg23[%c0_174, %c0_175] : memref<114x64xf32, #tpu.memory_space<vmem>>, vector<98x64xf32>
    %c0_176 = arith.constant 0 : index
    %c0_177 = arith.constant 0 : index
    %231 = vector.load %arg6[%c0_176, %c0_177] : memref<576x128xf32, #tpu.memory_space<vmem>>, vector<64x128xf32>
    %cst_178 = arith.constant dense<0.000000e+00> : vector<98x128xf32>
    %232 = tpu.matmul %230, %231, %cst_178 {dimension_numbers = #tpu.dot_dimension_numbers<[1], [0], [0], [1], [0, 0, 1, 1], [], []>} : vector<98x64xf32>, vector<64x128xf32>, vector<98x128xf32> -> vector<98x128xf32>
    %233 = arith.addf %229, %232 : vector<98x128xf32>
    %c1_179 = arith.constant 1 : index
    %c0_180 = arith.constant 0 : index
    %234 = vector.load %arg23[%c1_179, %c0_180] : memref<114x64xf32, #tpu.memory_space<vmem>>, vector<98x64xf32>
    %c64_181 = arith.constant 64 : index
    %c0_182 = arith.constant 0 : index
    %235 = vector.load %arg6[%c64_181, %c0_182] : memref<576x128xf32, #tpu.memory_space<vmem>>, vector<64x128xf32>
    %cst_183 = arith.constant dense<0.000000e+00> : vector<98x128xf32>
    %236 = tpu.matmul %234, %235, %cst_183 {dimension_numbers = #tpu.dot_dimension_numbers<[1], [0], [0], [1], [0, 0, 1, 1], [], []>} : vector<98x64xf32>, vector<64x128xf32>, vector<98x128xf32> -> vector<98x128xf32>
    %237 = arith.addf %233, %236 : vector<98x128xf32>
    %c2_184 = arith.constant 2 : index
    %c0_185 = arith.constant 0 : index
    %238 = vector.load %arg23[%c2_184, %c0_185] : memref<114x64xf32, #tpu.memory_space<vmem>>, vector<98x64xf32>
    %c128_186 = arith.constant 128 : index
    %c0_187 = arith.constant 0 : index
    %239 = vector.load %arg6[%c128_186, %c0_187] : memref<576x128xf32, #tpu.memory_space<vmem>>, vector<64x128xf32>
    %cst_188 = arith.constant dense<0.000000e+00> : vector<98x128xf32>
    %240 = tpu.matmul %238, %239, %cst_188 {dimension_numbers = #tpu.dot_dimension_numbers<[1], [0], [0], [1], [0, 0, 1, 1], [], []>} : vector<98x64xf32>, vector<64x128xf32>, vector<98x128xf32> -> vector<98x128xf32>
    %241 = arith.addf %237, %240 : vector<98x128xf32>
    %c7_189 = arith.constant 7 : index
    %c0_190 = arith.constant 0 : index
    %242 = vector.load %arg23[%c7_189, %c0_190] : memref<114x64xf32, #tpu.memory_space<vmem>>, vector<98x64xf32>
    %c192_191 = arith.constant 192 : index
    %c0_192 = arith.constant 0 : index
    %243 = vector.load %arg6[%c192_191, %c0_192] : memref<576x128xf32, #tpu.memory_space<vmem>>, vector<64x128xf32>
    %cst_193 = arith.constant dense<0.000000e+00> : vector<98x128xf32>
    %244 = tpu.matmul %242, %243, %cst_193 {dimension_numbers = #tpu.dot_dimension_numbers<[1], [0], [0], [1], [0, 0, 1, 1], [], []>} : vector<98x64xf32>, vector<64x128xf32>, vector<98x128xf32> -> vector<98x128xf32>
    %245 = arith.addf %241, %244 : vector<98x128xf32>
    %c8_194 = arith.constant 8 : index
    %c0_195 = arith.constant 0 : index
    %246 = vector.load %arg23[%c8_194, %c0_195] : memref<114x64xf32, #tpu.memory_space<vmem>>, vector<98x64xf32>
    %c256_196 = arith.constant 256 : index
    %c0_197 = arith.constant 0 : index
    %247 = vector.load %arg6[%c256_196, %c0_197] : memref<576x128xf32, #tpu.memory_space<vmem>>, vector<64x128xf32>
    %cst_198 = arith.constant dense<0.000000e+00> : vector<98x128xf32>
    %248 = tpu.matmul %246, %247, %cst_198 {dimension_numbers = #tpu.dot_dimension_numbers<[1], [0], [0], [1], [0, 0, 1, 1], [], []>} : vector<98x64xf32>, vector<64x128xf32>, vector<98x128xf32> -> vector<98x128xf32>
    %249 = arith.addf %245, %248 : vector<98x128xf32>
    %c9_199 = arith.constant 9 : index
    %c0_200 = arith.constant 0 : index
    %250 = vector.load %arg23[%c9_199, %c0_200] : memref<114x64xf32, #tpu.memory_space<vmem>>, vector<98x64xf32>
    %c320 = arith.constant 320 : index
    %c0_201 = arith.constant 0 : index
    %251 = vector.load %arg6[%c320, %c0_201] : memref<576x128xf32, #tpu.memory_space<vmem>>, vector<64x128xf32>
    %cst_202 = arith.constant dense<0.000000e+00> : vector<98x128xf32>
    %252 = tpu.matmul %250, %251, %cst_202 {dimension_numbers = #tpu.dot_dimension_numbers<[1], [0], [0], [1], [0, 0, 1, 1], [], []>} : vector<98x64xf32>, vector<64x128xf32>, vector<98x128xf32> -> vector<98x128xf32>
    %253 = arith.addf %249, %252 : vector<98x128xf32>
    %c14_203 = arith.constant 14 : index
    %c0_204 = arith.constant 0 : index
    %254 = vector.load %arg23[%c14_203, %c0_204] : memref<114x64xf32, #tpu.memory_space<vmem>>, vector<98x64xf32>
    %c384 = arith.constant 384 : index
    %c0_205 = arith.constant 0 : index
    %255 = vector.load %arg6[%c384, %c0_205] : memref<576x128xf32, #tpu.memory_space<vmem>>, vector<64x128xf32>
    %cst_206 = arith.constant dense<0.000000e+00> : vector<98x128xf32>
    %256 = tpu.matmul %254, %255, %cst_206 {dimension_numbers = #tpu.dot_dimension_numbers<[1], [0], [0], [1], [0, 0, 1, 1], [], []>} : vector<98x64xf32>, vector<64x128xf32>, vector<98x128xf32> -> vector<98x128xf32>
    %257 = arith.addf %253, %256 : vector<98x128xf32>
    %c15 = arith.constant 15 : index
    %c0_207 = arith.constant 0 : index
    %258 = vector.load %arg23[%c15, %c0_207] : memref<114x64xf32, #tpu.memory_space<vmem>>, vector<98x64xf32>
    %c448 = arith.constant 448 : index
    %c0_208 = arith.constant 0 : index
    %259 = vector.load %arg6[%c448, %c0_208] : memref<576x128xf32, #tpu.memory_space<vmem>>, vector<64x128xf32>
    %cst_209 = arith.constant dense<0.000000e+00> : vector<98x128xf32>
    %260 = tpu.matmul %258, %259, %cst_209 {dimension_numbers = #tpu.dot_dimension_numbers<[1], [0], [0], [1], [0, 0, 1, 1], [], []>} : vector<98x64xf32>, vector<64x128xf32>, vector<98x128xf32> -> vector<98x128xf32>
    %261 = arith.addf %257, %260 : vector<98x128xf32>
    %c16_210 = arith.constant 16 : index
    %c0_211 = arith.constant 0 : index
    %262 = vector.load %arg23[%c16_210, %c0_211] : memref<114x64xf32, #tpu.memory_space<vmem>>, vector<98x64xf32>
    %c512 = arith.constant 512 : index
    %c0_212 = arith.constant 0 : index
    %263 = vector.load %arg6[%c512, %c0_212] : memref<576x128xf32, #tpu.memory_space<vmem>>, vector<64x128xf32>
    %cst_213 = arith.constant dense<0.000000e+00> : vector<98x128xf32>
    %264 = tpu.matmul %262, %263, %cst_213 {dimension_numbers = #tpu.dot_dimension_numbers<[1], [0], [0], [1], [0, 0, 1, 1], [], []>} : vector<98x64xf32>, vector<64x128xf32>, vector<98x128xf32> -> vector<98x128xf32>
    %265 = arith.addf %261, %264 : vector<98x128xf32>
    %c0_214 = arith.constant 0 : index
    %c0_215 = arith.constant 0 : index
    %266 = vector.load %arg7[%c0_214, %c0_215] : memref<1x128xf32, #tpu.memory_space<vmem>>, vector<1x128xf32>
    %267 = vector.broadcast %266 : vector<1x128xf32> to vector<98x128xf32>
    %268 = arith.addf %265, %267 : vector<98x128xf32>
    %cst_216 = arith.constant 0.000000e+00 : f32
    %269 = vector.broadcast %cst_216 : f32 to vector<98x128xf32>
    %270 = arith.maximumf %268, %269 : vector<98x128xf32>
    %c0_217 = arith.constant 0 : index
    %c0_218 = arith.constant 0 : index
    %271 = vector.load %arg24[%c0_217, %c0_218] : memref<98x128xf32, #tpu.memory_space<vmem>>, vector<98x128xf32>
    tpu.vector_store %arg24[%c0_217, %c0_218], %270 {strides = array<i32>} : memref<98x128xf32, #tpu.memory_space<vmem>>, vector<98x128xf32>,
    %c0_219 = arith.constant 0 : index
    %c0_220 = arith.constant 0 : index
    %272 = vector.load %arg10[%c0_219, %c0_220] : memref<1x128xf32, #tpu.memory_space<vmem>>, vector<1x128xf32>
    %c0_221 = arith.constant 0 : index
    %c0_222 = arith.constant 0 : index
    %273 = vector.load %arg11[%c0_221, %c0_222] : memref<1x128xf32, #tpu.memory_space<vmem>>, vector<1x128xf32>
    %c0_223 = arith.constant 0 : index
    %c0_224 = arith.constant 0 : index
    %274 = tpu.strided_load %arg24[%c0_223, %c0_224] {strides = array<i32: 2, 1>} : memref<98x128xf32, #tpu.memory_space<vmem>>, vector<2x128xf32>
    %c1_225 = arith.constant 1 : index
    %c0_226 = arith.constant 0 : index
    %275 = tpu.strided_load %arg24[%c1_225, %c0_226] {strides = array<i32: 2, 1>} : memref<98x128xf32, #tpu.memory_space<vmem>>, vector<2x128xf32>
    %c7_227 = arith.constant 7 : index
    %c0_228 = arith.constant 0 : index
    %276 = tpu.strided_load %arg24[%c7_227, %c0_228] {strides = array<i32: 2, 1>} : memref<98x128xf32, #tpu.memory_space<vmem>>, vector<2x128xf32>
    %c8_229 = arith.constant 8 : index
    %c0_230 = arith.constant 0 : index
    %277 = tpu.strided_load %arg24[%c8_229, %c0_230] {strides = array<i32: 2, 1>} : memref<98x128xf32, #tpu.memory_space<vmem>>, vector<2x128xf32>
    %278 = arith.maximumf %274, %275 : vector<2x128xf32>
    %279 = arith.maximumf %276, %277 : vector<2x128xf32>
    %280 = arith.maximumf %278, %279 : vector<2x128xf32>
    %281 = vector.broadcast %272 : vector<1x128xf32> to vector<2x128xf32>
    %282 = arith.mulf %280, %281 : vector<2x128xf32>
    %283 = vector.broadcast %273 : vector<1x128xf32> to vector<2x128xf32>
    %284 = arith.addf %282, %283 : vector<2x128xf32>
    %c14_231 = arith.constant 14 : index
    %c0_232 = arith.constant 0 : index
    %285 = vector.load %arg25[%c14_231, %c0_232] : memref<88x128xf32, #tpu.memory_space<vmem>>, vector<2x128xf32>
    tpu.vector_store %arg25[%c14_231, %c0_232], %284 {strides = array<i32>} : memref<88x128xf32, #tpu.memory_space<vmem>>, vector<2x128xf32>,
    %c14_233 = arith.constant 14 : index
    %c0_234 = arith.constant 0 : index
    %286 = tpu.strided_load %arg24[%c14_233, %c0_234] {strides = array<i32: 2, 1>} : memref<98x128xf32, #tpu.memory_space<vmem>>, vector<2x128xf32>
    %c15_235 = arith.constant 15 : index
    %c0_236 = arith.constant 0 : index
    %287 = tpu.strided_load %arg24[%c15_235, %c0_236] {strides = array<i32: 2, 1>} : memref<98x128xf32, #tpu.memory_space<vmem>>, vector<2x128xf32>
    %c21 = arith.constant 21 : index
    %c0_237 = arith.constant 0 : index
    %288 = tpu.strided_load %arg24[%c21, %c0_237] {strides = array<i32: 2, 1>} : memref<98x128xf32, #tpu.memory_space<vmem>>, vector<2x128xf32>
    %c22 = arith.constant 22 : index
    %c0_238 = arith.constant 0 : index
    %289 = tpu.strided_load %arg24[%c22, %c0_238] {strides = array<i32: 2, 1>} : memref<98x128xf32, #tpu.memory_space<vmem>>, vector<2x128xf32>
    %290 = arith.maximumf %286, %287 : vector<2x128xf32>
    %291 = arith.maximumf %288, %289 : vector<2x128xf32>
    %292 = arith.maximumf %290, %291 : vector<2x128xf32>
    %293 = vector.broadcast %272 : vector<1x128xf32> to vector<2x128xf32>
    %294 = arith.mulf %292, %293 : vector<2x128xf32>
    %295 = vector.broadcast %273 : vector<1x128xf32> to vector<2x128xf32>
    %296 = arith.addf %294, %295 : vector<2x128xf32>
    %c20_239 = arith.constant 20 : index
    %c0_240 = arith.constant 0 : index
    %297 = vector.load %arg25[%c20_239, %c0_240] : memref<88x128xf32, #tpu.memory_space<vmem>>, vector<2x128xf32>
    tpu.vector_store %arg25[%c20_239, %c0_240], %296 {strides = array<i32>} : memref<88x128xf32, #tpu.memory_space<vmem>>, vector<2x128xf32>,
    %c49_241 = arith.constant 49 : index
    %c0_242 = arith.constant 0 : index
    %298 = tpu.strided_load %arg24[%c49_241, %c0_242] {strides = array<i32: 2, 1>} : memref<98x128xf32, #tpu.memory_space<vmem>>, vector<2x128xf32>
    %c50 = arith.constant 50 : index
    %c0_243 = arith.constant 0 : index
    %299 = tpu.strided_load %arg24[%c50, %c0_243] {strides = array<i32: 2, 1>} : memref<98x128xf32, #tpu.memory_space<vmem>>, vector<2x128xf32>
    %c56_244 = arith.constant 56 : index
    %c0_245 = arith.constant 0 : index
    %300 = tpu.strided_load %arg24[%c56_244, %c0_245] {strides = array<i32: 2, 1>} : memref<98x128xf32, #tpu.memory_space<vmem>>, vector<2x128xf32>
    %c57 = arith.constant 57 : index
    %c0_246 = arith.constant 0 : index
    %301 = tpu.strided_load %arg24[%c57, %c0_246] {strides = array<i32: 2, 1>} : memref<98x128xf32, #tpu.memory_space<vmem>>, vector<2x128xf32>
    %302 = arith.maximumf %298, %299 : vector<2x128xf32>
    %303 = arith.maximumf %300, %301 : vector<2x128xf32>
    %304 = arith.maximumf %302, %303 : vector<2x128xf32>
    %305 = vector.broadcast %272 : vector<1x128xf32> to vector<2x128xf32>
    %306 = arith.mulf %304, %305 : vector<2x128xf32>
    %307 = vector.broadcast %273 : vector<1x128xf32> to vector<2x128xf32>
    %308 = arith.addf %306, %307 : vector<2x128xf32>
    %c50_247 = arith.constant 50 : index
    %c0_248 = arith.constant 0 : index
    %309 = vector.load %arg25[%c50_247, %c0_248] : memref<88x128xf32, #tpu.memory_space<vmem>>, vector<2x128xf32>
    tpu.vector_store %arg25[%c50_247, %c0_248], %308 {strides = array<i32>} : memref<88x128xf32, #tpu.memory_space<vmem>>, vector<2x128xf32>,
    %c63 = arith.constant 63 : index
    %c0_249 = arith.constant 0 : index
    %310 = tpu.strided_load %arg24[%c63, %c0_249] {strides = array<i32: 2, 1>} : memref<98x128xf32, #tpu.memory_space<vmem>>, vector<2x128xf32>
    %c64_250 = arith.constant 64 : index
    %c0_251 = arith.constant 0 : index
    %311 = tpu.strided_load %arg24[%c64_250, %c0_251] {strides = array<i32: 2, 1>} : memref<98x128xf32, #tpu.memory_space<vmem>>, vector<2x128xf32>
    %c70 = arith.constant 70 : index
    %c0_252 = arith.constant 0 : index
    %312 = tpu.strided_load %arg24[%c70, %c0_252] {strides = array<i32: 2, 1>} : memref<98x128xf32, #tpu.memory_space<vmem>>, vector<2x128xf32>
    %c71 = arith.constant 71 : index
    %c0_253 = arith.constant 0 : index
    %313 = tpu.strided_load %arg24[%c71, %c0_253] {strides = array<i32: 2, 1>} : memref<98x128xf32, #tpu.memory_space<vmem>>, vector<2x128xf32>
    %314 = arith.maximumf %310, %311 : vector<2x128xf32>
    %315 = arith.maximumf %312, %313 : vector<2x128xf32>
    %316 = arith.maximumf %314, %315 : vector<2x128xf32>
    %317 = vector.broadcast %272 : vector<1x128xf32> to vector<2x128xf32>
    %318 = arith.mulf %316, %317 : vector<2x128xf32>
    %319 = vector.broadcast %273 : vector<1x128xf32> to vector<2x128xf32>
    %320 = arith.addf %318, %319 : vector<2x128xf32>
    %c56_254 = arith.constant 56 : index
    %c0_255 = arith.constant 0 : index
    %321 = vector.load %arg25[%c56_254, %c0_255] : memref<88x128xf32, #tpu.memory_space<vmem>>, vector<2x128xf32>
    tpu.vector_store %arg25[%c56_254, %c0_255], %320 {strides = array<i32>} : memref<88x128xf32, #tpu.memory_space<vmem>>, vector<2x128xf32>,
    %cst_256 = arith.constant 0.000000e+00 : f32
    %322 = vector.broadcast %cst_256 : f32 to vector<72x32xf32>
    %c0_257 = arith.constant 0 : index
    %c0_258 = arith.constant 0 : index
    %323 = vector.load %arg25[%c0_257, %c0_258] : memref<88x128xf32, #tpu.memory_space<vmem>>, vector<72x128xf32>
    %c0_259 = arith.constant 0 : index
    %c0_260 = arith.constant 0 : index
    %324 = vector.load %arg8[%c0_259, %c0_260] : memref<1152x32xf32, #tpu.memory_space<vmem>>, vector<128x32xf32>
    %cst_261 = arith.constant dense<0.000000e+00> : vector<72x32xf32>
    %325 = tpu.matmul %323, %324, %cst_261 {dimension_numbers = #tpu.dot_dimension_numbers<[1], [0], [0], [1], [0, 0, 1, 1], [], []>} : vector<72x128xf32>, vector<128x32xf32>, vector<72x32xf32> -> vector<72x32xf32>
    %326 = arith.addf %322, %325 : vector<72x32xf32>
    %c1_262 = arith.constant 1 : index
    %c0_263 = arith.constant 0 : index
    %327 = vector.load %arg25[%c1_262, %c0_263] : memref<88x128xf32, #tpu.memory_space<vmem>>, vector<72x128xf32>
    %c128_264 = arith.constant 128 : index
    %c0_265 = arith.constant 0 : index
    %328 = vector.load %arg8[%c128_264, %c0_265] : memref<1152x32xf32, #tpu.memory_space<vmem>>, vector<128x32xf32>
    %cst_266 = arith.constant dense<0.000000e+00> : vector<72x32xf32>
    %329 = tpu.matmul %327, %328, %cst_266 {dimension_numbers = #tpu.dot_dimension_numbers<[1], [0], [0], [1], [0, 0, 1, 1], [], []>} : vector<72x128xf32>, vector<128x32xf32>, vector<72x32xf32> -> vector<72x32xf32>
    %330 = arith.addf %326, %329 : vector<72x32xf32>
    %c2_267 = arith.constant 2 : index
    %c0_268 = arith.constant 0 : index
    %331 = vector.load %arg25[%c2_267, %c0_268] : memref<88x128xf32, #tpu.memory_space<vmem>>, vector<72x128xf32>
    %c256_269 = arith.constant 256 : index
    %c0_270 = arith.constant 0 : index
    %332 = vector.load %arg8[%c256_269, %c0_270] : memref<1152x32xf32, #tpu.memory_space<vmem>>, vector<128x32xf32>
    %cst_271 = arith.constant dense<0.000000e+00> : vector<72x32xf32>
    %333 = tpu.matmul %331, %332, %cst_271 {dimension_numbers = #tpu.dot_dimension_numbers<[1], [0], [0], [1], [0, 0, 1, 1], [], []>} : vector<72x128xf32>, vector<128x32xf32>, vector<72x32xf32> -> vector<72x32xf32>
    %334 = arith.addf %330, %333 : vector<72x32xf32>
    %c6_272 = arith.constant 6 : index
    %c0_273 = arith.constant 0 : index
    %335 = vector.load %arg25[%c6_272, %c0_273] : memref<88x128xf32, #tpu.memory_space<vmem>>, vector<72x128xf32>
    %c384_274 = arith.constant 384 : index
    %c0_275 = arith.constant 0 : index
    %336 = vector.load %arg8[%c384_274, %c0_275] : memref<1152x32xf32, #tpu.memory_space<vmem>>, vector<128x32xf32>
    %cst_276 = arith.constant dense<0.000000e+00> : vector<72x32xf32>
    %337 = tpu.matmul %335, %336, %cst_276 {dimension_numbers = #tpu.dot_dimension_numbers<[1], [0], [0], [1], [0, 0, 1, 1], [], []>} : vector<72x128xf32>, vector<128x32xf32>, vector<72x32xf32> -> vector<72x32xf32>
    %338 = arith.addf %334, %337 : vector<72x32xf32>
    %c7_277 = arith.constant 7 : index
    %c0_278 = arith.constant 0 : index
    %339 = vector.load %arg25[%c7_277, %c0_278] : memref<88x128xf32, #tpu.memory_space<vmem>>, vector<72x128xf32>
    %c512_279 = arith.constant 512 : index
    %c0_280 = arith.constant 0 : index
    %340 = vector.load %arg8[%c512_279, %c0_280] : memref<1152x32xf32, #tpu.memory_space<vmem>>, vector<128x32xf32>
    %cst_281 = arith.constant dense<0.000000e+00> : vector<72x32xf32>
    %341 = tpu.matmul %339, %340, %cst_281 {dimension_numbers = #tpu.dot_dimension_numbers<[1], [0], [0], [1], [0, 0, 1, 1], [], []>} : vector<72x128xf32>, vector<128x32xf32>, vector<72x32xf32> -> vector<72x32xf32>
    %342 = arith.addf %338, %341 : vector<72x32xf32>
    %c8_282 = arith.constant 8 : index
    %c0_283 = arith.constant 0 : index
    %343 = vector.load %arg25[%c8_282, %c0_283] : memref<88x128xf32, #tpu.memory_space<vmem>>, vector<72x128xf32>
    %c640 = arith.constant 640 : index
    %c0_284 = arith.constant 0 : index
    %344 = vector.load %arg8[%c640, %c0_284] : memref<1152x32xf32, #tpu.memory_space<vmem>>, vector<128x32xf32>
    %cst_285 = arith.constant dense<0.000000e+00> : vector<72x32xf32>
    %345 = tpu.matmul %343, %344, %cst_285 {dimension_numbers = #tpu.dot_dimension_numbers<[1], [0], [0], [1], [0, 0, 1, 1], [], []>} : vector<72x128xf32>, vector<128x32xf32>, vector<72x32xf32> -> vector<72x32xf32>
    %346 = arith.addf %342, %345 : vector<72x32xf32>
    %c12_286 = arith.constant 12 : index
    %c0_287 = arith.constant 0 : index
    %347 = vector.load %arg25[%c12_286, %c0_287] : memref<88x128xf32, #tpu.memory_space<vmem>>, vector<72x128xf32>
    %c768 = arith.constant 768 : index
    %c0_288 = arith.constant 0 : index
    %348 = vector.load %arg8[%c768, %c0_288] : memref<1152x32xf32, #tpu.memory_space<vmem>>, vector<128x32xf32>
    %cst_289 = arith.constant dense<0.000000e+00> : vector<72x32xf32>
    %349 = tpu.matmul %347, %348, %cst_289 {dimension_numbers = #tpu.dot_dimension_numbers<[1], [0], [0], [1], [0, 0, 1, 1], [], []>} : vector<72x128xf32>, vector<128x32xf32>, vector<72x32xf32> -> vector<72x32xf32>
    %350 = arith.addf %346, %349 : vector<72x32xf32>
    %c13_290 = arith.constant 13 : index
    %c0_291 = arith.constant 0 : index
    %351 = vector.load %arg25[%c13_290, %c0_291] : memref<88x128xf32, #tpu.memory_space<vmem>>, vector<72x128xf32>
    %c896 = arith.constant 896 : index
    %c0_292 = arith.constant 0 : index
    %352 = vector.load %arg8[%c896, %c0_292] : memref<1152x32xf32, #tpu.memory_space<vmem>>, vector<128x32xf32>
    %cst_293 = arith.constant dense<0.000000e+00> : vector<72x32xf32>
    %353 = tpu.matmul %351, %352, %cst_293 {dimension_numbers = #tpu.dot_dimension_numbers<[1], [0], [0], [1], [0, 0, 1, 1], [], []>} : vector<72x128xf32>, vector<128x32xf32>, vector<72x32xf32> -> vector<72x32xf32>
    %354 = arith.addf %350, %353 : vector<72x32xf32>
    %c14_294 = arith.constant 14 : index
    %c0_295 = arith.constant 0 : index
    %355 = vector.load %arg25[%c14_294, %c0_295] : memref<88x128xf32, #tpu.memory_space<vmem>>, vector<72x128xf32>
    %c1024 = arith.constant 1024 : index
    %c0_296 = arith.constant 0 : index
    %356 = vector.load %arg8[%c1024, %c0_296] : memref<1152x32xf32, #tpu.memory_space<vmem>>, vector<128x32xf32>
    %cst_297 = arith.constant dense<0.000000e+00> : vector<72x32xf32>
    %357 = tpu.matmul %355, %356, %cst_297 {dimension_numbers = #tpu.dot_dimension_numbers<[1], [0], [0], [1], [0, 0, 1, 1], [], []>} : vector<72x128xf32>, vector<128x32xf32>, vector<72x32xf32> -> vector<72x32xf32>
    %358 = arith.addf %354, %357 : vector<72x32xf32>
    %c0_298 = arith.constant 0 : index
    %c0_299 = arith.constant 0 : index
    %359 = vector.load %arg9[%c0_298, %c0_299] : memref<1x32xf32, #tpu.memory_space<vmem>>, vector<1x32xf32>
    %360 = vector.broadcast %359 : vector<1x32xf32> to vector<72x32xf32>
    %361 = arith.addf %358, %360 : vector<72x32xf32>
    %cst_300 = arith.constant 0.000000e+00 : f32
    %362 = vector.broadcast %cst_300 : f32 to vector<72x32xf32>
    %363 = arith.maximumf %361, %362 : vector<72x32xf32>
    %c0_301 = arith.constant 0 : index
    %c0_302 = arith.constant 0 : index
    %364 = vector.load %arg16[%c0_301, %c0_302] : memref<24x32xf32, #tpu.memory_space<vmem>>, vector<24x32xf32>
    %365 = vector.extract_strided_slice %363 {offsets = [0, 0], sizes = [24, 32], strides = [1, 1]} : vector<72x32xf32> to vector<24x32xf32>
    %366 = arith.mulf %365, %364 : vector<24x32xf32>
    %cst_303 = arith.constant dense<0.000000e+00> : vector<32xf32>
    %367 = vector.multi_reduction <add>, %366, %cst_303 [0] : vector<24x32xf32> to vector<32xf32>
    %368 = vector.shape_cast %367 : vector<32xf32> to vector<1x32xf32>
    %c0_304 = arith.constant 0 : index
    %c0_305 = arith.constant 0 : index
    %369 = vector.load %arg26[%c0_304, %c0_305] : memref<2x32xf32, #tpu.memory_space<vmem>>, vector<1x32xf32>
    tpu.vector_store %arg26[%c0_304, %c0_305], %368 {strides = array<i32>} : memref<2x32xf32, #tpu.memory_space<vmem>>, vector<1x32xf32>,
    %370 = vector.extract_strided_slice %363 {offsets = [36, 0], sizes = [24, 32], strides = [1, 1]} : vector<72x32xf32> to vector<24x32xf32>
    %371 = arith.mulf %370, %364 : vector<24x32xf32>
    %cst_306 = arith.constant dense<0.000000e+00> : vector<32xf32>
    %372 = vector.multi_reduction <add>, %371, %cst_306 [0] : vector<24x32xf32> to vector<32xf32>
    %373 = vector.shape_cast %372 : vector<32xf32> to vector<1x32xf32>
    %c1_307 = arith.constant 1 : index
    %c0_308 = arith.constant 0 : index
    %374 = vector.load %arg26[%c1_307, %c0_308] : memref<2x32xf32, #tpu.memory_space<vmem>>, vector<1x32xf32>
    tpu.vector_store %arg26[%c1_307, %c0_308], %373 {strides = array<i32>} : memref<2x32xf32, #tpu.memory_space<vmem>>, vector<1x32xf32>,
    %c0_309 = arith.constant 0 : index
    %c0_310 = arith.constant 0 : index
    %375 = vector.load %arg1[%c0_309, %c0_310] : memref<2x5xf32, #tpu.memory_space<vmem>>, vector<2x5xf32>
    %c0_311 = arith.constant 0 : index
    %c0_312 = arith.constant 0 : index
    %376 = vector.load %arg12[%c0_311, %c0_312] : memref<5x16xf32, #tpu.memory_space<vmem>>, vector<5x16xf32>
    %cst_313 = arith.constant dense<0.000000e+00> : vector<2x16xf32>
    %377 = tpu.matmul %375, %376, %cst_313 {dimension_numbers = #tpu.dot_dimension_numbers<[1], [0], [0], [1], [0, 0, 1, 1], [], []>} : vector<2x5xf32>, vector<5x16xf32>, vector<2x16xf32> -> vector<2x16xf32>
    %c0_314 = arith.constant 0 : index
    %c0_315 = arith.constant 0 : index
    %378 = vector.load %arg13[%c0_314, %c0_315] : memref<1x16xf32, #tpu.memory_space<vmem>>, vector<1x16xf32>
    %379 = vector.broadcast %378 : vector<1x16xf32> to vector<2x16xf32>
    %380 = arith.addf %377, %379 : vector<2x16xf32>
    %cst_316 = arith.constant 0.000000e+00 : f32
    %381 = vector.broadcast %cst_316 : f32 to vector<2x16xf32>
    %382 = arith.maximumf %380, %381 : vector<2x16xf32>
    %c0_317 = arith.constant 0 : index
    %c0_318 = arith.constant 0 : index
    %383 = vector.load %arg14[%c0_317, %c0_318] : memref<16x64xf32, #tpu.memory_space<vmem>>, vector<16x64xf32>
    %cst_319 = arith.constant dense<0.000000e+00> : vector<2x64xf32>
    %384 = tpu.matmul %382, %383, %cst_319 {dimension_numbers = #tpu.dot_dimension_numbers<[1], [0], [0], [1], [0, 0, 1, 1], [], []>} : vector<2x16xf32>, vector<16x64xf32>, vector<2x64xf32> -> vector<2x64xf32>
    %c0_320 = arith.constant 0 : index
    %c0_321 = arith.constant 0 : index
    %385 = vector.load %arg15[%c0_320, %c0_321] : memref<1x64xf32, #tpu.memory_space<vmem>>, vector<1x64xf32>
    %386 = vector.broadcast %385 : vector<1x64xf32> to vector<2x64xf32>
    %387 = arith.addf %384, %386 : vector<2x64xf32>
    %cst_322 = arith.constant 0.000000e+00 : f32
    %388 = vector.broadcast %cst_322 : f32 to vector<2x64xf32>
    %389 = arith.maximumf %387, %388 : vector<2x64xf32>
    %c0_323 = arith.constant 0 : index
    %c0_324 = arith.constant 0 : index
    %390 = vector.load %arg17[%c0_323, %c0_324] : memref<64x1xf32, #tpu.memory_space<vmem>>, vector<64x1xf32>
    %cst_325 = arith.constant dense<0.000000e+00> : vector<2x1xf32>
    %391 = tpu.matmul %389, %390, %cst_325 {dimension_numbers = #tpu.dot_dimension_numbers<[1], [0], [0], [1], [0, 0, 1, 1], [], []>} : vector<2x64xf32>, vector<64x1xf32>, vector<2x1xf32> -> vector<2x1xf32>
    %c0_326 = arith.constant 0 : index
    %c0_327 = arith.constant 0 : index
    %392 = vector.load %arg26[%c0_326, %c0_327] : memref<2x32xf32, #tpu.memory_space<vmem>>, vector<2x32xf32>
    %cst_328 = arith.constant dense<0.000000e+00> : vector<2xf32>
    %393 = vector.multi_reduction <add>, %392, %cst_328 [1] : vector<2x32xf32> to vector<2xf32>
    %394 = vector.shape_cast %393 : vector<2xf32> to vector<2x1xf32>
    %395 = arith.addf %394, %391 : vector<2x1xf32>
    %c0_329 = arith.constant 0 : index
    %c0_330 = arith.constant 0 : index
    %396 = vector.load %arg18[%c0_329, %c0_330] : memref<1x1xf32, #tpu.memory_space<vmem>>, vector<1x1xf32>
    %397 = vector.broadcast %396 : vector<1x1xf32> to vector<2x1xf32>
    %398 = arith.addf %395, %397 : vector<2x1xf32>
    %399 = math.tanh %398 : vector<2x1xf32>
    %c0_331 = arith.constant 0 : index
    %c0_332 = arith.constant 0 : index
    %400 = vector.load %arg19[%c0_331, %c0_332] : memref<2x1xf32, #tpu.memory_space<vmem>>, vector<2x1xf32>
    tpu.vector_store %arg19[%c0_331, %c0_332], %399 {strides = array<i32>} : memref<2x1xf32, #tpu.memory_space<vmem>>, vector<2x1xf32>,
    return
  }
}

</mosaic_0001>

<bundles_post_ra>
// kernel: veiled_chess_net_forward.1
= control target key start
LH: loop header
LB: loop body
LE: loop exit
PB: predicated region body
PF: predicated region fallthrough
CT: control target
= control target key end

     0   :  { %vm64_vm0 = vcmask 261120   ;;  %v10492_v0 = vmov 0.0|0.0   ;;  %v10493_v4 = vmov 0.0   ;;  %vm10494_vm1 = vmmov 0   ;;  %s15053_s4 = inlined_call_operand.vmem [shape: f32[288,64], index: 4, kind: input, shape index: {}]   ;;  %s15054_s0 = inlined_call_operand.vmem [shape: f32[320,32], index: 0, kind: input, shape index: {}]   ;;  %s15055_s2 = inlined_call_operand.vmem [shape: f32[9,32], index: 2, kind: input, shape index: {}]   ;;  %s15056_s3 = inlined_call_operand.vmem [shape: f32[1,32], index: 3, kind: input, shape index: {}]   ;;  %s15057_s6 = inlined_call_operand.vmem [shape: f32[576,128], index: 6, kind: input, shape index: {}]   ;;  %s15058_s5 = inlined_call_operand.vmem [shape: f32[1,64], index: 5, kind: input, shape index: {}]   ;;  %s15059_s8 = inlined_call_operand.vmem [shape: f32[1152,32], index: 8, kind: input, shape index: {}]   ;;  %s15060_s7 = inlined_call_operand.vmem [shape: f32[1,128], index: 7, kind: input, shape index: {}]   ;;  %s15061_s10 = inlined_call_operand.vmem [shape: f32[1,128], index: 10, kind: input, shape index: {}]   ;;  %s15062_s11 = inlined_call_operand.vmem [shape: f32[1,128], index: 11, kind: input, shape index: {}]   ;;  %s15063_s12 = inlined_call_operand.vmem [shape: f32[5,16], index: 12, kind: input, shape index: {}]   ;;  %s15064_s1 = inlined_call_operand.vmem [shape: f32[2,5], index: 1, kind: input, shape index: {}]   ;;  %s15065_s14 = inlined_call_operand.vmem [shape: f32[16,64], index: 14, kind: input, shape index: {}]   ;;  %s15066_s17 = inlined_call_operand.vmem [shape: f32[64,1], index: 17, kind: input, shape index: {}]   ;;  %s15067_s13 = inlined_call_operand.vmem [shape: f32[1,16], index: 13, kind: input, shape index: {}]   ;;  %s15068_s9 = inlined_call_operand.vmem [shape: f32[1,32], index: 9, kind: input, shape index: {}]   ;;  %s15069_s16 = inlined_call_operand.vmem [shape: f32[24,32], index: 16, kind: input, shape index: {}]   ;;  %s15070_s18 = inlined_call_operand.<no memory space> [shape: f32[1,1], index: 18, kind: input, shape index: {}]   ;;  %s15071_s15 = inlined_call_operand.vmem [shape: f32[1,64], index: 15, kind: input, shape index: {}]   ;;  %s15072_s19 = inlined_call_operand.vmem [shape: f32[2,1], index: 19, kind: output, shape index: {}]  }
   0x1   :  { %15077 = sst [smem:[#allocation10_spill]] %s15053_s4  ;;  %10077 = vmatprep.subr.bf16.mxu0 %v10492_v0  ;;  %10083 = vmatprep.subr.bf16.mxu1 %v10492_v0  ;;  %107 = vst [vmem:[#allocation7] sm:$0xff] %v10493_v4  ;;  %108 = vst [vmem:[#allocation7 + $0x8] sm:$0xff] %v10493_v4  ;;  %vm1161_vm2 = vcmask 258048   ;;  %vm90_vm3 = vcmask 523264   ;;  %vm105_vm4 = vcmask 517120  }
   0x2   :  { %15078 = sst [smem:[#allocation11_spill]] %s15054_s0  ;;  %s15081_s20 = sld [smem:[#allocation10_spill]]  ;;  %109 = vst [vmem:[#allocation7 + $0x10] sm:$0xff] %v10493_v4  ;;  %110 = vst [vmem:[#allocation7 + $0x18] sm:$0xff] %v10493_v4  ;;  %8389 = vmatprep.mubr.msk.f32.mxu0 %vm10494_vm1, %v10493_v4  ;;  %8460 = vmatprep.mubr.msk.f32.mxu1 %vm10494_vm1, %v10493_v4  ;;  %vm3820_vm5 = vcmask 518144   ;;  %vm7140_vm6 = vcmask 1044480  }
   0x3   :  { %15079 = sst [smem:[#allocation12_spill]] %s15055_s2  ;;  %111 = vst [vmem:[#allocation7 + $0x20] sm:$0xff] %v10493_v4  ;;  %112 = vst [vmem:[#allocation7 + $0x28] sm:$0xff] %v10493_v4  ;;  %s15082_s25 = sld [smem:[#allocation11_spill]]  ;;  %vm7136_vm7 = vcmask 39936   ;;  %vm88_vm8 = vcmask 254976  }
   0x4   :  { %15080 = sst [smem:[#allocation13_spill]] %s15056_s3  ;;  %113 = vst [vmem:[#allocation7 + $0x30] sm:$0xff] %v10493_v4  ;;  %114 = vst [vmem:[#allocation7 + $0x38] sm:$0xff] %v10493_v4  ;;  %s15083_s2 = sld [smem:[#allocation12_spill]]  ;;  %vm7224_vm9 = vcmask 130048   ;;  %vm7087_vm10 = vcmask 1043456  }
   0x5   :  { %115 = vst [vmem:[#allocation7 + $0x40] sm:$0xff] %v10493_v4  ;;  %116 = vst [vmem:[#allocation7 + $0x48] sm:$0xff] %v10493_v4  ;;  %s15084_s27 = sld [smem:[#allocation13_spill]]  ;;  %vm7082_vm11 = vcmask 253952   ;;  %vm7394_vm12 = vcmask 1024  }
   0x6   :  { %117 = vst [vmem:[#allocation7 + $0x50] sm:$0xff] %v10493_v4  ;;  %65 = vst.msk [vmem:[#allocation3] sm:$0xff] %vm64_vm0, %v10493_v4 }
   0x7   :  { %66 = vst.msk [vmem:[#allocation3 + $0x8] sm:$0xff] %vm64_vm0, %v10493_v4  ;;  %67 = vst.msk [vmem:[#allocation3 + $0x10] sm:$0xff] %vm64_vm0, %v10493_v4 }
   0x8   :  { %v1317_v1 = vld [vmem:[%s15081_s20 + $0x20] sm:$0xff]  ;;  %v1318_v2 = vld [vmem:[%s15081_s20 + $0x28] sm:$0xff]  ;;  %68 = vst.msk [vmem:[#allocation3 + $0x18] sm:$0xff] %vm64_vm0, %v10493_v4  ;;  %69 = vst.msk [vmem:[#allocation3 + $0x20] sm:$0xff] %vm64_vm0, %v10493_v4 }
   0x9   :  { %v1292_v3 = vld [vmem:[%s15081_s20] sm:$0xff]  ;;  %70 = vst.msk [vmem:[#allocation3 + $0x28] sm:$0xff] %vm64_vm0, %v10493_v4  ;;  %71 = vst.msk [vmem:[#allocation3 + $0x30] sm:$0xff] %vm64_vm0, %v10493_v4  ;;  %v10078_v5 = vpack.c.bf16 %v1318_v2, %v1317_v1  ;;  %v1293_v6 = vld [vmem:[%s15081_s20 + $0x8] sm:$0xff] }
   0xa   :  { %72 = vst.msk [vmem:[#allocation3 + $0x38] sm:$0xff] %vm64_vm0, %v10493_v4  ;;  %73 = vst.msk [vmem:[#allocation3 + $0x40] sm:$0xff] %vm64_vm0, %v10493_v4  ;;  %v1319_v7 = vld [vmem:[%s15081_s20 + $0x30] sm:$0xff]  ;;  %v1320_v8 = vld [vmem:[%s15081_s20 + $0x38] sm:$0xff]  ;;  %v10084_v9 = vpack.c.bf16 %v1293_v6, %v1292_v3 }
   0xb   :  { %74 = vst.msk [vmem:[#allocation3 + $0x48] sm:$0xff] %vm64_vm0, %v10493_v4  ;;  %75 = vst.msk [vmem:[#allocation3 + $0x50] sm:$0xff] %vm64_vm0, %v10493_v4  ;;  %v1294_v10 = vld [vmem:[%s15081_s20 + $0x10] sm:$0xff]  ;;  %v1295_v11 = vld [vmem:[%s15081_s20 + $0x18] sm:$0xff]  ;;  %10079 = vmatpush3.bf16.msra.mxu0 %v10078_v5  ;;  %v10081_v12 = vpack.c.bf16 %v1320_v8, %v1319_v7 }
   0xc   :  { %76 = vst.msk [vmem:[#allocation3 + $0x58] sm:$0xff] %vm64_vm0, %v10493_v4  ;;  %77 = vst.msk [vmem:[#allocation3 + $0x60] sm:$0xff] %vm64_vm0, %v10493_v4  ;;  %v1808_v13 = vld [vmem:[%s15081_s20 + $0x40] sm:$0xff]  ;;  %v1809_v14 = vld [vmem:[%s15081_s20 + $0x48] sm:$0xff]  ;;  %10085 = vmatpush3.bf16.msra.mxu1 %v10084_v9  ;;  %10080 = vmatprep.subr.bf16.mxu0 %v10492_v0  ;;  %v10087_v15 = vpack.c.bf16 %v1295_v11, %v1294_v10 }
   0xd   :  { %78 = vst.msk [vmem:[#allocation3 + $0x68] sm:$0xff] %vm64_vm0, %v10493_v4  ;;  %79 = vst.msk [vmem:[#allocation3 + $0x70] sm:$0xff] %vm64_vm0, %v10493_v4  ;;  %v118_v16 = vld [vmem:[%s15082_s25] sm:$0xff]  ;;  %v119_v17 = vld [vmem:[%s15082_s25 + $0x8] sm:$0xff]  ;;  %10086 = vmatprep.subr.bf16.mxu1 %v10492_v0  ;;  %v10090_v26 = vpack.c.bf16 %v1809_v14, %v1808_v13 }
   0xe   :  { %80 = vst.msk [vmem:[#allocation3 + $0x78] sm:$0xff] %vm64_vm0, %v10493_v4  ;;  %81 = vst.msk [vmem:[#allocation3 + $0x80] sm:$0xff] %vm64_vm0, %v10493_v4  ;;  %v120_v18 = vld [vmem:[%s15082_s25 + $0x10] sm:$0xff]  ;;  %v10702_v19 = vld [vmem:[%s15082_s25 + $0x18] sm:$0xff] }
   0xf   :  { %82 = vst.msk [vmem:[#allocation3 + $0x88] sm:$0xff] %vm64_vm0, %v10493_v4  ;;  %83 = vst.msk [vmem:[#allocation3 + $0x90] sm:$0xff] %vm64_vm0, %v10493_v4  ;;  %v10707_v20 = vld [vmem:[%s15082_s25 + $0x20] sm:$0xff]  ;;  %v10717_v22 = vld [vmem:[%s15082_s25 + $0x28] sm:$0xff]  ;;  %10082 = vmatpush3.bf16.msra.mxu0 %v10081_v12 }
  0x10   :  { %84 = vst.msk [vmem:[#allocation3 + $0x98] sm:$0xff] %vm64_vm0, %v10493_v4  ;;  %85 = vst.msk [vmem:[#allocation3 + $0xa0] sm:$0xff] %vm64_vm0, %v10493_v4  ;;  %v10712_v21 = vld [vmem:[%s15083_s2] ss:$0 sm:$0xff]  ;;  %v231_v23 = vld [vmem:[%s15082_s25 + $0x1] sm:$0xff]  ;;  %10088 = vmatpush3.bf16.msra.mxu1 %v10087_v15  ;;  %10089 = vmatprep.subr.bf16.mxu0 %v10492_v0 }
  0x11   :  { %86 = vst.msk [vmem:[#allocation3 + $0xa8] sm:$0xff] %vm64_vm0, %v10493_v4  ;;  %87 = vst.msk [vmem:[#allocation3 + $0xb0] sm:$0xff] %vm64_vm0, %v10493_v4  ;;  %v232_v24 = vld [vmem:[%s15082_s25 + $0x9] sm:$0xff]  ;;  %v1296_v25 = vld [vmem:[#allocation3 + $0x1] sm:$0xff]  ;;  %v159_v30 = vmul.f32 %v10712_v21, %v118_v16  ;;  %v160_v31 = vmul.f32 %v10712_v21, %v119_v17  ;;  %v161_v32 = vmul.f32 %v10712_v21, %v120_v18  ;;  %10095 = vmatprep.subr.bf16.mxu1 %v10492_v0 }
  0x12   :  { %v233_v27 = vld [vmem:[%s15082_s25 + $0x11] sm:$0xff]  ;;  %v10731_v28 = vld [vmem:[%s15082_s25 + $0x19] sm:$0xff]  ;;  %v10740_v33 = vld [vmem:[%s15082_s25 + $0x21] sm:$0xff]  ;;  %v162_v36 = vmul.f32 %v10712_v21, %v10702_v19  ;;  %v163_v37 = vmul.f32 %v10712_v21, %v10707_v20  ;;  %v164_v38 = vmul.f32 %v10712_v21, %v10717_v22  ;;  %8390 = vmatmul.mubr.msk.f32.vlgmr.msra.gmra.mrb[0].mxu0 %vm64_vm0, %v1296_v25 }
  0x13   :  { %v1271_v29 = vld [vmem:[#allocation3] sm:$0xff]  ;;  %v10745_v34 = vld [vmem:[%s15082_s25 + $0x29] sm:$0xff]  ;;  %v346_v46 = vld [vmem:[%s15082_s25 + $0x12] sm:$0xff]  ;;  %10091 = vmatpush3.bf16.msra.mxu0 %v10090_v26  ;;  %8392 = vmatprep.mubr.msk.f32.mxu0 %vm10494_vm1, %v10493_v4 }
  0x14   :  { %v1297_v35 = vld [vmem:[#allocation3 + $0x9] sm:$0xff]  ;;  %v10756_v39 = vld [vmem:[%s15083_s2 + $0x1] ss:$0 sm:$0xff]  ;;  %8461 = vmatmul.mubr.msk.f32.vlgmr.msra.gmra.mrb[0].mxu1 %vm64_vm0, %v1271_v29  ;;  %v10792_v51 = vld [vmem:[%s15083_s2 + $0x2] ss:$0 sm:$0xff]  ;;  %10092 = vmatprep.subr.bf16.mxu0 %v10492_v0 }
  0x15   :  { %v272_v40 = vmul.f32 %v10756_v39, %v231_v23  ;;  %v273_v41 = vmul.f32 %v10756_v39, %v232_v24  ;;  %v274_v42 = vmul.f32 %v10756_v39, %v233_v27  ;;  %v275_v43 = vmul.f32 %v10756_v39, %v10731_v28  ;;  %v344_v44 = vld [vmem:[%s15082_s25 + $0x2] sm:$0xff]  ;;  %v345_v45 = vld [vmem:[%s15082_s25 + $0xa] sm:$0xff]  ;;  %v10782_v49 = vld [vmem:[%s15082_s25 + $0x1a] sm:$0xff]  ;;  %8463 = vmatprep.mubr.msk.f32.mxu1 %vm10494_vm1, %v10493_v4 }
  0x16   :  { %v276_v47 = vmul.f32 %v10756_v39, %v10740_v33  ;;  %v277_v48 = vmul.f32 %v10756_v39, %v10745_v34  ;;  %v10787_v50 = vld [vmem:[%s15082_s25 + $0x22] sm:$0xff]  ;;  %v10801_v56 = vld [vmem:[%s15082_s25 + $0x2a] sm:$0xff]  ;;  %v385_v61 = vmul.f32 %v10792_v51, %v344_v44  ;;  %v458_v62 = vld [vmem:[%s15082_s25 + $0x14] sm:$0xff]  ;;  %8393 = vmatmul.mubr.msk.f32.gmra.mrb[2].mxu0 %vm64_vm0, %v1297_v35  ;;  %v386_v1 = vmul.f32 %v10792_v51, %v345_v45 }
  0x17   :  { %v1272_v52 = vld [vmem:[#allocation3 + $0x8] sm:$0xff]  ;;  %v308_v53 = vadd.f32 %v272_v40, %v159_v30  ;;  %v309_v54 = vadd.f32 %v273_v41, %v160_v31  ;;  %v310_v55 = vadd.f32 %v274_v42, %v161_v32  ;;  %v311_v58 = vadd.f32 %v275_v43, %v162_v36  ;;  %v10813_v63 = vld [vmem:[%s15083_s2 + $0x3] ss:$0 sm:$0xff]  ;;  %8395 = vmatprep.mubr.msk.f32.mxu0 %vm10494_vm1, %v10493_v4  ;;  %v462_v11 = vld [vmem:[%s15082_s25 + $0x34] sm:$0xff] }
  0x18   :  { %v457_v57 = vld [vmem:[%s15082_s25 + $0xc] sm:$0xff]  ;;  %v312_v59 = vadd.f32 %v276_v47, %v163_v37  ;;  %v313_v60 = vadd.f32 %v277_v48, %v164_v38  ;;  %v387_v2 = vmul.f32 %v10792_v51, %v346_v46  ;;  %v388_v3 = vmul.f32 %v10792_v51, %v10782_v49  ;;  %v459_v6 = vld [vmem:[%s15082_s25 + $0x1c] sm:$0xff]  ;;  %v460_v7 = vld [vmem:[%s15082_s25 + $0x24] sm:$0xff]  ;;  %8464 = vmatmul.mubr.msk.f32.gmra.mrb[2].mxu1 %vm64_vm0, %v1272_v52 }
  0x19   :  { %v389_v5 = vmul.f32 %v10792_v51, %v10787_v50  ;;  %v461_v8 = vld [vmem:[%s15082_s25 + $0x2c] sm:$0xff]  ;;  %v390_v9 = vmul.f32 %v10792_v51, %v10801_v56  ;;  %v421_v10 = vadd.f32 %v385_v61, %v308_v53  ;;  %v498_v12 = vmul.f32 %v10813_v63, %v457_v57  ;;  %v10847_v14 = vld [vmem:[%s15083_s2 + $0x4] ss:$0 sm:$0xff]  ;;  %8466 = vmatprep.mubr.msk.f32.mxu1 %vm10494_vm1, %v10493_v4  ;;  %v571_v23 = vld [vmem:[%s15082_s25 + $0x15] sm:$0xff] }
  0x1a   :  { %v570_v13 = vld [vmem:[%s15082_s25 + $0xd] sm:$0xff]  ;;  %v422_v15 = vadd.f32 %v386_v1, %v309_v54  ;;  %v423_v16 = vadd.f32 %v387_v2, %v310_v55  ;;  %v424_v17 = vadd.f32 %v388_v3, %v311_v58  ;;  %v499_v25 = vmul.f32 %v10813_v63, %v458_v62  ;;  %v572_v29 = vld [vmem:[%s15082_s25 + $0x1d] sm:$0xff]  ;;  %v10875_v40 = vld [vmem:[%s15083_s2 + $0x5] ss:$0 sm:$0xff] }
  0x1b   :  { %v425_v18 = vadd.f32 %v389_v5, %v312_v59  ;;  %v426_v24 = vadd.f32 %v390_v9, %v313_v60  ;;  %v500_v26 = vmul.f32 %v10813_v63, %v459_v6  ;;  %v501_v27 = vmul.f32 %v10813_v63, %v460_v7  ;;  %v683_v30 = vld [vmem:[%s15082_s25 + $0xe] sm:$0xff]  ;;  %v684_v37 = vld [vmem:[%s15082_s25 + $0x16] sm:$0xff]  ;;  %v685_v38 = vld [vmem:[%s15082_s25 + $0x1e] sm:$0xff] }
  0x1c   :  { %v502_v31 = vmul.f32 %v10813_v63, %v461_v8  ;;  %v503_v32 = vmul.f32 %v10813_v63, %v462_v11  ;;  %v534_v35 = vadd.f32 %v498_v12, %v421_v10  ;;  %v611_v36 = vmul.f32 %v10847_v14, %v570_v13  ;;  %v10883_v45 = vld [vmem:[%s15083_s2 + $0x6] ss:$0 sm:$0xff]  ;;  %v10893_v53 = vld [vmem:[%s15083_s2 + $0x7] ss:$0 sm:$0xff]  ;;  %v10901_v59 = vld [vmem:[%s15083_s2 + $0x8] ss:$0 sm:$0xff] }
  0x1d   :  { %v535_v41 = vadd.f32 %v499_v25, %v422_v15  ;;  %v536_v42 = vadd.f32 %v500_v26, %v423_v16  ;;  %v10877_v43 = vadd.f32 %v501_v27, %v424_v17  ;;  %v612_v44 = vmul.f32 %v10847_v14, %v571_v23  ;;  %v10912_v2 = vld [vmem:[%s15082_s25 + $0x30] sm:$0xff]  ;;  %v10942_v10 = vld [vmem:[%s15082_s25 + $0x39] sm:$0xff]  ;;  %v10947_v11 = vld [vmem:[%s15082_s25 + $0x41] sm:$0xff] }
  0x1e   :  { %v10885_v46 = vadd.f32 %v502_v31, %v425_v18  ;;  %v10887_v47 = vadd.f32 %v503_v32, %v426_v24  ;;  %v613_v48 = vmul.f32 %v10847_v14, %v572_v29  ;;  %v647_v52 = vadd.f32 %v611_v36, %v534_v35  ;;  %v10961_v15 = vld [vmem:[%s15082_s25 + $0x3a] sm:$0xff]  ;;  %v10976_v27 = vld [vmem:[%s15082_s25 + $0x42] sm:$0xff] }
  0x1f   :  { %v648_v54 = vadd.f32 %v612_v44, %v535_v41  ;;  %v724_v55 = vmul.f32 %v10875_v40, %v683_v30  ;;  %v725_v57 = vmul.f32 %v10875_v40, %v684_v37  ;;  %v726_v58 = vmul.f32 %v10875_v40, %v685_v38  ;;  %v463_v29 = vld [vmem:[%s15082_s25 + $0x3c] sm:$0xff]  ;;  %v464_v37 = vld [vmem:[%s15082_s25 + $0x44] sm:$0xff] }
  0x20   :  { %v649_v60 = vadd.f32 %v613_v48, %v536_v42  ;;  %v804_v61 = vmul.f32 %v10883_v45, %v10702_v19  ;;  %v805_v62 = vmul.f32 %v10883_v45, %v10707_v20  ;;  %v806_v1 = vmul.f32 %v10883_v45, %v10717_v22  ;;  %v10921_v19 = vld [vmem:[%s15082_s25 + $0x38] sm:$0xff]  ;;  %v10926_v20 = vld [vmem:[%s15082_s25 + $0x40] sm:$0xff]  ;;  %v465_v48 = vld [vmem:[%s15082_s25 + $0x4c] sm:$0xff] }
  0x21   :  { %v760_v3 = vadd.f32 %v724_v55, %v647_v52  ;;  %v761_v5 = vadd.f32 %v725_v57, %v648_v54  ;;  %v884_v6 = vmul.f32 %v10893_v53, %v10731_v28  ;;  %v885_v7 = vmul.f32 %v10893_v53, %v10740_v33  ;;  %v10931_v22 = vld [vmem:[%s15082_s25 + $0x31] sm:$0xff]  ;;  %v10984_v31 = vld [vmem:[%s15084_s27] ss:$0 sm:$0xff] }
  0x22   :  { %v762_v8 = vadd.f32 %v726_v58, %v649_v60  ;;  %v886_v28 = vmul.f32 %v10893_v53, %v10745_v34  ;;  %v964_v33 = vmul.f32 %v10901_v59, %v10782_v49  ;;  %v965_v9 = vmul.f32 %v10901_v59, %v10787_v50  ;;  %v10956_v50 = vld [vmem:[%s15082_s25 + $0x32] sm:$0xff]  ;;  %v573_v58 = vld [vmem:[%s15082_s25 + $0x25] sm:$0xff] }
  0x23   :  { %v840_v12 = vadd.f32 %v804_v61, %v760_v3  ;;  %v841_v13 = vadd.f32 %v805_v62, %v761_v5  ;;  %v966_v34 = vmul.f32 %v10901_v59, %v10801_v56  ;;  %v165_v49 = vmul.f32 %v10712_v21, %v10912_v2  ;;  %v574_v3 = vld [vmem:[%s15082_s25 + $0x2d] sm:$0xff]  ;;  %v575_v5 = vld [vmem:[%s15082_s25 + $0x35] sm:$0xff] }
  0x24   :  { %v842_v16 = vadd.f32 %v806_v1, %v762_v8  ;;  %v166_v17 = vmul.f32 %v10712_v21, %v10921_v19  ;;  %v167_v56 = vmul.f32 %v10712_v21, %v10926_v20  ;;  %v278_v18 = vmul.f32 %v10756_v39, %v10931_v22 }
  0x25   :  { %v920_v23 = vadd.f32 %v884_v6, %v840_v12  ;;  %v921_v24 = vadd.f32 %v885_v7, %v841_v13  ;;  %v279_v25 = vmul.f32 %v10756_v39, %v10942_v10  ;;  %v280_v26 = vmul.f32 %v10756_v39, %v10947_v11  ;;  %v688_v12 = vld [vmem:[%s15082_s25 + $0x36] sm:$0xff] }
  0x26   :  { %v922_v30 = vadd.f32 %v886_v28, %v842_v16  ;;  %v314_v32 = vadd.f32 %v278_v18, %v165_v49  ;;  %v391_v35 = vmul.f32 %v10792_v51, %v10956_v50  ;;  %v392_v36 = vmul.f32 %v10792_v51, %v10961_v15 }
  0x27   :  { %v1000_v38 = vadd.f32 %v964_v33, %v920_v23  ;;  %v1001_v41 = vadd.f32 %v965_v9, %v921_v24  ;;  %v315_v42 = vadd.f32 %v279_v25, %v166_v17  ;;  %v316_v44 = vadd.f32 %v280_v26, %v167_v56  ;;  %v686_v33 = vld [vmem:[%s15082_s25 + $0x26] sm:$0xff]  ;;  %v687_v9 = vld [vmem:[%s15082_s25 + $0x2e] sm:$0xff] }
  0x28   :  { %v1002_v52 = vadd.f32 %v966_v34, %v922_v30  ;;  %v393_v54 = vmul.f32 %v10792_v51, %v10976_v27  ;;  %v427_v55 = vadd.f32 %v391_v35, %v314_v32  ;;  %v504_v57 = vmul.f32 %v10813_v63, %v463_v29 }
  0x29   :  { %v1043_v60 = vadd.f32 %v10984_v31, %v1000_v38  ;;  %v1044_v61 = vadd.f32 %v10984_v31, %v1001_v41  ;;  %v428_v62 = vadd.f32 %v392_v36, %v315_v42  ;;  %v505_v1 = vmul.f32 %v10813_v63, %v464_v37 }
  0x2a   :  { %v1045_v6 = vadd.f32 %v10984_v31, %v1002_v52  ;;  %v429_v7 = vadd.f32 %v393_v54, %v316_v44  ;;  %v506_v8 = vmul.f32 %v10813_v63, %v465_v48  ;;  %v11013_v28 = vadd.f32 %v504_v57, %v427_v55  ;;  %v11077_v44 = vld [vmem:[%s15082_s25 + $0x51] sm:$0xff]  ;;  %v11082_v48 = vld [vmem:[%s15082_s25 + $0x59] sm:$0xff] }
  0x2b   :  { %v1079_v13 = vmax.f32 %v1043_v60, 0.0  ;;  %v1080_v34 = vmax.f32 %v1044_v61, 0.0  ;;  %v11024_v49 = vadd.f32 %v505_v1, %v428_v62  ;;  %v614_v16 = vmul.f32 %v10847_v14, %v573_v58  ;;  %v11093_v55 = vld [vmem:[%s15082_s25 + $0x4a] sm:$0xff]  ;;  %v11098_v57 = vld [vmem:[%s15082_s25 + $0x52] sm:$0xff] }
  0x2c   :  { %v1081_v17 = vmax.f32 %v1045_v6, 0.0  ;;  %v11027_v56 = vadd.f32 %v506_v8, %v429_v7  ;;  %v615_v18 = vmul.f32 %v10847_v14, %v574_v3  ;;  %v616_v23 = vmul.f32 %v10847_v14, %v575_v5  ;;  %v11113_v5 = vld [vmem:[%s15082_s25 + $0x5a] sm:$0xff] }
  0x2d   :  { %1115 = vst.msk [vmem:[#allocation2] sm:$0xff] %vm64_vm0, %v1079_v13  ;;  %1116 = vst.msk [vmem:[#allocation2 + $0x8] sm:$0xff] %vm64_vm0, %v1080_v34  ;;  %v650_v24 = vadd.f32 %v614_v16, %v10877_v43  ;;  %v727_v25 = vmul.f32 %v10875_v40, %v686_v33  ;;  %v728_v26 = vmul.f32 %v10875_v40, %v687_v9  ;;  %v11047_v43 = vld [vmem:[%s15082_s25 + $0x48] sm:$0xff]  ;;  %v466_v6 = vld [vmem:[%s15082_s25 + $0x54] sm:$0xff] }
  0x2e   :  { %v729_v29 = vmul.f32 %v10875_v40, %v688_v12  ;;  %1117 = vst.msk [vmem:[#allocation2 + $0x10] sm:$0xff] %vm64_vm0, %v1081_v17  ;;  %v651_v30 = vadd.f32 %v615_v18, %v10885_v46  ;;  %v652_v32 = vadd.f32 %v616_v23, %v10887_v47  ;;  %v807_v35 = vmul.f32 %v10883_v45, %v10912_v2  ;;  %v11058_v2 = vld [vmem:[%s15082_s25 + $0x50] sm:$0xff] }
  0x2f   :  { %v808_v36 = vmul.f32 %v10883_v45, %v10921_v19  ;;  %v763_v37 = vadd.f32 %v727_v25, %v650_v24  ;;  %v809_v38 = vmul.f32 %v10883_v45, %v10926_v20  ;;  %v887_v46 = vmul.f32 %v10893_v53, %v10931_v22  ;;  %v11063_v19 = vld [vmem:[%s15082_s25 + $0x58] sm:$0xff] }
  0x30   :  { %v888_v47 = vmul.f32 %v10893_v53, %v10942_v10  ;;  %v764_v41 = vadd.f32 %v728_v26, %v651_v30  ;;  %v765_v42 = vadd.f32 %v729_v29, %v652_v32  ;;  %v889_v20 = vmul.f32 %v10893_v53, %v10947_v11  ;;  %v11072_v10 = vld [vmem:[%s15082_s25 + $0x49] sm:$0xff]  ;;  %v467_v32 = vld [vmem:[%s15082_s25 + $0x5c] sm:$0xff] }
  0x31   :  { %v967_v22 = vmul.f32 %v10901_v59, %v10956_v50  ;;  %v843_v52 = vadd.f32 %v807_v35, %v763_v37  ;;  %v968_v11 = vmul.f32 %v10901_v59, %v10961_v15  ;;  %v969_v50 = vmul.f32 %v10901_v59, %v10976_v27  ;;  %v468_v35 = vld [vmem:[%s15082_s25 + $0x64] sm:$0xff] }
  0x32   :  { %v168_v54 = vmul.f32 %v10712_v21, %v11047_v43  ;;  %v844_v58 = vadd.f32 %v808_v36, %v764_v41  ;;  %v845_v60 = vadd.f32 %v809_v38, %v765_v42  ;;  %v169_v15 = vmul.f32 %v10712_v21, %v11058_v2 }
  0x33   :  { %v170_v27 = vmul.f32 %v10712_v21, %v11063_v19  ;;  %v923_v61 = vadd.f32 %v887_v46, %v843_v52  ;;  %v281_v62 = vmul.f32 %v10756_v39, %v11072_v10  ;;  %v282_v1 = vmul.f32 %v10756_v39, %v11077_v44  ;;  %v577_v52 = vld [vmem:[%s15082_s25 + $0x45] sm:$0xff] }
  0x34   :  { %v283_v3 = vmul.f32 %v10756_v39, %v11082_v48  ;;  %v1151_v7 = vld [vmem:[#allocation2] ss:$2 sm:$0x1f]  ;;  %v1153_v8 = vld [vmem:[#allocation2 + $0x1] ss:$2 sm:$0x1f]  ;;  %v924_v33 = vadd.f32 %v888_v47, %v844_v58  ;;  %v925_v9 = vadd.f32 %v889_v20, %v845_v60  ;;  %v394_v12 = vmul.f32 %v10792_v51, %v11093_v55 }
  0x35   :  { %v395_v13 = vmul.f32 %v10792_v51, %v11098_v57  ;;  %v1155_v34 = vld [vmem:[#allocation2 + $0xc] ss:$2 sm:$0x1f]  ;;  %v1157_v16 = vld [vmem:[#allocation2 + $0xd] ss:$2 sm:$0x1f]  ;;  %v1158_v17 = vmax.f32 %v1151_v7, %v1153_v8  ;;  %v1003_v18 = vadd.f32 %v967_v22, %v923_v61  ;;  %v317_v23 = vadd.f32 %v281_v62, %v168_v54 }
  0x36   :  { %v318_v24 = vadd.f32 %v282_v1, %v169_v15  ;;  %v1159_v25 = vmax.f32 %v1155_v34, %v1157_v16  ;;  %v1004_v26 = vadd.f32 %v968_v11, %v924_v33  ;;  %v1005_v29 = vadd.f32 %v969_v50, %v925_v9  ;;  %v576_v47 = vld [vmem:[%s15082_s25 + $0x3d] sm:$0xff]  ;;  %v578_v11 = vld [vmem:[%s15082_s25 + $0x4d] sm:$0xff] }
  0x37   :  { %v319_v30 = vadd.f32 %v283_v3, %v170_v27  ;;  %v1046_v36 = vadd.f32 %v10984_v31, %v1003_v18  ;;  %v396_v37 = vmul.f32 %v10792_v51, %v11113_v5  ;;  %v430_v38 = vadd.f32 %v394_v12, %v317_v23  ;;  %v689_v15 = vld [vmem:[%s15082_s25 + $0x3e] sm:$0xff]  ;;  %v690_v27 = vld [vmem:[%s15082_s25 + $0x46] sm:$0xff]  ;;  %v691_v61 = vld [vmem:[%s15082_s25 + $0x4e] sm:$0xff] }
  0x38   :  { %v431_v46 = vadd.f32 %v395_v13, %v318_v24  ;;  %v1160_v41 = vmax.f32 %v1158_v17, %v1159_v25  ;;  %v1047_v42 = vadd.f32 %v10984_v31, %v1004_v26  ;;  %v1048_v20 = vadd.f32 %v10984_v31, %v1005_v29 }
  0x39   :  { %v507_v22 = vmul.f32 %v10813_v63, %v466_v6  ;;  %v1082_v50 = vmax.f32 %v1046_v36, 0.0  ;;  %v432_v54 = vadd.f32 %v396_v37, %v319_v30  ;;  %v508_v58 = vmul.f32 %v10813_v63, %v467_v32  ;;  %v11210_v32 = vld [vmem:[%s15082_s25 + $0x69] sm:$0xff]  ;;  %v11221_v37 = vld [vmem:[%s15082_s25 + $0x71] sm:$0xff] }
  0x3a   :  { %v509_v60 = vmul.f32 %v10813_v63, %v468_v35  ;;  %1162 = vst.msk [vmem:[#allocation3 + $0x14] sm:$0x1f] %vm1161_vm2, %v1160_v41  ;;  %v1083_v62 = vmax.f32 %v1047_v42, 0.0  ;;  %v1084_v1 = vmax.f32 %v1048_v20, 0.0  ;;  %v617_v6 = vmul.f32 %v10847_v14, %v576_v47 }
  0x3b   :  { %v11155_v3 = vadd.f32 %v507_v22, %v430_v38  ;;  %1118 = vst.msk [vmem:[#allocation2 + $0x18] sm:$0xff] %vm64_vm0, %v1082_v50  ;;  %v11159_v7 = vadd.f32 %v508_v58, %v431_v46  ;;  %v618_v33 = vmul.f32 %v10847_v14, %v577_v52  ;;  %v619_v9 = vmul.f32 %v10847_v14, %v578_v11  ;;  %v11241_v11 = vld [vmem:[%s15082_s25 + $0x6a] sm:$0xff]  ;;  %v11246_v50 = vld [vmem:[%s15082_s25 + $0x72] sm:$0xff] }
  0x3c   :  { %v11161_v8 = vadd.f32 %v509_v60, %v432_v54  ;;  %1119 = vst.msk [vmem:[#allocation2 + $0x20] sm:$0xff] %vm64_vm0, %v1083_v62  ;;  %1120 = vst.msk [vmem:[#allocation2 + $0x28] sm:$0xff] %vm64_vm0, %v1084_v1  ;;  %v653_v12 = vadd.f32 %v617_v6, %v11013_v28  ;;  %v730_v13 = vmul.f32 %v10875_v40, %v689_v15  ;;  %v11180_v28 = vld [vmem:[%s15082_s25 + $0x60] sm:$0xff]  ;;  %v579_v54 = vld [vmem:[%s15082_s25 + $0x55] sm:$0xff] }
  0x3d   :  { %v731_v34 = vmul.f32 %v10875_v40, %v690_v27  ;;  %v732_v16 = vmul.f32 %v10875_v40, %v691_v61  ;;  %v654_v17 = vadd.f32 %v618_v33, %v11024_v49  ;;  %v655_v18 = vadd.f32 %v619_v9, %v11027_v56 }
  0x3e   :  { %v810_v23 = vmul.f32 %v10883_v45, %v11047_v43  ;;  %v811_v24 = vmul.f32 %v10883_v45, %v11058_v2  ;;  %v766_v25 = vadd.f32 %v730_v13, %v653_v12  ;;  %v812_v26 = vmul.f32 %v10883_v45, %v11063_v19  ;;  %v11191_v43 = vld [vmem:[%s15082_s25 + $0x68] sm:$0xff]  ;;  %v11196_v2 = vld [vmem:[%s15082_s25 + $0x70] sm:$0xff] }
  0x3f   :  { %v890_v49 = vmul.f32 %v10893_v53, %v11072_v10  ;;  %v891_v56 = vmul.f32 %v10893_v53, %v11077_v44  ;;  %v767_v29 = vadd.f32 %v731_v34, %v654_v17  ;;  %v768_v30 = vadd.f32 %v732_v16, %v655_v18  ;;  %v11205_v44 = vld [vmem:[%s15082_s25 + $0x61] sm:$0xff] }
  0x40   :  { %v892_v19 = vmul.f32 %v10893_v53, %v11082_v48  ;;  %v970_v10 = vmul.f32 %v10901_v59, %v11093_v55  ;;  %v846_v35 = vadd.f32 %v810_v23, %v766_v25  ;;  %v971_v36 = vmul.f32 %v10901_v59, %v11098_v57  ;;  %v580_v25 = vld [vmem:[%s15082_s25 + $0x5d] sm:$0xff] }
  0x41   :  { %v972_v48 = vmul.f32 %v10901_v59, %v11113_v5  ;;  %v171_v55 = vmul.f32 %v10712_v21, %v11180_v28  ;;  %v1298_v38 = vld [vmem:[#allocation3 + $0x11] sm:$0xff]  ;;  %v847_v47 = vadd.f32 %v811_v24, %v767_v29  ;;  %v848_v41 = vadd.f32 %v812_v26, %v768_v30  ;;  %v11230_v5 = vld [vmem:[%s15082_s25 + $0x62] sm:$0xff] }
  0x42   :  { %v1273_v46 = vld [vmem:[#allocation3 + $0x10] sm:$0xff]  ;;  %v172_v42 = vmul.f32 %v10712_v21, %v11191_v43  ;;  %v173_v57 = vmul.f32 %v10712_v21, %v11196_v2  ;;  %8396 = vmatmul.mubr.msk.f32.gmra.mrb[4].mxu0 %vm64_vm0, %v1298_v38  ;;  %v926_v20 = vadd.f32 %v890_v49, %v846_v35  ;;  %v284_v22 = vmul.f32 %v10756_v39, %v11205_v44  ;;  %v581_v26 = vld [vmem:[%s15082_s25 + $0x65] sm:$0xff] }
  0x43   :  { %8467 = vmatmul.mubr.msk.f32.gmra.mrb[4].mxu1 %vm64_vm0, %v1273_v46  ;;  %v285_v52 = vmul.f32 %v10756_v39, %v11210_v32  ;;  %8398 = vmatprep.mubr.msk.f32.mxu0 %vm10494_vm1, %v10493_v4  ;;  %v1164_v58 = vld [vmem:[#allocation2 + $0x18] ss:$2 sm:$0x1f]  ;;  %v1166_v60 = vld [vmem:[#allocation2 + $0x19] ss:$2 sm:$0x1f]  ;;  %v927_v15 = vadd.f32 %v891_v56, %v847_v47  ;;  %v928_v27 = vadd.f32 %v892_v19, %v848_v41 }
  0x44   :  { %8469 = vmatprep.mubr.msk.f32.mxu1 %vm10494_vm1, %v10493_v4  ;;  %v286_v61 = vmul.f32 %v10756_v39, %v11221_v37  ;;  %v1168_v62 = vld [vmem:[#allocation2 + $0x24] ss:$2 sm:$0x1f]  ;;  %v1170_v1 = vld [vmem:[#allocation2 + $0x25] ss:$2 sm:$0x1f]  ;;  %v1171_v6 = vmax.f32 %v1164_v58, %v1166_v60  ;;  %v1006_v33 = vadd.f32 %v970_v10, %v926_v20  ;;  %v320_v9 = vadd.f32 %v284_v22, %v171_v55 }
  0x45   :  { %v321_v12 = vadd.f32 %v285_v52, %v172_v42  ;;  %v1172_v13 = vmax.f32 %v1168_v62, %v1170_v1  ;;  %v1007_v34 = vadd.f32 %v971_v36, %v927_v15  ;;  %v1008_v16 = vadd.f32 %v972_v48, %v928_v27  ;;  %v692_v19 = vld [vmem:[%s15082_s25 + $0x56] sm:$0xff]  ;;  %v694_v10 = vld [vmem:[%s15082_s25 + $0x66] sm:$0xff] }
  0x46   :  { %v322_v17 = vadd.f32 %v286_v61, %v173_v57  ;;  %v1049_v18 = vadd.f32 %v10984_v31, %v1006_v33  ;;  %v397_v23 = vmul.f32 %v10792_v51, %v11230_v5  ;;  %v398_v24 = vmul.f32 %v10792_v51, %v11241_v11  ;;  %v11340_v33 = vld [vmem:[%s15082_s25 + $0x88] sm:$0xff] }
  0x47   :  { %v399_v39 = vmul.f32 %v10792_v51, %v11246_v50  ;;  %v1173_v49 = vmax.f32 %v1171_v6, %v1172_v13  ;;  %v1050_v56 = vadd.f32 %v10984_v31, %v1007_v34  ;;  %v1051_v29 = vadd.f32 %v10984_v31, %v1008_v16  ;;  %v693_v51 = vld [vmem:[%s15082_s25 + $0x5e] sm:$0xff] }
  0x48   :  { %v620_v30 = vmul.f32 %v10847_v14, %v579_v54  ;;  %v1085_v35 = vmax.f32 %v1049_v18, 0.0  ;;  %v11282_v36 = vadd.f32 %v397_v23, %v320_v9  ;;  %v11284_v48 = vadd.f32 %v398_v24, %v321_v12  ;;  %v11354_v18 = vld [vmem:[%s15082_s25 + $0x79] sm:$0xff] }
  0x49   :  { %v11286_v55 = vadd.f32 %v399_v39, %v322_v17  ;;  %1174 = vst.msk [vmem:[#allocation3 + $0x1d] sm:$0x1f] %vm1161_vm2, %v1173_v49  ;;  %v1086_v38 = vmax.f32 %v1050_v56, 0.0  ;;  %v1087_v46 = vmax.f32 %v1051_v29, 0.0  ;;  %v621_v47 = vmul.f32 %v10847_v14, %v580_v25  ;;  %v11361_v39 = vld [vmem:[%s15082_s25 + $0x81] sm:$0xff]  ;;  %v469_v25 = vld [vmem:[%s15082_s25 + $0x6c] sm:$0xff] }
  0x4a   :  { %v622_v41 = vmul.f32 %v10847_v14, %v581_v26  ;;  %1121 = vst.msk [vmem:[#allocation2 + $0x30] sm:$0xff] %vm64_vm0, %v1085_v35  ;;  %v656_v42 = vadd.f32 %v620_v30, %v11155_v3  ;;  %v733_v57 = vmul.f32 %v10875_v40, %v692_v19  ;;  %v734_v20 = vmul.f32 %v10875_v40, %v693_v51 }
  0x4b   :  { %v735_v22 = vmul.f32 %v10875_v40, %v694_v10  ;;  %1122 = vst.msk [vmem:[#allocation2 + $0x38] sm:$0xff] %vm64_vm0, %v1086_v38  ;;  %1123 = vst.msk [vmem:[#allocation2 + $0x40] sm:$0xff] %vm64_vm0, %v1087_v46  ;;  %v657_v52 = vadd.f32 %v621_v47, %v11159_v7  ;;  %v813_v58 = vmul.f32 %v10883_v45, %v11180_v28  ;;  %v11313_v7 = vld [vmem:[%s15082_s25 + $0x78] sm:$0xff]  ;;  %v11389_v47 = vld [vmem:[%s15082_s25 + $0x8a] sm:$0xff] }
  0x4c   :  { %v658_v54 = vadd.f32 %v622_v41, %v11161_v8  ;;  %v814_v3 = vmul.f32 %v10883_v45, %v11191_v43  ;;  %v769_v60 = vadd.f32 %v733_v57, %v656_v42  ;;  %v815_v15 = vmul.f32 %v10883_v45, %v11196_v2  ;;  %v136_v2 = vld [vmem:[%s15082_s25 + $0x90] sm:$0xff]  ;;  %v11379_v46 = vld [vmem:[%s15082_s25 + $0x7a] sm:$0xff] }
  0x4d   :  { %v893_v27 = vmul.f32 %v10893_v53, %v11205_v44  ;;  %v894_v61 = vmul.f32 %v10893_v53, %v11210_v32  ;;  %v770_v8 = vadd.f32 %v734_v20, %v657_v52  ;;  %v895_v43 = vmul.f32 %v10893_v53, %v11221_v37  ;;  %v137_v44 = vld [vmem:[%s15082_s25 + $0x98] sm:$0xff]  ;;  %v138_v32 = vld [vmem:[%s15082_s25 + $0xa0] sm:$0xff] }
  0x4e   :  { %v771_v28 = vadd.f32 %v735_v22, %v658_v54  ;;  %v973_v62 = vmul.f32 %v10901_v59, %v11230_v5  ;;  %v849_v1 = vadd.f32 %v813_v58, %v769_v60  ;;  %v974_v6 = vmul.f32 %v10901_v59, %v11241_v11  ;;  %v11335_v5 = vld [vmem:[%s15082_s25 + $0x80] sm:$0xff]  ;;  %v470_v57 = vld [vmem:[%s15082_s25 + $0x74] sm:$0xff] }
  0x4f   :  { %v975_v37 = vmul.f32 %v10901_v59, %v11246_v50  ;;  %v850_v9 = vadd.f32 %v814_v3, %v770_v8  ;;  %v11343_v11 = vmul.f32 %v10712_v21, %v136_v2  ;;  %v11346_v50 = vmul.f32 %v10712_v21, %v137_v44  ;;  %v471_v20 = vld [vmem:[%s15082_s25 + $0x7c] sm:$0xff]  ;;  %v582_v58 = vld [vmem:[%s15082_s25 + $0x6d] sm:$0xff] }
  0x50   :  { %v851_v12 = vadd.f32 %v815_v15, %v771_v28  ;;  %v1299_v13 = vld [vmem:[#allocation3 + $0x19] sm:$0xff]  ;;  %v929_v16 = vadd.f32 %v893_v27, %v849_v1  ;;  %v11349_v17 = vmul.f32 %v10712_v21, %v138_v32  ;;  %v11366_v21 = vld [vmem:[%s15082_s25 + $0x89] sm:$0xff]  ;;  %v510_v54 = vmul.f32 %v10813_v63, %v469_v25 }
  0x51   :  { %v1274_v34 = vld [vmem:[#allocation3 + $0x18] sm:$0xff]  ;;  %8399 = vmatmul.mubr.msk.f32.gmra.mrb[6].mxu0 %vm64_vm0, %v1299_v13  ;;  %v930_v23 = vadd.f32 %v894_v61, %v850_v9  ;;  %v511_v27 = vmul.f32 %v10813_v63, %v470_v57  ;;  %v512_v61 = vmul.f32 %v10813_v63, %v471_v20  ;;  %v695_v63 = vld [vmem:[%s15082_s25 + $0x6e] sm:$0xff] }
  0x52   :  { %8470 = vmatmul.mubr.msk.f32.gmra.mrb[6].mxu1 %vm64_vm0, %v1274_v34  ;;  %v931_v24 = vadd.f32 %v895_v43, %v851_v12  ;;  %8401 = vmatprep.mubr.msk.f32.mxu0 %vm10494_vm1, %v10493_v4  ;;  %v1176_v26 = vld [vmem:[#allocation2 + $0x30] ss:$2 sm:$0x1f]  ;;  %v1178_v49 = vld [vmem:[#allocation2 + $0x31] ss:$2 sm:$0x1f]  ;;  %v1009_v56 = vadd.f32 %v973_v62, %v929_v16  ;;  %v546_v28 = vadd.f32 %v510_v54, %v11282_v36 }
  0x53   :  { %8472 = vmatprep.mubr.msk.f32.mxu1 %vm10494_vm1, %v10493_v4  ;;  %v1180_v29 = vld [vmem:[#allocation2 + $0x3c] ss:$2 sm:$0x1f]  ;;  %v1182_v30 = vld [vmem:[#allocation2 + $0x3d] ss:$2 sm:$0x1f]  ;;  %v1183_v19 = vmax.f32 %v1176_v26, %v1178_v49  ;;  %v1010_v51 = vadd.f32 %v974_v6, %v930_v23  ;;  %v623_v43 = vmul.f32 %v10847_v14, %v582_v58  ;;  %v547_v62 = vadd.f32 %v511_v27, %v11284_v48 }
  0x54   :  { %v1011_v10 = vadd.f32 %v975_v37, %v931_v24  ;;  %v1184_v35 = vmax.f32 %v1180_v29, %v1182_v30  ;;  %v1052_v38 = vadd.f32 %v10984_v31, %v1009_v56  ;;  %v11384_v4 = vld [vmem:[%s15082_s25 + $0x82] sm:$0xff]  ;;  %v583_v15 = vld [vmem:[%s15082_s25 + $0x75] sm:$0xff]  ;;  %v548_v2 = vadd.f32 %v512_v61, %v11286_v55 }
  0x55   :  { %v1053_v41 = vadd.f32 %v10984_v31, %v1010_v51  ;;  %v584_v8 = vld [vmem:[%s15082_s25 + $0x7d] sm:$0xff]  ;;  %v624_v44 = vmul.f32 %v10847_v14, %v583_v15  ;;  %v659_v6 = vadd.f32 %v623_v43, %v546_v28  ;;  %v736_v55 = vmul.f32 %v10875_v40, %v695_v63  ;;  %v11437_v49 = vld [vmem:[#allocation7] sm:$0xff]  ;;  %v1810_v58 = vld [vmem:[%s15081_s20 + $0x50] sm:$0xff] }
  0x56   :  { %v1054_v42 = vadd.f32 %v10984_v31, %v1011_v10  ;;  %v1185_v22 = vmax.f32 %v1183_v19, %v1184_v35  ;;  %v1088_v52 = vmax.f32 %v1052_v38, 0.0  ;;  %v696_v32 = vld [vmem:[%s15082_s25 + $0x76] sm:$0xff]  ;;  %v625_v1 = vmul.f32 %v10847_v14, %v584_v8  ;;  %v697_v36 = vld [vmem:[%s15082_s25 + $0x7e] sm:$0xff] }
  0x57   :  { %v1089_v3 = vmax.f32 %v1053_v41, 0.0  ;;  %v660_v48 = vadd.f32 %v624_v44, %v547_v62  ;;  %v737_v9 = vmul.f32 %v10875_v40, %v696_v32  ;;  %v738_v12 = vmul.f32 %v10875_v40, %v697_v36  ;;  %v250_v57 = vld [vmem:[%s15082_s25 + $0x99] sm:$0xff]  ;;  %v11492_v15 = vld [vmem:[%s15082_s25 + $0xb0] sm:$0xff] }
  0x58   :  { %v1090_v60 = vmax.f32 %v1054_v42, 0.0  ;;  %1186 = vst.msk [vmem:[#allocation3 + $0x26] sm:$0x1f] %vm1161_vm2, %v1185_v22  ;;  %v661_v37 = vadd.f32 %v625_v1, %v548_v2  ;;  %v772_v16 = vadd.f32 %v736_v55, %v659_v6  ;;  %v816_v26 = vmul.f32 %v10883_v45, %v11313_v7  ;;  %v249_v42 = vld [vmem:[%s15082_s25 + $0x91] sm:$0xff]  ;;  %v11502_v43 = vld [vmem:[%s15083_s2] ss:$0 sm:$0xff] }
  0x59   :  { %1124 = vst.msk [vmem:[#allocation2 + $0x48] sm:$0xff] %vm64_vm0, %v1088_v52  ;;  %1125 = vst.msk [vmem:[#allocation2 + $0x50] sm:$0xff] %vm64_vm0, %v1089_v3  ;;  %v773_v23 = vadd.f32 %v737_v9, %v660_v48  ;;  %v817_v19 = vmul.f32 %v10883_v45, %v11335_v5  ;;  %v818_v51 = vmul.f32 %v10883_v45, %v11340_v33  ;;  %v251_v5 = vld [vmem:[%s15082_s25 + $0xa1] sm:$0xff]  ;;  %v11497_v27 = vld [vmem:[%s15082_s25 + $0xb8] sm:$0xff] }
  0x5a   :  { %1126 = vst.msk [vmem:[#allocation2 + $0x58] sm:$0xff] %vm64_vm0, %v1090_v60  ;;  %v774_v25 = vadd.f32 %v738_v12, %v661_v37  ;;  %v852_v10 = vadd.f32 %v816_v26, %v772_v16  ;;  %v896_v7 = vmul.f32 %v10893_v53, %v11354_v18  ;;  %v897_v45 = vmul.f32 %v10893_v53, %v11361_v39  ;;  %v1811_v39 = vld [vmem:[%s15081_s20 + $0x58] sm:$0xff]  ;;  %v11516_v32 = vld [vmem:[%s15082_s25 + $0xa9] sm:$0xff]  ;;  %v11534_v9 = vld [vmem:[%s15083_s2 + $0x1] ss:$0 sm:$0xff] }
  0x5b   :  { %v853_v38 = vadd.f32 %v817_v19, %v773_v23  ;;  %v898_v33 = vmul.f32 %v10893_v53, %v11366_v21  ;;  %v976_v52 = vmul.f32 %v10901_v59, %v11379_v46  ;;  %v977_v54 = vmul.f32 %v10901_v59, %v11384_v4  ;;  %v11476_v53 = vld [vmem:[%s15082_s25 + $0xa8] sm:$0xff]  ;;  %v362_v21 = vld [vmem:[%s15082_s25 + $0x92] sm:$0xff]  ;;  %v363_v46 = vld [vmem:[%s15082_s25 + $0x9a] sm:$0xff] }
  0x5c   :  { %v854_v41 = vadd.f32 %v818_v51, %v774_v25  ;;  %v932_v18 = vadd.f32 %v896_v7, %v852_v10  ;;  %v364_v4 = vld [vmem:[%s15082_s25 + $0xa2] sm:$0xff]  ;;  %v978_v3 = vmul.f32 %v10901_v59, %v11389_v47  ;;  %v10093_v28 = vpack.c.bf16 %v1811_v39, %v1810_v58  ;;  %v11521_v1 = vld [vmem:[%s15082_s25 + $0xb1] sm:$0xff]  ;;  %v11526_v48 = vld [vmem:[%s15082_s25 + $0xb9] sm:$0xff] }
  0x5d   :  { %v933_v20 = vadd.f32 %v897_v45, %v853_v38  ;;  %v180_v59 = vmul.f32 %v11502_v43, %v11476_v53  ;;  %v181_v44 = vmul.f32 %v11502_v43, %v11492_v15  ;;  %v182_v63 = vmul.f32 %v11502_v43, %v11497_v27  ;;  %v11556_v26 = vld [vmem:[%s15082_s25 + $0xaa] sm:$0xff]  ;;  %v475_v10 = vld [vmem:[%s15082_s25 + $0x9c] sm:$0xff] }
  0x5e   :  { %v934_v22 = vadd.f32 %v898_v33, %v854_v41  ;;  %v1012_v60 = vadd.f32 %v976_v52, %v932_v18  ;;  %10094 = vmatpush3.bf16.msra.mxu0 %v10093_v28  ;;  %v290_v12 = vmul.f32 %v11534_v9, %v249_v42  ;;  %v292_v16 = vmul.f32 %v11534_v9, %v251_v5  ;;  %v476_v7 = vld [vmem:[%s15082_s25 + $0xa4] sm:$0xff]  ;;  %v477_v41 = vld [vmem:[%s15082_s25 + $0xac] sm:$0xff]  ;;  %v478_v33 = vld [vmem:[%s15082_s25 + $0xb4] sm:$0xff] }
  0x5f   :  { %v1300_v13 = vld [vmem:[#allocation3 + $0x21] sm:$0xff]  ;;  %v1013_v61 = vadd.f32 %v977_v54, %v933_v20  ;;  %10101 = vmatprep.subr.bf16.mxu0 %v10492_v0  ;;  %v293_v23 = vmul.f32 %v11534_v9, %v11516_v32 }
  0x60   :  { %v1275_v34 = vld [vmem:[#allocation3 + $0x20] sm:$0xff]  ;;  %8402 = vmatmul.mubr.msk.f32.gmra.mrb[8].mxu0 %vm64_vm0, %v1300_v13  ;;  %v1188_v14 = vld [vmem:[#allocation2 + $0x48] ss:$2 sm:$0x1f]  ;;  %v1014_v8 = vadd.f32 %v978_v3, %v934_v22  ;;  %v1055_v47 = vadd.f32 %v10984_v31, %v1012_v60  ;;  %v291_v13 = vmul.f32 %v11534_v9, %v250_v57  ;;  %v326_v25 = vadd.f32 %v290_v12, %v11343_v11 }
  0x61   :  { %8473 = vmatmul.mubr.msk.f32.gmra.mrb[8].mxu1 %vm64_vm0, %v1275_v34  ;;  %v1190_v24 = vld [vmem:[#allocation2 + $0x49] ss:$2 sm:$0x1f]  ;;  %8404 = vmatprep.mubr.msk.f32.mxu0 %vm10494_vm1, %v11437_v49  ;;  %v1192_v40 = vld [vmem:[#allocation2 + $0x54] ss:$2 sm:$0x1f]  ;;  %v1056_v62 = vadd.f32 %v10984_v31, %v1013_v61 }
  0x62   :  { %8475 = vmatprep.mubr.msk.f32.mxu1 %vm10494_vm1, %v11437_v49  ;;  %v1194_v56 = vld [vmem:[#allocation2 + $0x55] ss:$2 sm:$0x1f]  ;;  %v1195_v29 = vmax.f32 %v1188_v14, %v1190_v24  ;;  %v1057_v2 = vadd.f32 %v10984_v31, %v1014_v8  ;;  %v1091_v31 = vmax.f32 %v1055_v47, 0.0  ;;  %v294_v14 = vmul.f32 %v11534_v9, %v11521_v1  ;;  %v11573_v11 = vld [vmem:[%s15083_s2 + $0x2] ss:$0 sm:$0xff] }
  0x63   :  { %v1196_v30 = vmax.f32 %v1192_v40, %v1194_v56  ;;  %v1092_v37 = vmax.f32 %v1056_v62, 0.0  ;;  %v295_v24 = vmul.f32 %v11534_v9, %v11526_v48  ;;  %v11561_v40 = vld [vmem:[%s15082_s25 + $0xb2] sm:$0xff]  ;;  %v11566_v56 = vld [vmem:[%s15082_s25 + $0xba] sm:$0xff]  ;;  %v403_v19 = vmul.f32 %v11573_v11, %v362_v21  ;;  %v480_v20 = vld [vmem:[%s15082_s25 + $0xc4] sm:$0xff] }
  0x64   :  { %v1093_v55 = vmax.f32 %v1057_v2, 0.0  ;;  %1127 = vst.msk [vmem:[#allocation2 + $0x60] sm:$0xff] %vm64_vm0, %v1091_v31  ;;  %v404_v51 = vmul.f32 %v11573_v11, %v363_v46  ;;  %v405_v38 = vmul.f32 %v11573_v11, %v364_v4  ;;  %v406_v42 = vmul.f32 %v11573_v11, %v11556_v26  ;;  %v479_v18 = vld [vmem:[%s15082_s25 + $0xbc] sm:$0xff]  ;;  %v589_v46 = vld [vmem:[%s15082_s25 + $0xa5] sm:$0xff]  ;;  %v590_v8 = vld [vmem:[%s15082_s25 + $0xad] sm:$0xff] }
  0x65   :  { %v1197_v35 = vmax.f32 %v1195_v29, %v1196_v30  ;;  %1128 = vst.msk [vmem:[#allocation2 + $0x68] sm:$0xff] %vm64_vm0, %v1092_v37  ;;  %v327_v29 = vadd.f32 %v291_v13, %v11346_v50  ;;  %v328_v30 = vadd.f32 %v292_v16, %v11349_v17  ;;  %v329_v50 = vadd.f32 %v293_v23, %v180_v59  ;;  %v11608_v54 = vld [vmem:[%s15083_s2 + $0x3] ss:$0 sm:$0xff] }
  0x66   :  { %1129 = vst.msk [vmem:[#allocation2 + $0x70] sm:$0xff] %vm64_vm0, %v1093_v55  ;;  %v330_v17 = vadd.f32 %v294_v14, %v181_v44  ;;  %v407_v57 = vmul.f32 %v11573_v11, %v11561_v40  ;;  %v408_v5 = vmul.f32 %v11573_v11, %v11566_v56  ;;  %v439_v45 = vadd.f32 %v403_v19, %v326_v25  ;;  %v588_v21 = vld [vmem:[%s15082_s25 + $0x9d] sm:$0xff]  ;;  %v702_v44 = vld [vmem:[%s15082_s25 + $0xa6] sm:$0xff] }
  0x67   :  { %1198 = vst.msk [vmem:[#allocation3 + $0x2f] sm:$0x1f] %vm1161_vm2, %v1197_v35  ;;  %v331_v35 = vadd.f32 %v295_v24, %v182_v63  ;;  %v440_v22 = vadd.f32 %v404_v51, %v327_v29  ;;  %v441_v52 = vadd.f32 %v405_v38, %v328_v30  ;;  %v516_v58 = vmul.f32 %v11608_v54, %v475_v10  ;;  %v701_v2 = vld [vmem:[%s15082_s25 + $0x9e] sm:$0xff]  ;;  %v703_v63 = vld [vmem:[%s15082_s25 + $0xae] sm:$0xff] }
  0x68   :  { %v517_v39 = vmul.f32 %v11608_v54, %v476_v7  ;;  %v442_v4 = vadd.f32 %v406_v42, %v329_v50  ;;  %v443_v3 = vadd.f32 %v407_v57, %v330_v17  ;;  %v518_v61 = vmul.f32 %v11608_v54, %v477_v41  ;;  %v11637_v55 = vld [vmem:[%s15083_s2 + $0x4] ss:$0 sm:$0xff]  ;;  %v11651_v10 = vld [vmem:[%s15083_s2 + $0x5] ss:$0 sm:$0xff] }
  0x69   :  { %v444_v60 = vadd.f32 %v408_v5, %v331_v35  ;;  %v519_v28 = vmul.f32 %v11608_v54, %v478_v33  ;;  %v520_v59 = vmul.f32 %v11608_v54, %v479_v18  ;;  %v521_v47 = vmul.f32 %v11608_v54, %v480_v20  ;;  %v11659_v35 = vld [vmem:[%s15083_s2 + $0x6] ss:$0 sm:$0xff]  ;;  %v11675_v20 = vld [vmem:[%s15083_s2 + $0x7] ss:$0 sm:$0xff] }
  0x6a   :  { %v552_v62 = vadd.f32 %v516_v58, %v439_v45  ;;  %v553_v31 = vadd.f32 %v517_v39, %v440_v22  ;;  %v554_v37 = vadd.f32 %v518_v61, %v441_v52  ;;  %v629_v12 = vmul.f32 %v11637_v55, %v588_v21  ;;  %v11670_v45 = vld [vmem:[%s15082_s25 + $0xc0] sm:$0xff]  ;;  %v11689_v22 = vld [vmem:[%s15082_s25 + $0xd0] sm:$0xff]  ;;  %v11702_v58 = vld [vmem:[%s15083_s2 + $0x8] ss:$0 sm:$0xff] }
  0x6b   :  { %v630_v13 = vmul.f32 %v11637_v55, %v589_v46  ;;  %v11641_v14 = vadd.f32 %v519_v28, %v442_v4  ;;  %v11643_v24 = vadd.f32 %v520_v59, %v443_v3  ;;  %v11645_v25 = vadd.f32 %v521_v47, %v444_v60  ;;  %v11694_v52 = vld [vmem:[%s15082_s25 + $0xc1] sm:$0xff]  ;;  %v11711_v46 = vld [vmem:[%s15082_s25 + $0xc9] sm:$0xff] }
  0x6c   :  { %v631_v30 = vmul.f32 %v11637_v55, %v590_v8  ;;  %v665_v19 = vadd.f32 %v629_v12, %v552_v62  ;;  %v742_v7 = vmul.f32 %v11651_v10, %v701_v2  ;;  %v743_v50 = vmul.f32 %v11651_v10, %v702_v44  ;;  %v11730_v61 = vld [vmem:[%s15082_s25 + $0xca] sm:$0xff] }
  0x6d   :  { %v1206_v16 = vld [vmem:[#allocation2 + $0x6d] ss:$2 sm:$0x1f]  ;;  %v666_v51 = vadd.f32 %v630_v13, %v553_v31  ;;  %v744_v17 = vmul.f32 %v11651_v10, %v703_v63  ;;  %v822_v38 = vmul.f32 %v11659_v35, %v11476_v53  ;;  %v823_v57 = vmul.f32 %v11659_v35, %v11492_v15 }
  0x6e   :  { %v1301_v36 = vld [vmem:[#allocation3 + $0x29] sm:$0xff]  ;;  %v667_v42 = vadd.f32 %v631_v30, %v554_v37  ;;  %v824_v5 = vmul.f32 %v11659_v35, %v11497_v27  ;;  %v778_v33 = vadd.f32 %v742_v7, %v665_v19  ;;  %v902_v53 = vmul.f32 %v11675_v20, %v11516_v32  ;;  %v11745_v63 = vld [vmem:[%s15082_s25 + $0xd2] sm:$0xff]  ;;  %v483_v30 = vld [vmem:[%s15082_s25 + $0xdc] sm:$0xff] }
  0x6f   :  { %v1276_v6 = vld [vmem:[#allocation3 + $0x28] sm:$0xff]  ;;  %8405 = vmatmul.mubr.msk.f32.gmra.mrb[10].mxu0 %vm64_vm0, %v1301_v36  ;;  %v1277_v34 = vld [vmem:[#allocation3 + $0x30] sm:$0xff]  ;;  %v779_v18 = vadd.f32 %v743_v50, %v666_v51  ;;  %v903_v15 = vmul.f32 %v11675_v20, %v11521_v1  ;;  %v904_v1 = vmul.f32 %v11675_v20, %v11526_v48  ;;  %v982_v39 = vmul.f32 %v11702_v58, %v11556_v26 }
  0x70   :  { %8476 = vmatmul.mubr.msk.f32.gmra.mrb[10].mxu1 %vm64_vm0, %v1276_v6  ;;  %8407 = vmatprep.mubr.msk.f32.mxu0 %vm10494_vm1, %v11437_v49  ;;  %v1200_v36 = vld [vmem:[#allocation2 + $0x60] ss:$2 sm:$0x1f]  ;;  %v1202_v6 = vld [vmem:[#allocation2 + $0x61] ss:$2 sm:$0x1f]  ;;  %v780_v32 = vadd.f32 %v744_v17, %v667_v42  ;;  %v983_v21 = vmul.f32 %v11702_v58, %v11561_v40  ;;  %v858_v4 = vadd.f32 %v822_v38, %v778_v33 }
  0x71   :  { %8478 = vmatprep.mubr.msk.f32.mxu1 %vm10494_vm1, %v11437_v49  ;;  %v1207_v23 = vmax.f32 %v1200_v36, %v1202_v6  ;;  %v11684_v27 = vld [vmem:[%s15082_s25 + $0xc8] sm:$0xff]  ;;  %v11716_v48 = vld [vmem:[%s15082_s25 + $0xd1] sm:$0xff]  ;;  %v859_v3 = vadd.f32 %v823_v57, %v779_v18  ;;  %v984_v60 = vmul.f32 %v11702_v58, %v11566_v56  ;;  %v183_v26 = vmul.f32 %v11502_v43, %v11670_v45  ;;  %v592_v38 = vld [vmem:[%s15082_s25 + $0xbd] sm:$0xff] }
  0x72   :  { %v11725_v40 = vld [vmem:[%s15082_s25 + $0xc2] sm:$0xff]  ;;  %v860_v8 = vadd.f32 %v824_v5, %v780_v32  ;;  %v184_v28 = vmul.f32 %v11502_v43, %v11684_v27  ;;  %v185_v56 = vmul.f32 %v11502_v43, %v11689_v22  ;;  %v296_v59 = vmul.f32 %v11534_v9, %v11694_v52  ;;  %v481_v36 = vld [vmem:[%s15082_s25 + $0xcc] sm:$0xff]  ;;  %v482_v13 = vld [vmem:[%s15082_s25 + $0xd4] sm:$0xff] }
  0x73   :  { %v938_v47 = vadd.f32 %v902_v53, %v858_v4  ;;  %v939_v62 = vadd.f32 %v903_v15, %v859_v3  ;;  %v297_v2 = vmul.f32 %v11534_v9, %v11711_v46  ;;  %v298_v44 = vmul.f32 %v11534_v9, %v11716_v48  ;;  %v591_v17 = vld [vmem:[%s15082_s25 + $0xb5] sm:$0xff]  ;;  %v11772_v57 = vld [vmem:[%s15084_s27] ss:$0 sm:$0xff]  ;;  %v593_v15 = vld [vmem:[%s15082_s25 + $0xc5] sm:$0xff] }
  0x74   :  { %8479 = vmatmul.mubr.msk.f32.gmra.mrb[12].mxu1 %vm64_vm0, %v1277_v34  ;;  %v1204_v34 = vld [vmem:[#allocation2 + $0x6c] ss:$2 sm:$0x1f]  ;;  %v940_v6 = vadd.f32 %v904_v1, %v860_v8  ;;  %v332_v31 = vadd.f32 %v296_v59, %v183_v26  ;;  %v409_v37 = vmul.f32 %v11573_v11, %v11725_v40  ;;  %v410_v12 = vmul.f32 %v11573_v11, %v11730_v61  ;;  %v705_v4 = vld [vmem:[%s15082_s25 + $0xbe] sm:$0xff] }
  0x75   :  { %8481 = vmatprep.mubr.msk.f32.mxu1 %vm10494_vm1, %v11437_v49  ;;  %v1208_v29 = vmax.f32 %v1204_v34, %v1206_v16  ;;  %v1018_v34 = vadd.f32 %v982_v39, %v938_v47  ;;  %v1019_v16 = vadd.f32 %v983_v21, %v939_v62  ;;  %v411_v51 = vmul.f32 %v11573_v11, %v11745_v63  ;;  %v704_v21 = vld [vmem:[%s15082_s25 + $0xb6] sm:$0xff]  ;;  %v706_v3 = vld [vmem:[%s15082_s25 + $0xc6] sm:$0xff] }
  0x76   :  { %v1020_v19 = vadd.f32 %v984_v60, %v940_v6  ;;  %v445_v7 = vadd.f32 %v409_v37, %v332_v31  ;;  %v522_v50 = vmul.f32 %v11608_v54, %v481_v36  ;;  %v523_v53 = vmul.f32 %v11608_v54, %v482_v13  ;;  %v1279_v26 = vld [vmem:[#allocation3 + $0x40] sm:$0xff] }
  0x77   :  { %v1209_v41 = vmax.f32 %v1207_v23, %v1208_v29  ;;  %v333_v23 = vadd.f32 %v297_v2, %v184_v28  ;;  %v334_v29 = vadd.f32 %v298_v44, %v185_v56  ;;  %v1061_v5 = vadd.f32 %v11772_v57, %v1018_v34 }
  0x78   :  { %v1062_v33 = vadd.f32 %v11772_v57, %v1019_v16  ;;  %v1063_v32 = vadd.f32 %v11772_v57, %v1020_v19  ;;  %v524_v39 = vmul.f32 %v11608_v54, %v483_v30  ;;  %v11797_v56 = vadd.f32 %v522_v50, %v445_v7  ;;  %v1304_v16 = vld [vmem:[#allocation3 + $0x41] sm:$0xff]  ;;  %v11834_v7 = vld [vmem:[%s15082_s25 + $0xd8] sm:$0xff] }
  0x79   :  { %1210 = vst.msk [vmem:[#allocation3 + $0x38] sm:$0x1f] %vm1161_vm2, %v1209_v41  ;;  %v446_v18 = vadd.f32 %v410_v12, %v333_v23  ;;  %v447_v1 = vadd.f32 %v411_v51, %v334_v29  ;;  %v1097_v8 = vmax.f32 %v1061_v5, 0.0  ;;  %v632_v2 = vmul.f32 %v11637_v55, %v591_v17  ;;  %v1280_v23 = vld [vmem:[#allocation3 + $0x48] sm:$0xff]  ;;  %v11855_v17 = vld [vmem:[%s15082_s25 + $0xd9] sm:$0xff]  ;;  %v1281_v5 = vld [vmem:[#allocation3 + $0x50] sm:$0xff] }
  0x7a   :  { %v1098_v28 = vmax.f32 %v1062_v33, 0.0  ;;  %v1099_v47 = vmax.f32 %v1063_v32, 0.0  ;;  %v633_v44 = vmul.f32 %v11637_v55, %v592_v38  ;;  %v634_v36 = vmul.f32 %v11637_v55, %v593_v15  ;;  %v11850_v50 = vld [vmem:[%s15082_s25 + $0xe8] sm:$0xff] }
  0x7b   :  { %v11799_v59 = vadd.f32 %v523_v53, %v446_v18  ;;  %v11801_v62 = vadd.f32 %v524_v39, %v447_v1  ;;  %1133 = vst.msk [vmem:[#allocation2 + $0x90] sm:$0xff] %vm64_vm0, %v1097_v8  ;;  %v745_v6 = vmul.f32 %v11651_v10, %v704_v21  ;;  %v746_v31 = vmul.f32 %v11651_v10, %v705_v4  ;;  %v1306_v4 = vld [vmem:[#allocation3 + $0x51] sm:$0xff] }
  0x7c   :  { %1134 = vst.msk [vmem:[#allocation2 + $0x98] sm:$0xff] %vm64_vm0, %v1098_v28  ;;  %v747_v37 = vmul.f32 %v11651_v10, %v706_v3  ;;  %1135 = vst.msk [vmem:[#allocation2 + $0xa0] sm:$0xff] %vm64_vm0, %v1099_v47  ;;  %v668_v12 = vadd.f32 %v632_v2, %v11641_v14  ;;  %v669_v13 = vadd.f32 %v633_v44, %v11643_v24 }
  0x7d   :  { %v825_v34 = vmul.f32 %v11659_v35, %v11670_v45  ;;  %v670_v29 = vadd.f32 %v634_v36, %v11645_v25  ;;  %v826_v30 = vmul.f32 %v11659_v35, %v11684_v27  ;;  %v827_v14 = vmul.f32 %v11659_v35, %v11689_v22  ;;  %v11839_v25 = vld [vmem:[%s15082_s25 + $0xe0] sm:$0xff] }
  0x7e   :  { %v781_v24 = vadd.f32 %v745_v6, %v668_v12  ;;  %v782_v19 = vadd.f32 %v746_v31, %v669_v13  ;;  %v905_v45 = vmul.f32 %v11675_v20, %v11694_v52  ;;  %v906_v51 = vmul.f32 %v11675_v20, %v11711_v46  ;;  %v371_v6 = vld [vmem:[%s15082_s25 + $0xda] sm:$0xff]  ;;  %v11895_v31 = vld [vmem:[%s15082_s25 + $0xe2] sm:$0xff] }
  0x7f   :  { %v783_v27 = vadd.f32 %v747_v37, %v670_v29  ;;  %v907_v22 = vmul.f32 %v11675_v20, %v11716_v48  ;;  %v985_v52 = vmul.f32 %v11702_v58, %v11725_v40  ;;  %v986_v46 = vmul.f32 %v11702_v58, %v11730_v61  ;;  %v11864_v61 = vld [vmem:[%s15082_s25 + $0xe1] sm:$0xff]  ;;  %v11900_v37 = vld [vmem:[%s15082_s25 + $0xea] sm:$0xff]  ;;  %v1282_v12 = vld [vmem:[#allocation3 + $0x58] sm:$0xff] }
  0x80   :  { %v1302_v41 = vld [vmem:[#allocation3 + $0x31] sm:$0xff]  ;;  %v1303_v60 = vld [vmem:[#allocation3 + $0x39] sm:$0xff]  ;;  %v861_v48 = vadd.f32 %v825_v34, %v781_v24  ;;  %v862_v38 = vadd.f32 %v826_v30, %v782_v19  ;;  %v987_v40 = vmul.f32 %v11702_v58, %v11745_v63  ;;  %v186_v63 = vmul.f32 %v11502_v43, %v11834_v7 }
  0x81   :  { %v1278_v42 = vld [vmem:[#allocation3 + $0x38] sm:$0xff]  ;;  %8408 = vmatmul.mubr.msk.f32.gmra.mrb[12].mxu0 %vm64_vm0, %v1302_v41  ;;  %v11869_v41 = vld [vmem:[%s15082_s25 + $0xe9] sm:$0xff]  ;;  %v863_v33 = vadd.f32 %v827_v14, %v783_v27  ;;  %v187_v18 = vmul.f32 %v11502_v43, %v11839_v25  ;;  %v188_v39 = vmul.f32 %v11502_v43, %v11850_v50  ;;  %v299_v21 = vmul.f32 %v11534_v9, %v11855_v17 }
  0x82   :  { %8482 = vmatmul.mubr.msk.f32.gmra.mrb[14].mxu1 %vm64_vm0, %v1278_v42  ;;  %8410 = vmatprep.mubr.msk.f32.mxu0 %vm10494_vm1, %v11437_v49  ;;  %v1305_v42 = vld [vmem:[#allocation3 + $0x49] sm:$0xff]  ;;  %v941_v32 = vadd.f32 %v905_v45, %v861_v48  ;;  %v942_v1 = vadd.f32 %v906_v51, %v862_v38  ;;  %v300_v28 = vmul.f32 %v11534_v9, %v11864_v61  ;;  %v595_v29 = vld [vmem:[%s15082_s25 + $0xd5] sm:$0xff] }
  0x83   :  { %8484 = vmatprep.mubr.msk.f32.mxu1 %vm10494_vm1, %v11437_v49  ;;  %v1212_v53 = vld [vmem:[#allocation2 + $0x90] ss:$2 sm:$0x1f]  ;;  %v1214_v15 = vld [vmem:[#allocation2 + $0x91] ss:$2 sm:$0x1f]  ;;  %v943_v8 = vadd.f32 %v907_v22, %v863_v33  ;;  %v301_v47 = vmul.f32 %v11534_v9, %v11869_v41  ;;  %v335_v34 = vadd.f32 %v299_v21, %v186_v63  ;;  %v412_v51 = vmul.f32 %v11573_v11, %v371_v6 }
  0x84   :  { %v1216_v3 = vld [vmem:[#allocation2 + $0x9c] ss:$2 sm:$0x1f]  ;;  %v1021_v44 = vadd.f32 %v985_v52, %v941_v32  ;;  %v1022_v36 = vadd.f32 %v986_v46, %v942_v1  ;;  %v413_v27 = vmul.f32 %v11573_v11, %v11895_v31  ;;  %v414_v22 = vmul.f32 %v11573_v11, %v11900_v37  ;;  %v707_v46 = vld [vmem:[%s15082_s25 + $0xce] sm:$0xff] }
  0x85   :  { %8411 = vmatmul.mubr.msk.f32.gmra.mrb[14].mxu0 %vm64_vm0, %v1303_v60  ;;  %v1218_v60 = vld [vmem:[#allocation2 + $0x9d] ss:$2 sm:$0x1f]  ;;  %v1023_v13 = vadd.f32 %v987_v40, %v943_v8  ;;  %v337_v19 = vadd.f32 %v301_v47, %v188_v39  ;;  %v829_v8 = vmul.f32 %v11659_v35, %v11839_v25  ;;  %v908_v47 = vmul.f32 %v11675_v20, %v11855_v17 }
  0x86   :  { %8485 = vmatmul.mubr.msk.f32.gmra.mrb[16].mxu1 %vm64_vm0, %v1279_v26  ;;  %8413 = vmatprep.mubr.msk.f32.mxu0 %vm10494_vm1, %v11437_v49  ;;  %v1219_v26 = vmax.f32 %v1212_v53, %v1214_v15  ;;  %v1220_v2 = vmax.f32 %v1216_v3, %v1218_v60  ;;  %v1064_v14 = vadd.f32 %v11772_v57, %v1021_v44  ;;  %v596_v52 = vld [vmem:[%s15082_s25 + $0xdd] sm:$0xff] }
  0x87   :  { %8487 = vmatprep.mubr.msk.f32.mxu1 %vm10494_vm1, %v11437_v49  ;;  %v1065_v24 = vadd.f32 %v11772_v57, %v1022_v36  ;;  %v1066_v45 = vadd.f32 %v11772_v57, %v1023_v13  ;;  %v709_v33 = vld [vmem:[%s15082_s25 + $0xde] sm:$0xff]  ;;  %v11941_v53 = vadd.f32 %v412_v51, %v335_v34  ;;  %v11945_v32 = vadd.f32 %v414_v22, %v337_v19  ;;  %v11991_v36 = vld [vmem:[%s15082_s25 + $0xf1] sm:$0xff] }
  0x88   :  { %v1221_v30 = vmax.f32 %v1219_v26, %v1220_v2  ;;  %v1100_v48 = vmax.f32 %v1064_v14, 0.0  ;;  %v1307_v63 = vld [vmem:[#allocation3 + $0x59] sm:$0xff]  ;;  %v637_v1 = vmul.f32 %v11637_v55, %v596_v52  ;;  %v750_v60 = vmul.f32 %v11651_v10, %v709_v33  ;;  %v11969_v2 = vld [vmem:[%s15082_s25 + $0xf0] sm:$0xff] }
  0x89   :  { %8414 = vmatmul.mubr.msk.f32.gmra.mrb[16].mxu0 %vm64_vm0, %v1304_v16  ;;  %v336_v16 = vadd.f32 %v300_v28, %v187_v18  ;;  %v1101_v38 = vmax.f32 %v1065_v24, 0.0  ;;  %v1102_v18 = vmax.f32 %v1066_v45, 0.0  ;;  %v828_v26 = vmul.f32 %v11659_v35, %v11834_v7  ;;  %v11974_v7 = vld [vmem:[%s15082_s25 + $0xf8] sm:$0xff] }
  0x8a   :  { %8488 = vmatmul.mubr.msk.f32.gmra.mrb[18].mxu1 %vm64_vm0, %v1280_v23  ;;  %8416 = vmatprep.mubr.msk.f32.mxu0 %vm10494_vm1, %v11437_v49  ;;  %v594_v23 = vld [vmem:[%s15082_s25 + $0xcd] sm:$0xff]  ;;  %1222 = vst.msk [vmem:[#allocation3 + $0x65] sm:$0x1f] %vm1161_vm2, %v1221_v30  ;;  %v910_v17 = vmul.f32 %v11675_v20, %v11869_v41  ;;  %v988_v44 = vmul.f32 %v11702_v58, %v371_v6  ;;  %v12005_v41 = vld [vmem:[%s15082_s25 + $0x101] sm:$0xff] }
  0x8b   :  { %8490 = vmatprep.mubr.msk.f32.mxu1 %vm10494_vm1, %v11437_v49  ;;  %v635_v40 = vmul.f32 %v11637_v55, %v594_v23  ;;  %v11943_v15 = vadd.f32 %v413_v27, %v336_v16  ;;  %1136 = vst.msk [vmem:[#allocation2 + $0xa8] sm:$0xff] %vm64_vm0, %v1100_v48  ;;  %1137 = vst.msk [vmem:[#allocation2 + $0xb0] sm:$0xff] %vm64_vm0, %v1101_v38  ;;  %v989_v34 = vmul.f32 %v11702_v58, %v11895_v31  ;;  %v12016_v14 = vld [vmem:[%s15082_s25 + $0xf2] sm:$0xff]  ;;  %v12025_v51 = vld [vmem:[%s15082_s25 + $0xfa] sm:$0xff] }
  0x8c   :  { %1138 = vst.msk [vmem:[#allocation2 + $0xb8] sm:$0xff] %vm64_vm0, %v1102_v18  ;;  %v990_v16 = vmul.f32 %v11702_v58, %v11900_v37  ;;  %v189_v30 = vmul.f32 %v11502_v43, %v11969_v2  ;;  %v190_v31 = vmul.f32 %v11502_v43, %v11974_v7  ;;  %v302_v45 = vmul.f32 %v11534_v9, %v11991_v36  ;;  %v484_v27 = vld [vmem:[%s15082_s25 + $0xe4] sm:$0xff] }
  0x8d   :  { %8417 = vmatmul.mubr.msk.f32.gmra.mrb[18].mxu0 %vm64_vm0, %v1305_v42  ;;  %v636_v42 = vmul.f32 %v11637_v55, %v595_v29  ;;  %v671_v39 = vadd.f32 %v635_v40, %v11797_v56  ;;  %v673_v56 = vadd.f32 %v637_v1, %v11801_v62  ;;  %v11979_v62 = vld [vmem:[%s15082_s25 + $0x100] sm:$0xff]  ;;  %v304_v38 = vmul.f32 %v11534_v9, %v12005_v41 }
  0x8e   :  { %8491 = vmatmul.mubr.msk.f32.gmra.mrb[20].mxu1 %vm64_vm0, %v1281_v5  ;;  %8419 = vmatprep.mubr.msk.f32.mxu0 %vm10494_vm1, %v11437_v49  ;;  %v708_v5 = vld [vmem:[%s15082_s25 + $0xd6] sm:$0xff]  ;;  %v191_v37 = vmul.f32 %v11502_v43, %v11979_v62  ;;  %v12030_v43 = vld [vmem:[%s15082_s25 + $0x102] sm:$0xff]  ;;  %v338_v18 = vadd.f32 %v302_v45, %v189_v30 }
  0x8f   :  { %8493 = vmatprep.mubr.msk.f32.mxu1 %vm10494_vm1, %v11437_v49  ;;  %v672_v21 = vadd.f32 %v636_v42, %v11799_v59  ;;  %v749_v3 = vmul.f32 %v11651_v10, %v708_v5  ;;  %v830_v59 = vmul.f32 %v11659_v35, %v11850_v50  ;;  %v909_v50 = vmul.f32 %v11675_v20, %v11864_v61  ;;  %v12000_v61 = vld [vmem:[%s15082_s25 + $0xf9] sm:$0xff] }
  0x90   :  { %v303_v48 = vmul.f32 %v11534_v9, %v12000_v61  ;;  %v485_v9 = vld [vmem:[%s15082_s25 + $0xec] sm:$0xff] }
  0x91   :  { %8420 = vmatmul.mubr.msk.f32.gmra.mrb[20].mxu0 %vm64_vm0, %v1306_v4  ;;  %v748_v4 = vmul.f32 %v11651_v10, %v707_v46  ;;  %v785_v25 = vadd.f32 %v749_v3, %v672_v21  ;;  %v1308_v6 = vld [vmem:[#allocation3 + $0x61] sm:$0xff] }
  0x92   :  { %8494 = vmatmul.mubr.msk.f32.gmra.mrb[22].mxu1 %vm64_vm0, %v1282_v12  ;;  %8422 = vmatprep.mubr.msk.f32.mxu0 %vm10494_vm1, %v11437_v49  ;;  %v786_v12 = vadd.f32 %v750_v60, %v673_v56  ;;  %v1283_v23 = vld [vmem:[#allocation3 + $0x60] sm:$0xff]  ;;  %v1224_v22 = vld [vmem:[#allocation2 + $0xa8] ss:$2 sm:$0x1f]  ;;  %v339_v21 = vadd.f32 %v303_v48, %v190_v31  ;;  %v486_v56 = vld [vmem:[%s15082_s25 + $0xf4] sm:$0xff] }
  0x93   :  { %8496 = vmatprep.mubr.msk.f32.mxu1 %vm10494_vm1, %v11437_v49  ;;  %v784_v28 = vadd.f32 %v748_v4, %v671_v39  ;;  %v865_v29 = vadd.f32 %v829_v8, %v785_v25  ;;  %v1226_v52 = vld [vmem:[#allocation2 + $0xa9] ss:$2 sm:$0x1f]  ;;  %v1228_v40 = vld [vmem:[#allocation2 + $0xb4] ss:$2 sm:$0x1f]  ;;  %v340_v4 = vadd.f32 %v304_v38, %v191_v37  ;;  %v416_v8 = vmul.f32 %v11573_v11, %v12025_v51 }
  0x94   :  { %v866_v24 = vadd.f32 %v830_v59, %v786_v12  ;;  %v1230_v42 = vld [vmem:[#allocation2 + $0xb5] ss:$2 sm:$0x1f]  ;;  %v1231_v5 = vmax.f32 %v1224_v22, %v1226_v52  ;;  %v527_v30 = vmul.f32 %v11608_v54, %v486_v56  ;;  %v598_v31 = vld [vmem:[%s15082_s25 + $0xed] sm:$0xff] }
  0x95   :  { %8423 = vmatmul.mubr.msk.f32.gmra.mrb[22].mxu0 %vm64_vm0, %v1307_v63  ;;  %v864_v13 = vadd.f32 %v828_v26, %v784_v28  ;;  %v945_v46 = vadd.f32 %v909_v50, %v865_v29  ;;  %v1232_v1 = vmax.f32 %v1228_v40, %v1230_v42  ;;  %v415_v26 = vmul.f32 %v11573_v11, %v12016_v14  ;;  %v487_v25 = vld [vmem:[%s15082_s25 + $0xfc] sm:$0xff]  ;;  %v488_v50 = vld [vmem:[%s15082_s25 + $0x104] sm:$0xff]  ;;  %v711_v52 = vld [vmem:[%s15082_s25 + $0xee] sm:$0xff] }
  0x96   :  { %8425 = vmatprep.mubr.msk.f32.mxu0 %vm10494_vm1, %v11437_v49  ;;  %8497 = vmatmul.mubr.msk.f32.gmra.mrb[24].mxu1 %vm64_vm0, %v1283_v23  ;;  %v946_v33 = vadd.f32 %v910_v17, %v866_v24  ;;  %v489_v17 = vld [vmem:[%s15082_s25 + $0x10c] sm:$0xff]  ;;  %v526_v29 = vmul.f32 %v11608_v54, %v485_v9  ;;  %v528_v24 = vmul.f32 %v11608_v54, %v487_v25  ;;  %v712_v40 = vld [vmem:[%s15082_s25 + $0xf6] sm:$0xff] }
  0x97   :  { %v944_v19 = vadd.f32 %v908_v47, %v864_v13  ;;  %8499 = vmatprep.mubr.msk.f32.mxu1 %vm10494_vm1, %v11437_v49  ;;  %v1025_v39 = vadd.f32 %v989_v34, %v945_v46  ;;  %v1233_v28 = vmax.f32 %v1231_v5, %v1232_v1  ;;  %v417_v47 = vmul.f32 %v11573_v11, %v12030_v43  ;;  %v597_v11 = vld [vmem:[%s15082_s25 + $0xe5] sm:$0xff] }
  0x98   :  { %v1026_v3 = vadd.f32 %v990_v16, %v946_v33  ;;  %v451_v34 = vadd.f32 %v415_v26, %v338_v18  ;;  %v452_v16 = vadd.f32 %v416_v8, %v339_v21  ;;  %v530_v45 = vmul.f32 %v11608_v54, %v489_v17  ;;  %v710_v22 = vld [vmem:[%s15082_s25 + $0xe6] sm:$0xff] }
  0x99   :  { %8426 = vmatmul.mubr.msk.f32.gmra.mrb[24].mxu0 %vm64_vm0, %v1308_v6  ;;  %v1024_v63 = vadd.f32 %v988_v44, %v944_v19  ;;  %v1068_v59 = vadd.f32 %v11772_v57, %v1025_v39  ;;  %v525_v44 = vmul.f32 %v11608_v54, %v484_v27  ;;  %1234 = vst.msk [vmem:[#allocation3 + $0x6e] sm:$0x1f] %vm1161_vm2, %v1233_v28  ;;  %v599_v27 = vld [vmem:[%s15082_s25 + $0xf5] sm:$0xff]  ;;  %v12149_v25 = vld [vmem:[%s15082_s25 + $0x109] sm:$0xff] }
  0x9a   :  { %8428 = vmatprep.mubr.msk.f32.mxu0 %vm10494_vm1, %v11437_v49  ;;  %v1069_v12 = vadd.f32 %v11772_v57, %v1026_v3  ;;  %v453_v23 = vadd.f32 %v417_v47, %v340_v4  ;;  %v529_v19 = vmul.f32 %v11608_v54, %v488_v50  ;;  %v562_v48 = vadd.f32 %v526_v29, %v11943_v15  ;;  %v265_v29 = vld [vmem:[%s15082_s25 + $0x111] sm:$0xff] }
  0x9b   :  { %v1067_v60 = vadd.f32 %v11772_v57, %v1024_v63  ;;  %v1104_v6 = vmax.f32 %v1068_v59, 0.0  ;;  %v561_v46 = vadd.f32 %v525_v44, %v11941_v53  ;;  %v563_v54 = vadd.f32 %v527_v30, %v11945_v32 }
  0x9c   :  { %v1105_v37 = vmax.f32 %v1069_v12, 0.0  ;;  %v638_v38 = vmul.f32 %v11637_v55, %v597_v11  ;;  %v12099_v42 = vadd.f32 %v528_v24, %v451_v34  ;;  %v12101_v5 = vadd.f32 %v529_v19, %v452_v16 }
  0x9d   :  { %v1103_v13 = vmax.f32 %v1067_v60, 0.0  ;;  %1140 = vst.msk [vmem:[#allocation2 + $0xc8] sm:$0xff] %vm64_vm0, %v1104_v6  ;;  %v12103_v33 = vadd.f32 %v530_v45, %v453_v23  ;;  %v639_v53 = vmul.f32 %v11637_v55, %v598_v31  ;;  %v640_v15 = vmul.f32 %v11637_v55, %v599_v27  ;;  %v378_v27 = vld [vmem:[%s15082_s25 + $0x112] sm:$0xff] }
  0x9e   :  { %1141 = vst.msk [vmem:[#allocation2 + $0xd0] sm:$0xff] %vm64_vm0, %v1105_v37  ;;  %v674_v63 = vadd.f32 %v638_v38, %v561_v46  ;;  %v751_v32 = vmul.f32 %v11651_v10, %v710_v22  ;;  %v752_v18 = vmul.f32 %v11651_v10, %v711_v52  ;;  %v753_v39 = vmul.f32 %v11651_v10, %v712_v40  ;;  %v379_v22 = vld [vmem:[%s15082_s25 + $0x11a] sm:$0xff]  ;;  %v602_v40 = vld [vmem:[%s15082_s25 + $0x10d] sm:$0xff] }
  0x9f   :  { %1139 = vst.msk [vmem:[#allocation2 + $0xc0] sm:$0xff] %vm64_vm0, %v1103_v13  ;;  %v675_v1 = vadd.f32 %v639_v53, %v562_v48  ;;  %v831_v21 = vmul.f32 %v11659_v35, %v11969_v2  ;;  %v832_v4 = vmul.f32 %v11659_v35, %v11974_v7  ;;  %v676_v3 = vadd.f32 %v640_v15, %v563_v54  ;;  %v600_v46 = vld [vmem:[%s15082_s25 + $0xfd] sm:$0xff]  ;;  %v601_v48 = vld [vmem:[%s15082_s25 + $0x105] sm:$0xff] }
  0xa0   :  { %v787_v60 = vadd.f32 %v751_v32, %v674_v63  ;;  %v833_v26 = vmul.f32 %v11659_v35, %v11979_v62  ;;  %v911_v8 = vmul.f32 %v11675_v20, %v11991_v36  ;;  %v12118_v9 = vld [vmem:[#allocation3 + $0x69] sm:$0xff]  ;;  %v912_v59 = vmul.f32 %v11675_v20, %v12000_v61 }
  0xa1   :  { %v1284_v56 = vld [vmem:[#allocation3 + $0x68] sm:$0xff]  ;;  %v788_v28 = vadd.f32 %v752_v18, %v675_v1  ;;  %v913_v2 = vmul.f32 %v11675_v20, %v12005_v41  ;;  %v991_v7 = vmul.f32 %v11702_v58, %v12016_v14  ;;  %8429 = vmatmul.mubr.msk.f32.gmra.mrb[26].mxu0 %vm64_vm0, %v12118_v9  ;;  %v789_v36 = vadd.f32 %v753_v39, %v676_v3  ;;  %v12139_v41 = vld [vmem:[%s15082_s25 + $0x110] sm:$0xff]  ;;  %v12144_v14 = vld [vmem:[%s15082_s25 + $0x118] sm:$0xff] }
  0xa2   :  { %v12129_v62 = vld [vmem:[%s15082_s25 + $0x108] sm:$0xff]  ;;  %8500 = vmatmul.mubr.msk.f32.gmra.mrb[26].mxu1 %vm64_vm0, %v1284_v56  ;;  %v867_v47 = vadd.f32 %v831_v21, %v787_v60  ;;  %v992_v61 = vmul.f32 %v11702_v58, %v12025_v51  ;;  %8431 = vmatprep.mubr.msk.f32.mxu0 %vm10494_vm1, %v11437_v49  ;;  %v993_v44 = vmul.f32 %v11702_v58, %v12030_v43  ;;  %v713_v18 = vld [vmem:[%s15082_s25 + $0xfe] sm:$0xff] }
  0xa3   :  { %8502 = vmatprep.mubr.msk.f32.mxu1 %vm10494_vm1, %v11437_v49  ;;  %v868_v17 = vadd.f32 %v832_v4, %v788_v28  ;;  %v869_v16 = vadd.f32 %v833_v26, %v789_v36  ;;  %v266_v49 = vld [vmem:[%s15082_s25 + $0x119] sm:$0xff]  ;;  %v12166_v43 = vld [vmem:[%s15082_s25 + $0x10a] sm:$0xff]  ;;  %v641_v63 = vmul.f32 %v11637_v55, %v600_v46  ;;  %v642_v32 = vmul.f32 %v11637_v55, %v601_v48 }
  0xa4   :  { %v947_v11 = vadd.f32 %v911_v8, %v867_v47  ;;  %v714_v1 = vld [vmem:[%s15082_s25 + $0x106] sm:$0xff]  ;;  %v643_v39 = vmul.f32 %v11637_v55, %v602_v40  ;;  %v715_v21 = vld [vmem:[%s15082_s25 + $0x10e] sm:$0xff]  ;;  %v754_v26 = vmul.f32 %v11651_v10, %v713_v18 }
  0xa5   :  { %v1240_v12 = vld [vmem:[#allocation2 + $0xcc] ss:$2 sm:$0x1f]  ;;  %v1242_v13 = vld [vmem:[#allocation2 + $0xcd] ss:$2 sm:$0x1f]  ;;  %v948_v23 = vadd.f32 %v912_v59, %v868_v17  ;;  %v949_v30 = vadd.f32 %v913_v2, %v869_v16  ;;  %v677_v4 = vadd.f32 %v641_v63, %v12099_v42  ;;  %v678_v3 = vadd.f32 %v642_v32, %v12101_v5 }
  0xa6   :  { %v1236_v51 = vld [vmem:[#allocation2 + $0xc0] ss:$2 sm:$0x1f]  ;;  %v1238_v50 = vld [vmem:[#allocation2 + $0xc1] ss:$2 sm:$0x1f]  ;;  %v1244_v6 = vmax.f32 %v1240_v12, %v1242_v13  ;;  %v1027_v31 = vadd.f32 %v991_v7, %v947_v11  ;;  %v679_v60 = vadd.f32 %v643_v39, %v12103_v33  ;;  %v755_v8 = vmul.f32 %v11651_v10, %v714_v1 }
  0xa7   :  { %v1243_v34 = vmax.f32 %v1236_v51, %v1238_v50  ;;  %v1028_v24 = vadd.f32 %v992_v61, %v948_v23  ;;  %v1029_v19 = vadd.f32 %v993_v44, %v949_v30  ;;  %v756_v55 = vmul.f32 %v11651_v10, %v715_v21  ;;  %v12213_v42 = vld [vmem:[#allocation7] sm:$0xff] }
  0xa8   :  { %v1070_v45 = vadd.f32 %v11772_v57, %v1027_v31  ;;  %v790_v59 = vadd.f32 %v754_v26, %v677_v4  ;;  %v791_v33 = vadd.f32 %v755_v8, %v678_v3  ;;  %v834_v10 = vmul.f32 %v11659_v35, %v12129_v62  ;;  %v2088_v30 = vld [vmem:[%s15081_s20 + $0x68] sm:$0xff]  ;;  %v12282_v4 = vld [vmem:[#allocation3 + $0x91] sm:$0xff]  ;;  %v1316_v8 = vld [vmem:[#allocation3 + $0xa1] sm:$0x3] }
  0xa9   :  { %v1245_v37 = vmax.f32 %v1243_v34, %v1244_v6  ;;  %v1071_v52 = vadd.f32 %v11772_v57, %v1028_v24  ;;  %v1072_v54 = vadd.f32 %v11772_v57, %v1029_v19  ;;  %v792_v2 = vadd.f32 %v756_v55, %v679_v60  ;;  %v2089_v19 = vld [vmem:[%s15081_s20 + $0x70] sm:$0xff]  ;;  %v12291_v60 = vld [vmem:[#allocation3 + $0x99] sm:$0xff] }
  0xaa   :  { %v1106_v38 = vmax.f32 %v1070_v45, 0.0  ;;  %v835_v7 = vmul.f32 %v11659_v35, %v12139_v41  ;;  %v836_v61 = vmul.f32 %v11659_v35, %v12144_v14  ;;  %v870_v44 = vadd.f32 %v834_v10, %v790_v59  ;;  %v2090_v45 = vld [vmem:[%s15081_s20 + $0x78] sm:$0xff]  ;;  %v1289_v3 = vld [vmem:[#allocation3 + $0x90] sm:$0xff]  ;;  %v2366_v55 = vld [vmem:[%s15081_s20 + $0x80] sm:$0xff] }
  0xab   :  { %1246 = vst.msk [vmem:[#allocation3 + $0x77] sm:$0x1f] %vm1161_vm2, %v1245_v37  ;;  %v1107_v53 = vmax.f32 %v1071_v52, 0.0  ;;  %v1108_v15 = vmax.f32 %v1072_v54, 0.0  ;;  %v914_v13 = vmul.f32 %v11675_v20, %v12149_v25  ;;  %v915_v41 = vmul.f32 %v11675_v20, %v265_v29  ;;  %v2087_v25 = vld [vmem:[%s15081_s20 + $0x60] sm:$0xff]  ;;  %v1290_v26 = vld [vmem:[#allocation3 + $0x98] sm:$0xff] }
  0xac   :  { %1142 = vst.msk [vmem:[#allocation2 + $0xd8] sm:$0xff] %vm64_vm0, %v1106_v38  ;;  %v871_v12 = vadd.f32 %v835_v7, %v791_v33  ;;  %v872_v62 = vadd.f32 %v836_v61, %v792_v2  ;;  %v916_v16 = vmul.f32 %v11675_v20, %v266_v49  ;;  %v994_v23 = vmul.f32 %v11702_v58, %v12166_v43  ;;  %v2367_v59 = vld [vmem:[%s15081_s20 + $0x88] sm:$0xff] }
  0xad   :  { %1143 = vst.msk [vmem:[#allocation2 + $0xe0] sm:$0xff] %vm64_vm0, %v1107_v53  ;;  %1144 = vst.msk [vmem:[#allocation2 + $0xe8] sm:$0xff] %vm64_vm0, %v1108_v15  ;;  %v950_v14 = vadd.f32 %v914_v13, %v870_v44  ;;  %v995_v29 = vmul.f32 %v11702_v58, %v378_v27  ;;  %v996_v20 = vmul.f32 %v11702_v58, %v379_v22  ;;  %v2646_v33 = vld [vmem:[%s15081_s20 + $0xa8] sm:$0xff]  ;;  %v2369_v44 = vld [vmem:[%s15081_s20 + $0x98] sm:$0xff] }
  0xae   :  { %v951_v11 = vadd.f32 %v915_v41, %v871_v12  ;;  %v952_v6 = vadd.f32 %v916_v16, %v872_v62  ;;  %v10096_v24 = vpack.c.bf16 %v2088_v30, %v2087_v25  ;;  %v10099_v48 = vpack.c.bf16 %v2090_v45, %v2089_v19  ;;  %v1787_v7 = vld [vmem:[#allocation3 + $0x2] sm:$0xff]  ;;  %v2647_v13 = vld [vmem:[%s15081_s20 + $0xb0] sm:$0xff]  ;;  %v2072_v45 = vld [vmem:[#allocation3 + $0x39] sm:$0xff] }
  0xaf   :  { %v1030_v49 = vadd.f32 %v994_v23, %v950_v14  ;;  %v12336_v16 = vld [vmem:[#allocation3 + $0xa] sm:$0xff]  ;;  %v12348_v30 = vld [vmem:[#allocation3 + $0x12] sm:$0xff] }
  0xb0   :  { %v1031_v31 = vadd.f32 %v995_v29, %v951_v11  ;;  %v1032_v37 = vadd.f32 %v996_v20, %v952_v6  ;;  %10097 = vmatpush3.bf16.msra.mxu1 %v10096_v24  ;;  %v2068_v29 = vld [vmem:[#allocation3 + $0x19] sm:$0xff]  ;;  %v12378_v24 = vld [vmem:[#allocation3 + $0x2a] sm:$0xff] }
  0xb1   :  { %v1073_v43 = vadd.f32 %v11772_v57, %v1030_v49  ;;  %10098 = vmatprep.subr.bf16.mxu1 %v10492_v0  ;;  %v12359_v20 = vld [vmem:[#allocation3 + $0x1a] sm:$0xff]  ;;  %v12387_v19 = vld [vmem:[#allocation3 + $0x32] sm:$0xff] }
  0xb2   :  { %v12207_v56 = vld [vmem:[#allocation3 + $0x71] sm:$0xff]  ;;  %v1074_v52 = vadd.f32 %v11772_v57, %v1031_v31  ;;  %v1075_v27 = vadd.f32 %v11772_v57, %v1032_v37  ;;  %v2069_v49 = vld [vmem:[#allocation3 + $0x21] sm:$0xff]  ;;  %v2070_v37 = vld [vmem:[#allocation3 + $0x29] sm:$0xff] }
  0xb3   :  { %v1285_v28 = vld [vmem:[#allocation3 + $0x70] sm:$0xff]  ;;  %8432 = vmatmul.mubr.msk.f32.gmra.mrb[28].mxu0 %vm64_vm0, %v12207_v56  ;;  %v1286_v5 = vld [vmem:[#allocation3 + $0x78] sm:$0xff]  ;;  %v1109_v58 = vmax.f32 %v1073_v43, 0.0  ;;  %v12369_v31 = vld [vmem:[#allocation3 + $0x22] sm:$0xff] }
  0xb4   :  { %8503 = vmatmul.mubr.msk.f32.gmra.mrb[28].mxu1 %vm64_vm0, %v1285_v28  ;;  %8434 = vmatprep.mubr.msk.f32.mxu0 %vm10494_vm1, %v12213_v42  ;;  %v1248_v36 = vld [vmem:[#allocation2 + $0xd8] ss:$2 sm:$0x1f]  ;;  %v1250_v47 = vld [vmem:[#allocation2 + $0xd9] ss:$2 sm:$0x1f] }
  0xb5   :  { %8505 = vmatprep.mubr.msk.f32.mxu1 %vm10494_vm1, %v12213_v42  ;;  %v1252_v51 = vld [vmem:[#allocation2 + $0xe4] ss:$2 sm:$0x1f]  ;;  %v1254_v50 = vld [vmem:[#allocation2 + $0xe5] ss:$2 sm:$0x1f]  ;;  %v1255_v17 = vmax.f32 %v1248_v36, %v1250_v47  ;;  %10100 = vmatpush3.bf16.msra.mxu1 %v10099_v48  ;;  %v10102_v36 = vpack.c.bf16 %v2367_v59, %v2366_v55 }
  0xb6   :  { %v1256_v34 = vmax.f32 %v1252_v51, %v1254_v50  ;;  %v1110_v22 = vmax.f32 %v1074_v52, 0.0  ;;  %v1111_v46 = vmax.f32 %v1075_v27, 0.0  ;;  %1145 = vst.msk [vmem:[#allocation2 + $0xf0] sm:$0xff] %vm64_vm0, %v1109_v58  ;;  %10107 = vmatprep.subr.bf16.mxu1 %v10492_v0  ;;  %v1291_v28 = vld [vmem:[#allocation3 + $0xa0] sm:$0x3]  ;;  %v2066_v47 = vld [vmem:[#allocation3 + $0x9] sm:$0xff] }
  0xb7   :  { %v2071_v43 = vld [vmem:[#allocation3 + $0x31] sm:$0xff]  ;;  %v12396_v52 = vld [vmem:[#allocation3 + $0x3a] sm:$0xff]  ;;  %v12405_v58 = vld [vmem:[#allocation3 + $0x42] sm:$0xff] }
  0xb8   :  { %8506 = vmatmul.mubr.msk.f32.gmra.mrb[30].mxu1 %vm64_vm0, %v1286_v5  ;;  %v1257_v35 = vmax.f32 %v1255_v17, %v1256_v34  ;;  %1146 = vst.msk [vmem:[#allocation2 + $0xf8] sm:$0xff] %vm64_vm0, %v1110_v22  ;;  %1147 = vst.msk [vmem:[#allocation2 + $0x100] sm:$0xff] %vm64_vm0, %v1111_v46  ;;  %v2645_v5 = vld [vmem:[%s15081_s20 + $0xa0] sm:$0xff]  ;;  %v2368_v17 = vld [vmem:[%s15081_s20 + $0x90] sm:$0xff] }
  0xb9   :  { %8508 = vmatprep.mubr.msk.f32.mxu1 %vm10494_vm1, %v12213_v42  ;;  %v10108_v12 = vpack.c.bf16 %v2646_v33, %v2645_v5  ;;  %v2648_v34 = vld [vmem:[%s15081_s20 + $0xb8] sm:$0xff]  ;;  %v10105_v23 = vpack.c.bf16 %v2369_v44, %v2368_v17  ;;  %v2073_v27 = vld [vmem:[#allocation3 + $0x41] sm:$0xff]  ;;  %v2074_v22 = vld [vmem:[#allocation3 + $0x49] sm:$0xff] }
  0xba   :  { %1258 = vst.msk [vmem:[#allocation3 + $0x80] sm:$0x1f] %vm1161_vm2, %v1257_v35  ;;  %v2067_v35 = vld [vmem:[#allocation3 + $0x11] sm:$0xff]  ;;  %v10111_v25 = vpack.c.bf16 %v2648_v34, %v2647_v13  ;;  %v2925_v17 = vld [vmem:[%s15081_s20 + $0xc8] sm:$0xff]  ;;  %v3203_v13 = vld [vmem:[%s15081_s20 + $0xe0] sm:$0xff] }
  0xbb   :  { %v12414_v46 = vld [vmem:[#allocation3 + $0x4a] sm:$0xff]  ;;  %v12465_v5 = vld [vmem:[#allocation3 + $0x72] sm:$0xff] }
  0xbc   :  { %v2075_v48 = vld [vmem:[#allocation3 + $0x51] sm:$0xff]  ;;  %v3204_v34 = vld [vmem:[%s15081_s20 + $0xe8] sm:$0xff] }
  0xbf   :  { %v1260_v40 = vld [vmem:[#allocation2 + $0xf0] ss:$2 sm:$0x1f]  ;;  %v1262_v53 = vld [vmem:[#allocation2 + $0xf1] ss:$2 sm:$0x1f] }
  0xc0   :  { %v1264_v15 = vld [vmem:[#allocation2 + $0xfc] ss:$2 sm:$0x1f]  ;;  %v1266_v63 = vld [vmem:[#allocation2 + $0xfd] ss:$2 sm:$0x1f]  ;;  %v1267_v32 = vmax.f32 %v1260_v40, %v1262_v53 }
  0xc1   :  { %v12253_v54 = vld [vmem:[#allocation3 + $0x79] sm:$0xff]  ;;  %v12263_v57 = vld [vmem:[#allocation3 + $0x81] sm:$0xff]  ;;  %v1268_v18 = vmax.f32 %v1264_v15, %v1266_v63 }
  0xc2   :  { %v1287_v38 = vld [vmem:[#allocation3 + $0x80] sm:$0xff]  ;;  %8435 = vmatmul.mubr.msk.f32.gmra.mrb[30].mxu0 %vm64_vm0, %v12253_v54  ;;  %v12423_v53 = vld [vmem:[#allocation3 + $0x52] sm:$0xff] }
  0xc3   :  { %8509 = vmatmul.mubr.msk.f32.gmra.mrb[32].mxu1 %vm64_vm0, %v1287_v38  ;;  %8437 = vmatprep.mubr.msk.f32.mxu0 %vm10494_vm1, %v12213_v42  ;;  %v1269_v1 = vmax.f32 %v1267_v32, %v1268_v18  ;;  %v2076_v15 = vld [vmem:[#allocation3 + $0x59] sm:$0xff] }
  0xc4   :  { %8511 = vmatprep.mubr.msk.f32.mxu1 %vm10494_vm1, %v12213_v42 }
  0xc5   :  { %1270 = vst.msk [vmem:[#allocation3 + $0x89] sm:$0x1f] %vm1161_vm2, %v1269_v1  ;;  %v12434_v1 = vld [vmem:[#allocation3 + $0x5a] sm:$0xff] }
  0xc6   :  { %8438 = vmatmul.mubr.msk.f32.gmra.mrb[32].mxu0 %vm64_vm0, %v12263_v57 }
  0xc7   :  { %8440 = vmatprep.mubr.msk.f32.mxu0 %vm10494_vm1, %v12213_v42 }
  0xcc   :  { %v12273_v39 = vld [vmem:[#allocation3 + $0x89] sm:$0xff] }
  0xcd   :  { %v1288_v21 = vld [vmem:[#allocation3 + $0x88] sm:$0xff]  ;;  %8441 = vmatmul.mubr.msk.f32.gmra.mrb[34].mxu0 %vm64_vm0, %v12273_v39 }
  0xce   :  { %8512 = vmatmul.mubr.msk.f32.gmra.mrb[34].mxu1 %vm64_vm0, %v1288_v21  ;;  %8443 = vmatprep.mubr.msk.f32.mxu0 %vm10494_vm1, %v12213_v42  ;;  %v2077_v21 = vld [vmem:[#allocation3 + $0x61] sm:$0xff] }
  0xcf   :  { %8514 = vmatprep.mubr.msk.f32.mxu1 %vm10494_vm1, %v12213_v42  ;;  %v12485_v33 = vld [vmem:[#allocation3 + $0x82] sm:$0xff] }
  0xd1   :  { %8444 = vmatmul.mubr.msk.f32.gmra.mrb[36].mxu0 %vm64_vm0, %v12282_v4 }
  0xd2   :  { %8515 = vmatmul.mubr.msk.f32.gmra.mrb[36].mxu1 %vm64_vm0, %v1289_v3  ;;  %8446 = vmatprep.mubr.msk.f32.mxu0 %vm10494_vm1, %v12213_v42  ;;  %v12443_v3 = vld [vmem:[#allocation3 + $0x62] sm:$0xff] }
  0xd3   :  { %8517 = vmatprep.mubr.msk.f32.mxu1 %vm10494_vm1, %v12213_v42 }
  0xd5   :  { %8447 = vmatmul.mubr.msk.f32.gmra.mrb[38].mxu0 %vm64_vm0, %v12291_v60 }
  0xd6   :  { %8518 = vmatmul.mubr.msk.f32.gmra.mrb[38].mxu1 %vm64_vm0, %v1290_v26  ;;  %8449 = vmatprep.mubr.msk.f32.mxu0 %vm10494_vm1, %v12213_v42  ;;  %v12453_v26 = vld [vmem:[#allocation3 + $0x6a] sm:$0xff] }
  0xd7   :  { %8520 = vmatprep.mubr.msk.f32.mxu1 %vm10494_vm1, %v12213_v42 }
  0xd9   :  { %8450 = vmatmul.mubr.msk.f32.gmra.mrb[40].mxu0 %vm64_vm0, %v1316_v8 }
  0xda   :  { %8521 = vmatmul.mubr.msk.f32.gmra.mrb[40].mxu1 %vm64_vm0, %v1291_v28  ;;  %8531 = vmatprep.mubr.msk.f32.mxu0 %vm10494_vm1, %v12213_v42 }
  0xdb   :  { %8602 = vmatprep.mubr.msk.f32.mxu1 %vm10494_vm1, %v12213_v42 }
  0xdd   :  { %8532 = vmatmul.mubr.msk.f32.vlgmr.msra.gmra.mrb[42].mxu0 %vm64_vm0, %v1787_v7 }
  0xde   :  { %8603 = vmatmul.mubr.msk.f32.vlgmr.msra.gmra.mrb[42].mxu1 %vm64_vm0, %v2066_v47  ;;  %10103 = vmatpush3.bf16.msra.mxu0 %v10102_v36  ;;  %v12517_v47 = vld [vmem:[#allocation3 + $0x9a] sm:$0xff] }
  0xdf   :  { %8534 = vmatprep.mubr.msk.f32.mxu0 %vm10494_vm1, %v12213_v42  ;;  %8605 = vmatprep.mubr.msk.f32.mxu1 %vm10494_vm1, %v12213_v42 }
  0xe0   :  { %10104 = vmatprep.subr.bf16.mxu0 %v10492_v0  ;;  %10109 = vmatpush3.bf16.msra.mxu1 %v10108_v12 }
  0xe1   :  { %8535 = vmatmul.mubr.msk.f32.gmra.mrb[44].mxu0 %vm64_vm0, %v12336_v16  ;;  %10110 = vmatprep.subr.bf16.mxu1 %v10492_v0 }
  0xe2   :  { %8606 = vmatmul.mubr.msk.f32.gmra.mrb[44].mxu1 %vm64_vm0, %v2067_v35  ;;  %8537 = vmatprep.mubr.msk.f32.mxu0 %vm10494_vm1, %v12213_v42 }
  0xe3   :  { %8608 = vmatprep.mubr.msk.f32.mxu1 %vm10494_vm1, %v12213_v42  ;;  %10106 = vmatpush3.bf16.msra.mxu0 %v10105_v23  ;;  %v2926_v23 = vld [vmem:[%s15081_s20 + $0xd0] sm:$0xff] }
  0xe4   :  { %10112 = vmatpush3.bf16.msra.mxu1 %v10111_v25  ;;  %10113 = vmatprep.subr.bf16.mxu0 %v10492_v0  ;;  %v2927_v25 = vld [vmem:[%s15081_s20 + $0xd8] sm:$0xff] }
  0xe5   :  { %v1450_v2 = vpop.f32.mrb[0].mxu0  ;;  %8538 = vmatmul.mubr.msk.f32.gmra.mrb[46].mxu0 %vm64_vm0, %v12348_v30  ;;  %10119 = vmatprep.subr.bf16.mxu1 %v10492_v0 }
  0xe6   :  { %v8391_v61 = vpop.f32.mrb[1].mxu0  ;;  %8609 = vmatmul.mubr.msk.f32.gmra.mrb[46].mxu1 %vm64_vm0, %v2068_v29  ;;  %8540 = vmatprep.mubr.msk.f32.mxu0 %vm10494_vm1, %v12213_v42  ;;  %v10120_v29 = vpack.c.bf16 %v3204_v34, %v3203_v13 }
  0xe7   :  { %v1683_v10 = vpop.f32.mrb[0].mxu1  ;;  %8611 = vmatprep.mubr.msk.f32.mxu1 %vm10494_vm1, %v12213_v42  ;;  %v1807_v61 = vld [vmem:[#allocation3 + $0xa2] sm:$0x3] }
  0xe8   :  { %v12318_v51 = vadd.f32 %v1683_v10, %v1450_v2  ;;  %v8462_v50 = vpop.f32.mrb[1].mxu1 }
  0xe9   :  { %v1455_v62 = vpop.f32.mrb[2].mxu0  ;;  %8541 = vmatmul.mubr.msk.f32.gmra.mrb[48].mxu0 %vm64_vm0, %v12359_v20  ;;  %v2924_v50 = vld [vmem:[%s15081_s20 + $0xc0] sm:$0xff] }
  0xea   :  { %v8394_v14 = vpop.f32.mrb[3].mxu0  ;;  %8612 = vmatmul.mubr.msk.f32.gmra.mrb[48].mxu1 %vm64_vm0, %v2069_v49  ;;  %8543 = vmatprep.mubr.msk.f32.mxu0 %vm10494_vm1, %v12213_v42 }
  0xeb   :  { %v1688_v41 = vpop.f32.mrb[2].mxu1  ;;  %8614 = vmatprep.mubr.msk.f32.mxu1 %vm10494_vm1, %v12213_v42 }
  0xec   :  { %v12338_v11 = vadd.f32 %v1688_v41, %v1455_v62  ;;  %v8465_v6 = vpop.f32.mrb[3].mxu1  ;;  %v10114_v62 = vpack.c.bf16 %v2925_v17, %v2924_v50  ;;  %v2624_v41 = vld [vmem:[#allocation3 + $0xb] sm:$0xff] }
  0xed   :  { %8544 = vmatmul.mubr.msk.f32.gmra.mrb[50].mxu0 %vm64_vm0, %v12369_v31  ;;  %v12643_v17 = vld [vmem:[#allocation3 + $0x4b] sm:$0xff] }
  0xee   :  { %8615 = vmatmul.mubr.msk.f32.gmra.mrb[50].mxu1 %vm64_vm0, %v2070_v37  ;;  %8546 = vmatprep.mubr.msk.f32.mxu0 %vm10494_vm1, %v12213_v42  ;;  %v3205_v37 = vld [vmem:[%s15081_s20 + $0xf0] sm:$0xff] }
  0xef   :  { %8617 = vmatprep.mubr.msk.f32.mxu1 %vm10494_vm1, %v12213_v42 }
  0xf1   :  { %8547 = vmatmul.mubr.msk.f32.gmra.mrb[52].mxu0 %vm64_vm0, %v12378_v24 }
  0xf2   :  { %8618 = vmatmul.mubr.msk.f32.gmra.mrb[52].mxu1 %vm64_vm0, %v2071_v43  ;;  %8549 = vmatprep.mubr.msk.f32.mxu0 %vm10494_vm1, %v12213_v42  ;;  %v3206_v43 = vld [vmem:[%s15081_s20 + $0xf8] sm:$0xff] }
  0xf3   :  { %8620 = vmatprep.mubr.msk.f32.mxu1 %vm10494_vm1, %v12213_v42 }
  0xf5   :  { %8550 = vmatmul.mubr.msk.f32.gmra.mrb[54].mxu0 %vm64_vm0, %v12387_v19 }
  0xf6   :  { %8621 = vmatmul.mubr.msk.f32.gmra.mrb[54].mxu1 %vm64_vm0, %v2072_v45  ;;  %8552 = vmatprep.mubr.msk.f32.mxu0 %vm10494_vm1, %v12213_v42  ;;  %v12565_v45 = vld [vmem:[#allocation3 + $0x13] sm:$0xff] }
  0xf7   :  { %8623 = vmatprep.mubr.msk.f32.mxu1 %vm10494_vm1, %v12213_v42 }
  0xf9   :  { %8553 = vmatmul.mubr.msk.f32.gmra.mrb[56].mxu0 %vm64_vm0, %v12396_v52 }
  0xfa   :  { %8624 = vmatmul.mubr.msk.f32.gmra.mrb[56].mxu1 %vm64_vm0, %v2073_v27  ;;  %8555 = vmatprep.mubr.msk.f32.mxu0 %vm10494_vm1, %v12213_v42 }
  0xfb   :  { %8626 = vmatprep.mubr.msk.f32.mxu1 %vm10494_vm1, %v12213_v42 }
  0xfd   :  { %8556 = vmatmul.mubr.msk.f32.gmra.mrb[58].mxu0 %vm64_vm0, %v12405_v58 }
  0xfe   :  { %8627 = vmatmul.mubr.msk.f32.gmra.mrb[58].mxu1 %vm64_vm0, %v2074_v22  ;;  %8558 = vmatprep.mubr.msk.f32.mxu0 %vm10494_vm1, %v12213_v42  ;;  %v10123_v22 = vpack.c.bf16 %v3206_v43, %v3205_v37 }
  0xff   :  { %8629 = vmatprep.mubr.msk.f32.mxu1 %vm10494_vm1, %v12213_v42 }
 0x101   :  { %8559 = vmatmul.mubr.msk.f32.gmra.mrb[60].mxu0 %vm64_vm0, %v12414_v46 }
 0x102   :  { %8630 = vmatmul.mubr.msk.f32.gmra.mrb[60].mxu1 %vm64_vm0, %v2075_v48  ;;  %8561 = vmatprep.mubr.msk.f32.mxu0 %vm10494_vm1, %v12213_v42  ;;  %v12578_v48 = vld [vmem:[#allocation3 + $0x1b] sm:$0xff] }
 0x103   :  { %8632 = vmatprep.mubr.msk.f32.mxu1 %vm10494_vm1, %v12213_v42 }
 0x105   :  { %8562 = vmatmul.mubr.msk.f32.gmra.mrb[62].mxu0 %vm64_vm0, %v12423_v53 }
 0x106   :  { %8633 = vmatmul.mubr.msk.f32.gmra.mrb[62].mxu1 %vm64_vm0, %v2076_v15  ;;  %8564 = vmatprep.mubr.msk.f32.mxu0 %vm10494_vm1, %v12213_v42  ;;  %v12611_v15 = vld [vmem:[#allocation3 + $0x33] sm:$0xff] }
 0x107   :  { %8635 = vmatprep.mubr.msk.f32.mxu1 %vm10494_vm1, %v12213_v42 }
 0x109   :  { %8565 = vmatmul.mubr.msk.f32.gmra.mrb[64].mxu0 %vm64_vm0, %v12434_v1 }
 0x10a   :  { %8636 = vmatmul.mubr.msk.f32.gmra.mrb[64].mxu1 %vm64_vm0, %v2077_v21  ;;  %8567 = vmatprep.mubr.msk.f32.mxu0 %vm10494_vm1, %v12213_v42 }
 0x10b   :  { %8638 = vmatprep.mubr.msk.f32.mxu1 %vm10494_vm1, %v12213_v42 }
 0x10d   :  { %8568 = vmatmul.mubr.msk.f32.gmra.mrb[66].mxu0 %vm64_vm0, %v12443_v3 }
 0x10e   :  { %8639 = vmatmul.mubr.msk.f32.gmra.mrb[66].mxu1 %vm64_vm0, %v12118_v9  ;;  %8570 = vmatprep.mubr.msk.f32.mxu0 %vm10494_vm1, %v12213_v42 }
 0x10f   :  { %8641 = vmatprep.mubr.msk.f32.mxu1 %vm10494_vm1, %v12213_v42 }
 0x111   :  { %8571 = vmatmul.mubr.msk.f32.gmra.mrb[68].mxu0 %vm64_vm0, %v12453_v26 }
 0x112   :  { %8642 = vmatmul.mubr.msk.f32.gmra.mrb[68].mxu1 %vm64_vm0, %v12207_v56  ;;  %8573 = vmatprep.mubr.msk.f32.mxu0 %vm10494_vm1, %v12213_v42  ;;  %v12475_v56 = vld [vmem:[#allocation3 + $0x7a] sm:$0xff] }
 0x113   :  { %8644 = vmatprep.mubr.msk.f32.mxu1 %vm10494_vm1, %v12213_v42 }
 0x115   :  { %v1460_v38 = vpop.f32.mrb[4].mxu0  ;;  %8574 = vmatmul.mubr.msk.f32.gmra.mrb[70].mxu0 %vm64_vm0, %v12465_v5 }
 0x116   :  { %v1693_v40 = vpop.f32.mrb[4].mxu1  ;;  %v8397_v32 = vpop.f32.mrb[5].mxu0  ;;  %8645 = vmatmul.mubr.msk.f32.gmra.mrb[70].mxu1 %vm64_vm0, %v12253_v54  ;;  %8576 = vmatprep.mubr.msk.f32.mxu0 %vm10494_vm1, %v12213_v42  ;;  %v12495_v54 = vld [vmem:[#allocation3 + $0x8a] sm:$0xff] }
 0x117   :  { %v12427_v63 = vadd.f32 %v1693_v40, %v1460_v38  ;;  %v8468_v18 = vpop.f32.mrb[5].mxu1  ;;  %8647 = vmatprep.mubr.msk.f32.mxu1 %vm10494_vm1, %v12213_v42  ;;  %v12590_v38 = vld [vmem:[#allocation3 + $0x23] sm:$0xff]  ;;  %v12601_v40 = vld [vmem:[#allocation3 + $0x2b] sm:$0xff] }
 0x119   :  { %8577 = vmatmul.mubr.msk.f32.gmra.mrb[72].mxu0 %vm64_vm0, %v12475_v56 }
 0x11a   :  { %8648 = vmatmul.mubr.msk.f32.gmra.mrb[72].mxu1 %vm64_vm0, %v12263_v57  ;;  %8579 = vmatprep.mubr.msk.f32.mxu0 %vm10494_vm1, %v12213_v42 }
 0x11b   :  { %8650 = vmatprep.mubr.msk.f32.mxu1 %vm10494_vm1, %v12213_v42 }
 0x11d   :  { %8580 = vmatmul.mubr.msk.f32.gmra.mrb[74].mxu0 %vm64_vm0, %v12485_v33 }
 0x11e   :  { %8651 = vmatmul.mubr.msk.f32.gmra.mrb[74].mxu1 %vm64_vm0, %v12273_v39  ;;  %8582 = vmatprep.mubr.msk.f32.mxu0 %vm10494_vm1, %v12213_v42  ;;  %v12507_v39 = vld [vmem:[#allocation3 + $0x92] sm:$0xff] }
 0x11f   :  { %8653 = vmatprep.mubr.msk.f32.mxu1 %vm10494_vm1, %v12213_v42 }
 0x121   :  { %8583 = vmatmul.mubr.msk.f32.gmra.mrb[76].mxu0 %vm64_vm0, %v12495_v54 }
 0x122   :  { %8654 = vmatmul.mubr.msk.f32.gmra.mrb[76].mxu1 %vm64_vm0, %v12282_v4  ;;  %8585 = vmatprep.mubr.msk.f32.mxu0 %vm10494_vm1, %v12213_v42  ;;  %v2085_v4 = vld [vmem:[#allocation3 + $0xa1] sm:$0xff] }
 0x123   :  { %8656 = vmatprep.mubr.msk.f32.mxu1 %vm10494_vm1, %v12213_v42 }
 0x124   :  { %v1465_v8 = vpop.f32.mrb[6].mxu0 }
 0x125   :  { %v1698_v28 = vpop.f32.mrb[6].mxu1  ;;  %v8400_v59 = vpop.f32.mrb[7].mxu0  ;;  %8586 = vmatmul.mubr.msk.f32.gmra.mrb[78].mxu0 %vm64_vm0, %v12507_v39 }
 0x126   :  { %v12461_v55 = vadd.f32 %v1698_v28, %v1465_v8  ;;  %v8471_v9 = vpop.f32.mrb[7].mxu1  ;;  %8657 = vmatmul.mubr.msk.f32.gmra.mrb[78].mxu1 %vm64_vm0, %v12291_v60  ;;  %8588 = vmatprep.mubr.msk.f32.mxu0 %vm10494_vm1, %v12213_v42  ;;  %v2086_v60 = vld [vmem:[#allocation3 + $0xa9] sm:$0x3]  ;;  %v12623_v59 = vld [vmem:[#allocation3 + $0x3b] sm:$0xff] }
 0x127   :  { %8659 = vmatprep.mubr.msk.f32.mxu1 %vm10494_vm1, %v12213_v42 }
 0x129   :  { %8589 = vmatmul.mubr.msk.f32.gmra.mrb[80].mxu0 %vm64_vm0, %v12517_v47 }
 0x12a   :  { %8660 = vmatmul.mubr.msk.f32.gmra.mrb[80].mxu1 %vm64_vm0, %v2085_v4  ;;  %8591 = vmatprep.mubr.msk.f32.mxu0 %vm10494_vm1, %v12213_v42 }
 0x12b   :  { %8662 = vmatprep.mubr.msk.f32.mxu1 %vm10494_vm1, %v12213_v42 }
 0x12d   :  { %8592 = vmatmul.mubr.msk.f32.gmra.mrb[82].mxu0 %vm64_vm0, %v1807_v61 }
 0x12e   :  { %8663 = vmatmul.mubr.msk.f32.gmra.mrb[82].mxu1 %vm64_vm0, %v2086_v60  ;;  %8673 = vmatprep.mubr.msk.f32.mxu0 %vm10494_vm1, %v12213_v42 }
 0x12f   :  { %8744 = vmatprep.mubr.msk.f32.mxu1 %vm10494_vm1, %v12213_v42 }
 0x131   :  { %8674 = vmatmul.mubr.msk.f32.vlgmr.msra.gmra.mrb[84].mxu0 %vm64_vm0, %v12336_v16  ;;  %v10117_v16 = vpack.c.bf16 %v2927_v25, %v2926_v23 }
 0x132   :  { %8745 = vmatmul.mubr.msk.f32.vlgmr.msra.gmra.mrb[84].mxu1 %vm64_vm0, %v2624_v41  ;;  %10115 = vmatpush3.bf16.msra.mxu0 %v10114_v62  ;;  %v12653_v62 = vld [vmem:[#allocation3 + $0x53] sm:$0xff] }
 0x133   :  { %v1470_v57 = vpop.f32.mrb[8].mxu0  ;;  %8676 = vmatprep.mubr.msk.f32.mxu0 %vm10494_vm1, %v12213_v42  ;;  %8747 = vmatprep.mubr.msk.f32.mxu1 %vm10494_vm1, %v12213_v42 }
 0x134   :  { %v1703_v2 = vpop.f32.mrb[8].mxu1  ;;  %v8403_v7 = vpop.f32.mrb[9].mxu0  ;;  %10116 = vmatprep.subr.bf16.mxu0 %v10492_v0  ;;  %10121 = vmatpush3.bf16.msra.mxu1 %v10120_v29  ;;  %v12665_v29 = vld [vmem:[#allocation3 + $0x5b] sm:$0xff] }
 0x135   :  { %v12499_v10 = vadd.f32 %v1703_v2, %v1470_v57  ;;  %v8474_v36 = vpop.f32.mrb[9].mxu1  ;;  %8677 = vmatmul.mubr.msk.f32.gmra.mrb[86].mxu0 %vm64_vm0, %v12348_v30  ;;  %10122 = vmatprep.subr.bf16.mxu1 %v10492_v0 }
 0x136   :  { %8748 = vmatmul.mubr.msk.f32.gmra.mrb[86].mxu1 %vm64_vm0, %v12565_v45  ;;  %8679 = vmatprep.mubr.msk.f32.mxu0 %vm10494_vm1, %v12213_v42  ;;  %v12633_v36 = vld [vmem:[#allocation3 + $0x43] sm:$0xff] }
 0x137   :  { %8750 = vmatprep.mubr.msk.f32.mxu1 %vm10494_vm1, %v12213_v42  ;;  %10118 = vmatpush3.bf16.msra.mxu0 %v10117_v16 }
 0x138   :  { %10124 = vmatpush3.bf16.msra.mxu1 %v10123_v22  ;;  %10125 = vmatprep.subr.bf16.mxu0 %v10492_v0 }
 0x139   :  { %8680 = vmatmul.mubr.msk.f32.gmra.mrb[88].mxu0 %vm64_vm0, %v12359_v20  ;;  %10131 = vmatprep.subr.bf16.mxu1 %v10492_v0 }
 0x13a   :  { %8751 = vmatmul.mubr.msk.f32.gmra.mrb[88].mxu1 %vm64_vm0, %v12578_v48  ;;  %8682 = vmatprep.mubr.msk.f32.mxu0 %vm10494_vm1, %v12213_v42 }
 0x13b   :  { %8753 = vmatprep.mubr.msk.f32.mxu1 %vm10494_vm1, %v12213_v42 }
 0x13d   :  { %8683 = vmatmul.mubr.msk.f32.gmra.mrb[90].mxu0 %vm64_vm0, %v12369_v31 }
 0x13e   :  { %8754 = vmatmul.mubr.msk.f32.gmra.mrb[90].mxu1 %vm64_vm0, %v12590_v38  ;;  %8685 = vmatprep.mubr.msk.f32.mxu0 %vm10494_vm1, %v12213_v42 }
 0x13f   :  { %8756 = vmatprep.mubr.msk.f32.mxu1 %vm10494_vm1, %v12213_v42 }
 0x141   :  { %8686 = vmatmul.mubr.msk.f32.gmra.mrb[92].mxu0 %vm64_vm0, %v12378_v24 }
 0x142   :  { %v1475_v44 = vpop.f32.mrb[10].mxu0  ;;  %8757 = vmatmul.mubr.msk.f32.gmra.mrb[92].mxu1 %vm64_vm0, %v12601_v40  ;;  %8688 = vmatprep.mubr.msk.f32.mxu0 %vm10494_vm1, %v12213_v42 }
 0x143   :  { %v1708_v12 = vpop.f32.mrb[10].mxu1  ;;  %v8406_v14 = vpop.f32.mrb[11].mxu0  ;;  %8759 = vmatprep.mubr.msk.f32.mxu1 %vm10494_vm1, %v12213_v42 }
 0x144   :  { %v12546_v35 = vadd.f32 %v1708_v12, %v1475_v44  ;;  %v8477_v6 = vpop.f32.mrb[11].mxu1 }
 0x145   :  { %8689 = vmatmul.mubr.msk.f32.gmra.mrb[94].mxu0 %vm64_vm0, %v12387_v19 }
 0x146   :  { %8760 = vmatmul.mubr.msk.f32.gmra.mrb[94].mxu1 %vm64_vm0, %v12611_v15  ;;  %8691 = vmatprep.mubr.msk.f32.mxu0 %vm10494_vm1, %v12213_v42 }
 0x147   :  { %v1713_v49 = vpop.f32.mrb[12].mxu1  ;;  %8762 = vmatprep.mubr.msk.f32.mxu1 %vm10494_vm1, %v12213_v42 }
 0x148   :  { %v8480_v27 = vpop.f32.mrb[13].mxu1 }
 0x149   :  { %8692 = vmatmul.mubr.msk.f32.gmra.mrb[96].mxu0 %vm64_vm0, %v12396_v52  ;;  %v12677_v27 = vld [vmem:[#allocation3 + $0x63] sm:$0xff] }
 0x14a   :  { %8763 = vmatmul.mubr.msk.f32.gmra.mrb[96].mxu1 %vm64_vm0, %v12623_v59  ;;  %8694 = vmatprep.mubr.msk.f32.mxu0 %vm10494_vm1, %v12213_v42 }
 0x14b   :  { %8765 = vmatprep.mubr.msk.f32.mxu1 %vm10494_vm1, %v12213_v42 }
 0x14d   :  { %8695 = vmatmul.mubr.msk.f32.gmra.mrb[98].mxu0 %vm64_vm0, %v12405_v58 }
 0x14e   :  { %8766 = vmatmul.mubr.msk.f32.gmra.mrb[98].mxu1 %vm64_vm0, %v12633_v36  ;;  %8697 = vmatprep.mubr.msk.f32.mxu0 %vm10494_vm1, %v12213_v42 }
 0x14f   :  { %8768 = vmatprep.mubr.msk.f32.mxu1 %vm10494_vm1, %v12213_v42 }
 0x151   :  { %8698 = vmatmul.mubr.msk.f32.gmra.mrb[100].mxu0 %vm64_vm0, %v12414_v46 }
 0x152   :  { %8769 = vmatmul.mubr.msk.f32.gmra.mrb[100].mxu1 %vm64_vm0, %v12643_v17  ;;  %8700 = vmatprep.mubr.msk.f32.mxu0 %vm10494_vm1, %v12213_v42 }
 0x153   :  { %8771 = vmatprep.mubr.msk.f32.mxu1 %vm10494_vm1, %v12213_v42 }
 0x154   :  { %v1480_v32 = vpop.f32.mrb[12].mxu0 }
 0x155   :  { %v1718_v18 = vpop.f32.mrb[14].mxu1  ;;  %v12617_v21 = vadd.f32 %v1713_v49, %v1480_v32  ;;  %v8409_v8 = vpop.f32.mrb[13].mxu0  ;;  %8701 = vmatmul.mubr.msk.f32.gmra.mrb[102].mxu0 %vm64_vm0, %v12423_v53 }
 0x156   :  { %v8483_v28 = vpop.f32.mrb[15].mxu1  ;;  %8772 = vmatmul.mubr.msk.f32.gmra.mrb[102].mxu1 %vm64_vm0, %v12653_v62  ;;  %8703 = vmatprep.mubr.msk.f32.mxu0 %vm10494_vm1, %v12213_v42 }
 0x157   :  { %8774 = vmatprep.mubr.msk.f32.mxu1 %vm10494_vm1, %v12213_v42  ;;  %v12689_v28 = vld [vmem:[#allocation3 + $0x6b] sm:$0xff] }
 0x158   :  { %v1485_v9 = vpop.f32.mrb[14].mxu0 }
 0x159   :  { %v1723_v57 = vpop.f32.mrb[16].mxu1  ;;  %v8412_v2 = vpop.f32.mrb[15].mxu0  ;;  %8704 = vmatmul.mubr.msk.f32.gmra.mrb[104].mxu0 %vm64_vm0, %v12434_v1  ;;  %v12699_v9 = vld [vmem:[#allocation3 + $0x73] sm:$0xff] }
 0x15a   :  { %v8486_v7 = vpop.f32.mrb[17].mxu1  ;;  %8775 = vmatmul.mubr.msk.f32.gmra.mrb[104].mxu1 %vm64_vm0, %v12665_v29  ;;  %8706 = vmatprep.mubr.msk.f32.mxu0 %vm10494_vm1, %v12213_v42  ;;  %v12709_v57 = vld [vmem:[#allocation3 + $0x7b] sm:$0xff]  ;;  %v12719_v2 = vld [vmem:[#allocation3 + $0x83] sm:$0xff] }
 0x15b   :  { %8777 = vmatprep.mubr.msk.f32.mxu1 %vm10494_vm1, %v12213_v42 }
 0x15c   :  { %v1490_v4 = vpop.f32.mrb[16].mxu0 }
 0x15d   :  { %v1728_v61 = vpop.f32.mrb[18].mxu1  ;;  %v8415_v60 = vpop.f32.mrb[17].mxu0  ;;  %8707 = vmatmul.mubr.msk.f32.gmra.mrb[106].mxu0 %vm64_vm0, %v12443_v3 }
 0x15e   :  { %v8489_v50 = vpop.f32.mrb[19].mxu1  ;;  %8778 = vmatmul.mubr.msk.f32.gmra.mrb[106].mxu1 %vm64_vm0, %v12677_v27  ;;  %8709 = vmatprep.mubr.msk.f32.mxu0 %vm10494_vm1, %v12213_v42 }
 0x15f   :  { %8780 = vmatprep.mubr.msk.f32.mxu1 %vm10494_vm1, %v12213_v42 }
 0x160   :  { %v1495_v44 = vpop.f32.mrb[18].mxu0 }
 0x161   :  { %v1733_v12 = vpop.f32.mrb[20].mxu1  ;;  %v8418_v13 = vpop.f32.mrb[19].mxu0  ;;  %8710 = vmatmul.mubr.msk.f32.gmra.mrb[108].mxu0 %vm64_vm0, %v12453_v26  ;;  %v12731_v44 = vld [vmem:[#allocation3 + $0x8b] sm:$0xff] }
 0x162   :  { %v8492_v34 = vpop.f32.mrb[21].mxu1  ;;  %8781 = vmatmul.mubr.msk.f32.gmra.mrb[108].mxu1 %vm64_vm0, %v12689_v28  ;;  %8712 = vmatprep.mubr.msk.f32.mxu0 %vm10494_vm1, %v12213_v42  ;;  %v12751_v13 = vld [vmem:[#allocation3 + $0x9b] sm:$0xff] }
 0x163   :  { %8783 = vmatprep.mubr.msk.f32.mxu1 %vm10494_vm1, %v12213_v42  ;;  %v12759_v34 = vld [vmem:[#allocation3 + $0xa2] sm:$0xff] }
 0x164   :  { %v1500_v41 = vpop.f32.mrb[20].mxu0 }
 0x165   :  { %v1738_v14 = vpop.f32.mrb[22].mxu1  ;;  %v12659_v6 = vadd.f32 %v1733_v12, %v1500_v41  ;;  %v8421_v23 = vpop.f32.mrb[21].mxu0  ;;  %8713 = vmatmul.mubr.msk.f32.gmra.mrb[110].mxu0 %vm64_vm0, %v12465_v5  ;;  %v12741_v12 = vld [vmem:[#allocation3 + $0x93] sm:$0xff]  ;;  %v12763_v41 = vld [vmem:[#allocation3 + $0xa3] sm:$0xff] }
 0x166   :  { %v8495_v25 = vpop.f32.mrb[23].mxu1  ;;  %8784 = vmatmul.mubr.msk.f32.gmra.mrb[110].mxu1 %vm64_vm0, %v12699_v9  ;;  %8715 = vmatprep.mubr.msk.f32.mxu0 %vm10494_vm1, %v12213_v42 }
 0x167   :  { %8786 = vmatprep.mubr.msk.f32.mxu1 %vm10494_vm1, %v12213_v42 }
 0x168   :  { %v1505_v49 = vpop.f32.mrb[22].mxu0 }
 0x169   :  { %v12671_v37 = vadd.f32 %v1738_v14, %v1505_v49  ;;  %v8424_v43 = vpop.f32.mrb[23].mxu0  ;;  %v1743_v22 = vpop.f32.mrb[24].mxu1  ;;  %8716 = vmatmul.mubr.msk.f32.gmra.mrb[112].mxu0 %vm64_vm0, %v12475_v56 }
 0x16a   :  { %v8498_v8 = vpop.f32.mrb[25].mxu1  ;;  %8787 = vmatmul.mubr.msk.f32.gmra.mrb[112].mxu1 %vm64_vm0, %v12709_v57  ;;  %8718 = vmatprep.mubr.msk.f32.mxu0 %vm10494_vm1, %v12213_v42 }
 0x16b   :  { %8789 = vmatprep.mubr.msk.f32.mxu1 %vm10494_vm1, %v12213_v42  ;;  %v3482_v8 = vld [vmem:[%s15081_s20 + $0x100] sm:$0xff] }
 0x16c   :  { %v1510_v16 = vpop.f32.mrb[24].mxu0 }
 0x16d   :  { %v12683_v32 = vadd.f32 %v1743_v22, %v1510_v16  ;;  %v8427_v18 = vpop.f32.mrb[25].mxu0  ;;  %8719 = vmatmul.mubr.msk.f32.gmra.mrb[114].mxu0 %vm64_vm0, %v12485_v33  ;;  %v2365_v16 = vld [vmem:[#allocation3 + $0xaa] sm:$0x3] }
 0x16e   :  { %8790 = vmatmul.mubr.msk.f32.gmra.mrb[114].mxu1 %vm64_vm0, %v12719_v2  ;;  %8721 = vmatprep.mubr.msk.f32.mxu0 %vm10494_vm1, %v12213_v42  ;;  %v2644_v22 = vld [vmem:[#allocation3 + $0xab] sm:$0x3] }
 0x16f   :  { %8792 = vmatprep.mubr.msk.f32.mxu1 %vm10494_vm1, %v12213_v42 }
 0x171   :  { %8722 = vmatmul.mubr.msk.f32.gmra.mrb[116].mxu0 %vm64_vm0, %v12495_v54 }
 0x172   :  { %8793 = vmatmul.mubr.msk.f32.gmra.mrb[116].mxu1 %vm64_vm0, %v12731_v44  ;;  %8724 = vmatprep.mubr.msk.f32.mxu0 %vm10494_vm1, %v12213_v42 }
 0x173   :  { %8795 = vmatprep.mubr.msk.f32.mxu1 %vm10494_vm1, %v12213_v42 }
 0x174   :  { %v1515_v7 = vpop.f32.mrb[26].mxu0 }
 0x175   :  { %v1748_v4 = vpop.f32.mrb[26].mxu1  ;;  %v8430_v60 = vpop.f32.mrb[27].mxu0  ;;  %8725 = vmatmul.mubr.msk.f32.gmra.mrb[118].mxu0 %vm64_vm0, %v12507_v39 }
 0x176   :  { %v12721_v61 = vadd.f32 %v1748_v4, %v1515_v7  ;;  %v8501_v50 = vpop.f32.mrb[27].mxu1  ;;  %8796 = vmatmul.mubr.msk.f32.gmra.mrb[118].mxu1 %vm64_vm0, %v12741_v12  ;;  %8727 = vmatprep.mubr.msk.f32.mxu0 %vm10494_vm1, %v12213_v42  ;;  %v3483_v7 = vld [vmem:[%s15081_s20 + $0x108] sm:$0xff] }
 0x177   :  { %8798 = vmatprep.mubr.msk.f32.mxu1 %vm10494_vm1, %v12213_v42  ;;  %v10126_v60 = vpack.c.bf16 %v3483_v7, %v3482_v8  ;;  %v3484_v50 = vld [vmem:[%s15081_s20 + $0x110] sm:$0xff] }
 0x179   :  { %8728 = vmatmul.mubr.msk.f32.gmra.mrb[120].mxu0 %vm64_vm0, %v12517_v47 }
 0x17a   :  { %8799 = vmatmul.mubr.msk.f32.gmra.mrb[120].mxu1 %vm64_vm0, %v12751_v13  ;;  %8730 = vmatprep.mubr.msk.f32.mxu0 %vm10494_vm1, %v12213_v42 }
 0x17b   :  { %8801 = vmatprep.mubr.msk.f32.mxu1 %vm10494_vm1, %v12213_v42 }
 0x17d   :  { %8731 = vmatmul.mubr.msk.f32.gmra.mrb[122].mxu0 %vm64_vm0, %v12759_v34 }
 0x17e   :  { %8802 = vmatmul.mubr.msk.f32.gmra.mrb[122].mxu1 %vm64_vm0, %v12763_v41  ;;  %8733 = vmatprep.mubr.msk.f32.mxu0 %vm10494_vm1, %v12213_v42 }
 0x17f   :  { %8804 = vmatprep.mubr.msk.f32.mxu1 %vm10494_vm1, %v12213_v42 }
 0x181   :  { %8734 = vmatmul.mubr.msk.f32.gmra.mrb[124].mxu0 %vm64_vm0, %v2365_v16 }
 0x182   :  { %8805 = vmatmul.mubr.msk.f32.gmra.mrb[124].mxu1 %vm64_vm0, %v2644_v22  ;;  %8815 = vmatprep.mubr.msk.f32.mxu0 %vm10494_vm1, %v12213_v42 }
 0x183   :  { %8886 = vmatprep.mubr.msk.f32.mxu1 %vm10494_vm1, %v12213_v42 }
 0x185   :  { %8816 = vmatmul.mubr.msk.f32.vlgmr.msra.gmra.mrb[126].mxu0 %vm64_vm0, %v12348_v30 }
 0x186   :  { %v1520_v14 = vpop.f32.mrb[28].mxu0  ;;  %8887 = vmatmul.mubr.msk.f32.vlgmr.msra.gmra.mrb[126].mxu1 %vm64_vm0, %v12565_v45  ;;  %10127 = vmatpush3.bf16.msra.mxu0 %v10126_v60 }
 0x187   :  { %v1753_v23 = vpop.f32.mrb[28].mxu1  ;;  %v8433_v49 = vpop.f32.mrb[29].mxu0  ;;  %8818 = vmatprep.mubr.msk.f32.mxu0 %vm10494_vm1, %v12213_v42  ;;  %8889 = vmatprep.mubr.msk.f32.mxu1 %vm10494_vm1, %v12213_v42 }
 0x188   :  { %v12765_v25 = vadd.f32 %v1753_v23, %v1520_v14  ;;  %v8504_v43 = vpop.f32.mrb[29].mxu1  ;;  %v3485_v14 = vld [vmem:[%s15081_s20 + $0x118] sm:$0xff]  ;;  %10128 = vmatprep.subr.bf16.mxu0 %v10492_v0 }
 0x189   :  { %v10129_v23 = vpack.c.bf16 %v3485_v14, %v3484_v50  ;;  %8819 = vmatmul.mubr.msk.f32.gmra.mrb[128].mxu0 %vm64_vm0, %v12359_v20 }
 0x18a   :  { %8890 = vmatmul.mubr.msk.f32.gmra.mrb[128].mxu1 %vm64_vm0, %v12578_v48  ;;  %8821 = vmatprep.mubr.msk.f32.mxu0 %vm10494_vm1, %v12213_v42 }
 0x18b   :  { %v1758_v18 = vpop.f32.mrb[30].mxu1  ;;  %8892 = vmatprep.mubr.msk.f32.mxu1 %vm10494_vm1, %v12213_v42  ;;  %10130 = vmatpush3.bf16.msra.mxu0 %v10129_v23 }
 0x18c   :  { %v8507_v4 = vpop.f32.mrb[31].mxu1  ;;  %10155 = vmatprep.subr.bf16.mxu0 %v10492_v0 }
 0x18d   :  { %8822 = vmatmul.mubr.msk.f32.gmra.mrb[130].mxu0 %vm64_vm0, %v12369_v31  ;;  %v12843_v31 = vld [vmem:[#allocation7] sm:$0xff] }
 0x18e   :  { %8893 = vmatmul.mubr.msk.f32.gmra.mrb[130].mxu1 %vm64_vm0, %v12590_v38  ;;  %8824 = vmatprep.mubr.msk.f32.mxu0 %vm10494_vm1, %v12213_v42  ;;  %91 = vst.msk [vmem:[#allocation5] sm:$0xff] %vm90_vm3, %v12843_v31  ;;  %92 = vst.msk [vmem:[#allocation5 + $0x8] sm:$0xff] %vm90_vm3, %v12843_v31 }
 0x18f   :  { %8895 = vmatprep.mubr.msk.f32.mxu1 %vm10494_vm1, %v12213_v42  ;;  %93 = vst.msk [vmem:[#allocation5 + $0x10] sm:$0xff] %vm90_vm3, %v12843_v31  ;;  %94 = vst.msk [vmem:[#allocation5 + $0x18] sm:$0xff] %vm90_vm3, %v12843_v31 }
 0x190   :  { %95 = vst.msk [vmem:[#allocation5 + $0x20] sm:$0xff] %vm90_vm3, %v12843_v31  ;;  %96 = vst.msk [vmem:[#allocation5 + $0x28] sm:$0xff] %vm90_vm3, %v12843_v31 }
 0x191   :  { %8825 = vmatmul.mubr.msk.f32.gmra.mrb[132].mxu0 %vm64_vm0, %v12378_v24  ;;  %97 = vst.msk [vmem:[#allocation5 + $0x30] sm:$0xff] %vm90_vm3, %v12843_v31  ;;  %98 = vst.msk [vmem:[#allocation5 + $0x38] sm:$0xff] %vm90_vm3, %v12843_v31 }
 0x192   :  { %8896 = vmatmul.mubr.msk.f32.gmra.mrb[132].mxu1 %vm64_vm0, %v12601_v40  ;;  %8827 = vmatprep.mubr.msk.f32.mxu0 %vm10494_vm1, %v12213_v42  ;;  %99 = vst.msk [vmem:[#allocation5 + $0x40] sm:$0xff] %vm90_vm3, %v12843_v31  ;;  %100 = vst.msk [vmem:[#allocation5 + $0x48] sm:$0xff] %vm90_vm3, %v12843_v31 }
 0x193   :  { %8898 = vmatprep.mubr.msk.f32.mxu1 %vm10494_vm1, %v12213_v42  ;;  %101 = vst.msk [vmem:[#allocation5 + $0x50] sm:$0xff] %vm90_vm3, %v12843_v31  ;;  %102 = vst.msk [vmem:[#allocation5 + $0x58] sm:$0xff] %vm90_vm3, %v12843_v31 }
 0x194   :  { %103 = vst.msk [vmem:[#allocation5 + $0x60] sm:$0xff] %vm90_vm3, %v12843_v31  ;;  %104 = vst.msk [vmem:[#allocation5 + $0x68] sm:$0xff] %vm90_vm3, %v12843_v31 }
 0x195   :  { %v1525_v30 = vpop.f32.mrb[30].mxu0  ;;  %8828 = vmatmul.mubr.msk.f32.gmra.mrb[134].mxu0 %vm64_vm0, %v12387_v19 }
 0x196   :  { %v1763_v45 = vpop.f32.mrb[32].mxu1  ;;  %v12810_v49 = vadd.f32 %v1758_v18, %v1525_v30  ;;  %v8436_v43 = vpop.f32.mrb[31].mxu0  ;;  %8899 = vmatmul.mubr.msk.f32.gmra.mrb[134].mxu1 %vm64_vm0, %v12611_v15  ;;  %8830 = vmatprep.mubr.msk.f32.mxu0 %vm10494_vm1, %v12213_v42 }
 0x197   :  { %v8510_v16 = vpop.f32.mrb[33].mxu1  ;;  %8901 = vmatprep.mubr.msk.f32.mxu1 %vm10494_vm1, %v12213_v42 }
 0x199   :  { %v1530_v20 = vpop.f32.mrb[32].mxu0  ;;  %8831 = vmatmul.mubr.msk.f32.gmra.mrb[136].mxu0 %vm64_vm0, %v12396_v52 }
 0x19a   :  { %v12821_v48 = vadd.f32 %v1763_v45, %v1530_v20  ;;  %v8439_v22 = vpop.f32.mrb[33].mxu0  ;;  %8902 = vmatmul.mubr.msk.f32.gmra.mrb[136].mxu1 %vm64_vm0, %v12623_v59  ;;  %8833 = vmatprep.mubr.msk.f32.mxu0 %vm10494_vm1, %v12843_v31 }
 0x19b   :  { %8904 = vmatprep.mubr.msk.f32.mxu1 %vm10494_vm1, %v12843_v31 }
 0x19d   :  { %8834 = vmatmul.mubr.msk.f32.gmra.mrb[138].mxu0 %vm64_vm0, %v12405_v58 }
 0x19e   :  { %8905 = vmatmul.mubr.msk.f32.gmra.mrb[138].mxu1 %vm64_vm0, %v12633_v36  ;;  %8836 = vmatprep.mubr.msk.f32.mxu0 %vm10494_vm1, %v12843_v31 }
 0x19f   :  { %8907 = vmatprep.mubr.msk.f32.mxu1 %vm10494_vm1, %v12843_v31 }
 0x1a0   :  { %v1535_v42 = vpop.f32.mrb[34].mxu0 }
 0x1a1   :  { %v1768_v24 = vpop.f32.mrb[34].mxu1  ;;  %v8442_v19 = vpop.f32.mrb[35].mxu0  ;;  %8837 = vmatmul.mubr.msk.f32.gmra.mrb[140].mxu0 %vm64_vm0, %v12414_v46 }
 0x1a2   :  { %v8513_v52 = vpop.f32.mrb[35].mxu1  ;;  %8908 = vmatmul.mubr.msk.f32.gmra.mrb[140].mxu1 %vm64_vm0, %v12643_v17  ;;  %8839 = vmatprep.mubr.msk.f32.mxu0 %vm10494_vm1, %v12843_v31 }
 0x1a3   :  { %8910 = vmatprep.mubr.msk.f32.mxu1 %vm10494_vm1, %v12843_v31 }
 0x1a4   :  { %v1540_v58 = vpop.f32.mrb[36].mxu0 }
 0x1a5   :  { %v1773_v38 = vpop.f32.mrb[36].mxu1  ;;  %v8445_v40 = vpop.f32.mrb[37].mxu0  ;;  %8840 = vmatmul.mubr.msk.f32.gmra.mrb[142].mxu0 %vm64_vm0, %v12423_v53 }
 0x1a6   :  { %v8516_v15 = vpop.f32.mrb[37].mxu1  ;;  %8911 = vmatmul.mubr.msk.f32.gmra.mrb[142].mxu1 %vm64_vm0, %v12653_v62  ;;  %8842 = vmatprep.mubr.msk.f32.mxu0 %vm10494_vm1, %v12843_v31 }
 0x1a7   :  { %8913 = vmatprep.mubr.msk.f32.mxu1 %vm10494_vm1, %v12843_v31 }
 0x1a8   :  { %v1545_v46 = vpop.f32.mrb[38].mxu0 }
 0x1a9   :  { %v1778_v59 = vpop.f32.mrb[38].mxu1  ;;  %v8448_v36 = vpop.f32.mrb[39].mxu0  ;;  %8843 = vmatmul.mubr.msk.f32.gmra.mrb[144].mxu0 %vm64_vm0, %v12434_v1 }
 0x1aa   :  { %v8519_v17 = vpop.f32.mrb[39].mxu1  ;;  %8914 = vmatmul.mubr.msk.f32.gmra.mrb[144].mxu1 %vm64_vm0, %v12665_v29  ;;  %8845 = vmatprep.mubr.msk.f32.mxu0 %vm10494_vm1, %v12843_v31 }
 0x1ab   :  { %8916 = vmatprep.mubr.msk.f32.mxu1 %vm10494_vm1, %v12843_v31 }
 0x1ac   :  { %v1550_v53 = vpop.f32.mrb[40].mxu0 }
 0x1ad   :  { %v1783_v62 = vpop.f32.mrb[40].mxu1  ;;  %v8451_v18 = vpop.f32.mrb[41].mxu0  ;;  %8846 = vmatmul.mubr.msk.f32.gmra.mrb[146].mxu0 %vm64_vm0, %v12443_v3 }
 0x1ae   :  { %8917 = vmatmul.mubr.msk.f32.gmra.mrb[146].mxu1 %vm64_vm0, %v12677_v27  ;;  %v8522_v1 = vpop.f32.mrb[41].mxu1  ;;  %8848 = vmatprep.mubr.msk.f32.mxu0 %vm10494_vm1, %v12843_v31  ;;  %v3202_v18 = vld [vmem:[#allocation3 + $0xb3] sm:$0x3] }
 0x1af   :  { %8919 = vmatprep.mubr.msk.f32.mxu1 %vm10494_vm1, %v12843_v31 }
 0x1b0   :  { %v1941_v29 = vpop.f32.mrb[42].mxu0 }
 0x1b1   :  { %v2220_v8 = vpop.f32.mrb[42].mxu1  ;;  %v2045_v7 = vadd.f32 %v1941_v29, %v12318_v51  ;;  %v8533_v4 = vpop.f32.mrb[43].mxu0  ;;  %8849 = vmatmul.mubr.msk.f32.gmra.mrb[148].mxu0 %vm64_vm0, %v12453_v26 }
 0x1b2   :  { %8920 = vmatmul.mubr.msk.f32.gmra.mrb[148].mxu1 %vm64_vm0, %v12689_v28  ;;  %v8604_v3 = vpop.f32.mrb[43].mxu1  ;;  %8851 = vmatprep.mubr.msk.f32.mxu0 %vm10494_vm1, %v12843_v31  ;;  %v3461_v4 = vld [vmem:[#allocation3 + $0x14] sm:$0xff] }
 0x1b3   :  { %8922 = vmatprep.mubr.msk.f32.mxu1 %vm10494_vm1, %v12843_v31  ;;  %v12898_v27 = vadd.f32 %v2220_v8, %v2045_v7 }
 0x1b4   :  { %v1946_v60 = vpop.f32.mrb[44].mxu0 }
 0x1b5   :  { %v2225_v50 = vpop.f32.mrb[44].mxu1  ;;  %v2046_v51 = vadd.f32 %v1946_v60, %v12338_v11  ;;  %v8536_v14 = vpop.f32.mrb[45].mxu0  ;;  %8852 = vmatmul.mubr.msk.f32.gmra.mrb[150].mxu0 %vm64_vm0, %v12465_v5 }
 0x1b6   :  { %8923 = vmatmul.mubr.msk.f32.gmra.mrb[150].mxu1 %vm64_vm0, %v12699_v9  ;;  %v8607_v26 = vpop.f32.mrb[45].mxu1  ;;  %8854 = vmatprep.mubr.msk.f32.mxu0 %vm10494_vm1, %v12843_v31 }
 0x1b7   :  { %8925 = vmatprep.mubr.msk.f32.mxu1 %vm10494_vm1, %v12843_v31  ;;  %v12909_v28 = vadd.f32 %v2225_v50, %v2046_v51  ;;  %v3462_v26 = vld [vmem:[#allocation3 + $0x1c] sm:$0xff] }
 0x1b8   :  { %v1951_v23 = vpop.f32.mrb[46].mxu0 }
 0x1b9   :  { %v2230_v30 = vpop.f32.mrb[46].mxu1  ;;  %v2047_v11 = vadd.f32 %v1951_v23, %v12427_v63  ;;  %v8539_v45 = vpop.f32.mrb[47].mxu0  ;;  %8855 = vmatmul.mubr.msk.f32.gmra.mrb[152].mxu0 %vm64_vm0, %v12475_v56 }
 0x1ba   :  { %8926 = vmatmul.mubr.msk.f32.gmra.mrb[152].mxu1 %vm64_vm0, %v12709_v57  ;;  %v8610_v5 = vpop.f32.mrb[47].mxu1  ;;  %8857 = vmatprep.mubr.msk.f32.mxu0 %vm10494_vm1, %v12843_v31 }
 0x1bb   :  { %8928 = vmatprep.mubr.msk.f32.mxu1 %vm10494_vm1, %v12843_v31  ;;  %v12920_v9 = vadd.f32 %v2230_v30, %v2047_v11 }
 0x1bc   :  { %v1956_v43 = vpop.f32.mrb[48].mxu0 }
 0x1bd   :  { %v2235_v16 = vpop.f32.mrb[48].mxu1  ;;  %v2048_v63 = vadd.f32 %v1956_v43, %v12461_v55  ;;  %v8542_v20 = vpop.f32.mrb[49].mxu0  ;;  %8858 = vmatmul.mubr.msk.f32.gmra.mrb[154].mxu0 %vm64_vm0, %v12485_v33 }
 0x1be   :  { %8929 = vmatmul.mubr.msk.f32.gmra.mrb[154].mxu1 %vm64_vm0, %v12719_v2  ;;  %v8613_v56 = vpop.f32.mrb[49].mxu1  ;;  %8860 = vmatprep.mubr.msk.f32.mxu0 %vm10494_vm1, %v12843_v31 }
 0x1bf   :  { %8931 = vmatprep.mubr.msk.f32.mxu1 %vm10494_vm1, %v12843_v31  ;;  %v12931_v57 = vadd.f32 %v2235_v16, %v2048_v63 }
 0x1c0   :  { %v1961_v22 = vpop.f32.mrb[50].mxu0 }
 0x1c1   :  { %v2240_v42 = vpop.f32.mrb[50].mxu1  ;;  %v2049_v55 = vadd.f32 %v1961_v22, %v12499_v10  ;;  %v8545_v24 = vpop.f32.mrb[51].mxu0  ;;  %8861 = vmatmul.mubr.msk.f32.gmra.mrb[156].mxu0 %vm64_vm0, %v12495_v54 }
 0x1c2   :  { %8932 = vmatmul.mubr.msk.f32.gmra.mrb[156].mxu1 %vm64_vm0, %v12731_v44  ;;  %v8616_v33 = vpop.f32.mrb[51].mxu1  ;;  %8863 = vmatprep.mubr.msk.f32.mxu0 %vm10494_vm1, %v12843_v31 }
 0x1c3   :  { %8934 = vmatprep.mubr.msk.f32.mxu1 %vm10494_vm1, %v12843_v31  ;;  %v12942_v2 = vadd.f32 %v2240_v42, %v2049_v55 }
 0x1c4   :  { %v1966_v19 = vpop.f32.mrb[52].mxu0 }
 0x1c5   :  { %v2245_v52 = vpop.f32.mrb[52].mxu1  ;;  %v2050_v10 = vadd.f32 %v1966_v19, %v12546_v35  ;;  %v8548_v58 = vpop.f32.mrb[53].mxu0  ;;  %8864 = vmatmul.mubr.msk.f32.gmra.mrb[158].mxu0 %vm64_vm0, %v12507_v39 }
 0x1c6   :  { %8935 = vmatmul.mubr.msk.f32.gmra.mrb[158].mxu1 %vm64_vm0, %v12741_v12  ;;  %v8619_v54 = vpop.f32.mrb[53].mxu1  ;;  %8866 = vmatprep.mubr.msk.f32.mxu0 %vm10494_vm1, %v12843_v31 }
 0x1c7   :  { %8937 = vmatprep.mubr.msk.f32.mxu1 %vm10494_vm1, %v12843_v31  ;;  %v12953_v44 = vadd.f32 %v2245_v52, %v2050_v10 }
 0x1c8   :  { %v1971_v38 = vpop.f32.mrb[54].mxu0 }
 0x1c9   :  { %v2250_v40 = vpop.f32.mrb[54].mxu1  ;;  %v2051_v35 = vadd.f32 %v1971_v38, %v12617_v21  ;;  %v8551_v15 = vpop.f32.mrb[55].mxu0  ;;  %8867 = vmatmul.mubr.msk.f32.gmra.mrb[160].mxu0 %vm64_vm0, %v12517_v47  ;;  %v2922_v21 = vld [vmem:[#allocation3 + $0xaa] sm:$0xff] }
 0x1ca   :  { %8938 = vmatmul.mubr.msk.f32.gmra.mrb[160].mxu1 %vm64_vm0, %v12751_v13  ;;  %v8622_v39 = vpop.f32.mrb[55].mxu1  ;;  %8869 = vmatprep.mubr.msk.f32.mxu0 %vm10494_vm1, %v12843_v31  ;;  %v3201_v13 = vld [vmem:[#allocation3 + $0xab] sm:$0xff] }
 0x1cb   :  { %8940 = vmatprep.mubr.msk.f32.mxu1 %vm10494_vm1, %v12843_v31  ;;  %v12964_v12 = vadd.f32 %v2250_v40, %v2051_v35 }
 0x1cc   :  { %v1976_v46 = vpop.f32.mrb[56].mxu0 }
 0x1cd   :  { %v2255_v59 = vpop.f32.mrb[56].mxu1  ;;  %v8554_v36 = vpop.f32.mrb[57].mxu0  ;;  %8870 = vmatmul.mubr.msk.f32.gmra.mrb[162].mxu0 %vm64_vm0, %v12759_v34 }
 0x1ce   :  { %8941 = vmatmul.mubr.msk.f32.gmra.mrb[162].mxu1 %vm64_vm0, %v12763_v41  ;;  %v8625_v47 = vpop.f32.mrb[57].mxu1  ;;  %8872 = vmatprep.mubr.msk.f32.mxu0 %vm10494_vm1, %v12843_v31  ;;  %v2923_v41 = vld [vmem:[#allocation3 + $0xb2] sm:$0x3] }
 0x1cf   :  { %8943 = vmatprep.mubr.msk.f32.mxu1 %vm10494_vm1, %v12843_v31 }
 0x1d0   :  { %v1981_v17 = vpop.f32.mrb[58].mxu0 }
 0x1d1   :  { %v2260_v53 = vpop.f32.mrb[58].mxu1  ;;  %v8557_v62 = vpop.f32.mrb[59].mxu0  ;;  %8873 = vmatmul.mubr.msk.f32.gmra.mrb[164].mxu0 %vm64_vm0, %v2922_v21 }
 0x1d2   :  { %8944 = vmatmul.mubr.msk.f32.gmra.mrb[164].mxu1 %vm64_vm0, %v3201_v13  ;;  %v8628_v34 = vpop.f32.mrb[59].mxu1  ;;  %8875 = vmatprep.mubr.msk.f32.mxu0 %vm10494_vm1, %v12843_v31 }
 0x1d3   :  { %8946 = vmatprep.mubr.msk.f32.mxu1 %vm10494_vm1, %v12843_v31 }
 0x1d4   :  { %v1986_v1 = vpop.f32.mrb[60].mxu0 }
 0x1d5   :  { %v2265_v29 = vpop.f32.mrb[60].mxu1  ;;  %v8560_v8 = vpop.f32.mrb[61].mxu0  ;;  %8876 = vmatmul.mubr.msk.f32.gmra.mrb[166].mxu0 %vm64_vm0, %v2923_v41 }
 0x1d6   :  { %8947 = vmatmul.mubr.msk.f32.gmra.mrb[166].mxu1 %vm64_vm0, %v3202_v18  ;;  %v8631_v7 = vpop.f32.mrb[61].mxu1  ;;  %8957 = vmatprep.mubr.msk.f32.mxu0 %vm10494_vm1, %v12843_v31 }
 0x1d7   :  { %9036 = vmatprep.mubr.msk.f32.mxu1 %vm10494_vm1, %v12843_v31 }
 0x1d8   :  { %v1991_v3 = vpop.f32.mrb[62].mxu0 }
 0x1d9   :  { %v2270_v60 = vpop.f32.mrb[62].mxu1  ;;  %v2055_v50 = vadd.f32 %v1991_v3, %v12659_v6  ;;  %v8563_v51 = vpop.f32.mrb[63].mxu0  ;;  %8958 = vmatmul.mubr.msk.f32.vlgmr.msra.gmra.mrb[168].mxu0 %vm64_vm0, %v3461_v4  ;;  %v3463_v6 = vld [vmem:[#allocation3 + $0x24] sm:$0xff] }
 0x1da   :  { %v8634_v14 = vpop.f32.mrb[63].mxu1  ;;  %8960 = vmatprep.mubr.msk.f32.mxu0 %vm10494_vm1, %v12843_v31  ;;  %v3470_v51 = vld [vmem:[#allocation3 + $0x5c] sm:$0xff] }
 0x1db   :  { %v12990_v23 = vadd.f32 %v2270_v60, %v2055_v50 }
 0x1dc   :  { %v1996_v30 = vpop.f32.mrb[64].mxu0 }
 0x1dd   :  { %v2275_v11 = vpop.f32.mrb[64].mxu1  ;;  %v2056_v45 = vadd.f32 %v1996_v30, %v12671_v37  ;;  %v8566_v5 = vpop.f32.mrb[65].mxu0  ;;  %8961 = vmatmul.mubr.msk.f32.gmra.mrb[170].mxu0 %vm64_vm0, %v3462_v26  ;;  %v3464_v37 = vld [vmem:[#allocation3 + $0x2c] sm:$0xff] }
 0x1de   :  { %v8637_v43 = vpop.f32.mrb[65].mxu1  ;;  %8963 = vmatprep.mubr.msk.f32.mxu0 %vm10494_vm1, %v12843_v31 }
 0x1df   :  { %v12996_v16 = vadd.f32 %v2275_v11, %v2056_v45  ;;  %v3471_v45 = vld [vmem:[#allocation3 + $0x64] sm:$0xff] }
 0x1e0   :  { %v2001_v63 = vpop.f32.mrb[66].mxu0 }
 0x1e1   :  { %v2280_v20 = vpop.f32.mrb[66].mxu1  ;;  %v2057_v56 = vadd.f32 %v2001_v63, %v12683_v32  ;;  %v8569_v22 = vpop.f32.mrb[67].mxu0  ;;  %8964 = vmatmul.mubr.msk.f32.gmra.mrb[172].mxu0 %vm64_vm0, %v3463_v6  ;;  %v3465_v32 = vld [vmem:[#allocation3 + $0x34] sm:$0xff] }
 0x1e2   :  { %v8640_v42 = vpop.f32.mrb[67].mxu1  ;;  %8966 = vmatprep.mubr.msk.f32.mxu0 %vm10494_vm1, %v12843_v31 }
 0x1e3   :  { %v13002_v55 = vadd.f32 %v2280_v20, %v2057_v56  ;;  %v3472_v20 = vld [vmem:[#allocation3 + $0x6c] sm:$0xff] }
 0x1e4   :  { %v2006_v24 = vpop.f32.mrb[68].mxu0 }
 0x1e5   :  { %v2285_v33 = vpop.f32.mrb[68].mxu1  ;;  %v2058_v19 = vadd.f32 %v2006_v24, %v12721_v61  ;;  %v8572_v52 = vpop.f32.mrb[69].mxu0  ;;  %8967 = vmatmul.mubr.msk.f32.gmra.mrb[174].mxu0 %vm64_vm0, %v3464_v37  ;;  %v3466_v61 = vld [vmem:[#allocation3 + $0x3c] sm:$0xff] }
 0x1e6   :  { %v8643_v10 = vpop.f32.mrb[69].mxu1  ;;  %8969 = vmatprep.mubr.msk.f32.mxu0 %vm10494_vm1, %v12843_v31 }
 0x1e7   :  { %v13008_v58 = vadd.f32 %v2285_v33, %v2058_v19  ;;  %v3473_v33 = vld [vmem:[#allocation3 + $0x74] sm:$0xff] }
 0x1e8   :  { %v2011_v54 = vpop.f32.mrb[70].mxu0 }
 0x1e9   :  { %v2290_v38 = vpop.f32.mrb[70].mxu1  ;;  %v2059_v40 = vadd.f32 %v2011_v54, %v12765_v25  ;;  %v8575_v35 = vpop.f32.mrb[71].mxu0  ;;  %8970 = vmatmul.mubr.msk.f32.gmra.mrb[176].mxu0 %vm64_vm0, %v3465_v32  ;;  %v3467_v25 = vld [vmem:[#allocation3 + $0x44] sm:$0xff] }
 0x1ea   :  { %v8646_v15 = vpop.f32.mrb[71].mxu1  ;;  %8972 = vmatprep.mubr.msk.f32.mxu0 %vm10494_vm1, %v12843_v31 }
 0x1eb   :  { %v13014_v39 = vadd.f32 %v2290_v38, %v2059_v40 }
 0x1ec   :  { %v2016_v46 = vpop.f32.mrb[72].mxu0 }
 0x1ed   :  { %v2295_v59 = vpop.f32.mrb[72].mxu1  ;;  %v2060_v36 = vadd.f32 %v2016_v46, %v12810_v49  ;;  %v8578_v47 = vpop.f32.mrb[73].mxu0  ;;  %8973 = vmatmul.mubr.msk.f32.gmra.mrb[178].mxu0 %vm64_vm0, %v3466_v61  ;;  %v3468_v49 = vld [vmem:[#allocation3 + $0x4c] sm:$0xff] }
 0x1ee   :  { %v8649_v21 = vpop.f32.mrb[73].mxu1  ;;  %8975 = vmatprep.mubr.msk.f32.mxu0 %vm10494_vm1, %v12843_v31 }
 0x1ef   :  { %v13020_v13 = vadd.f32 %v2295_v59, %v2060_v36 }
 0x1f0   :  { %v2021_v17 = vpop.f32.mrb[74].mxu0 }
 0x1f1   :  { %v2300_v53 = vpop.f32.mrb[74].mxu1  ;;  %v2061_v62 = vadd.f32 %v2021_v17, %v12821_v48  ;;  %v8581_v34 = vpop.f32.mrb[75].mxu0  ;;  %8976 = vmatmul.mubr.msk.f32.gmra.mrb[180].mxu0 %vm64_vm0, %v3467_v25  ;;  %v3469_v48 = vld [vmem:[#allocation3 + $0x54] sm:$0xff]  ;;  %v3916_v25 = vld [vmem:[%s15057_s6 + $0x40] sm:$0xff] }
 0x1f2   :  { %v8652_v41 = vpop.f32.mrb[75].mxu1  ;;  %8978 = vmatprep.mubr.msk.f32.mxu0 %vm10494_vm1, %v12843_v31 }
 0x1f3   :  { %v13026_v18 = vadd.f32 %v2300_v53, %v2061_v62  ;;  %v3476_v41 = vld [vmem:[#allocation3 + $0x8c] sm:$0xff] }
 0x1f4   :  { %v2026_v1 = vpop.f32.mrb[76].mxu0 }
 0x1f5   :  { %v2305_v29 = vpop.f32.mrb[76].mxu1  ;;  %v8584_v8 = vpop.f32.mrb[77].mxu0  ;;  %8979 = vmatmul.mubr.msk.f32.gmra.mrb[182].mxu0 %vm64_vm0, %v3468_v49 }
 0x1f6   :  { %v8655_v7 = vpop.f32.mrb[77].mxu1  ;;  %8981 = vmatprep.mubr.msk.f32.mxu0 %vm10494_vm1, %v12843_v31 }
 0x1f8   :  { %v2031_v4 = vpop.f32.mrb[78].mxu0 }
 0x1f9   :  { %v2310_v3 = vpop.f32.mrb[78].mxu1  ;;  %v8587_v60 = vpop.f32.mrb[79].mxu0  ;;  %8982 = vmatmul.mubr.msk.f32.gmra.mrb[184].mxu0 %vm64_vm0, %v3469_v48  ;;  %v3477_v48 = vld [vmem:[#allocation3 + $0x94] sm:$0xff] }
 0x1fa   :  { %v8658_v50 = vpop.f32.mrb[79].mxu1  ;;  %8984 = vmatprep.mubr.msk.f32.mxu0 %vm10494_vm1, %v12843_v31 }
 0x1fc   :  { %v2036_v14 = vpop.f32.mrb[80].mxu0 }
 0x1fd   :  { %v2315_v26 = vpop.f32.mrb[80].mxu1  ;;  %v8590_v30 = vpop.f32.mrb[81].mxu0  ;;  %8985 = vmatmul.mubr.msk.f32.gmra.mrb[186].mxu0 %vm64_vm0, %v3470_v51 }
 0x1fe   :  { %v8661_v11 = vpop.f32.mrb[81].mxu1  ;;  %8987 = vmatprep.mubr.msk.f32.mxu0 %vm10494_vm1, %v12843_v31 }
 0x200   :  { %v2041_v5 = vpop.f32.mrb[82].mxu0 }
 0x201   :  { %v2320_v43 = vpop.f32.mrb[82].mxu1  ;;  %v8593_v6 = vpop.f32.mrb[83].mxu0  ;;  %8988 = vmatmul.mubr.msk.f32.gmra.mrb[188].mxu0 %vm64_vm0, %v3471_v45 }
 0x202   :  { %v8664_v63 = vpop.f32.mrb[83].mxu1  ;;  %8990 = vmatprep.mubr.msk.f32.mxu0 %vm10494_vm1, %v12843_v31 }
 0x204   :  { %v2499_v56 = vpop.f32.mrb[84].mxu0 }
 0x205   :  { %v2778_v22 = vpop.f32.mrb[84].mxu1  ;;  %v2603_v42 = vadd.f32 %v2499_v56, %v12898_v27  ;;  %v8675_v37 = vpop.f32.mrb[85].mxu0  ;;  %8991 = vmatmul.mubr.msk.f32.gmra.mrb[190].mxu0 %vm64_vm0, %v3472_v20  ;;  %v3474_v27 = vld [vmem:[#allocation3 + $0x7c] sm:$0xff] }
 0x206   :  { %v8746_v24 = vpop.f32.mrb[85].mxu1  ;;  %8993 = vmatprep.mubr.msk.f32.mxu0 %vm10494_vm1, %v12843_v31 }
 0x207   :  { %v13044_v19 = vadd.f32 %v2778_v22, %v2603_v42 }
 0x208   :  { %v2504_v52 = vpop.f32.mrb[86].mxu0 }
 0x209   :  { %v2783_v10 = vpop.f32.mrb[86].mxu1  ;;  %v2604_v32 = vadd.f32 %v2504_v52, %v12909_v28  ;;  %v8678_v54 = vpop.f32.mrb[87].mxu0  ;;  %8994 = vmatmul.mubr.msk.f32.gmra.mrb[192].mxu0 %vm64_vm0, %v3473_v33  ;;  %v3475_v28 = vld [vmem:[#allocation3 + $0x84] sm:$0xff]  ;;  %v3918_v52 = vld [vmem:[%s15057_s6 + $0x50] sm:$0xff] }
 0x20a   :  { %v8749_v38 = vpop.f32.mrb[87].mxu1  ;;  %8996 = vmatprep.mubr.msk.f32.mxu0 %vm10494_vm1, %v12843_v31 }
 0x20b   :  { %v13050_v40 = vadd.f32 %v2783_v10, %v2604_v32  ;;  %v3919_v10 = vld [vmem:[%s15057_s6 + $0x58] sm:$0xff]  ;;  %v3481_v32 = vld [vmem:[#allocation3 + $0xb4] sm:$0x3] }
 0x20c   :  { %v2509_v35 = vpop.f32.mrb[88].mxu0  ;;  %v10135_v54 = vpack.c.bf16 %v3919_v10, %v3918_v52 }
 0x20d   :  { %v2788_v15 = vpop.f32.mrb[88].mxu1  ;;  %v2605_v61 = vadd.f32 %v2509_v35, %v12920_v9  ;;  %v8681_v46 = vpop.f32.mrb[89].mxu0  ;;  %8997 = vmatmul.mubr.msk.f32.gmra.mrb[194].mxu0 %vm64_vm0, %v3474_v27  ;;  %v3917_v9 = vld [vmem:[%s15057_s6 + $0x48] sm:$0xff] }
 0x20e   :  { %v8752_v59 = vpop.f32.mrb[89].mxu1  ;;  %8999 = vmatprep.mubr.msk.f32.mxu0 %vm10494_vm1, %v12843_v31  ;;  %v10132_v34 = vpack.c.bf16 %v3917_v9, %v3916_v25 }
 0x20f   :  { %v13056_v36 = vadd.f32 %v2788_v15, %v2605_v61 }
 0x210   :  { %v2514_v47 = vpop.f32.mrb[90].mxu0  ;;  %10133 = vmatpush3.bf16.msra.mxu1 %v10132_v34 }
 0x211   :  { %v2793_v21 = vpop.f32.mrb[90].mxu1  ;;  %v2606_v17 = vadd.f32 %v2514_v47, %v12931_v57  ;;  %v8684_v53 = vpop.f32.mrb[91].mxu0  ;;  %9000 = vmatmul.mubr.msk.f32.gmra.mrb[196].mxu0 %vm64_vm0, %v3475_v28  ;;  %10134 = vmatprep.subr.bf16.mxu1 %v10492_v0 }
 0x212   :  { %v8755_v62 = vpop.f32.mrb[91].mxu1  ;;  %9002 = vmatprep.mubr.msk.f32.mxu0 %vm10494_vm1, %v12843_v31 }
 0x213   :  { %v13068_v49 = vadd.f32 %v2793_v21, %v2606_v17 }
 0x214   :  { %v2519_v1 = vpop.f32.mrb[92].mxu0  ;;  %10136 = vmatpush3.bf16.msra.mxu1 %v10135_v54  ;;  %v3923_v54 = vld [vmem:[%s15057_s6 + $0x78] sm:$0xff] }
 0x215   :  { %v2798_v29 = vpop.f32.mrb[92].mxu1  ;;  %v2607_v8 = vadd.f32 %v2519_v1, %v12942_v2  ;;  %v8687_v7 = vpop.f32.mrb[93].mxu0  ;;  %9003 = vmatmul.mubr.msk.f32.gmra.mrb[198].mxu0 %vm64_vm0, %v3476_v41  ;;  %v3478_v2 = vld [vmem:[#allocation3 + $0x9c] sm:$0xff]  ;;  %10137 = vmatprep.subr.bf16.mxu1 %v10492_v0 }
 0x216   :  { %v8758_v57 = vpop.f32.mrb[93].mxu1  ;;  %9005 = vmatprep.mubr.msk.f32.mxu0 %vm10494_vm1, %v12843_v31 }
 0x217   :  { %v13075_v4 = vadd.f32 %v2798_v29, %v2607_v8  ;;  %v4276_v57 = vld [vmem:[%s15057_s6 + $0x88] sm:$0xff] }
 0x218   :  { %v2524_v3 = vpop.f32.mrb[94].mxu0 }
 0x219   :  { %v2803_v60 = vpop.f32.mrb[94].mxu1  ;;  %v2608_v50 = vadd.f32 %v2524_v3, %v12953_v44  ;;  %v8690_v51 = vpop.f32.mrb[95].mxu0  ;;  %9006 = vmatmul.mubr.msk.f32.gmra.mrb[200].mxu0 %vm64_vm0, %v3477_v48  ;;  %v3479_v44 = vld [vmem:[#allocation3 + $0xa4] sm:$0xff] }
 0x21a   :  { %v8761_v14 = vpop.f32.mrb[95].mxu1  ;;  %9008 = vmatprep.mubr.msk.f32.mxu0 %vm10494_vm1, %v12843_v31 }
 0x21b   :  { %v13081_v26 = vadd.f32 %v2803_v60, %v2608_v50  ;;  %v4277_v14 = vld [vmem:[%s15057_s6 + $0x90] sm:$0xff] }
 0x21c   :  { %v2529_v30 = vpop.f32.mrb[96].mxu0 }
 0x21d   :  { %v2808_v11 = vpop.f32.mrb[96].mxu1  ;;  %v2609_v45 = vadd.f32 %v2529_v30, %v12964_v12  ;;  %v8693_v5 = vpop.f32.mrb[97].mxu0  ;;  %9009 = vmatmul.mubr.msk.f32.gmra.mrb[202].mxu0 %vm64_vm0, %v3478_v2  ;;  %v3480_v12 = vld [vmem:[#allocation3 + $0xac] sm:$0xff]  ;;  %v4278_v2 = vld [vmem:[%s15057_s6 + $0x98] sm:$0xff] }
 0x21e   :  { %v8764_v43 = vpop.f32.mrb[97].mxu1  ;;  %9011 = vmatprep.mubr.msk.f32.mxu0 %vm10494_vm1, %v12843_v31  ;;  %v10159_v30 = vpack.c.bf16 %v4278_v2, %v4277_v14 }
 0x21f   :  { %v13087_v6 = vadd.f32 %v2808_v11, %v2609_v45 }
 0x220   :  { %v2534_v63 = vpop.f32.mrb[98].mxu0 }
 0x221   :  { %v2813_v20 = vpop.f32.mrb[98].mxu1  ;;  %v8696_v56 = vpop.f32.mrb[99].mxu0  ;;  %9012 = vmatmul.mubr.msk.f32.gmra.mrb[204].mxu0 %vm64_vm0, %v3479_v44  ;;  %v3920_v63 = vld [vmem:[%s15057_s6 + $0x60] sm:$0xff] }
 0x222   :  { %v8767_v22 = vpop.f32.mrb[99].mxu1  ;;  %9014 = vmatprep.mubr.msk.f32.mxu0 %vm10494_vm1, %v12843_v31  ;;  %v3921_v20 = vld [vmem:[%s15057_s6 + $0x68] sm:$0xff]  ;;  %v4279_v56 = vld [vmem:[%s15057_s6 + $0xa0] sm:$0xff] }
 0x223   :  { %v10138_v22 = vpack.c.bf16 %v3921_v20, %v3920_v63 }
 0x224   :  { %v2539_v42 = vpop.f32.mrb[100].mxu0 }
 0x225   :  { %v2818_v37 = vpop.f32.mrb[100].mxu1  ;;  %v8699_v24 = vpop.f32.mrb[101].mxu0  ;;  %9015 = vmatmul.mubr.msk.f32.gmra.mrb[206].mxu0 %vm64_vm0, %v3480_v12  ;;  %10139 = vmatpush3.bf16.msra.mxu1 %v10138_v22 }
 0x226   :  { %v8770_v33 = vpop.f32.mrb[101].mxu1  ;;  %9017 = vmatprep.mubr.msk.f32.mxu0 %vm10494_vm1, %v12843_v31  ;;  %10140 = vmatprep.subr.bf16.mxu1 %v10492_v0 }
 0x228   :  { %v2544_v38 = vpop.f32.mrb[102].mxu0 }
 0x229   :  { %v2823_v27 = vpop.f32.mrb[102].mxu1  ;;  %v8702_v35 = vpop.f32.mrb[103].mxu0  ;;  %9018 = vmatmul.mubr.msk.f32.gmra.mrb[208].mxu0 %vm64_vm0, %v3481_v32  ;;  %v3922_v32 = vld [vmem:[%s15057_s6 + $0x70] sm:$0xff] }
 0x22a   :  { %v8773_v15 = vpop.f32.mrb[103].mxu1  ;;  %9146 = vmatprep.mubr.msk.f32.mxu0 %vm10494_vm1, %v12843_v31  ;;  %v4281_v38 = vld [vmem:[%s15057_s6 + $0xb0] sm:$0xff]  ;;  %v4282_v27 = vld [vmem:[%s15057_s6 + $0xb8] sm:$0xff] }
 0x22b   :  { %v10165_v15 = vpack.c.bf16 %v4282_v27, %v4281_v38 }
 0x22c   :  { %v2549_v61 = vpop.f32.mrb[104].mxu0 }
 0x22d   :  { %v2828_v46 = vpop.f32.mrb[104].mxu1  ;;  %v2613_v59 = vadd.f32 %v2549_v61, %v12990_v23  ;;  %v8705_v28 = vpop.f32.mrb[105].mxu0  ;;  %v4275_v23 = vld [vmem:[%s15057_s6 + $0x80] sm:$0xff] }
 0x22e   :  { %v8776_v47 = vpop.f32.mrb[105].mxu1  ;;  %v10156_v48 = vpack.c.bf16 %v4276_v57, %v4275_v23 }
 0x22f   :  { %v13134_v21 = vadd.f32 %v2828_v46, %v2613_v59 }
 0x230   :  { %v2554_v25 = vpop.f32.mrb[106].mxu0  ;;  %10157 = vmatpush3.bf16.msra.mxu0 %v10156_v48 }
 0x231   :  { %v2833_v9 = vpop.f32.mrb[106].mxu1  ;;  %v2614_v17 = vadd.f32 %v2554_v25, %v12996_v16  ;;  %v8708_v53 = vpop.f32.mrb[107].mxu0  ;;  %10158 = vmatprep.subr.bf16.mxu0 %v10492_v0  ;;  %v3903_v25 = vld [vmem:[#allocation5 + $0x1] sm:$0xff] }
 0x232   :  { %v8779_v62 = vpop.f32.mrb[107].mxu1 }
 0x233   :  { %v13137_v34 = vadd.f32 %v2833_v9, %v2614_v17  ;;  %v4262_v9 = vld [vmem:[#allocation5 + $0x2] sm:$0xff] }
 0x234   :  { %v2559_v41 = vpop.f32.mrb[108].mxu0  ;;  %10160 = vmatpush3.bf16.msra.mxu0 %v10159_v30 }
 0x235   :  { %v2838_v1 = vpop.f32.mrb[108].mxu1  ;;  %v2615_v29 = vadd.f32 %v2559_v41, %v13002_v55  ;;  %v8711_v8 = vpop.f32.mrb[109].mxu0  ;;  %10161 = vmatprep.subr.bf16.mxu0 %v10492_v0 }
 0x236   :  { %v8782_v7 = vpop.f32.mrb[109].mxu1 }
 0x237   :  { %v13146_v16 = vadd.f32 %v2838_v1, %v2615_v29 }
 0x238   :  { %v2564_v3 = vpop.f32.mrb[110].mxu0 }
 0x239   :  { %v2843_v60 = vpop.f32.mrb[110].mxu1  ;;  %v2616_v50 = vadd.f32 %v2564_v3, %v13008_v58  ;;  %v8714_v51 = vpop.f32.mrb[111].mxu0 }
 0x23a   :  { %v8785_v55 = vpop.f32.mrb[111].mxu1 }
 0x23b   :  { %v13156_v11 = vadd.f32 %v2843_v60, %v2616_v50 }
 0x23c   :  { %v2569_v45 = vpop.f32.mrb[112].mxu0 }
 0x23d   :  { %v2848_v5 = vpop.f32.mrb[112].mxu1  ;;  %v2617_v58 = vadd.f32 %v2569_v45, %v13014_v39  ;;  %v8717_v43 = vpop.f32.mrb[113].mxu0  ;;  %v4280_v39 = vld [vmem:[%s15057_s6 + $0xa8] sm:$0xff] }
 0x23e   :  { %v8788_v44 = vpop.f32.mrb[113].mxu1  ;;  %v10162_v42 = vpack.c.bf16 %v4280_v39, %v4279_v56 }
 0x23f   :  { %v13172_v12 = vadd.f32 %v2848_v5, %v2617_v58 }
 0x240   :  { %v2574_v37 = vpop.f32.mrb[114].mxu0  ;;  %10163 = vmatpush3.bf16.msra.mxu0 %v10162_v42 }
 0x241   :  { %v2853_v24 = vpop.f32.mrb[114].mxu1  ;;  %v2618_v33 = vadd.f32 %v2574_v37, %v13020_v13  ;;  %v8720_v52 = vpop.f32.mrb[115].mxu0  ;;  %10164 = vmatprep.subr.bf16.mxu0 %v10492_v0  ;;  %v10141_v13 = vpack.c.bf16 %v3923_v54, %v3922_v32 }
 0x242   :  { %v8791_v10 = vpop.f32.mrb[115].mxu1 }
 0x243   :  { %v13189_v35 = vadd.f32 %v2853_v24, %v2618_v33  ;;  %10142 = vmatpush3.bf16.msra.mxu1 %v10141_v13 }
 0x244   :  { %v2579_v61 = vpop.f32.mrb[116].mxu0  ;;  %10166 = vmatpush3.bf16.msra.mxu0 %v10165_v15  ;;  %10143 = vmatprep.subr.bf16.mxu1 %v10492_v0 }
 0x245   :  { %v2858_v46 = vpop.f32.mrb[116].mxu1  ;;  %v2619_v59 = vadd.f32 %v2579_v61, %v13026_v18  ;;  %v8723_v28 = vpop.f32.mrb[117].mxu0  ;;  %10179 = vmatprep.subr.bf16.mxu0 %v10492_v0 }
 0x246   :  { %v8794_v47 = vpop.f32.mrb[117].mxu1  ;;  %9037 = vmatmul.mubr.msk.f32.vlgmr.msra.gmra.mrb[168].mxu1 %vm90_vm3, %v3903_v25 }
 0x247   :  { %v13194_v17 = vadd.f32 %v2858_v46, %v2619_v59  ;;  %9147 = vmatmul.mubr.msk.f32.vlgmr.msra.gmra.mrb[210].mxu0 %vm90_vm3, %v4262_v9  ;;  %9039 = vmatprep.mubr.msk.f32.mxu1 %vm10494_vm1, %v12843_v31 }
 0x248   :  { %v2584_v53 = vpop.f32.mrb[118].mxu0  ;;  %9149 = vmatprep.mubr.msk.f32.mxu0 %vm10494_vm1, %v12843_v31 }
 0x249   :  { %v2863_v62 = vpop.f32.mrb[118].mxu1  ;;  %v8726_v18 = vpop.f32.mrb[119].mxu0 }
 0x24a   :  { %v8797_v41 = vpop.f32.mrb[119].mxu1 }
 0x24c   :  { %v2589_v1 = vpop.f32.mrb[120].mxu0 }
 0x24d   :  { %v2868_v29 = vpop.f32.mrb[120].mxu1  ;;  %v8729_v8 = vpop.f32.mrb[121].mxu0 }
 0x24e   :  { %v8800_v7 = vpop.f32.mrb[121].mxu1 }
 0x250   :  { %v2594_v23 = vpop.f32.mrb[122].mxu0 }
 0x251   :  { %v2873_v57 = vpop.f32.mrb[122].mxu1  ;;  %v8732_v48 = vpop.f32.mrb[123].mxu0 }
 0x252   :  { %v8803_v3 = vpop.f32.mrb[123].mxu1 }
 0x254   :  { %v2599_v60 = vpop.f32.mrb[124].mxu0 }
 0x255   :  { %v2878_v50 = vpop.f32.mrb[124].mxu1  ;;  %v8735_v51 = vpop.f32.mrb[125].mxu0 }
 0x256   :  { %v8806_v55 = vpop.f32.mrb[125].mxu1 }
 0x258   :  { %v3057_v14 = vpop.f32.mrb[126].mxu0 }
 0x259   :  { %v3336_v2 = vpop.f32.mrb[126].mxu1  ;;  %v3161_v30 = vadd.f32 %v3057_v14, %v13044_v19  ;;  %v8817_v45 = vpop.f32.mrb[127].mxu0 }
 0x25a   :  { %v8888_v5 = vpop.f32.mrb[127].mxu1 }
 0x25b   :  { %v13203_v58 = vadd.f32 %v3336_v2, %v3161_v30  ;;  %v3898_v30 = vld [vmem:[%s15057_s6 + $0x18] sm:$0xff] }
 0x25c   :  { %v3062_v31 = vpop.f32.mrb[128].mxu0 }
 0x25d   :  { %v3341_v43 = vpop.f32.mrb[128].mxu1  ;;  %v3162_v44 = vadd.f32 %v3062_v31, %v13050_v40  ;;  %v8820_v63 = vpop.f32.mrb[129].mxu0 }
 0x25e   :  { %v8891_v20 = vpop.f32.mrb[129].mxu1 }
 0x25f   :  { %v13206_v56 = vadd.f32 %v3341_v43, %v3162_v44  ;;  %v13236_v43 = vld [vmem:[#allocation7] sm:$0xff] }
 0x260   :  { %v3067_v22 = vpop.f32.mrb[130].mxu0  ;;  %106 = vst.msk [vmem:[#allocation5 + $0x70] sm:$0x3] %vm105_vm4, %v13236_v43 }
 0x261   :  { %v3346_v39 = vpop.f32.mrb[130].mxu1  ;;  %v3163_v42 = vadd.f32 %v3067_v22, %v13056_v36  ;;  %v8823_v37 = vpop.f32.mrb[131].mxu0 }
 0x262   :  { %v8894_v24 = vpop.f32.mrb[131].mxu1 }
 0x263   :  { %v13209_v33 = vadd.f32 %v3346_v39, %v3163_v42  ;;  %v3899_v39 = vld [vmem:[%s15057_s6 + $0x20] sm:$0xff]  ;;  %v3900_v42 = vld [vmem:[%s15057_s6 + $0x28] sm:$0xff] }
 0x264   :  { %v3072_v19 = vpop.f32.mrb[132].mxu0 }
 0x265   :  { %v3351_v52 = vpop.f32.mrb[132].mxu1  ;;  %v3164_v10 = vadd.f32 %v3072_v19, %v13068_v49  ;;  %v8826_v32 = vpop.f32.mrb[133].mxu0  ;;  %v3895_v49 = vld [vmem:[%s15057_s6] sm:$0xff]  ;;  %v10150_v19 = vpack.c.bf16 %v3900_v42, %v3899_v39 }
 0x266   :  { %v8897_v54 = vpop.f32.mrb[133].mxu1  ;;  %v4681_v32 = vld [vmem:[%s15057_s6 + $0x100] sm:$0xff] }
 0x267   :  { %v13212_v38 = vadd.f32 %v3351_v52, %v3164_v10  ;;  %v4682_v54 = vld [vmem:[%s15057_s6 + $0x108] sm:$0xff] }
 0x268   :  { %v3077_v40 = vpop.f32.mrb[134].mxu0 }
 0x269   :  { %v3356_v13 = vpop.f32.mrb[134].mxu1  ;;  %v3165_v27 = vadd.f32 %v3077_v40, %v13075_v4  ;;  %v8829_v15 = vpop.f32.mrb[135].mxu0  ;;  %v3896_v4 = vld [vmem:[%s15057_s6 + $0x8] sm:$0xff] }
 0x26a   :  { %v8900_v61 = vpop.f32.mrb[135].mxu1  ;;  %v10144_v18 = vpack.c.bf16 %v3896_v4, %v3895_v49  ;;  %v4684_v49 = vld [vmem:[%s15057_s6 + $0x118] sm:$0xff] }
 0x26b   :  { %v13215_v46 = vadd.f32 %v3356_v13, %v3165_v27  ;;  %v10180_v13 = vpack.c.bf16 %v4682_v54, %v4681_v32  ;;  %v3902_v61 = vld [vmem:[%s15057_s6 + $0x38] sm:$0xff] }
 0x26c   :  { %v3082_v36 = vpop.f32.mrb[136].mxu0  ;;  %10145 = vmatpush3.bf16.msra.mxu1 %v10144_v18 }
 0x26d   :  { %v3361_v59 = vpop.f32.mrb[136].mxu1  ;;  %v3166_v28 = vadd.f32 %v3082_v36, %v13081_v26  ;;  %v8832_v47 = vpop.f32.mrb[137].mxu0  ;;  %10146 = vmatprep.subr.bf16.mxu1 %v10492_v0  ;;  %10181 = vmatpush3.bf16.msra.mxu0 %v10180_v13 }
 0x26e   :  { %v8903_v25 = vpop.f32.mrb[137].mxu1  ;;  %10182 = vmatprep.subr.bf16.mxu0 %v10492_v0 }
 0x26f   :  { %v13218_v9 = vadd.f32 %v3361_v59, %v3166_v28  ;;  %v4683_v25 = vld [vmem:[%s15057_s6 + $0x110] sm:$0xff] }
 0x270   :  { %v3087_v53 = vpop.f32.mrb[138].mxu0 }
 0x271   :  { %v3366_v62 = vpop.f32.mrb[138].mxu1  ;;  %v3167_v41 = vadd.f32 %v3087_v53, %v13087_v6  ;;  %v8835_v1 = vpop.f32.mrb[139].mxu0  ;;  %v3897_v6 = vld [vmem:[%s15057_s6 + $0x10] sm:$0xff]  ;;  %v10183_v53 = vpack.c.bf16 %v4684_v49, %v4683_v25 }
 0x272   :  { %v8906_v29 = vpop.f32.mrb[139].mxu1  ;;  %v10147_v31 = vpack.c.bf16 %v3898_v30, %v3897_v6 }
 0x273   :  { %v13227_v26 = vadd.f32 %v3366_v62, %v3167_v41  ;;  %10184 = vmatpush3.bf16.msra.mxu0 %v10183_v53  ;;  %v4685_v29 = vld [vmem:[%s15057_s6 + $0x120] sm:$0xff] }
 0x274   :  { %v3092_v8 = vpop.f32.mrb[140].mxu0  ;;  %10148 = vmatpush3.bf16.msra.mxu1 %v10147_v31  ;;  %10185 = vmatprep.subr.bf16.mxu0 %v10492_v0 }
 0x275   :  { %v3371_v7 = vpop.f32.mrb[140].mxu1  ;;  %v8838_v23 = vpop.f32.mrb[141].mxu0  ;;  %10149 = vmatprep.subr.bf16.mxu1 %v10492_v0  ;;  %v4686_v8 = vld [vmem:[%s15057_s6 + $0x128] sm:$0xff] }
 0x276   :  { %v8909_v57 = vpop.f32.mrb[141].mxu1  ;;  %v10186_v23 = vpack.c.bf16 %v4686_v8, %v4685_v29 }
 0x278   :  { %v3097_v48 = vpop.f32.mrb[142].mxu0  ;;  %10151 = vmatpush3.bf16.msra.mxu1 %v10150_v19  ;;  %10187 = vmatpush3.bf16.msra.mxu0 %v10186_v23 }
 0x279   :  { %v3376_v3 = vpop.f32.mrb[142].mxu1  ;;  %v8841_v60 = vpop.f32.mrb[143].mxu0  ;;  %10152 = vmatprep.subr.bf16.mxu1 %v10492_v0  ;;  %10188 = vmatprep.subr.bf16.mxu0 %v10492_v0 }
 0x27a   :  { %v8912_v50 = vpop.f32.mrb[143].mxu1 }
 0x27b   :  { %v4687_v50 = vld [vmem:[%s15057_s6 + $0x130] sm:$0xff] }
 0x27c   :  { %v3102_v51 = vpop.f32.mrb[144].mxu0 }
 0x27d   :  { %v3381_v55 = vpop.f32.mrb[144].mxu1  ;;  %v8844_v14 = vpop.f32.mrb[145].mxu0  ;;  %v4688_v51 = vld [vmem:[%s15057_s6 + $0x138] sm:$0xff] }
 0x27e   :  { %v8915_v2 = vpop.f32.mrb[145].mxu1  ;;  %v10189_v14 = vpack.c.bf16 %v4688_v51, %v4687_v50 }
 0x280   :  { %v3107_v45 = vpop.f32.mrb[146].mxu0  ;;  %10190 = vmatpush3.bf16.msra.mxu0 %v10189_v14 }
 0x281   :  { %v3386_v5 = vpop.f32.mrb[146].mxu1  ;;  %v3171_v44 = vadd.f32 %v3107_v45, %v13134_v21  ;;  %v8847_v63 = vpop.f32.mrb[147].mxu0  ;;  %10203 = vmatprep.subr.bf16.mxu0 %v10492_v0 }
 0x282   :  { %v8918_v20 = vpop.f32.mrb[147].mxu1 }
 0x283   :  { %v13240_v22 = vadd.f32 %v3386_v5, %v3171_v44 }
 0x284   :  { %v3112_v37 = vpop.f32.mrb[148].mxu0 }
 0x285   :  { %v3391_v24 = vpop.f32.mrb[148].mxu1  ;;  %v3172_v21 = vadd.f32 %v3112_v37, %v13137_v34  ;;  %v8850_v52 = vpop.f32.mrb[149].mxu0  ;;  %v3901_v34 = vld [vmem:[%s15057_s6 + $0x30] sm:$0xff] }
 0x286   :  { %v8921_v10 = vpop.f32.mrb[149].mxu1  ;;  %v10153_v47 = vpack.c.bf16 %v3902_v61, %v3901_v34 }
 0x287   :  { %v13256_v40 = vadd.f32 %v3391_v24, %v3172_v21 }
 0x288   :  { %v3117_v27 = vpop.f32.mrb[150].mxu0  ;;  %10154 = vmatpush3.bf16.msra.mxu1 %v10153_v47 }
 0x289   :  { %v3396_v15 = vpop.f32.mrb[150].mxu1  ;;  %v3173_v36 = vadd.f32 %v3117_v27, %v13146_v16  ;;  %v8853_v59 = vpop.f32.mrb[151].mxu0  ;;  %10167 = vmatprep.subr.bf16.mxu1 %v10492_v0 }
 0x28a   :  { %v8924_v28 = vpop.f32.mrb[151].mxu1 }
 0x28b   :  { %v13273_v4 = vadd.f32 %v3396_v15, %v3173_v36  ;;  %v13306_v28 = vld [vmem:[%s15058_s5] ss:$0 sm:$0xff] }
 0x28c   :  { %v3122_v62 = vpop.f32.mrb[152].mxu0 }
 0x28d   :  { %v3401_v16 = vpop.f32.mrb[152].mxu1  ;;  %v3174_v18 = vadd.f32 %v3122_v62, %v13156_v11  ;;  %v8856_v41 = vpop.f32.mrb[153].mxu0 }
 0x28e   :  { %v8927_v1 = vpop.f32.mrb[153].mxu1 }
 0x28f   :  { %v13284_v7 = vadd.f32 %v3401_v16, %v3174_v18 }
 0x290   :  { %v3127_v57 = vpop.f32.mrb[154].mxu0 }
 0x291   :  { %v3406_v48 = vpop.f32.mrb[154].mxu1  ;;  %v3175_v11 = vadd.f32 %v3127_v57, %v13172_v12  ;;  %v8859_v3 = vpop.f32.mrb[155].mxu0 }
 0x292   :  { %v8930_v60 = vpop.f32.mrb[155].mxu1 }
 0x293   :  { %v13294_v55 = vadd.f32 %v3406_v48, %v3175_v11 }
 0x294   :  { %v3132_v2 = vpop.f32.mrb[156].mxu0 }
 0x295   :  { %v3411_v6 = vpop.f32.mrb[156].mxu1  ;;  %v3176_v12 = vadd.f32 %v3132_v2, %v13189_v35  ;;  %v8862_v30 = vpop.f32.mrb[157].mxu0 }
 0x296   :  { %v8933_v45 = vpop.f32.mrb[157].mxu1 }
 0x297   :  { %v13298_v5 = vadd.f32 %v3411_v6, %v3176_v12 }
 0x298   :  { %v3137_v31 = vpop.f32.mrb[158].mxu0 }
 0x299   :  { %v3416_v44 = vpop.f32.mrb[158].mxu1  ;;  %v3177_v63 = vadd.f32 %v3137_v31, %v13194_v17  ;;  %v8865_v20 = vpop.f32.mrb[159].mxu0 }
 0x29a   :  { %v8936_v39 = vpop.f32.mrb[159].mxu1 }
 0x29b   :  { %v13301_v42 = vadd.f32 %v3416_v44, %v3177_v63 }
 0x29c   :  { %v3142_v37 = vpop.f32.mrb[160].mxu0 }
 0x29d   :  { %v3421_v24 = vpop.f32.mrb[160].mxu1  ;;  %v8868_v19 = vpop.f32.mrb[161].mxu0 }
 0x29e   :  { %v8939_v21 = vpop.f32.mrb[161].mxu1 }
 0x2a0   :  { %v3147_v35 = vpop.f32.mrb[162].mxu0 }
 0x2a1   :  { %v3426_v52 = vpop.f32.mrb[162].mxu1  ;;  %v8871_v10 = vpop.f32.mrb[163].mxu0 }
 0x2a2   :  { %v8942_v32 = vpop.f32.mrb[163].mxu1 }
 0x2a4   :  { %v3152_v54 = vpop.f32.mrb[164].mxu0 }
 0x2a5   :  { %v3431_v13 = vpop.f32.mrb[164].mxu1  ;;  %v8874_v27 = vpop.f32.mrb[165].mxu0 }
 0x2a6   :  { %v8945_v15 = vpop.f32.mrb[165].mxu1 }
 0x2a8   :  { %v3157_v34 = vpop.f32.mrb[166].mxu0 }
 0x2a9   :  { %v3436_v61 = vpop.f32.mrb[166].mxu1  ;;  %v8877_v36 = vpop.f32.mrb[167].mxu0 }
 0x2aa   :  { %v8948_v17 = vpop.f32.mrb[167].mxu1 }
 0x2ac   :  { %v3615_v59 = vpop.f32.mrb[168].mxu0 }
 0x2ad   :  { %v3719_v47 = vadd.f32 %v3615_v59, %v13203_v58  ;;  %v8959_v25 = vpop.f32.mrb[169].mxu0 }
 0x2af   :  { %v3747_v49 = vadd.f32 %v13306_v28, %v3719_v47 }
 0x2b0   :  { %v3620_v53 = vpop.f32.mrb[170].mxu0 }
 0x2b1   :  { %v3768_v62 = vmax.f32 %v3747_v49, 0.0  ;;  %v3720_v16 = vadd.f32 %v3620_v53, %v13206_v56  ;;  %v8962_v18 = vpop.f32.mrb[171].mxu0 }
 0x2b3   :  { %3789 = vst.msk [vmem:[#allocation4] sm:$0xff] %vm90_vm3, %v3768_v62  ;;  %v3748_v41 = vadd.f32 %v13306_v28, %v3720_v16 }
 0x2b4   :  { %v3625_v1 = vpop.f32.mrb[172].mxu0 }
 0x2b5   :  { %v3769_v29 = vmax.f32 %v3748_v41, 0.0  ;;  %v3721_v8 = vadd.f32 %v3625_v1, %v13209_v33  ;;  %v8965_v23 = vpop.f32.mrb[173].mxu0 }
 0x2b7   :  { %3790 = vst.msk [vmem:[#allocation4 + $0x8] sm:$0xff] %vm90_vm3, %v3769_v29  ;;  %v3749_v58 = vadd.f32 %v13306_v28, %v3721_v8 }
 0x2b8   :  { %v3630_v57 = vpop.f32.mrb[174].mxu0 }
 0x2b9   :  { %v3770_v48 = vmax.f32 %v3749_v58, 0.0  ;;  %v3722_v11 = vadd.f32 %v3630_v57, %v13212_v38  ;;  %v8968_v3 = vpop.f32.mrb[175].mxu0 }
 0x2ba   :  { %v3810_v56 = vld [vmem:[#allocation4] ss:$2 sm:$0x7]  ;;  %v3812_v50 = vld [vmem:[#allocation4 + $0x1] ss:$2 sm:$0x7] }
 0x2bb   :  { %3791 = vst.msk [vmem:[#allocation4 + $0x10] sm:$0xff] %vm90_vm3, %v3770_v48  ;;  %v3750_v60 = vadd.f32 %v13306_v28, %v3722_v11  ;;  %v3817_v30 = vmax.f32 %v3810_v56, %v3812_v50 }
 0x2bc   :  { %v3635_v51 = vpop.f32.mrb[176].mxu0 }
 0x2bd   :  { %v3771_v14 = vmax.f32 %v3750_v60, 0.0  ;;  %v3723_v33 = vadd.f32 %v3635_v51, %v13215_v46  ;;  %v8971_v2 = vpop.f32.mrb[177].mxu0 }
 0x2be   :  { %v3814_v6 = vld [vmem:[#allocation4 + $0x9] ss:$2 sm:$0x7]  ;;  %v3816_v12 = vld [vmem:[#allocation4 + $0xa] ss:$2 sm:$0x7] }
 0x2bf   :  { %v3818_v45 = vmax.f32 %v3814_v6, %v3816_v12  ;;  %3792 = vst.msk [vmem:[#allocation4 + $0x18] sm:$0xff] %vm90_vm3, %v3771_v14  ;;  %v3751_v38 = vadd.f32 %v13306_v28, %v3723_v33 }
 0x2c0   :  { %v3640_v31 = vpop.f32.mrb[178].mxu0 }
 0x2c1   :  { %v3772_v44 = vmax.f32 %v3751_v38, 0.0  ;;  %v3724_v63 = vadd.f32 %v3640_v31, %v13218_v9  ;;  %v8974_v20 = vpop.f32.mrb[179].mxu0  ;;  %v3819_v39 = vmax.f32 %v3817_v30, %v3818_v45  ;;  %v4266_v30 = vld [vmem:[#allocation5 + $0x22] sm:$0xff] }
 0x2c2   :  { %v3823_v35 = vld [vmem:[#allocation4 + $0x12] ss:$2 sm:$0x7]  ;;  %v3825_v10 = vld [vmem:[#allocation4 + $0x13] ss:$2 sm:$0x7] }
 0x2c3   :  { %3793 = vst.msk [vmem:[#allocation4 + $0x20] sm:$0xff] %vm90_vm3, %v3772_v44  ;;  %v3752_v46 = vadd.f32 %v13306_v28, %v3724_v63  ;;  %v3830_v61 = vmax.f32 %v3823_v35, %v3825_v10 }
 0x2c4   :  { %3821 = vst.msk [vmem:[#allocation5 + $0x10] sm:$0x7] %vm3820_vm5, %v3819_v39  ;;  %v3645_v37 = vpop.f32.mrb[180].mxu0 }
 0x2c5   :  { %v3773_v24 = vmax.f32 %v3752_v46, 0.0  ;;  %v3725_v19 = vadd.f32 %v3645_v37, %v13227_v26  ;;  %v8977_v21 = vpop.f32.mrb[181].mxu0  ;;  %v4267_v46 = vld [vmem:[#allocation5 + $0x2a] sm:$0xff] }
 0x2c6   :  { %v3827_v32 = vld [vmem:[#allocation4 + $0x1b] ss:$2 sm:$0x7] }
 0x2c7   :  { %3794 = vst.msk [vmem:[#allocation4 + $0x28] sm:$0xff] %vm90_vm3, %v3773_v24  ;;  %v3753_v52 = vadd.f32 %v13306_v28, %v3725_v19 }
 0x2c8   :  { %v3650_v9 = vpop.f32.mrb[182].mxu0 }
 0x2c9   :  { %v3774_v54 = vmax.f32 %v3753_v52, 0.0  ;;  %v8980_v13 = vpop.f32.mrb[183].mxu0 }
 0x2ca   :  { %v3829_v27 = vld [vmem:[#allocation4 + $0x1c] ss:$2 sm:$0x7] }
 0x2cb   :  { %v13329_v15 = vld [vmem:[#allocation5 + $0x9] sm:$0xff]  ;;  %v3831_v36 = vmax.f32 %v3827_v32, %v3829_v27  ;;  %3795 = vst.msk [vmem:[#allocation4 + $0x30] sm:$0xff] %vm90_vm3, %v3774_v54  ;;  %v4268_v54 = vld [vmem:[#allocation5 + $0x32] sm:$0xff] }
 0x2cc   :  { %v4263_v34 = vld [vmem:[#allocation5 + $0xa] sm:$0xff]  ;;  %9040 = vmatmul.mubr.msk.f32.gmra.mrb[170].mxu1 %vm90_vm3, %v13329_v15  ;;  %v3655_v26 = vpop.f32.mrb[184].mxu0 }
 0x2cd   :  { %9150 = vmatmul.mubr.msk.f32.gmra.mrb[212].mxu0 %vm90_vm3, %v4263_v34  ;;  %9042 = vmatprep.mubr.msk.f32.mxu1 %vm10494_vm1, %v13236_v43  ;;  %v3832_v17 = vmax.f32 %v3830_v61, %v3831_v36  ;;  %v8983_v59 = vpop.f32.mrb[185].mxu0 }
 0x2ce   :  { %9152 = vmatprep.mubr.msk.f32.mxu0 %vm10494_vm1, %v13236_v43  ;;  %v3835_v47 = vld [vmem:[#allocation4 + $0x24] ss:$2 sm:$0x7]  ;;  %v3837_v25 = vld [vmem:[#allocation4 + $0x25] ss:$2 sm:$0x7] }
 0x2cf   :  { %3833 = vst.msk [vmem:[#allocation5 + $0x17] sm:$0x7] %vm3820_vm5, %v3832_v17  ;;  %v3842_v18 = vmax.f32 %v3835_v47, %v3837_v25 }
 0x2d0   :  { %v3660_v49 = vpop.f32.mrb[186].mxu0 }
 0x2d1   :  { %v8986_v53 = vpop.f32.mrb[187].mxu0 }
 0x2d2   :  { %v3839_v62 = vld [vmem:[#allocation4 + $0x2d] ss:$2 sm:$0x7]  ;;  %v3841_v16 = vld [vmem:[#allocation4 + $0x2e] ss:$2 sm:$0x7] }
 0x2d3   :  { %v3843_v41 = vmax.f32 %v3839_v62, %v3841_v16 }
 0x2d4   :  { %v3665_v1 = vpop.f32.mrb[188].mxu0 }
 0x2d5   :  { %v3844_v29 = vmax.f32 %v3842_v18, %v3843_v41  ;;  %v3729_v8 = vadd.f32 %v3665_v1, %v13240_v22  ;;  %v8989_v23 = vpop.f32.mrb[189].mxu0 }
 0x2d6   :  { %v13341_v58 = vld [vmem:[#allocation5 + $0x11] sm:$0xff] }
 0x2d7   :  { %v4264_v57 = vld [vmem:[#allocation5 + $0x12] sm:$0xff]  ;;  %3845 = vst.msk [vmem:[#allocation5 + $0x1e] sm:$0x7] %vm3820_vm5, %v3844_v29  ;;  %v3757_v48 = vadd.f32 %v13306_v28, %v3729_v8  ;;  %9043 = vmatmul.mubr.msk.f32.gmra.mrb[172].mxu1 %vm90_vm3, %v13341_v58 }
 0x2d8   :  { %9153 = vmatmul.mubr.msk.f32.gmra.mrb[214].mxu0 %vm90_vm3, %v4264_v57  ;;  %v3670_v11 = vpop.f32.mrb[190].mxu0  ;;  %9045 = vmatprep.mubr.msk.f32.mxu1 %vm10494_vm1, %v13236_v43 }
 0x2d9   :  { %9155 = vmatprep.mubr.msk.f32.mxu0 %vm10494_vm1, %v13236_v43  ;;  %v3778_v22 = vmax.f32 %v3757_v48, 0.0  ;;  %v3730_v3 = vadd.f32 %v3670_v11, %v13256_v40  ;;  %v8992_v56 = vpop.f32.mrb[191].mxu0 }
 0x2db   :  { %3799 = vst.msk [vmem:[#allocation4 + $0x50] sm:$0xff] %vm90_vm3, %v3778_v22  ;;  %v3758_v60 = vadd.f32 %v13306_v28, %v3730_v3 }
 0x2dc   :  { %v3675_v50 = vpop.f32.mrb[192].mxu0 }
 0x2dd   :  { %v3779_v51 = vmax.f32 %v3758_v60, 0.0  ;;  %v3731_v14 = vadd.f32 %v3675_v50, %v13273_v4  ;;  %v8995_v33 = vpop.f32.mrb[193].mxu0  ;;  %v13367_v4 = vld [vmem:[#allocation5 + $0x21] sm:$0xff] }
 0x2de   :  { %v13356_v2 = vld [vmem:[#allocation5 + $0x19] sm:$0xff] }
 0x2df   :  { %v4265_v6 = vld [vmem:[#allocation5 + $0x1a] sm:$0xff]  ;;  %3800 = vst.msk [vmem:[#allocation4 + $0x58] sm:$0xff] %vm90_vm3, %v3779_v51  ;;  %v3759_v12 = vadd.f32 %v13306_v28, %v3731_v14  ;;  %9046 = vmatmul.mubr.msk.f32.gmra.mrb[174].mxu1 %vm90_vm3, %v13356_v2 }
 0x2e0   :  { %9156 = vmatmul.mubr.msk.f32.gmra.mrb[216].mxu0 %vm90_vm3, %v4265_v6  ;;  %v3680_v40 = vpop.f32.mrb[194].mxu0  ;;  %9048 = vmatprep.mubr.msk.f32.mxu1 %vm10494_vm1, %v13236_v43 }
 0x2e1   :  { %9158 = vmatprep.mubr.msk.f32.mxu0 %vm10494_vm1, %v13236_v43  ;;  %v3780_v45 = vmax.f32 %v3759_v12, 0.0  ;;  %v3732_v38 = vadd.f32 %v3680_v40, %v13284_v7  ;;  %v8998_v31 = vpop.f32.mrb[195].mxu0  ;;  %v13379_v7 = vld [vmem:[#allocation5 + $0x29] sm:$0xff] }
 0x2e2   :  { %v3847_v44 = vld [vmem:[#allocation4 + $0x51] ss:$2 sm:$0x7]  ;;  %v3849_v20 = vld [vmem:[#allocation4 + $0x52] ss:$2 sm:$0x7] }
 0x2e3   :  { %3801 = vst.msk [vmem:[#allocation4 + $0x60] sm:$0xff] %vm90_vm3, %v3780_v45  ;;  %v3760_v63 = vadd.f32 %v13306_v28, %v3732_v38  ;;  %9049 = vmatmul.mubr.msk.f32.gmra.mrb[176].mxu1 %vm90_vm3, %v13367_v4  ;;  %v3854_v52 = vmax.f32 %v3847_v44, %v3849_v20  ;;  %v4272_v38 = vld [vmem:[#allocation5 + $0x52] sm:$0xff]  ;;  %v3915_v20 = vld [vmem:[#allocation5 + $0x61] sm:$0x3] }
 0x2e4   :  { %9159 = vmatmul.mubr.msk.f32.gmra.mrb[218].mxu0 %vm90_vm3, %v4266_v30  ;;  %v3685_v39 = vpop.f32.mrb[196].mxu0  ;;  %9051 = vmatprep.mubr.msk.f32.mxu1 %vm10494_vm1, %v13236_v43  ;;  %v13446_v44 = vld [vmem:[#allocation5 + $0x59] sm:$0xff] }
 0x2e5   :  { %9161 = vmatprep.mubr.msk.f32.mxu0 %vm10494_vm1, %v13236_v43  ;;  %v3781_v37 = vmax.f32 %v3760_v63, 0.0  ;;  %v3733_v24 = vadd.f32 %v3685_v39, %v13294_v55  ;;  %v9001_v19 = vpop.f32.mrb[197].mxu0  ;;  %v13391_v55 = vld [vmem:[#allocation5 + $0x31] sm:$0xff]  ;;  %v4273_v63 = vld [vmem:[#allocation5 + $0x5a] sm:$0xff]  ;;  %v4274_v39 = vld [vmem:[#allocation5 + $0x62] sm:$0x3] }
 0x2e6   :  { %v3851_v21 = vld [vmem:[#allocation4 + $0x5a] ss:$2 sm:$0x7]  ;;  %v3853_v35 = vld [vmem:[#allocation4 + $0x5b] ss:$2 sm:$0x7] }
 0x2e7   :  { %v3855_v10 = vmax.f32 %v3851_v21, %v3853_v35  ;;  %3802 = vst.msk [vmem:[#allocation4 + $0x68] sm:$0xff] %vm90_vm3, %v3781_v37  ;;  %v3761_v9 = vadd.f32 %v13306_v28, %v3733_v24  ;;  %9052 = vmatmul.mubr.msk.f32.gmra.mrb[178].mxu1 %vm90_vm3, %v13379_v7  ;;  %v4479_v37 = vld [vmem:[%s15057_s6 + $0xc8] sm:$0xff]  ;;  %v5087_v24 = vld [vmem:[%s15057_s6 + $0x180] sm:$0xff] }
 0x2e8   :  { %9162 = vmatmul.mubr.msk.f32.gmra.mrb[220].mxu0 %vm90_vm3, %v4267_v46  ;;  %v3690_v32 = vpop.f32.mrb[198].mxu0  ;;  %9054 = vmatprep.mubr.msk.f32.mxu1 %vm10494_vm1, %v13236_v43  ;;  %v4478_v46 = vld [vmem:[%s15057_s6 + $0xc0] sm:$0xff]  ;;  %v5088_v19 = vld [vmem:[%s15057_s6 + $0x188] sm:$0xff] }
 0x2e9   :  { %9164 = vmatprep.mubr.msk.f32.mxu0 %vm10494_vm1, %v13236_v43  ;;  %v3782_v13 = vmax.f32 %v3761_v9, 0.0  ;;  %v3734_v27 = vadd.f32 %v3690_v32, %v13298_v5  ;;  %v9004_v34 = vpop.f32.mrb[199].mxu0  ;;  %v3856_v61 = vmax.f32 %v3854_v52, %v3855_v10  ;;  %v13404_v5 = vld [vmem:[#allocation5 + $0x39] sm:$0xff]  ;;  %v10168_v35 = vpack.c.bf16 %v4479_v37, %v4478_v46  ;;  %v4668_v52 = vld [vmem:[#allocation5 + $0x8] sm:$0xff]  ;;  %v4481_v9 = vld [vmem:[%s15057_s6 + $0xd8] sm:$0xff] }
 0x2ea   :  { %v3859_v62 = vld [vmem:[#allocation4 + $0x63] ss:$2 sm:$0x7]  ;;  %v3882_v21 = vld [vmem:[#allocation5] sm:$0xff]  ;;  %v4480_v10 = vld [vmem:[%s15057_s6 + $0xd0] sm:$0xff]  ;;  %v10204_v32 = vpack.c.bf16 %v5088_v19, %v5087_v24 }
 0x2eb   :  { %3803 = vst.msk [vmem:[#allocation4 + $0x70] sm:$0xff] %vm90_vm3, %v3782_v13  ;;  %v3762_v36 = vadd.f32 %v13306_v28, %v3734_v27  ;;  %9055 = vmatmul.mubr.msk.f32.gmra.mrb[180].mxu1 %vm90_vm3, %v13391_v55  ;;  %v5090_v13 = vld [vmem:[%s15057_s6 + $0x198] sm:$0xff]  ;;  %v10171_v27 = vpack.c.bf16 %v4481_v9, %v4480_v10  ;;  %v5495_v24 = vld [vmem:[%s15057_s6 + $0x210] sm:$0xff]  ;;  %v4888_v10 = vld [vmem:[%s15057_s6 + $0x160] sm:$0xff] }
 0x2ec   :  { %9165 = vmatmul.mubr.msk.f32.gmra.mrb[222].mxu0 %vm90_vm3, %v4268_v54  ;;  %3857 = vst.msk [vmem:[#allocation5 + $0x41] sm:$0x7] %vm3820_vm5, %v3856_v61  ;;  %v3695_v26 = vpop.f32.mrb[200].mxu0  ;;  %9057 = vmatprep.mubr.msk.f32.mxu1 %vm10494_vm1, %v13236_v43  ;;  %v5089_v54 = vld [vmem:[%s15057_s6 + $0x190] sm:$0xff]  ;;  %v13492_v34 = vld [vmem:[#allocation5 + $0x10] sm:$0xff]  ;;  %v4482_v61 = vld [vmem:[%s15057_s6 + $0xe0] sm:$0xff] }
 0x2ed   :  { %9167 = vmatprep.mubr.msk.f32.mxu0 %vm10494_vm1, %v13236_v43  ;;  %v3783_v17 = vmax.f32 %v3762_v36, 0.0  ;;  %v3735_v59 = vadd.f32 %v3695_v26, %v13301_v42  ;;  %v9007_v47 = vpop.f32.mrb[201].mxu0  ;;  %v4483_v36 = vld [vmem:[%s15057_s6 + $0xe8] sm:$0xff]  ;;  %v10207_v26 = vpack.c.bf16 %v5090_v13, %v5089_v54  ;;  %v4887_v46 = vld [vmem:[%s15057_s6 + $0x158] sm:$0xff]  ;;  %v5497_v54 = vld [vmem:[%s15057_s6 + $0x220] sm:$0xff] }
 0x2ee   :  { %v3861_v49 = vld [vmem:[#allocation4 + $0x64] ss:$2 sm:$0x7]  ;;  %v5496_v19 = vld [vmem:[%s15057_s6 + $0x218] sm:$0xff] }
 0x2ef   :  { %3804 = vst.msk [vmem:[#allocation4 + $0x78] sm:$0xff] %vm90_vm3, %v3783_v17  ;;  %v3763_v25 = vadd.f32 %v13306_v28, %v3735_v59  ;;  %9058 = vmatmul.mubr.msk.f32.gmra.mrb[182].mxu1 %vm90_vm3, %v13404_v5  ;;  %v3866_v29 = vmax.f32 %v3859_v62, %v3861_v49  ;;  %v5091_v17 = vld [vmem:[%s15057_s6 + $0x1a0] sm:$0xff]  ;;  %v5092_v59 = vld [vmem:[%s15057_s6 + $0x1a8] sm:$0xff]  ;;  %v10174_v62 = vpack.c.bf16 %v4483_v36, %v4482_v61 }
 0x2f0   :  { %v3700_v53 = vpop.f32.mrb[202].mxu0  ;;  %9060 = vmatprep.mubr.msk.f32.mxu1 %vm10494_vm1, %v13236_v43  ;;  %v4889_v9 = vld [vmem:[%s15057_s6 + $0x168] sm:$0xff] }
 0x2f1   :  { %v3784_v16 = vmax.f32 %v3763_v25, 0.0  ;;  %v9010_v18 = vpop.f32.mrb[203].mxu0  ;;  %v5498_v13 = vld [vmem:[%s15057_s6 + $0x228] sm:$0xff]  ;;  %v10198_v61 = vpack.c.bf16 %v4889_v9, %v4888_v10  ;;  %v5292_v9 = vld [vmem:[%s15057_s6 + $0x1d0] sm:$0xff] }
 0x2f2   :  { %v3863_v41 = vld [vmem:[#allocation4 + $0x6c] ss:$2 sm:$0x7]  ;;  %v3865_v1 = vld [vmem:[#allocation4 + $0x6d] ss:$2 sm:$0x7] }
 0x2f3   :  { %v3867_v42 = vmax.f32 %v3863_v41, %v3865_v1  ;;  %3805 = vst.msk [vmem:[#allocation4 + $0x80] sm:$0xff] %vm90_vm3, %v3784_v16  ;;  %v4269_v8 = vld [vmem:[#allocation5 + $0x3a] sm:$0xff]  ;;  %v4484_v18 = vld [vmem:[%s15057_s6 + $0xf0] sm:$0xff]  ;;  %v4485_v41 = vld [vmem:[%s15057_s6 + $0xf8] sm:$0xff]  ;;  %v10210_v1 = vpack.c.bf16 %v5092_v59, %v5091_v17  ;;  %v10234_v59 = vpack.c.bf16 %v5498_v13, %v5497_v54 }
 0x2f4   :  { %9168 = vmatmul.mubr.msk.f32.gmra.mrb[224].mxu0 %vm90_vm3, %v4269_v8  ;;  %v3705_v28 = vpop.f32.mrb[204].mxu0  ;;  %v13518_v16 = vld [vmem:[#allocation5 + $0x18] sm:$0xff]  ;;  %v10177_v8 = vpack.c.bf16 %v4485_v41, %v4484_v18  ;;  %v4891_v17 = vld [vmem:[%s15057_s6 + $0x178] sm:$0xff] }
 0x2f5   :  { %v9013_v23 = vpop.f32.mrb[205].mxu0  ;;  %9170 = vmatprep.mubr.msk.f32.mxu0 %vm10494_vm1, %v13236_v43  ;;  %v3868_v57 = vmax.f32 %v3866_v29, %v3867_v42  ;;  %v5093_v29 = vld [vmem:[%s15057_s6 + $0x1b0] sm:$0xff]  ;;  %v5094_v42 = vld [vmem:[%s15057_s6 + $0x1b8] sm:$0xff]  ;;  %v13542_v28 = vld [vmem:[#allocation5 + $0x20] sm:$0xff] }
 0x2f6   :  { %v3871_v48 = vld [vmem:[#allocation4 + $0x75] ss:$2 sm:$0x7]  ;;  %v3873_v11 = vld [vmem:[#allocation4 + $0x76] ss:$2 sm:$0x7]  ;;  %v10213_v23 = vpack.c.bf16 %v5094_v42, %v5093_v29 }
 0x2f7   :  { %3869 = vst.msk [vmem:[#allocation5 + $0x48] sm:$0x7] %vm3820_vm5, %v3868_v57  ;;  %v3878_v50 = vmax.f32 %v3871_v48, %v3873_v11  ;;  %v13553_v57 = vld [vmem:[#allocation5 + $0x28] sm:$0xff]  ;;  %v13565_v48 = vld [vmem:[#allocation5 + $0x30] sm:$0xff]  ;;  %v13576_v11 = vld [vmem:[#allocation5 + $0x38] sm:$0xff] }
 0x2f8   :  { %v3710_v22 = vpop.f32.mrb[206].mxu0  ;;  %v5076_v36 = vld [vmem:[#allocation5 + $0x1e] sm:$0xff]  ;;  %v5078_v42 = vld [vmem:[#allocation5 + $0x2e] sm:$0xff] }
 0x2f9   :  { %v9016_v3 = vpop.f32.mrb[207].mxu0  ;;  %v13586_v22 = vld [vmem:[#allocation5 + $0x40] sm:$0xff]  ;;  %v5294_v13 = vld [vmem:[%s15057_s6 + $0x1e0] sm:$0xff] }
 0x2fa   :  { %v3875_v56 = vld [vmem:[#allocation4 + $0x7e] ss:$2 sm:$0x7]  ;;  %v3877_v60 = vld [vmem:[#allocation4 + $0x7f] ss:$2 sm:$0x7] }
 0x2fb   :  { %v3879_v51 = vmax.f32 %v3875_v56, %v3877_v60  ;;  %v13616_v60 = vld [vmem:[#allocation5 + $0x58] sm:$0xff]  ;;  %v13724_v29 = vld [vmem:[#allocation7] sm:$0xff] }
 0x2fc   :  { %v3715_v14 = vpop.f32.mrb[208].mxu0  ;;  %v13718_v41 = vld [vmem:[#allocation5 + $0x1f] sm:$0xff] }
 0x2fd   :  { %v3880_v33 = vmax.f32 %v3878_v50, %v3879_v51  ;;  %v9019_v6 = vpop.f32.mrb[209].mxu0  ;;  %v13626_v50 = vld [vmem:[#allocation5 + $0x60] sm:$0xff]  ;;  %v4680_v14 = vld [vmem:[#allocation5 + $0x68] sm:$0x3] }
 0x2fe   :  { %v13418_v12 = vld [vmem:[#allocation5 + $0x41] sm:$0xff] }
 0x2ff   :  { %v4270_v40 = vld [vmem:[#allocation5 + $0x42] sm:$0xff]  ;;  %3881 = vst.msk [vmem:[#allocation5 + $0x4f] sm:$0x7] %vm3820_vm5, %v3880_v33  ;;  %9061 = vmatmul.mubr.msk.f32.gmra.mrb[184].mxu1 %vm90_vm3, %v13418_v12  ;;  %v3894_v51 = vld [vmem:[#allocation5 + $0x60] sm:$0x3]  ;;  %v4884_v33 = vld [vmem:[%s15057_s6 + $0x140] sm:$0xff] }
 0x300   :  { %9171 = vmatmul.mubr.msk.f32.gmra.mrb[226].mxu0 %vm90_vm3, %v4270_v40  ;;  %9063 = vmatprep.mubr.msk.f32.mxu1 %vm10494_vm1, %v13236_v43  ;;  %v4885_v6 = vld [vmem:[%s15057_s6 + $0x148] sm:$0xff]  ;;  %v5493_v40 = vld [vmem:[%s15057_s6 + $0x200] sm:$0xff] }
 0x301   :  { %9173 = vmatprep.mubr.msk.f32.mxu0 %vm10494_vm1, %v13236_v43 }
 0x306   :  { %v13428_v30 = vld [vmem:[#allocation5 + $0x49] sm:$0xff]  ;;  %v13437_v31 = vld [vmem:[#allocation5 + $0x51] sm:$0xff] }
 0x307   :  { %v4271_v45 = vld [vmem:[#allocation5 + $0x4a] sm:$0xff]  ;;  %9064 = vmatmul.mubr.msk.f32.gmra.mrb[186].mxu1 %vm90_vm3, %v13428_v30 }
 0x308   :  { %9174 = vmatmul.mubr.msk.f32.gmra.mrb[228].mxu0 %vm90_vm3, %v4271_v45  ;;  %9066 = vmatprep.mubr.msk.f32.mxu1 %vm10494_vm1, %v13236_v43  ;;  %v13596_v3 = vld [vmem:[#allocation5 + $0x48] sm:$0xff]  ;;  %v13606_v56 = vld [vmem:[#allocation5 + $0x50] sm:$0xff]  ;;  %v5494_v45 = vld [vmem:[%s15057_s6 + $0x208] sm:$0xff] }
 0x309   :  { %9176 = vmatprep.mubr.msk.f32.mxu0 %vm10494_vm1, %v13236_v43  ;;  %v10228_v37 = vpack.c.bf16 %v5494_v45, %v5493_v40  ;;  %v13769_v40 = vld [vmem:[#allocation5 + $0x47] sm:$0xff] }
 0x30a   :  { %v5082_v45 = vld [vmem:[#allocation5 + $0x4e] sm:$0xff] }
 0x30b   :  { %9067 = vmatmul.mubr.msk.f32.gmra.mrb[188].mxu1 %vm90_vm3, %v13437_v31 }
 0x30c   :  { %9177 = vmatmul.mubr.msk.f32.gmra.mrb[230].mxu0 %vm90_vm3, %v4272_v38  ;;  %9069 = vmatprep.mubr.msk.f32.mxu1 %vm10494_vm1, %v13236_v43  ;;  %v4465_v38 = vld [vmem:[#allocation5 + $0x7] sm:$0xff] }
 0x30d   :  { %9179 = vmatprep.mubr.msk.f32.mxu0 %vm10494_vm1, %v13236_v43 }
 0x30f   :  { %9070 = vmatmul.mubr.msk.f32.gmra.mrb[190].mxu1 %vm90_vm3, %v13446_v44 }
 0x310   :  { %9180 = vmatmul.mubr.msk.f32.gmra.mrb[232].mxu0 %vm90_vm3, %v4273_v63  ;;  %9072 = vmatprep.mubr.msk.f32.mxu1 %vm10494_vm1, %v13236_v43  ;;  %v10192_v63 = vpack.c.bf16 %v4885_v6, %v4884_v33  ;;  %v13760_v33 = vld [vmem:[#allocation5 + $0x3f] sm:$0xff] }
 0x311   :  { %9182 = vmatprep.mubr.msk.f32.mxu0 %vm10494_vm1, %v13236_v43  ;;  %v5081_v6 = vld [vmem:[#allocation5 + $0x46] sm:$0xff] }
 0x313   :  { %9073 = vmatmul.mubr.msk.f32.gmra.mrb[192].mxu1 %vm90_vm3, %v3915_v20  ;;  %v5074_v20 = vld [vmem:[#allocation5 + $0xe] sm:$0xff] }
 0x314   :  { %9183 = vmatmul.mubr.msk.f32.gmra.mrb[234].mxu0 %vm90_vm3, %v4274_v39  ;;  %9091 = vmatprep.mubr.msk.f32.mxu1 %vm10494_vm1, %v13236_v43  ;;  %v4886_v39 = vld [vmem:[%s15057_s6 + $0x150] sm:$0xff] }
 0x315   :  { %9256 = vmatprep.mubr.msk.f32.mxu0 %vm10494_vm1, %v13236_v43 }
 0x317   :  { %9092 = vmatmul.mubr.msk.f32.vlgmr.msra.gmra.mrb[194].mxu1 %vm90_vm3, %v3882_v21  ;;  %v13672_v21 = vld [vmem:[#allocation5 + $0xf] sm:$0xff] }
 0x318   :  { %9257 = vmatmul.mubr.msk.f32.vlgmr.msra.gmra.mrb[236].mxu0 %vm90_vm3, %v4668_v52  ;;  %10169 = vmatpush3.bf16.msra.mxu1 %v10168_v35  ;;  %v10195_v35 = vpack.c.bf16 %v4887_v46, %v4886_v39  ;;  %v5084_v39 = vld [vmem:[#allocation5 + $0x5e] sm:$0xff] }
 0x319   :  { %9094 = vmatprep.mubr.msk.f32.mxu1 %vm10494_vm1, %v13236_v43  ;;  %9259 = vmatprep.mubr.msk.f32.mxu0 %vm10494_vm1, %v13236_v43  ;;  %v13509_v47 = vpop.f32.mrb[168].mxu1  ;;  %v13796_v46 = vld [vmem:[#allocation5 + $0x5f] sm:$0xff] }
 0x31a   :  { %10170 = vmatprep.subr.bf16.mxu1 %v10492_v0  ;;  %10205 = vmatpush3.bf16.msra.mxu0 %v10204_v32  ;;  %v13511_v25 = vpop.f32.mrb[210].mxu0  ;;  %v9038_v49 = vpop.f32.mrb[169].mxu1  ;;  %v10231_v32 = vpack.c.bf16 %v5496_v19, %v5495_v24  ;;  %v4477_v24 = vld [vmem:[#allocation5 + $0x67] sm:$0x3]  ;;  %v5086_v19 = vld [vmem:[#allocation5 + $0x6e] sm:$0x3] }
 0x31b   :  { %9095 = vmatmul.mubr.msk.f32.gmra.mrb[196].mxu1 %vm90_vm3, %v4668_v52  ;;  %v9148_v53 = vpop.f32.mrb[211].mxu0  ;;  %10206 = vmatprep.subr.bf16.mxu0 %v10492_v0  ;;  %v5075_v52 = vld [vmem:[#allocation5 + $0x16] sm:$0xff]  ;;  %v5499_v49 = vld [vmem:[%s15057_s6 + $0x230] sm:$0xff] }
 0x31c   :  { %9260 = vmatmul.mubr.msk.f32.gmra.mrb[238].mxu0 %vm90_vm3, %v13492_v34  ;;  %9097 = vmatprep.mubr.msk.f32.mxu1 %vm10494_vm1, %v13236_v43  ;;  %v5500_v53 = vld [vmem:[%s15057_s6 + $0x238] sm:$0xff] }
 0x31d   :  { %9262 = vmatprep.mubr.msk.f32.mxu0 %vm10494_vm1, %v13236_v43  ;;  %10172 = vmatpush3.bf16.msra.mxu1 %v10171_v27  ;;  %v13694_v27 = vld [vmem:[#allocation5 + $0x17] sm:$0xff] }
 0x31e   :  { %10173 = vmatprep.subr.bf16.mxu1 %v10492_v0  ;;  %10208 = vmatpush3.bf16.msra.mxu0 %v10207_v26  ;;  %v4890_v26 = vld [vmem:[%s15057_s6 + $0x170] sm:$0xff] }
 0x31f   :  { %9098 = vmatmul.mubr.msk.f32.gmra.mrb[198].mxu1 %vm90_vm3, %v13492_v34  ;;  %10209 = vmatprep.subr.bf16.mxu0 %v10492_v0  ;;  %v10201_v18 = vpack.c.bf16 %v4891_v17, %v4890_v26 }
 0x320   :  { %9263 = vmatmul.mubr.msk.f32.gmra.mrb[240].mxu0 %vm90_vm3, %v13518_v16  ;;  %9100 = vmatprep.mubr.msk.f32.mxu1 %vm10494_vm1, %v13236_v43 }
 0x321   :  { %9265 = vmatprep.mubr.msk.f32.mxu0 %vm10494_vm1, %v13236_v43  ;;  %10175 = vmatpush3.bf16.msra.mxu1 %v10174_v62  ;;  %v5077_v62 = vld [vmem:[#allocation5 + $0x26] sm:$0xff] }
 0x322   :  { %10176 = vmatprep.subr.bf16.mxu1 %v10492_v0  ;;  %10211 = vmatpush3.bf16.msra.mxu0 %v10210_v1  ;;  %v10237_v1 = vpack.c.bf16 %v5500_v53, %v5499_v49 }
 0x323   :  { %9101 = vmatmul.mubr.msk.f32.gmra.mrb[200].mxu1 %vm90_vm3, %v13518_v16  ;;  %10212 = vmatprep.subr.bf16.mxu0 %v10492_v0 }
 0x324   :  { %9266 = vmatmul.mubr.msk.f32.gmra.mrb[242].mxu0 %vm90_vm3, %v13542_v28  ;;  %9103 = vmatprep.mubr.msk.f32.mxu1 %vm10494_vm1, %v13236_v43 }
 0x325   :  { %9268 = vmatprep.mubr.msk.f32.mxu0 %vm10494_vm1, %v13236_v43  ;;  %10178 = vmatpush3.bf16.msra.mxu1 %v10177_v8  ;;  %v13741_v8 = vld [vmem:[#allocation5 + $0x2f] sm:$0xff] }
 0x326   :  { %10214 = vmatpush3.bf16.msra.mxu0 %v10213_v23  ;;  %10191 = vmatprep.subr.bf16.mxu1 %v10492_v0  ;;  %v5079_v23 = vld [vmem:[#allocation5 + $0x36] sm:$0xff] }
 0x327   :  { %9104 = vmatmul.mubr.msk.f32.gmra.mrb[202].mxu1 %vm90_vm3, %v13542_v28  ;;  %10227 = vmatprep.subr.bf16.mxu0 %v10492_v0 }
 0x328   :  { %9269 = vmatmul.mubr.msk.f32.gmra.mrb[244].mxu0 %vm90_vm3, %v13553_v57  ;;  %9106 = vmatprep.mubr.msk.f32.mxu1 %vm10494_vm1, %v13236_v43 }
 0x329   :  { %9271 = vmatprep.mubr.msk.f32.mxu0 %vm10494_vm1, %v13236_v43 }
 0x32b   :  { %9107 = vmatmul.mubr.msk.f32.gmra.mrb[204].mxu1 %vm90_vm3, %v13553_v57 }
 0x32c   :  { %9272 = vmatmul.mubr.msk.f32.gmra.mrb[246].mxu0 %vm90_vm3, %v13565_v48  ;;  %9109 = vmatprep.mubr.msk.f32.mxu1 %vm10494_vm1, %v13236_v43 }
 0x32d   :  { %9274 = vmatprep.mubr.msk.f32.mxu0 %vm10494_vm1, %v13236_v43 }
 0x32f   :  { %9110 = vmatmul.mubr.msk.f32.gmra.mrb[206].mxu1 %vm90_vm3, %v13565_v48 }
 0x330   :  { %9275 = vmatmul.mubr.msk.f32.gmra.mrb[248].mxu0 %vm90_vm3, %v13576_v11  ;;  %9112 = vmatprep.mubr.msk.f32.mxu1 %vm10494_vm1, %v13236_v43 }
 0x331   :  { %9277 = vmatprep.mubr.msk.f32.mxu0 %vm10494_vm1, %v13236_v43 }
 0x333   :  { %9113 = vmatmul.mubr.msk.f32.gmra.mrb[208].mxu1 %vm90_vm3, %v13576_v11 }
 0x334   :  { %9278 = vmatmul.mubr.msk.f32.gmra.mrb[250].mxu0 %vm90_vm3, %v13586_v22  ;;  %9115 = vmatprep.mubr.msk.f32.mxu1 %vm10494_vm1, %v13236_v43 }
 0x335   :  { %9280 = vmatprep.mubr.msk.f32.mxu0 %vm10494_vm1, %v13236_v43 }
 0x337   :  { %9116 = vmatmul.mubr.msk.f32.gmra.mrb[210].mxu1 %vm90_vm3, %v13586_v22 }
 0x338   :  { %9281 = vmatmul.mubr.msk.f32.gmra.mrb[252].mxu0 %vm90_vm3, %v13596_v3  ;;  %9118 = vmatprep.mubr.msk.f32.mxu1 %vm10494_vm1, %v13236_v43 }
 0x339   :  { %9283 = vmatprep.mubr.msk.f32.mxu0 %vm10494_vm1, %v13236_v43 }
 0x33b   :  { %9119 = vmatmul.mubr.msk.f32.gmra.mrb[212].mxu1 %vm90_vm3, %v13596_v3 }
 0x33c   :  { %9284 = vmatmul.mubr.msk.f32.gmra.mrb[254].mxu0 %vm90_vm3, %v13606_v56  ;;  %9121 = vmatprep.mubr.msk.f32.mxu1 %vm10494_vm1, %v13236_v43 }
 0x33d   :  { %9286 = vmatprep.mubr.msk.f32.mxu0 %vm10494_vm1, %v13236_v43 }
 0x33f   :  { %9122 = vmatmul.mubr.msk.f32.gmra.mrb[214].mxu1 %vm90_vm3, %v13606_v56 }
 0x340   :  { %9287 = vmatmul.mubr.msk.f32.gmra.mrb[0].mxu0 %vm90_vm3, %v13616_v60  ;;  %9124 = vmatprep.mubr.msk.f32.mxu1 %vm10494_vm1, %v13236_v43 }
 0x341   :  { %9289 = vmatprep.mubr.msk.f32.mxu0 %vm10494_vm1, %v13236_v43 }
 0x343   :  { %9125 = vmatmul.mubr.msk.f32.gmra.mrb[216].mxu1 %vm90_vm3, %v13616_v60 }
 0x344   :  { %9290 = vmatmul.mubr.msk.f32.gmra.mrb[2].mxu0 %vm90_vm3, %v13626_v50  ;;  %9127 = vmatprep.mubr.msk.f32.mxu1 %vm10494_vm1, %v13236_v43 }
 0x345   :  { %9292 = vmatprep.mubr.msk.f32.mxu0 %vm10494_vm1, %v13236_v43 }
 0x347   :  { %9128 = vmatmul.mubr.msk.f32.gmra.mrb[218].mxu1 %vm90_vm3, %v3894_v51  ;;  %v13751_v51 = vld [vmem:[#allocation5 + $0x37] sm:$0xff] }
 0x348   :  { %9293 = vmatmul.mubr.msk.f32.gmra.mrb[4].mxu0 %vm90_vm3, %v4680_v14  ;;  %9201 = vmatprep.mubr.msk.f32.mxu1 %vm10494_vm1, %v13236_v43  ;;  %v5080_v14 = vld [vmem:[#allocation5 + $0x3e] sm:$0xff] }
 0x349   :  { %9366 = vmatprep.mubr.msk.f32.mxu0 %vm10494_vm1, %v13236_v43 }
 0x34b   :  { %9202 = vmatmul.mubr.msk.f32.vlgmr.msra.gmra.mrb[220].mxu1 %vm90_vm3, %v4465_v38  ;;  %v5083_v38 = vld [vmem:[#allocation5 + $0x56] sm:$0xff] }
 0x34c   :  { %9367 = vmatmul.mubr.msk.f32.vlgmr.msra.gmra.mrb[6].mxu0 %vm90_vm3, %v5074_v20  ;;  %10193 = vmatpush3.bf16.msra.mxu1 %v10192_v63  ;;  %v13778_v63 = vld [vmem:[#allocation5 + $0x4f] sm:$0xff]  ;;  %v13787_v20 = vld [vmem:[#allocation5 + $0x57] sm:$0xff] }
 0x34d   :  { %9204 = vmatprep.mubr.msk.f32.mxu1 %vm10494_vm1, %v13236_v43  ;;  %9369 = vmatprep.mubr.msk.f32.mxu0 %vm10494_vm1, %v13236_v43 }
 0x34e   :  { %10194 = vmatprep.subr.bf16.mxu1 %v10492_v0  ;;  %10229 = vmatpush3.bf16.msra.mxu0 %v10228_v37  ;;  %v5085_v37 = vld [vmem:[#allocation5 + $0x66] sm:$0xff] }
 0x34f   :  { %9205 = vmatmul.mubr.msk.f32.gmra.mrb[222].mxu1 %vm90_vm3, %v13672_v21  ;;  %10230 = vmatprep.subr.bf16.mxu0 %v10492_v0 }
 0x350   :  { %9370 = vmatmul.mubr.msk.f32.gmra.mrb[8].mxu0 %vm90_vm3, %v5075_v52  ;;  %9207 = vmatprep.mubr.msk.f32.mxu1 %vm10494_vm1, %v13236_v43  ;;  %v5291_v52 = vld [vmem:[%s15057_s6 + $0x1c8] sm:$0xff] }
 0x351   :  { %9372 = vmatprep.mubr.msk.f32.mxu0 %vm10494_vm1, %v13236_v43  ;;  %10196 = vmatpush3.bf16.msra.mxu1 %v10195_v35  ;;  %v5290_v35 = vld [vmem:[%s15057_s6 + $0x1c0] sm:$0xff] }
 0x352   :  { %10197 = vmatprep.subr.bf16.mxu1 %v10492_v0  ;;  %10232 = vmatpush3.bf16.msra.mxu0 %v10231_v32  ;;  %v10216_v10 = vpack.c.bf16 %v5291_v52, %v5290_v35  ;;  %v5293_v32 = vld [vmem:[%s15057_s6 + $0x1d8] sm:$0xff] }
 0x353   :  { %9208 = vmatmul.mubr.msk.f32.gmra.mrb[224].mxu1 %vm90_vm3, %v13694_v27  ;;  %10233 = vmatprep.subr.bf16.mxu0 %v10492_v0  ;;  %v10219_v54 = vpack.c.bf16 %v5293_v32, %v5292_v9 }
 0x354   :  { %9373 = vmatmul.mubr.msk.f32.gmra.mrb[10].mxu0 %vm90_vm3, %v5076_v36  ;;  %9210 = vmatprep.mubr.msk.f32.mxu1 %vm10494_vm1, %v13236_v43 }
 0x355   :  { %9375 = vmatprep.mubr.msk.f32.mxu0 %vm10494_vm1, %v13236_v43  ;;  %10199 = vmatpush3.bf16.msra.mxu1 %v10198_v61  ;;  %v13730_v43 = vld [vmem:[#allocation5 + $0x27] sm:$0xff] }
 0x356   :  { %10200 = vmatprep.subr.bf16.mxu1 %v10492_v0  ;;  %10235 = vmatpush3.bf16.msra.mxu0 %v10234_v59  ;;  %v5296_v61 = vld [vmem:[%s15057_s6 + $0x1f0] sm:$0xff] }
 0x357   :  { %9211 = vmatmul.mubr.msk.f32.gmra.mrb[226].mxu1 %vm90_vm3, %v13718_v41  ;;  %10236 = vmatprep.subr.bf16.mxu0 %v10492_v0 }
 0x358   :  { %9376 = vmatmul.mubr.msk.f32.gmra.mrb[12].mxu0 %vm90_vm3, %v5077_v62  ;;  %9213 = vmatprep.mubr.msk.f32.mxu1 %vm10494_vm1, %v13724_v29 }
 0x359   :  { %9378 = vmatprep.mubr.msk.f32.mxu0 %vm10494_vm1, %v13724_v29  ;;  %10202 = vmatpush3.bf16.msra.mxu1 %v10201_v18 }
 0x35a   :  { %10238 = vmatpush3.bf16.msra.mxu0 %v10237_v1  ;;  %10215 = vmatprep.subr.bf16.mxu1 %v10492_v0 }
 0x35b   :  { %9214 = vmatmul.mubr.msk.f32.gmra.mrb[228].mxu1 %vm90_vm3, %v13730_v43  ;;  %10263 = vmatprep.subr.bf16.mxu0 %v10492_v0 }
 0x35c   :  { %9379 = vmatmul.mubr.msk.f32.gmra.mrb[14].mxu0 %vm90_vm3, %v5078_v42  ;;  %9216 = vmatprep.mubr.msk.f32.mxu1 %vm10494_vm1, %v13724_v29 }
 0x35d   :  { %9381 = vmatprep.mubr.msk.f32.mxu0 %vm10494_vm1, %v13724_v29 }
 0x35f   :  { %9217 = vmatmul.mubr.msk.f32.gmra.mrb[230].mxu1 %vm90_vm3, %v13741_v8 }
 0x360   :  { %9382 = vmatmul.mubr.msk.f32.gmra.mrb[16].mxu0 %vm90_vm3, %v5079_v23  ;;  %9219 = vmatprep.mubr.msk.f32.mxu1 %vm10494_vm1, %v13724_v29 }
 0x361   :  { %9384 = vmatprep.mubr.msk.f32.mxu0 %vm10494_vm1, %v13724_v29 }
 0x363   :  { %9220 = vmatmul.mubr.msk.f32.gmra.mrb[232].mxu1 %vm90_vm3, %v13751_v51 }
 0x364   :  { %9385 = vmatmul.mubr.msk.f32.gmra.mrb[18].mxu0 %vm90_vm3, %v5080_v14  ;;  %9222 = vmatprep.mubr.msk.f32.mxu1 %vm10494_vm1, %v13724_v29 }
 0x365   :  { %9387 = vmatprep.mubr.msk.f32.mxu0 %vm10494_vm1, %v13724_v29 }
 0x367   :  { %9223 = vmatmul.mubr.msk.f32.gmra.mrb[234].mxu1 %vm90_vm3, %v13760_v33 }
 0x368   :  { %9388 = vmatmul.mubr.msk.f32.gmra.mrb[20].mxu0 %vm90_vm3, %v5081_v6  ;;  %9225 = vmatprep.mubr.msk.f32.mxu1 %vm10494_vm1, %v13724_v29 }
 0x369   :  { %9390 = vmatprep.mubr.msk.f32.mxu0 %vm10494_vm1, %v13724_v29 }
 0x36b   :  { %9226 = vmatmul.mubr.msk.f32.gmra.mrb[236].mxu1 %vm90_vm3, %v13769_v40 }
 0x36c   :  { %9391 = vmatmul.mubr.msk.f32.gmra.mrb[22].mxu0 %vm90_vm3, %v5082_v45  ;;  %9228 = vmatprep.mubr.msk.f32.mxu1 %vm10494_vm1, %v13724_v29 }
 0x36d   :  { %9393 = vmatprep.mubr.msk.f32.mxu0 %vm10494_vm1, %v13724_v29 }
 0x36f   :  { %9229 = vmatmul.mubr.msk.f32.gmra.mrb[238].mxu1 %vm90_vm3, %v13778_v63 }
 0x370   :  { %9394 = vmatmul.mubr.msk.f32.gmra.mrb[24].mxu0 %vm90_vm3, %v5083_v38  ;;  %9231 = vmatprep.mubr.msk.f32.mxu1 %vm10494_vm1, %v13724_v29  ;;  %v5288_v38 = vld [vmem:[#allocation5 + $0x67] sm:$0xff] }
 0x371   :  { %9396 = vmatprep.mubr.msk.f32.mxu0 %vm10494_vm1, %v13724_v29 }
 0x373   :  { %9232 = vmatmul.mubr.msk.f32.gmra.mrb[240].mxu1 %vm90_vm3, %v13787_v20 }
 0x374   :  { %9397 = vmatmul.mubr.msk.f32.gmra.mrb[26].mxu0 %vm90_vm3, %v5084_v39  ;;  %9234 = vmatprep.mubr.msk.f32.mxu1 %vm10494_vm1, %v13724_v29 }
 0x375   :  { %9399 = vmatprep.mubr.msk.f32.mxu0 %vm10494_vm1, %v13724_v29 }
 0x377   :  { %9235 = vmatmul.mubr.msk.f32.gmra.mrb[242].mxu1 %vm90_vm3, %v13796_v46 }
 0x378   :  { %9400 = vmatmul.mubr.msk.f32.gmra.mrb[28].mxu0 %vm90_vm3, %v5085_v37  ;;  %9237 = vmatprep.mubr.msk.f32.mxu1 %vm10494_vm1, %v13724_v29 }
 0x379   :  { %9402 = vmatprep.mubr.msk.f32.mxu0 %vm10494_vm1, %v13724_v29 }
 0x37b   :  { %9238 = vmatmul.mubr.msk.f32.gmra.mrb[244].mxu1 %vm90_vm3, %v4477_v24  ;;  %v5289_v24 = vld [vmem:[#allocation5 + $0x6f] sm:$0x3] }
 0x37c   :  { %9403 = vmatmul.mubr.msk.f32.gmra.mrb[30].mxu0 %vm90_vm3, %v5086_v19  ;;  %9311 = vmatprep.mubr.msk.f32.mxu1 %vm10494_vm1, %v13724_v29 }
 0x37d   :  { %9476 = vmatprep.mubr.msk.f32.mxu0 %vm10494_vm1, %v13724_v29 }
 0x37f   :  { %9312 = vmatmul.mubr.msk.f32.vlgmr.msra.gmra.mrb[246].mxu1 %vm90_vm3, %v13329_v15  ;;  %v5295_v15 = vld [vmem:[%s15057_s6 + $0x1e8] sm:$0xff] }
 0x380   :  { %9477 = vmatmul.mubr.msk.f32.vlgmr.msra.gmra.mrb[32].mxu0 %vm90_vm3, %v13492_v34  ;;  %10217 = vmatpush3.bf16.msra.mxu1 %v10216_v10  ;;  %v10222_v34 = vpack.c.bf16 %v5295_v15, %v5294_v13 }
 0x381   :  { %9314 = vmatprep.mubr.msk.f32.mxu1 %vm10494_vm1, %v13724_v29  ;;  %9479 = vmatprep.mubr.msk.f32.mxu0 %vm10494_vm1, %v13724_v29 }
 0x382   :  { %10218 = vmatprep.subr.bf16.mxu1 %v10492_v0 }
 0x383   :  { %9315 = vmatmul.mubr.msk.f32.gmra.mrb[248].mxu1 %vm90_vm3, %v13341_v58  ;;  %v5297_v58 = vld [vmem:[%s15057_s6 + $0x1f8] sm:$0xff] }
 0x384   :  { %9480 = vmatmul.mubr.msk.f32.gmra.mrb[34].mxu0 %vm90_vm3, %v13518_v16  ;;  %9317 = vmatprep.mubr.msk.f32.mxu1 %vm10494_vm1, %v13724_v29  ;;  %v10225_v16 = vpack.c.bf16 %v5297_v58, %v5296_v61 }
 0x385   :  { %9482 = vmatprep.mubr.msk.f32.mxu0 %vm10494_vm1, %v13724_v29  ;;  %10220 = vmatpush3.bf16.msra.mxu1 %v10219_v54 }
 0x386   :  { %10221 = vmatprep.subr.bf16.mxu1 %v10492_v0 }
 0x387   :  { %9318 = vmatmul.mubr.msk.f32.gmra.mrb[250].mxu1 %vm90_vm3, %v13356_v2 }
 0x388   :  { %9483 = vmatmul.mubr.msk.f32.gmra.mrb[36].mxu0 %vm90_vm3, %v13542_v28  ;;  %9320 = vmatprep.mubr.msk.f32.mxu1 %vm10494_vm1, %v13724_v29 }
 0x389   :  { %9485 = vmatprep.mubr.msk.f32.mxu0 %vm10494_vm1, %v13724_v29  ;;  %10223 = vmatpush3.bf16.msra.mxu1 %v10222_v34 }
 0x38a   :  { %10224 = vmatprep.subr.bf16.mxu1 %v10492_v0 }
 0x38b   :  { %9321 = vmatmul.mubr.msk.f32.gmra.mrb[252].mxu1 %vm90_vm3, %v13367_v4 }
 0x38c   :  { %9486 = vmatmul.mubr.msk.f32.gmra.mrb[38].mxu0 %vm90_vm3, %v13553_v57  ;;  %9323 = vmatprep.mubr.msk.f32.mxu1 %vm10494_vm1, %v13724_v29 }
 0x38d   :  { %9488 = vmatprep.mubr.msk.f32.mxu0 %vm10494_vm1, %v13724_v29  ;;  %10226 = vmatpush3.bf16.msra.mxu1 %v10225_v16 }
 0x38e   :  { %10239 = vmatprep.subr.bf16.mxu1 %v10492_v0 }
 0x38f   :  { %9324 = vmatmul.mubr.msk.f32.gmra.mrb[254].mxu1 %vm90_vm3, %v13379_v7 }
 0x390   :  { %9489 = vmatmul.mubr.msk.f32.gmra.mrb[40].mxu0 %vm90_vm3, %v13565_v48  ;;  %9326 = vmatprep.mubr.msk.f32.mxu1 %vm10494_vm1, %v13724_v29  ;;  %v5492_v48 = vld [vmem:[#allocation5 + $0x70] sm:$0x3] }
 0x391   :  { %9491 = vmatprep.mubr.msk.f32.mxu0 %vm10494_vm1, %v13724_v29 }
 0x393   :  { %9327 = vmatmul.mubr.msk.f32.gmra.mrb[0].mxu1 %vm90_vm3, %v13391_v55 }
 0x394   :  { %9492 = vmatmul.mubr.msk.f32.gmra.mrb[42].mxu0 %vm90_vm3, %v13576_v11  ;;  %9329 = vmatprep.mubr.msk.f32.mxu1 %vm10494_vm1, %v13724_v29 }
 0x395   :  { %9494 = vmatprep.mubr.msk.f32.mxu0 %vm10494_vm1, %v13724_v29 }
 0x397   :  { %9330 = vmatmul.mubr.msk.f32.gmra.mrb[2].mxu1 %vm90_vm3, %v13404_v5  ;;  %v4882_v5 = vld [vmem:[#allocation5 + $0x61] sm:$0xff] }
 0x398   :  { %9495 = vmatmul.mubr.msk.f32.gmra.mrb[44].mxu0 %vm90_vm3, %v13586_v22  ;;  %9332 = vmatprep.mubr.msk.f32.mxu1 %vm10494_vm1, %v13724_v29 }
 0x399   :  { %9497 = vmatprep.mubr.msk.f32.mxu0 %vm10494_vm1, %v13724_v29 }
 0x39b   :  { %9333 = vmatmul.mubr.msk.f32.gmra.mrb[4].mxu1 %vm90_vm3, %v13418_v12  ;;  %v5491_v12 = vld [vmem:[#allocation5 + $0x68] sm:$0xff] }
 0x39c   :  { %9498 = vmatmul.mubr.msk.f32.gmra.mrb[46].mxu0 %vm90_vm3, %v13596_v3  ;;  %9335 = vmatprep.mubr.msk.f32.mxu1 %vm10494_vm1, %v13724_v29 }
 0x39d   :  { %9500 = vmatprep.mubr.msk.f32.mxu0 %vm10494_vm1, %v13724_v29 }
 0x39f   :  { %v13903_v2 = vpop.f32.mrb[170].mxu1  ;;  %9336 = vmatmul.mubr.msk.f32.gmra.mrb[6].mxu1 %vm90_vm3, %v13428_v30 }
 0x3a0   :  { %v13905_v4 = vpop.f32.mrb[212].mxu0  ;;  %v9041_v7 = vpop.f32.mrb[171].mxu1  ;;  %9501 = vmatmul.mubr.msk.f32.gmra.mrb[48].mxu0 %vm90_vm3, %v13606_v56  ;;  %9338 = vmatprep.mubr.msk.f32.mxu1 %vm10494_vm1, %v13724_v29 }
 0x3a1   :  { %v9151_v55 = vpop.f32.mrb[213].mxu0  ;;  %9503 = vmatprep.mubr.msk.f32.mxu0 %vm10494_vm1, %v13724_v29 }
 0x3a3   :  { %9339 = vmatmul.mubr.msk.f32.gmra.mrb[8].mxu1 %vm90_vm3, %v13437_v31 }
 0x3a4   :  { %9504 = vmatmul.mubr.msk.f32.gmra.mrb[50].mxu0 %vm90_vm3, %v13616_v60  ;;  %9341 = vmatprep.mubr.msk.f32.mxu1 %vm10494_vm1, %v13724_v29 }
 0x3a5   :  { %9506 = vmatprep.mubr.msk.f32.mxu0 %vm10494_vm1, %v13724_v29 }
 0x3a7   :  { %9342 = vmatmul.mubr.msk.f32.gmra.mrb[10].mxu1 %vm90_vm3, %v13446_v44  ;;  %v4883_v44 = vld [vmem:[#allocation5 + $0x69] sm:$0x3] }
 0x3a8   :  { %9507 = vmatmul.mubr.msk.f32.gmra.mrb[52].mxu0 %vm90_vm3, %v13626_v50  ;;  %9344 = vmatprep.mubr.msk.f32.mxu1 %vm10494_vm1, %v13724_v29 }
 0x3a9   :  { %9509 = vmatprep.mubr.msk.f32.mxu0 %vm10494_vm1, %v13724_v29 }
 0x3aa   :  { %v13931_v30 = vpop.f32.mrb[172].mxu1 }
 0x3ab   :  { %v13933_v31 = vpop.f32.mrb[214].mxu0  ;;  %v9044_v28 = vpop.f32.mrb[173].mxu1  ;;  %9345 = vmatmul.mubr.msk.f32.gmra.mrb[12].mxu1 %vm90_vm3, %v4882_v5 }
 0x3ac   :  { %v9154_v57 = vpop.f32.mrb[215].mxu0  ;;  %9510 = vmatmul.mubr.msk.f32.gmra.mrb[54].mxu0 %vm90_vm3, %v5491_v12  ;;  %9347 = vmatprep.mubr.msk.f32.mxu1 %vm10494_vm1, %v13724_v29 }
 0x3ad   :  { %9512 = vmatprep.mubr.msk.f32.mxu0 %vm10494_vm1, %v13724_v29 }
 0x3af   :  { %9348 = vmatmul.mubr.msk.f32.gmra.mrb[14].mxu1 %vm90_vm3, %v4883_v44 }
 0x3b0   :  { %9513 = vmatmul.mubr.msk.f32.gmra.mrb[56].mxu0 %vm90_vm3, %v5492_v48  ;;  %9421 = vmatprep.mubr.msk.f32.mxu1 %vm10494_vm1, %v13724_v29 }
 0x3b1   :  { %9606 = vmatprep.mubr.msk.f32.mxu0 %vm10494_vm1, %v13724_v29 }
 0x3b2   :  { %v13947_v11 = vpop.f32.mrb[174].mxu1 }
 0x3b3   :  { %v13949_v22 = vpop.f32.mrb[216].mxu0  ;;  %v9047_v3 = vpop.f32.mrb[175].mxu1  ;;  %9422 = vmatmul.mubr.msk.f32.vlgmr.msra.gmra.mrb[16].mxu1 %vm90_vm3, %v13672_v21 }
 0x3b4   :  { %v9157_v56 = vpop.f32.mrb[217].mxu0  ;;  %9424 = vmatprep.mubr.msk.f32.mxu1 %vm10494_vm1, %v13724_v29 }
 0x3b6   :  { %v4049_v50 = vpop.f32.mrb[176].mxu1 }
 0x3b7   :  { %v4408_v60 = vpop.f32.mrb[218].mxu0  ;;  %9425 = vmatmul.mubr.msk.f32.gmra.mrb[18].mxu1 %vm90_vm3, %v13694_v27  ;;  %v9050_v26 = vpop.f32.mrb[177].mxu1 }
 0x3b8   :  { %v9160_v36 = vpop.f32.mrb[219].mxu0  ;;  %9427 = vmatprep.mubr.msk.f32.mxu1 %vm10494_vm1, %v13724_v29 }
 0x3ba   :  { %v4054_v59 = vpop.f32.mrb[178].mxu1 }
 0x3bb   :  { %v4413_v17 = vpop.f32.mrb[220].mxu0  ;;  %9428 = vmatmul.mubr.msk.f32.gmra.mrb[20].mxu1 %vm90_vm3, %v13718_v41  ;;  %v9053_v21 = vpop.f32.mrb[179].mxu1 }
 0x3bc   :  { %v9163_v49 = vpop.f32.mrb[221].mxu0  ;;  %9430 = vmatprep.mubr.msk.f32.mxu1 %vm10494_vm1, %v13724_v29 }
 0x3be   :  { %v13965_v62 = vpop.f32.mrb[180].mxu1 }
 0x3bf   :  { %v13963_v53 = vpop.f32.mrb[222].mxu0  ;;  %9431 = vmatmul.mubr.msk.f32.gmra.mrb[22].mxu1 %vm90_vm3, %v13730_v43  ;;  %v9056_v18 = vpop.f32.mrb[181].mxu1 }
 0x3c0   :  { %v9166_v27 = vpop.f32.mrb[223].mxu0  ;;  %9433 = vmatprep.mubr.msk.f32.mxu1 %vm10494_vm1, %v13724_v29 }
 0x3c2   :  { %v13971_v1 = vpop.f32.mrb[182].mxu1 }
 0x3c3   :  { %9434 = vmatmul.mubr.msk.f32.gmra.mrb[24].mxu1 %vm90_vm3, %v13741_v8  ;;  %v9059_v41 = vpop.f32.mrb[183].mxu1 }
 0x3c4   :  { %9436 = vmatprep.mubr.msk.f32.mxu1 %vm10494_vm1, %v13724_v29 }
 0x3c7   :  { %v13977_v42 = vpop.f32.mrb[224].mxu0  ;;  %9437 = vmatmul.mubr.msk.f32.gmra.mrb[26].mxu1 %vm90_vm3, %v13751_v51 }
 0x3c8   :  { %v9169_v43 = vpop.f32.mrb[225].mxu0  ;;  %9439 = vmatprep.mubr.msk.f32.mxu1 %vm10494_vm1, %v13724_v29 }
 0x3cb   :  { %9440 = vmatmul.mubr.msk.f32.gmra.mrb[28].mxu1 %vm90_vm3, %v13760_v33 }
 0x3cc   :  { %9442 = vmatprep.mubr.msk.f32.mxu1 %vm10494_vm1, %v13724_v29 }
 0x3cf   :  { %9443 = vmatmul.mubr.msk.f32.gmra.mrb[30].mxu1 %vm90_vm3, %v13769_v40 }
 0x3d0   :  { %9445 = vmatprep.mubr.msk.f32.mxu1 %vm10494_vm1, %v13724_v29 }
 0x3d2   :  { %v13991_v8 = vpop.f32.mrb[184].mxu1 }
 0x3d3   :  { %v13993_v23 = vpop.f32.mrb[226].mxu0  ;;  %v9062_v51 = vpop.f32.mrb[185].mxu1  ;;  %9446 = vmatmul.mubr.msk.f32.gmra.mrb[32].mxu1 %vm90_vm3, %v13778_v63 }
 0x3d4   :  { %v9172_v14 = vpop.f32.mrb[227].mxu0  ;;  %9448 = vmatprep.mubr.msk.f32.mxu1 %vm10494_vm1, %v13724_v29 }
 0x3d7   :  { %9449 = vmatmul.mubr.msk.f32.gmra.mrb[34].mxu1 %vm90_vm3, %v13787_v20 }
 0x3d8   :  { %9451 = vmatprep.mubr.msk.f32.mxu1 %vm10494_vm1, %v13724_v29 }
 0x3da   :  { %v14003_v33 = vpop.f32.mrb[186].mxu1 }
 0x3db   :  { %v14005_v6 = vpop.f32.mrb[228].mxu0  ;;  %v9065_v40 = vpop.f32.mrb[187].mxu1  ;;  %9452 = vmatmul.mubr.msk.f32.gmra.mrb[36].mxu1 %vm90_vm3, %v13796_v46 }
 0x3dc   :  { %v9175_v45 = vpop.f32.mrb[229].mxu0  ;;  %9454 = vmatprep.mubr.msk.f32.mxu1 %vm10494_vm1, %v13724_v29 }
 0x3de   :  { %v4079_v63 = vpop.f32.mrb[188].mxu1 }
 0x3df   :  { %v4438_v39 = vpop.f32.mrb[230].mxu0  ;;  %v9068_v37 = vpop.f32.mrb[189].mxu1  ;;  %9455 = vmatmul.mubr.msk.f32.gmra.mrb[38].mxu1 %vm90_vm3, %v5288_v38  ;;  %v5809_v38 = vld [vmem:[%s15059_s8 + $0x10] sm:$0xff]  ;;  %v5810_v63 = vld [vmem:[%s15059_s8 + $0x18] sm:$0xff] }
 0x3e0   :  { %v9178_v20 = vpop.f32.mrb[231].mxu0  ;;  %9457 = vmatprep.mubr.msk.f32.mxu1 %vm10494_vm1, %v13724_v29  ;;  %v10267_v39 = vpack.c.bf16 %v5810_v63, %v5809_v38 }
 0x3e2   :  { %v4084_v19 = vpop.f32.mrb[190].mxu1 }
 0x3e3   :  { %v4443_v35 = vpop.f32.mrb[232].mxu0  ;;  %v9071_v52 = vpop.f32.mrb[191].mxu1  ;;  %9458 = vmatmul.mubr.msk.f32.gmra.mrb[40].mxu1 %vm90_vm3, %v5289_v24 }
 0x3e4   :  { %v9181_v46 = vpop.f32.mrb[233].mxu0  ;;  %9547 = vmatprep.mubr.msk.f32.mxu1 %vm10494_vm1, %v13724_v29  ;;  %v5832_v52 = vld [vmem:[%s15059_s8 + $0x80] sm:$0xff] }
 0x3e5   :  { %v5833_v46 = vld [vmem:[%s15059_s8 + $0x88] sm:$0xff] }
 0x3e6   :  { %v4089_v10 = vpop.f32.mrb[192].mxu1 }
 0x3e7   :  { %v4448_v9 = vpop.f32.mrb[234].mxu0  ;;  %v9074_v32 = vpop.f32.mrb[193].mxu1 }
 0x3e8   :  { %v9184_v54 = vpop.f32.mrb[235].mxu0 }
 0x3ea   :  { %v4198_v13 = vpop.f32.mrb[194].mxu1 }
 0x3eb   :  { %v14017_v15 = vpop.f32.mrb[236].mxu0  ;;  %v4199_v34 = vadd.f32 %v4198_v13, %v13509_v47  ;;  %v9093_v61 = vpop.f32.mrb[195].mxu1 }
 0x3ec   :  { %v9258_v58 = vpop.f32.mrb[237].mxu0  ;;  %v5835_v61 = vld [vmem:[%s15059_s8 + $0x98] sm:$0xff] }
 0x3ed   :  { %v14021_v16 = vadd.f32 %v13511_v25, %v4199_v34  ;;  %v5834_v34 = vld [vmem:[%s15059_s8 + $0x90] sm:$0xff] }
 0x3ee   :  { %v4203_v7 = vpop.f32.mrb[196].mxu1 }
 0x3ef   :  { %v14023_v55 = vpop.f32.mrb[238].mxu0  ;;  %v4204_v5 = vadd.f32 %v4203_v7, %v13903_v2  ;;  %v9096_v12 = vpop.f32.mrb[197].mxu1 }
 0x3f0   :  { %v9261_v28 = vpop.f32.mrb[239].mxu0 }
 0x3f1   :  { %v14027_v57 = vadd.f32 %v13905_v4, %v4204_v5 }
 0x3f2   :  { %v4208_v44 = vpop.f32.mrb[198].mxu1 }
 0x3f3   :  { %v14029_v48 = vpop.f32.mrb[240].mxu0  ;;  %v4209_v47 = vadd.f32 %v4208_v44, %v13931_v30  ;;  %v9099_v3 = vpop.f32.mrb[199].mxu1  ;;  %v5807_v30 = vld [vmem:[%s15059_s8] sm:$0xff] }
 0x3f4   :  { %v9264_v56 = vpop.f32.mrb[241].mxu0  ;;  %v5811_v44 = vld [vmem:[%s15059_s8 + $0x20] sm:$0xff] }
 0x3f5   :  { %v14033_v25 = vadd.f32 %v13933_v31, %v4209_v47  ;;  %v5808_v31 = vld [vmem:[%s15059_s8 + $0x8] sm:$0xff] }
 0x3f6   :  { %v4213_v60 = vpop.f32.mrb[200].mxu1  ;;  %v10264_v27 = vpack.c.bf16 %v5808_v31, %v5807_v30  ;;  %v5812_v47 = vld [vmem:[%s15059_s8 + $0x28] sm:$0xff]  ;;  %v5839_v30 = vld [vmem:[%s15059_s8 + $0xb8] sm:$0xff] }
 0x3f7   :  { %v14035_v50 = vpop.f32.mrb[242].mxu0  ;;  %v4214_v2 = vadd.f32 %v4213_v60, %v13947_v11  ;;  %v9102_v36 = vpop.f32.mrb[201].mxu1  ;;  %v10270_v3 = vpack.c.bf16 %v5812_v47, %v5811_v44 }
 0x3f8   :  { %v9267_v26 = vpop.f32.mrb[243].mxu0  ;;  %10265 = vmatpush3.bf16.msra.mxu0 %v10264_v27 }
 0x3f9   :  { %v14039_v4 = vadd.f32 %v13949_v22, %v4214_v2  ;;  %10266 = vmatprep.subr.bf16.mxu0 %v10492_v0 }
 0x3fa   :  { %v4218_v17 = vpop.f32.mrb[202].mxu1 }
 0x3fb   :  { %v4814_v59 = vpop.f32.mrb[244].mxu0  ;;  %v9105_v49 = vpop.f32.mrb[203].mxu1 }
 0x3fc   :  { %v9270_v21 = vpop.f32.mrb[245].mxu0  ;;  %10268 = vmatpush3.bf16.msra.mxu0 %v10267_v39  ;;  %v5813_v59 = vld [vmem:[%s15059_s8 + $0x30] sm:$0xff]  ;;  %v5814_v49 = vld [vmem:[%s15059_s8 + $0x38] sm:$0xff] }
 0x3fd   :  { %10269 = vmatprep.subr.bf16.mxu0 %v10492_v0  ;;  %v10273_v21 = vpack.c.bf16 %v5814_v49, %v5813_v59 }
 0x3fe   :  { %v4223_v18 = vpop.f32.mrb[204].mxu1 }
 0x3ff   :  { %v4819_v11 = vpop.f32.mrb[246].mxu0  ;;  %v9108_v41 = vpop.f32.mrb[205].mxu1 }
 0x400   :  { %v9273_v43 = vpop.f32.mrb[247].mxu0  ;;  %10271 = vmatpush3.bf16.msra.mxu0 %v10270_v3 }
 0x401   :  { %10272 = vmatprep.subr.bf16.mxu0 %v10492_v0  ;;  %v5815_v43 = vld [vmem:[%s15059_s8 + $0x40] sm:$0xff] }
 0x402   :  { %v4228_v22 = vpop.f32.mrb[206].mxu1 }
 0x403   :  { %v14048_v51 = vpop.f32.mrb[248].mxu0  ;;  %v4229_v14 = vadd.f32 %v4228_v22, %v13965_v62  ;;  %v9111_v40 = vpop.f32.mrb[207].mxu1  ;;  %v5816_v22 = vld [vmem:[%s15059_s8 + $0x48] sm:$0xff] }
 0x404   :  { %v9276_v45 = vpop.f32.mrb[249].mxu0  ;;  %10274 = vmatpush3.bf16.msra.mxu0 %v10273_v21  ;;  %v10276_v40 = vpack.c.bf16 %v5816_v22, %v5815_v43 }
 0x405   :  { %v14058_v37 = vadd.f32 %v13963_v53, %v4229_v14  ;;  %v10240_v53 = vpack.c.bf16 %v5833_v46, %v5832_v52  ;;  %10275 = vmatprep.subr.bf16.mxu0 %v10492_v0  ;;  %v5840_v14 = vld [vmem:[%s15059_s8 + $0xc0] sm:$0xff]  ;;  %v5841_v45 = vld [vmem:[%s15059_s8 + $0xc8] sm:$0xff]  ;;  %v5817_v52 = vld [vmem:[%s15059_s8 + $0x50] sm:$0xff] }
 0x406   :  { %v4233_v20 = vpop.f32.mrb[208].mxu1  ;;  %v10252_v38 = vpack.c.bf16 %v5841_v45, %v5840_v14 }
 0x407   :  { %v14060_v24 = vpop.f32.mrb[250].mxu0  ;;  %v4234_v62 = vadd.f32 %v4233_v20, %v13971_v1  ;;  %v9114_v19 = vpop.f32.mrb[209].mxu1  ;;  %10241 = vmatpush3.bf16.msra.mxu1 %v10240_v53  ;;  %v5818_v53 = vld [vmem:[%s15059_s8 + $0x58] sm:$0xff] }
 0x408   :  { %v9279_v35 = vpop.f32.mrb[251].mxu0  ;;  %10242 = vmatprep.subr.bf16.mxu1 %v10492_v0  ;;  %10277 = vmatpush3.bf16.msra.mxu0 %v10276_v40  ;;  %v5842_v19 = vld [vmem:[%s15059_s8 + $0xd0] sm:$0xff] }
 0x409   :  { %v14071_v10 = vadd.f32 %v13977_v42, %v4234_v62  ;;  %v10243_v42 = vpack.c.bf16 %v5835_v61, %v5834_v34  ;;  %10278 = vmatprep.subr.bf16.mxu0 %v10492_v0  ;;  %v5843_v35 = vld [vmem:[%s15059_s8 + $0xd8] sm:$0xff] }
 0x40a   :  { %v4238_v9 = vpop.f32.mrb[210].mxu1  ;;  %v10255_v46 = vpack.c.bf16 %v5843_v35, %v5842_v19 }
 0x40b   :  { %v14073_v32 = vpop.f32.mrb[252].mxu0  ;;  %v4239_v1 = vadd.f32 %v4238_v9, %v13991_v8  ;;  %v9117_v54 = vpop.f32.mrb[211].mxu1  ;;  %10244 = vmatpush3.bf16.msra.mxu1 %v10243_v42  ;;  %v10279_v9 = vpack.c.bf16 %v5818_v53, %v5817_v52  ;;  %v5844_v42 = vld [vmem:[%s15059_s8 + $0xe0] sm:$0xff]  ;;  %v6215_v53 = vld [vmem:[%s15059_s8 + $0x190] sm:$0xff] }
 0x40c   :  { %v9282_v13 = vpop.f32.mrb[253].mxu0  ;;  %10245 = vmatprep.subr.bf16.mxu1 %v10492_v0 }
 0x40d   :  { %v14084_v58 = vadd.f32 %v13993_v23, %v4239_v1  ;;  %v5836_v23 = vld [vmem:[%s15059_s8 + $0xa0] sm:$0xff]  ;;  %10280 = vmatpush3.bf16.msra.mxu0 %v10279_v9  ;;  %v6216_v9 = vld [vmem:[%s15059_s8 + $0x198] sm:$0xff] }
 0x40e   :  { %v4243_v7 = vpop.f32.mrb[212].mxu1  ;;  %10281 = vmatprep.subr.bf16.mxu0 %v10492_v0 }
 0x40f   :  { %v14086_v5 = vpop.f32.mrb[254].mxu0  ;;  %v4244_v8 = vadd.f32 %v4243_v7, %v14003_v33  ;;  %v9120_v12 = vpop.f32.mrb[213].mxu1  ;;  %v5837_v33 = vld [vmem:[%s15059_s8 + $0xa8] sm:$0xff] }
 0x410   :  { %v9285_v28 = vpop.f32.mrb[255].mxu0  ;;  %v10246_v60 = vpack.c.bf16 %v5837_v33, %v5836_v23  ;;  %v5845_v7 = vld [vmem:[%s15059_s8 + $0xe8] sm:$0xff] }
 0x411   :  { %v14103_v56 = vadd.f32 %v14005_v6, %v4244_v8  ;;  %v5838_v6 = vld [vmem:[%s15059_s8 + $0xb0] sm:$0xff]  ;;  %v5819_v8 = vld [vmem:[%s15059_s8 + $0x60] sm:$0xff]  ;;  %v5820_v12 = vld [vmem:[%s15059_s8 + $0x68] sm:$0xff] }
 0x412   :  { %v4248_v2 = vpop.f32.mrb[214].mxu1  ;;  %10247 = vmatpush3.bf16.msra.mxu1 %v10246_v60  ;;  %v10249_v31 = vpack.c.bf16 %v5839_v30, %v5838_v6  ;;  %v10282_v44 = vpack.c.bf16 %v5820_v12, %v5819_v8 }
 0x413   :  { %v4844_v36 = vpop.f32.mrb[0].mxu0  ;;  %v9123_v26 = vpop.f32.mrb[215].mxu1  ;;  %10248 = vmatprep.subr.bf16.mxu1 %v10492_v0  ;;  %v5846_v2 = vld [vmem:[%s15059_s8 + $0xf0] sm:$0xff] }
 0x414   :  { %v9288_v17 = vpop.f32.mrb[1].mxu0  ;;  %10283 = vmatpush3.bf16.msra.mxu0 %v10282_v44  ;;  %v5847_v36 = vld [vmem:[%s15059_s8 + $0xf8] sm:$0xff]  ;;  %v6217_v44 = vld [vmem:[%s15059_s8 + $0x1a0] sm:$0xff] }
 0x415   :  { %10284 = vmatprep.subr.bf16.mxu0 %v10492_v0  ;;  %v5822_v26 = vld [vmem:[%s15059_s8 + $0x78] sm:$0xff] }
 0x416   :  { %v4253_v27 = vpop.f32.mrb[216].mxu1  ;;  %10250 = vmatpush3.bf16.msra.mxu1 %v10249_v31 }
 0x417   :  { %v4849_v18 = vpop.f32.mrb[2].mxu0  ;;  %v9126_v11 = vpop.f32.mrb[217].mxu1  ;;  %10251 = vmatprep.subr.bf16.mxu1 %v10492_v0  ;;  %v5823_v27 = vld [vmem:[#allocation7 + $0x1] sm:$0xff] }
 0x418   :  { %v9291_v41 = vpop.f32.mrb[3].mxu0 }
 0x41a   :  { %v4258_v63 = vpop.f32.mrb[218].mxu1  ;;  %10253 = vmatpush3.bf16.msra.mxu1 %v10252_v38 }
 0x41b   :  { %v4854_v39 = vpop.f32.mrb[4].mxu0  ;;  %v9129_v20 = vpop.f32.mrb[219].mxu1  ;;  %10254 = vmatprep.subr.bf16.mxu1 %v10492_v0 }
 0x41c   :  { %v9294_v62 = vpop.f32.mrb[5].mxu0 }
 0x41d   :  { %v6214_v62 = vld [vmem:[%s15059_s8 + $0x188] sm:$0xff] }
 0x41e   :  { %v4591_v1 = vpop.f32.mrb[220].mxu1  ;;  %10256 = vmatpush3.bf16.msra.mxu1 %v10255_v46 }
 0x41f   :  { %v14147_v54 = vpop.f32.mrb[6].mxu0  ;;  %v4655_v13 = vadd.f32 %v4591_v1, %v14021_v16  ;;  %v9203_v34 = vpop.f32.mrb[221].mxu1  ;;  %10257 = vmatprep.subr.bf16.mxu1 %v10492_v0  ;;  %v10258_v16 = vpack.c.bf16 %v5845_v7, %v5844_v42  ;;  %v6073_v1 = vld [vmem:[%s15059_s8 + $0x100] sm:$0xff] }
 0x420   :  { %v9368_v61 = vpop.f32.mrb[7].mxu0 }
 0x421   :  { %v14165_v28 = vadd.f32 %v14017_v15, %v4655_v13  ;;  %v5821_v15 = vld [vmem:[%s15059_s8 + $0x70] sm:$0xff]  ;;  %v10315_v13 = vpack.c.bf16 %v6216_v9, %v6215_v53  ;;  %v6225_v53 = vld [vmem:[%s15059_s8 + $0x1e0] sm:$0xff] }
 0x422   :  { %v4596_v47 = vpop.f32.mrb[222].mxu1  ;;  %10259 = vmatpush3.bf16.msra.mxu1 %v10258_v16  ;;  %v10285_v59 = vpack.c.bf16 %v5822_v26, %v5821_v15 }
 0x423   :  { %v14167_v23 = vpop.f32.mrb[8].mxu0  ;;  %v4656_v3 = vadd.f32 %v4596_v47, %v14027_v57  ;;  %v9206_v33 = vpop.f32.mrb[223].mxu1  ;;  %10260 = vmatprep.subr.bf16.mxu1 %v10492_v0  ;;  %v10261_v57 = vpack.c.bf16 %v5847_v36, %v5846_v2  ;;  %v6075_v47 = vld [vmem:[%s15059_s8 + $0x110] sm:$0xff] }
 0x424   :  { %v9371_v60 = vpop.f32.mrb[9].mxu0  ;;  %10286 = vmatpush3.bf16.msra.mxu0 %v10285_v59  ;;  %v6219_v59 = vld [vmem:[%s15059_s8 + $0x1b0] sm:$0xff] }
 0x425   :  { %v14185_v17 = vadd.f32 %v14023_v55, %v4656_v3  ;;  %10311 = vmatprep.subr.bf16.mxu0 %v10492_v0 }
 0x426   :  { %v4601_v49 = vpop.f32.mrb[224].mxu1  ;;  %10262 = vmatpush3.bf16.msra.mxu1 %v10261_v57 }
 0x427   :  { %v14187_v6 = vpop.f32.mrb[10].mxu0  ;;  %v4657_v21 = vadd.f32 %v4601_v49, %v14033_v25  ;;  %v9209_v30 = vpop.f32.mrb[225].mxu1  ;;  %10287 = vmatprep.subr.bf16.mxu1 %v10492_v0  ;;  %9607 = vmatmul.mubr.f32.vlgmr.msra.gmra.mrb[58].mxu0 %v13724_v29  ;;  %v6077_v49 = vld [vmem:[%s15059_s8 + $0x120] sm:$0xff] }
 0x428   :  { %v9374_v31 = vpop.f32.mrb[11].mxu0  ;;  %9609 = vmatprep.mubr.msk.f32.mxu0 %vm10494_vm1, %v13724_v29  ;;  %v6221_v30 = vld [vmem:[%s15059_s8 + $0x1c0] sm:$0xff] }
 0x429   :  { %v14193_v18 = vadd.f32 %v14029_v48, %v4657_v21  ;;  %9548 = vmatmul.mubr.f32.vlgmr.msra.gmra.mrb[42].mxu1 %v5823_v27 }
 0x42a   :  { %v4606_v55 = vpop.f32.mrb[226].mxu1  ;;  %9550 = vmatprep.mubr.msk.f32.mxu1 %vm10494_vm1, %v13724_v29 }
 0x42b   :  { %v14195_v11 = vpop.f32.mrb[12].mxu0  ;;  %v4658_v25 = vadd.f32 %v4606_v55, %v14039_v4  ;;  %v9212_v41 = vpop.f32.mrb[227].mxu1  ;;  %v6213_v4 = vld [vmem:[%s15059_s8 + $0x180] sm:$0xff]  ;;  %v6222_v55 = vld [vmem:[%s15059_s8 + $0x1c8] sm:$0xff] }
 0x42c   :  { %v9377_v43 = vpop.f32.mrb[13].mxu0  ;;  %v10312_v29 = vpack.c.bf16 %v6214_v62, %v6213_v4  ;;  %v6082_v4 = vld [vmem:[%s15059_s8 + $0x148] sm:$0xff] }
 0x42d   :  { %v14204_v22 = vadd.f32 %v14035_v50, %v4658_v25  ;;  %v10324_v43 = vpack.c.bf16 %v6222_v55, %v6221_v30  ;;  %v6088_v30 = vld [vmem:[%s15059_s8 + $0x178] sm:$0xff] }
 0x42e   :  { %v4611_v48 = vpop.f32.mrb[228].mxu1  ;;  %10313 = vmatpush3.bf16.msra.mxu0 %v10312_v29 }
 0x42f   :  { %v5220_v14 = vpop.f32.mrb[14].mxu0  ;;  %v9215_v40 = vpop.f32.mrb[229].mxu1  ;;  %10314 = vmatprep.subr.bf16.mxu0 %v10492_v0 }
 0x430   :  { %v9380_v45 = vpop.f32.mrb[15].mxu0 }
 0x431   :  { %v6080_v45 = vld [vmem:[%s15059_s8 + $0x138] sm:$0xff] }
 0x432   :  { %v4616_v38 = vpop.f32.mrb[230].mxu1  ;;  %10316 = vmatpush3.bf16.msra.mxu0 %v10315_v13 }
 0x433   :  { %v5225_v63 = vpop.f32.mrb[16].mxu0  ;;  %v9218_v39 = vpop.f32.mrb[231].mxu1  ;;  %10317 = vmatprep.subr.bf16.mxu0 %v10492_v0 }
 0x434   :  { %v9383_v20 = vpop.f32.mrb[17].mxu0  ;;  %v6224_v63 = vld [vmem:[%s15059_s8 + $0x1d8] sm:$0xff]  ;;  %v6081_v39 = vld [vmem:[%s15059_s8 + $0x140] sm:$0xff] }
 0x436   :  { %v4621_v19 = vpop.f32.mrb[232].mxu1 }
 0x437   :  { %v14212_v50 = vpop.f32.mrb[18].mxu0  ;;  %v4661_v35 = vadd.f32 %v4621_v19, %v14058_v37  ;;  %v9221_v52 = vpop.f32.mrb[233].mxu1  ;;  %v6074_v37 = vld [vmem:[%s15059_s8 + $0x108] sm:$0xff] }
 0x438   :  { %v9386_v46 = vpop.f32.mrb[19].mxu0  ;;  %v10288_v61 = vpack.c.bf16 %v6074_v37, %v6073_v1 }
 0x439   :  { %v14229_v34 = vadd.f32 %v14048_v51, %v4661_v35  ;;  %v6218_v51 = vld [vmem:[%s15059_s8 + $0x1a8] sm:$0xff]  ;;  %v10300_v46 = vpack.c.bf16 %v6082_v4, %v6081_v39 }
 0x43a   :  { %v4626_v42 = vpop.f32.mrb[234].mxu1  ;;  %10289 = vmatpush3.bf16.msra.mxu1 %v10288_v61  ;;  %v10318_v3 = vpack.c.bf16 %v6218_v51, %v6217_v44 }
 0x43b   :  { %v14231_v7 = vpop.f32.mrb[20].mxu0  ;;  %v4662_v8 = vadd.f32 %v4626_v42, %v14071_v10  ;;  %v9224_v16 = vpop.f32.mrb[235].mxu1  ;;  %10290 = vmatprep.subr.bf16.mxu1 %v10492_v0  ;;  %v6076_v10 = vld [vmem:[%s15059_s8 + $0x118] sm:$0xff]  ;;  %v6083_v42 = vld [vmem:[%s15059_s8 + $0x150] sm:$0xff] }
 0x43c   :  { %v9389_v12 = vpop.f32.mrb[21].mxu0  ;;  %v10291_v60 = vpack.c.bf16 %v6076_v10, %v6075_v47  ;;  %10319 = vmatpush3.bf16.msra.mxu0 %v10318_v3  ;;  %v6227_v3 = vld [vmem:[%s15059_s8 + $0x1f0] sm:$0xff]  ;;  %v6228_v10 = vld [vmem:[%s15059_s8 + $0x1f8] sm:$0xff] }
 0x43d   :  { %v14249_v33 = vadd.f32 %v14060_v24, %v4662_v8  ;;  %10320 = vmatprep.subr.bf16.mxu0 %v10492_v0  ;;  %v6220_v24 = vld [vmem:[%s15059_s8 + $0x1b8] sm:$0xff] }
 0x43e   :  { %v4631_v2 = vpop.f32.mrb[236].mxu1  ;;  %10292 = vmatpush3.bf16.msra.mxu1 %v10291_v60  ;;  %v10321_v21 = vpack.c.bf16 %v6220_v24, %v6219_v59  ;;  %v6084_v8 = vld [vmem:[%s15059_s8 + $0x158] sm:$0xff]  ;;  %v6085_v60 = vld [vmem:[%s15059_s8 + $0x160] sm:$0xff] }
 0x43f   :  { %v14251_v36 = vpop.f32.mrb[22].mxu0  ;;  %v4663_v15 = vadd.f32 %v4631_v2, %v14084_v58  ;;  %v9227_v57 = vpop.f32.mrb[237].mxu1  ;;  %10293 = vmatprep.subr.bf16.mxu1 %v10492_v0  ;;  %v6078_v58 = vld [vmem:[%s15059_s8 + $0x128] sm:$0xff]  ;;  %v10303_v16 = vpack.c.bf16 %v6084_v8, %v6083_v42  ;;  %v10333_v2 = vpack.c.bf16 %v6228_v10, %v6227_v3 }
 0x440   :  { %v9392_v26 = vpop.f32.mrb[23].mxu0  ;;  %v10294_v27 = vpack.c.bf16 %v6078_v58, %v6077_v49  ;;  %10322 = vmatpush3.bf16.msra.mxu0 %v10321_v21  ;;  %v6087_v58 = vld [vmem:[%s15059_s8 + $0x170] sm:$0xff] }
 0x441   :  { %v14272_v31 = vadd.f32 %v14073_v32, %v4663_v15  ;;  %10323 = vmatprep.subr.bf16.mxu0 %v10492_v0  ;;  %v6079_v32 = vld [vmem:[%s15059_s8 + $0x130] sm:$0xff]  ;;  %v6086_v15 = vld [vmem:[%s15059_s8 + $0x168] sm:$0xff]  ;;  %v10309_v55 = vpack.c.bf16 %v6088_v30, %v6087_v58 }
 0x442   :  { %v4636_v25 = vpop.f32.mrb[238].mxu1  ;;  %10295 = vmatpush3.bf16.msra.mxu1 %v10294_v27  ;;  %v10297_v38 = vpack.c.bf16 %v6080_v45, %v6079_v32  ;;  %v10306_v57 = vpack.c.bf16 %v6086_v15, %v6085_v60 }
 0x443   :  { %v14277_v41 = vpop.f32.mrb[24].mxu0  ;;  %v4664_v48 = vadd.f32 %v4636_v25, %v14103_v56  ;;  %v9230_v14 = vpop.f32.mrb[239].mxu1  ;;  %10296 = vmatprep.subr.bf16.mxu1 %v10492_v0  ;;  %v6223_v56 = vld [vmem:[%s15059_s8 + $0x1d0] sm:$0xff] }
 0x444   :  { %v9395_v40 = vpop.f32.mrb[25].mxu0  ;;  %10325 = vmatpush3.bf16.msra.mxu0 %v10324_v43  ;;  %v10327_v19 = vpack.c.bf16 %v6224_v63, %v6223_v56 }
 0x445   :  { %v14298_v20 = vadd.f32 %v14086_v5, %v4664_v48  ;;  %10326 = vmatprep.subr.bf16.mxu0 %v10492_v0  ;;  %v6226_v5 = vld [vmem:[%s15059_s8 + $0x1e8] sm:$0xff] }
 0x446   :  { %v4641_v62 = vpop.f32.mrb[240].mxu1  ;;  %10298 = vmatpush3.bf16.msra.mxu1 %v10297_v38  ;;  %v10330_v13 = vpack.c.bf16 %v6226_v5, %v6225_v53 }
 0x447   :  { %v5250_v29 = vpop.f32.mrb[26].mxu0  ;;  %v9233_v35 = vpop.f32.mrb[241].mxu1  ;;  %10299 = vmatprep.subr.bf16.mxu1 %v10492_v0 }
 0x448   :  { %v9398_v52 = vpop.f32.mrb[27].mxu0  ;;  %10328 = vmatpush3.bf16.msra.mxu0 %v10327_v19 }
 0x449   :  { %10329 = vmatprep.subr.bf16.mxu0 %v10492_v0 }
 0x44a   :  { %v4646_v9 = vpop.f32.mrb[242].mxu1  ;;  %10301 = vmatpush3.bf16.msra.mxu1 %v10300_v46 }
 0x44b   :  { %v5255_v1 = vpop.f32.mrb[28].mxu0  ;;  %v9236_v37 = vpop.f32.mrb[243].mxu1  ;;  %10302 = vmatprep.subr.bf16.mxu1 %v10492_v0 }
 0x44c   :  { %v9401_v61 = vpop.f32.mrb[29].mxu0  ;;  %10331 = vmatpush3.bf16.msra.mxu0 %v10330_v13 }
 0x44d   :  { %10332 = vmatprep.subr.bf16.mxu0 %v10492_v0 }
 0x44e   :  { %v4651_v12 = vpop.f32.mrb[244].mxu1  ;;  %10304 = vmatpush3.bf16.msra.mxu1 %v10303_v16 }
 0x44f   :  { %v5260_v44 = vpop.f32.mrb[30].mxu0  ;;  %v9239_v51 = vpop.f32.mrb[245].mxu1  ;;  %10305 = vmatprep.subr.bf16.mxu1 %v10492_v0 }
 0x450   :  { %v9404_v47 = vpop.f32.mrb[31].mxu0  ;;  %10334 = vmatpush3.bf16.msra.mxu0 %v10333_v2 }
 0x451   :  { %10359 = vmatprep.subr.bf16.mxu0 %v10492_v0 }
 0x452   :  { %v4997_v26 = vpop.f32.mrb[246].mxu1  ;;  %10307 = vmatpush3.bf16.msra.mxu1 %v10306_v57 }
 0x453   :  { %v14333_v59 = vpop.f32.mrb[32].mxu0  ;;  %v5061_v24 = vadd.f32 %v4997_v26, %v14165_v28  ;;  %v9313_v49 = vpop.f32.mrb[247].mxu1  ;;  %10308 = vmatprep.subr.bf16.mxu1 %v10492_v0 }
 0x454   :  { %v9478_v21 = vpop.f32.mrb[33].mxu0 }
 0x455   :  { %v14345_v27 = vadd.f32 %v14147_v54, %v5061_v24 }
 0x456   :  { %v5002_v28 = vpop.f32.mrb[248].mxu1  ;;  %10310 = vmatpush3.bf16.msra.mxu1 %v10309_v55 }
 0x457   :  { %v14347_v25 = vpop.f32.mrb[34].mxu0  ;;  %v5062_v43 = vadd.f32 %v5002_v28, %v14185_v17  ;;  %v9316_v48 = vpop.f32.mrb[249].mxu1  ;;  %10335 = vmatprep.subr.bf16.mxu1 %v10492_v0 }
 0x458   :  { %v9481_v14 = vpop.f32.mrb[35].mxu0 }
 0x459   :  { %v14352_v40 = vadd.f32 %v14167_v23, %v5062_v43 }
 0x45a   :  { %v5007_v32 = vpop.f32.mrb[250].mxu1 }
 0x45b   :  { %v14354_v45 = vpop.f32.mrb[36].mxu0  ;;  %v5063_v54 = vadd.f32 %v5007_v32, %v14193_v18  ;;  %v9319_v38 = vpop.f32.mrb[251].mxu1 }
 0x45c   :  { %v9484_v56 = vpop.f32.mrb[37].mxu0 }
 0x45d   :  { %v14358_v63 = vadd.f32 %v14187_v6, %v5063_v54 }
 0x45e   :  { %v5012_v39 = vpop.f32.mrb[252].mxu1 }
 0x45f   :  { %v14360_v17 = vpop.f32.mrb[38].mxu0  ;;  %v5064_v4 = vadd.f32 %v5012_v39, %v14204_v22  ;;  %v9322_v62 = vpop.f32.mrb[253].mxu1 }
 0x460   :  { %v9487_v29 = vpop.f32.mrb[39].mxu0 }
 0x461   :  { %v14364_v23 = vadd.f32 %v14195_v11, %v5064_v4 }
 0x462   :  { %v5017_v19 = vpop.f32.mrb[254].mxu1 }
 0x463   :  { %v5626_v35 = vpop.f32.mrb[40].mxu0  ;;  %v9325_v52 = vpop.f32.mrb[255].mxu1 }
 0x464   :  { %v9490_v46 = vpop.f32.mrb[41].mxu0 }
 0x466   :  { %v5022_v18 = vpop.f32.mrb[0].mxu1 }
 0x467   :  { %v5631_v53 = vpop.f32.mrb[42].mxu0  ;;  %v9328_v5 = vpop.f32.mrb[1].mxu1 }
 0x468   :  { %v9493_v9 = vpop.f32.mrb[43].mxu0 }
 0x46a   :  { %v5027_v6 = vpop.f32.mrb[2].mxu1 }
 0x46b   :  { %v14366_v1 = vpop.f32.mrb[44].mxu0  ;;  %v5067_v13 = vadd.f32 %v5027_v6, %v14229_v34  ;;  %v9331_v37 = vpop.f32.mrb[3].mxu1 }
 0x46c   :  { %v9496_v22 = vpop.f32.mrb[45].mxu0 }
 0x46d   :  { %v14370_v61 = vadd.f32 %v14212_v50, %v5067_v13 }
 0x46e   :  { %v5032_v11 = vpop.f32.mrb[4].mxu1 }
 0x46f   :  { %v14372_v42 = vpop.f32.mrb[46].mxu0  ;;  %v5068_v8 = vadd.f32 %v5032_v11, %v14249_v33  ;;  %v9334_v16 = vpop.f32.mrb[5].mxu1 }
 0x470   :  { %v9499_v12 = vpop.f32.mrb[47].mxu0 }
 0x471   :  { %v14376_v44 = vadd.f32 %v14231_v7, %v5068_v8 }
 0x472   :  { %v5037_v51 = vpop.f32.mrb[6].mxu1 }
 0x473   :  { %v14378_v47 = vpop.f32.mrb[48].mxu0  ;;  %v5069_v34 = vadd.f32 %v5037_v51, %v14272_v31  ;;  %v9337_v3 = vpop.f32.mrb[7].mxu1 }
 0x474   :  { %v9502_v10 = vpop.f32.mrb[49].mxu0  ;;  %v14415_v3 = vld [vmem:[%s15062_s11] ss:$0 sm:$0xff] }
 0x475   :  { %v14382_v50 = vadd.f32 %v14251_v36, %v5069_v34 }
 0x476   :  { %v5042_v60 = vpop.f32.mrb[8].mxu1 }
 0x477   :  { %v14384_v2 = vpop.f32.mrb[50].mxu0  ;;  %v5070_v33 = vadd.f32 %v5042_v60, %v14298_v20  ;;  %v9340_v15 = vpop.f32.mrb[9].mxu1 }
 0x478   :  { %v9505_v57 = vpop.f32.mrb[51].mxu0 }
 0x479   :  { %v14388_v7 = vadd.f32 %v14277_v41, %v5070_v33  ;;  %v14394_v41 = vld [vmem:[%s15060_s7] ss:$0 sm:$0xff] }
 0x47a   :  { %v5047_v26 = vpop.f32.mrb[10].mxu1 }
 0x47b   :  { %v5656_v24 = vpop.f32.mrb[52].mxu0  ;;  %v9343_v49 = vpop.f32.mrb[11].mxu1 }
 0x47c   :  { %v9508_v21 = vpop.f32.mrb[53].mxu0 }
 0x47e   :  { %v5052_v31 = vpop.f32.mrb[12].mxu1 }
 0x47f   :  { %v5661_v58 = vpop.f32.mrb[54].mxu0  ;;  %v9346_v30 = vpop.f32.mrb[13].mxu1 }
 0x480   :  { %v9511_v55 = vpop.f32.mrb[55].mxu0 }
 0x482   :  { %v5057_v36 = vpop.f32.mrb[14].mxu1 }
 0x483   :  { %v5666_v28 = vpop.f32.mrb[56].mxu0  ;;  %v9349_v43 = vpop.f32.mrb[15].mxu1 }
 0x484   :  { %v9514_v48 = vpop.f32.mrb[57].mxu0 }
 0x486   :  { %v5403_v14 = vpop.f32.mrb[16].mxu1 }
 0x487   :  { %v5467_v20 = vadd.f32 %v5403_v14, %v14345_v27  ;;  %v9423_v32 = vpop.f32.mrb[17].mxu1 }
 0x489   :  { %v5670_v54 = vadd.f32 %v14333_v59, %v5467_v20 }
 0x48a   :  { %v5408_v38 = vpop.f32.mrb[18].mxu1 }
 0x48b   :  { %v5690_v56 = vadd.f32 %v14394_v41, %v5670_v54  ;;  %v5468_v39 = vadd.f32 %v5408_v38, %v14352_v40  ;;  %v9426_v4 = vpop.f32.mrb[19].mxu1 }
 0x48d   :  { %v5703_v62 = vmax.f32 %v5690_v56, 0.0  ;;  %v5671_v29 = vadd.f32 %v14347_v25, %v5468_v39 }
 0x48e   :  { %v5413_v19 = vpop.f32.mrb[20].mxu1 }
 0x48f   :  { %5716 = vst [vmem:[#allocation6] sm:$0xff] %v5703_v62  ;;  %v5691_v27 = vadd.f32 %v14394_v41, %v5671_v29  ;;  %v5469_v35 = vadd.f32 %v5413_v19, %v14358_v63  ;;  %v9429_v52 = vpop.f32.mrb[21].mxu1 }
 0x491   :  { %v5704_v46 = vmax.f32 %v5691_v27, 0.0  ;;  %v5672_v18 = vadd.f32 %v14354_v45, %v5469_v35 }
 0x492   :  { %v5418_v59 = vpop.f32.mrb[22].mxu1 }
 0x493   :  { %5717 = vst [vmem:[#allocation6 + $0x8] sm:$0xff] %v5704_v46  ;;  %v5692_v53 = vadd.f32 %v14394_v41, %v5672_v18  ;;  %v5470_v40 = vadd.f32 %v5418_v59, %v14364_v23  ;;  %v9432_v5 = vpop.f32.mrb[23].mxu1  ;;  %v14410_v23 = vld [vmem:[%s15061_s10] ss:$0 sm:$0xff] }
 0x495   :  { %v5705_v9 = vmax.f32 %v5692_v53, 0.0  ;;  %v5673_v25 = vadd.f32 %v14360_v17, %v5470_v40 }
 0x496   :  { %v5731_v6 = vld [vmem:[#allocation6] ss:$2 sm:$0x3]  ;;  %v5423_v37 = vpop.f32.mrb[24].mxu1 }
 0x497   :  { %5718 = vst [vmem:[#allocation6 + $0x10] sm:$0xff] %v5705_v9  ;;  %v5693_v13 = vadd.f32 %v14394_v41, %v5673_v25  ;;  %v5733_v63 = vld [vmem:[#allocation6 + $0x1] ss:$2 sm:$0x3]  ;;  %v9435_v22 = vpop.f32.mrb[25].mxu1 }
 0x498   :  { %v5738_v16 = vmax.f32 %v5731_v6, %v5733_v63 }
 0x499   :  { %v5706_v11 = vmax.f32 %v5693_v13, 0.0 }
 0x49a   :  { %v5735_v8 = vld [vmem:[#allocation6 + $0x7] ss:$2 sm:$0x3]  ;;  %v5737_v45 = vld [vmem:[#allocation6 + $0x8] ss:$2 sm:$0x3] }
 0x49b   :  { %v5739_v12 = vmax.f32 %v5735_v8, %v5737_v45  ;;  %5719 = vst [vmem:[#allocation6 + $0x18] sm:$0xff] %v5706_v11  ;;  %v5428_v51 = vpop.f32.mrb[26].mxu1 }
 0x49c   :  { %v9438_v34 = vpop.f32.mrb[27].mxu1 }
 0x49d   :  { %v5740_v17 = vmax.f32 %v5738_v16, %v5739_v12  ;;  %v5827_v12 = vld [vmem:[#allocation7 + $0x21] sm:$0xff] }
 0x49e   :  { %v5757_v10 = vld [vmem:[#allocation6 + $0xe] ss:$2 sm:$0x3]  ;;  %v5433_v60 = vpop.f32.mrb[28].mxu1 }
 0x49f   :  { %v5747_v33 = vmul.f32 %v14410_v23, %v5740_v17  ;;  %v5759_v15 = vld [vmem:[#allocation6 + $0xf] ss:$2 sm:$0x3]  ;;  %v5473_v57 = vadd.f32 %v5433_v60, %v14370_v61  ;;  %v9441_v26 = vpop.f32.mrb[29].mxu1 }
 0x4a0   :  { %v5761_v24 = vld [vmem:[#allocation6 + $0x15] ss:$2 sm:$0x3]  ;;  %v5764_v30 = vmax.f32 %v5757_v10, %v5759_v15 }
 0x4a1   :  { %v5754_v49 = vadd.f32 %v14415_v3, %v5747_v33  ;;  %v5676_v31 = vadd.f32 %v14366_v1, %v5473_v57  ;;  %v5828_v15 = vld [vmem:[#allocation7 + $0x29] sm:$0xff] }
 0x4a2   :  { %v5763_v21 = vld [vmem:[#allocation6 + $0x16] ss:$2 sm:$0x3]  ;;  %v5438_v58 = vpop.f32.mrb[30].mxu1 }
 0x4a3   :  { %v5765_v55 = vmax.f32 %v5761_v24, %v5763_v21  ;;  %v5474_v36 = vadd.f32 %v5438_v58, %v14376_v44  ;;  %v9444_v28 = vpop.f32.mrb[31].mxu1  ;;  %5755 = vst [vmem:[#allocation7 + $0xe] sm:$0x3] %v5754_v49  ;;  %v5696_v43 = vadd.f32 %v14394_v41, %v5676_v31  ;;  %v6494_v21 = vld [vmem:[%s15059_s8 + $0x288] sm:$0xff] }
 0x4a4   :  { %v5831_v58 = vld [vmem:[#allocation7 + $0x41] sm:$0xff]  ;;  %v6496_v28 = vld [vmem:[%s15059_s8 + $0x298] sm:$0xff] }
 0x4a5   :  { %v5766_v48 = vmax.f32 %v5764_v30, %v5765_v55  ;;  %v5677_v14 = vadd.f32 %v14372_v42, %v5474_v36  ;;  %v5709_v61 = vmax.f32 %v5696_v43, 0.0  ;;  %v6204_v30 = vld [vmem:[#allocation7 + $0x6] sm:$0xff]  ;;  %v6353_v43 = vld [vmem:[%s15059_s8 + $0x200] sm:$0xff] }
 0x4a6   :  { %v5443_v20 = vpop.f32.mrb[32].mxu1  ;;  %v6495_v36 = vld [vmem:[%s15059_s8 + $0x290] sm:$0xff] }
 0x4a7   :  { %v5697_v32 = vadd.f32 %v14394_v41, %v5677_v14  ;;  %v5475_v54 = vadd.f32 %v5443_v20, %v14382_v50  ;;  %v9447_v38 = vpop.f32.mrb[33].mxu1  ;;  %v5767_v1 = vmul.f32 %v14410_v23, %v5766_v48  ;;  %5722 = vst [vmem:[#allocation6 + $0x30] sm:$0xff] %v5709_v61  ;;  %v14434_v50 = vld [vmem:[#allocation7] sm:$0xff]  ;;  %v10363_v61 = vpack.c.bf16 %v6496_v28, %v6495_v36  ;;  %v6497_v20 = vld [vmem:[%s15059_s8 + $0x2a0] sm:$0xff] }
 0x4a8   :  { %v6354_v48 = vld [vmem:[%s15059_s8 + $0x208] sm:$0xff] }
 0x4a9   :  { %v5710_v56 = vmax.f32 %v5697_v32, 0.0  ;;  %v5678_v44 = vadd.f32 %v14378_v47, %v5475_v54  ;;  %v5768_v39 = vadd.f32 %v14415_v3, %v5767_v1  ;;  %v6064_v14 = vld [vmem:[#allocation7 + $0x2] sm:$0xff]  ;;  %v10336_v38 = vpack.c.bf16 %v6354_v48, %v6353_v43  ;;  %v6071_v36 = vld [vmem:[#allocation7 + $0x3a] sm:$0xff] }
 0x4aa   :  { %v5448_v4 = vpop.f32.mrb[34].mxu1  ;;  %v5824_v62 = vld [vmem:[#allocation7 + $0x9] sm:$0xff]  ;;  %v6498_v32 = vld [vmem:[%s15059_s8 + $0x2a8] sm:$0xff]  ;;  %v6773_v43 = vld [vmem:[%s15059_s8 + $0x380] sm:$0xff] }
 0x4ab   :  { %v14429_v29 = vld [vmem:[#allocation7 + $0x8] sm:$0xff]  ;;  %5723 = vst [vmem:[#allocation6 + $0x38] sm:$0xff] %v5710_v56  ;;  %v5698_v42 = vadd.f32 %v14394_v41, %v5678_v44  ;;  %v5476_v19 = vadd.f32 %v5448_v4, %v14388_v7  ;;  %v9450_v27 = vpop.f32.mrb[35].mxu1  ;;  %9551 = vmatmul.mubr.f32.gmra.mrb[44].mxu1 %v5824_v62  ;;  %5769 = vst [vmem:[#allocation7 + $0x14] sm:$0x3] %v5768_v39  ;;  %v6356_v56 = vld [vmem:[%s15059_s8 + $0x218] sm:$0xff]  ;;  %v10366_v39 = vpack.c.bf16 %v6498_v32, %v6497_v20 }
 0x4ac   :  { %9610 = vmatmul.mubr.f32.gmra.mrb[60].mxu0 %v14429_v29  ;;  %9553 = vmatprep.mubr.msk.f32.mxu1 %vm10494_vm1, %v14434_v50  ;;  %v6355_v1 = vld [vmem:[%s15059_s8 + $0x210] sm:$0xff]  ;;  %v14525_v44 = vld [vmem:[#allocation7 + $0x16] sm:$0xff]  ;;  %v6774_v48 = vld [vmem:[%s15059_s8 + $0x388] sm:$0xff] }
 0x4ad   :  { %9612 = vmatprep.mubr.msk.f32.mxu0 %vm10494_vm1, %v14434_v50  ;;  %v5711_v47 = vmax.f32 %v5698_v42, 0.0  ;;  %v5679_v35 = vadd.f32 %v14384_v2, %v5476_v19  ;;  %v6499_v4 = vld [vmem:[%s15059_s8 + $0x2b0] sm:$0xff]  ;;  %v6500_v62 = vld [vmem:[%s15059_s8 + $0x2b8] sm:$0xff]  ;;  %v10339_v19 = vpack.c.bf16 %v6356_v56, %v6355_v1  ;;  %v6357_v27 = vld [vmem:[%s15059_s8 + $0x220] sm:$0xff]  ;;  %v10408_v20 = vpack.c.bf16 %v6774_v48, %v6773_v43 }
 0x4ae   :  { %v5453_v52 = vpop.f32.mrb[36].mxu1  ;;  %v5771_v46 = vld [vmem:[#allocation6 + $0x31] ss:$2 sm:$0x3]  ;;  %v6633_v1 = vld [vmem:[%s15059_s8 + $0x300] sm:$0xff]  ;;  %v6634_v56 = vld [vmem:[%s15059_s8 + $0x308] sm:$0xff] }
 0x4af   :  { %5724 = vst [vmem:[#allocation6 + $0x40] sm:$0xff] %v5711_v47  ;;  %v5699_v7 = vadd.f32 %v14394_v41, %v5679_v35  ;;  %v5773_v18 = vld [vmem:[#allocation6 + $0x32] ss:$2 sm:$0x3]  ;;  %v9453_v59 = vpop.f32.mrb[37].mxu1  ;;  %v5826_v41 = vld [vmem:[#allocation7 + $0x19] sm:$0xff]  ;;  %v10369_v52 = vpack.c.bf16 %v6500_v62, %v6499_v4 }
 0x4b0   :  { %v5778_v9 = vmax.f32 %v5771_v46, %v5773_v18  ;;  %v6065_v42 = vld [vmem:[#allocation7 + $0xa] sm:$0xff]  ;;  %v6358_v47 = vld [vmem:[%s15059_s8 + $0x228] sm:$0xff]  ;;  %v6501_v46 = vld [vmem:[%s15059_s8 + $0x2c0] sm:$0xff] }
 0x4b1   :  { %v5712_v53 = vmax.f32 %v5699_v7, 0.0  ;;  %v14545_v35 = vld [vmem:[#allocation7 + $0x1e] sm:$0xff]  ;;  %v10342_v59 = vpack.c.bf16 %v6358_v47, %v6357_v27  ;;  %v14646_v28 = vld [vmem:[#allocation7 + $0x46] sm:$0xff]  ;;  %v6636_v27 = vld [vmem:[%s15059_s8 + $0x318] sm:$0xff] }
 0x4b2   :  { %v5775_v40 = vld [vmem:[#allocation6 + $0x38] ss:$2 sm:$0x3]  ;;  %v5777_v5 = vld [vmem:[#allocation6 + $0x39] ss:$2 sm:$0x3] }
 0x4b3   :  { %v5779_v25 = vmax.f32 %v5775_v40, %v5777_v5  ;;  %5725 = vst [vmem:[#allocation6 + $0x48] sm:$0xff] %v5712_v53  ;;  %v5458_v6 = vpop.f32.mrb[38].mxu1  ;;  %v5825_v13 = vld [vmem:[#allocation7 + $0x11] sm:$0xff]  ;;  %v6502_v7 = vld [vmem:[%s15059_s8 + $0x2c8] sm:$0xff]  ;;  %v6359_v53 = vld [vmem:[%s15059_s8 + $0x230] sm:$0xff] }
 0x4b4   :  { %v14442_v37 = vld [vmem:[#allocation7 + $0x10] sm:$0xff]  ;;  %9554 = vmatmul.mubr.f32.gmra.mrb[46].mxu1 %v5825_v13  ;;  %v9456_v2 = vpop.f32.mrb[39].mxu1  ;;  %v6067_v5 = vld [vmem:[#allocation7 + $0x1a] sm:$0xff]  ;;  %v6503_v13 = vld [vmem:[%s15059_s8 + $0x2d0] sm:$0xff] }
 0x4b5   :  { %9613 = vmatmul.mubr.f32.gmra.mrb[62].mxu0 %v14442_v37  ;;  %v5780_v63 = vmax.f32 %v5778_v9, %v5779_v25  ;;  %9556 = vmatprep.mubr.msk.f32.mxu1 %vm10494_vm1, %v14434_v50  ;;  %v14514_v54 = vld [vmem:[#allocation7 + $0xe] sm:$0xff]  ;;  %v14566_v9 = vld [vmem:[#allocation7 + $0x26] sm:$0xff]  ;;  %v10372_v25 = vpack.c.bf16 %v6502_v7, %v6501_v46  ;;  %v6645_v48 = vld [vmem:[%s15059_s8 + $0x360] sm:$0xff] }
 0x4b6   :  { %9615 = vmatprep.mubr.msk.f32.mxu0 %vm10494_vm1, %v14434_v50  ;;  %v5785_v22 = vld [vmem:[#allocation6 + $0x3f] ss:$2 sm:$0x3]  ;;  %v5463_v11 = vpop.f32.mrb[40].mxu1  ;;  %v6775_v32 = vld [vmem:[%s15059_s8 + $0x390] sm:$0xff]  ;;  %v6778_v4 = vld [vmem:[%s15059_s8 + $0x3a8] sm:$0xff] }
 0x4b7   :  { %v5781_v8 = vmul.f32 %v14410_v23, %v5780_v63  ;;  %v5787_v45 = vld [vmem:[#allocation6 + $0x40] ss:$2 sm:$0x3]  ;;  %v9459_v16 = vpop.f32.mrb[41].mxu1  ;;  %v6360_v40 = vld [vmem:[%s15059_s8 + $0x238] sm:$0xff]  ;;  %v6344_v62 = vld [vmem:[#allocation7 + $0x7] sm:$0xff] }
 0x4b8   :  { %9557 = vmatmul.mubr.f32.gmra.mrb[48].mxu1 %v5826_v41  ;;  %v5792_v10 = vmax.f32 %v5785_v22, %v5787_v45  ;;  %v6066_v18 = vld [vmem:[#allocation7 + $0x12] sm:$0xff]  ;;  %v10345_v6 = vpack.c.bf16 %v6360_v40, %v6359_v53  ;;  %v6362_v41 = vld [vmem:[%s15059_s8 + $0x248] sm:$0xff] }
 0x4b9   :  { %9616 = vmatmul.mubr.f32.gmra.mrb[64].mxu0 %v14434_v50  ;;  %9559 = vmatprep.mubr.msk.f32.mxu1 %vm10494_vm1, %v14434_v50  ;;  %v5782_v51 = vadd.f32 %v14415_v3, %v5781_v8  ;;  %v6504_v2 = vld [vmem:[%s15059_s8 + $0x2d8] sm:$0xff]  ;;  %v6361_v63 = vld [vmem:[%s15059_s8 + $0x240] sm:$0xff]  ;;  %v6068_v22 = vld [vmem:[#allocation7 + $0x22] sm:$0xff] }
 0x4ba   :  { %9618 = vmatprep.mubr.msk.f32.mxu0 %vm10494_vm1, %v14434_v50  ;;  %v5789_v34 = vld [vmem:[#allocation6 + $0x46] ss:$2 sm:$0x3]  ;;  %v5791_v17 = vld [vmem:[#allocation6 + $0x47] ss:$2 sm:$0x3]  ;;  %v10375_v11 = vpack.c.bf16 %v6504_v2, %v6503_v13  ;;  %v10348_v45 = vpack.c.bf16 %v6362_v41, %v6361_v63 }
 0x4bb   :  { %v5793_v60 = vmax.f32 %v5789_v34, %v5791_v17  ;;  %5783 = vst [vmem:[#allocation7 + $0x32] sm:$0x3] %v5782_v51  ;;  %v6505_v16 = vld [vmem:[%s15059_s8 + $0x2e0] sm:$0xff]  ;;  %v6363_v51 = vld [vmem:[%s15059_s8 + $0x250] sm:$0xff]  ;;  %v6364_v34 = vld [vmem:[%s15059_s8 + $0x258] sm:$0xff] }
 0x4bc   :  { %9560 = vmatmul.mubr.f32.gmra.mrb[50].mxu1 %v5827_v12  ;;  %v6506_v12 = vld [vmem:[%s15059_s8 + $0x2e8] sm:$0xff]  ;;  %v6069_v17 = vld [vmem:[#allocation7 + $0x2a] sm:$0xff]  ;;  %v6346_v13 = vld [vmem:[#allocation7 + $0x17] sm:$0xff] }
 0x4bd   :  { %9619 = vmatmul.mubr.f32.gmra.mrb[66].mxu0 %v14434_v50  ;;  %v5794_v33 = vmax.f32 %v5792_v10, %v5793_v60  ;;  %9562 = vmatprep.mubr.msk.f32.mxu1 %vm10494_vm1, %v14434_v50  ;;  %v10378_v10 = vpack.c.bf16 %v6506_v12, %v6505_v16  ;;  %v6781_v63 = vld [vmem:[%s15059_s8 + $0x3c0] sm:$0xff]  ;;  %v6782_v41 = vld [vmem:[%s15059_s8 + $0x3c8] sm:$0xff]  ;;  %v6788_v43 = vld [vmem:[%s15059_s8 + $0x3f8] sm:$0xff] }
 0x4be   :  { %9621 = vmatprep.mubr.msk.f32.mxu0 %vm10494_vm1, %v14434_v50  ;;  %v6347_v16 = vld [vmem:[#allocation7 + $0x1f] sm:$0xff]  ;;  %v10420_v12 = vpack.c.bf16 %v6782_v41, %v6781_v63 }
 0x4bf   :  { %v5795_v57 = vmul.f32 %v14410_v23, %v5794_v33  ;;  %v10351_v33 = vpack.c.bf16 %v6364_v34, %v6363_v51  ;;  %v6783_v34 = vld [vmem:[%s15059_s8 + $0x3d0] sm:$0xff] }
 0x4c0   :  { %9563 = vmatmul.mubr.f32.gmra.mrb[52].mxu1 %v5828_v15  ;;  %v6507_v15 = vld [vmem:[%s15059_s8 + $0x2f0] sm:$0xff] }
 0x4c1   :  { %9622 = vmatmul.mubr.f32.gmra.mrb[68].mxu0 %v14434_v50  ;;  %9565 = vmatprep.mubr.msk.f32.mxu1 %vm10494_vm1, %v14434_v50  ;;  %v5796_v26 = vadd.f32 %v14415_v3, %v5795_v57  ;;  %v6493_v3 = vld [vmem:[%s15059_s8 + $0x280] sm:$0xff]  ;;  %v6508_v57 = vld [vmem:[%s15059_s8 + $0x2f8] sm:$0xff]  ;;  %v6627_v63 = vld [vmem:[#allocation7 + $0x24] sm:$0xff] }
 0x4c2   :  { %9624 = vmatprep.mubr.msk.f32.mxu0 %vm10494_vm1, %v14434_v50  ;;  %v14468_v24 = vld [vmem:[#allocation7 + $0x30] sm:$0xff]  ;;  %v10360_v55 = vpack.c.bf16 %v6494_v21, %v6493_v3  ;;  %v14631_v3 = vld [vmem:[#allocation7 + $0x3e] sm:$0xff]  ;;  %v10381_v21 = vpack.c.bf16 %v6508_v57, %v6507_v15  ;;  %v6348_v15 = vld [vmem:[#allocation7 + $0x27] sm:$0xff] }
 0x4c3   :  { %5797 = vst [vmem:[#allocation7 + $0x38] sm:$0x3] %v5796_v26  ;;  %v14590_v8 = vld [vmem:[#allocation7 + $0x2e] sm:$0xff]  ;;  %v6365_v26 = vld [vmem:[%s15059_s8 + $0x260] sm:$0xff] }
 0x4c5   :  { %9625 = vmatmul.mubr.f32.gmra.mrb[70].mxu0 %v14468_v24 }
 0x4c6   :  { %9627 = vmatprep.mubr.msk.f32.mxu0 %vm10494_vm1, %v14434_v50 }
 0x4ca   :  { %v5829_v23 = vld [vmem:[#allocation7 + $0x31] sm:$0xff]  ;;  %v5830_v31 = vld [vmem:[#allocation7 + $0x39] sm:$0xff] }
 0x4cb   :  { %v14473_v49 = vld [vmem:[#allocation7 + $0x38] sm:$0xff]  ;;  %9566 = vmatmul.mubr.f32.gmra.mrb[54].mxu1 %v5829_v23  ;;  %v6366_v23 = vld [vmem:[%s15059_s8 + $0x268] sm:$0xff] }
 0x4cc   :  { %9628 = vmatmul.mubr.f32.gmra.mrb[72].mxu0 %v14473_v49  ;;  %9568 = vmatprep.mubr.msk.f32.mxu1 %vm10494_vm1, %v14434_v50  ;;  %v14611_v60 = vld [vmem:[#allocation7 + $0x36] sm:$0xff] }
 0x4cd   :  { %9630 = vmatprep.mubr.msk.f32.mxu0 %vm10494_vm1, %v14434_v50 }
 0x4cf   :  { %9569 = vmatmul.mubr.f32.gmra.mrb[56].mxu1 %v5830_v31  ;;  %v6070_v31 = vld [vmem:[#allocation7 + $0x32] sm:$0xff] }
 0x4d0   :  { %9631 = vmatmul.mubr.f32.gmra.mrb[74].mxu0 %v14434_v50  ;;  %9571 = vmatprep.mubr.msk.f32.mxu1 %vm10494_vm1, %v14434_v50 }
 0x4d1   :  { %9724 = vmatprep.mubr.msk.f32.mxu0 %vm10494_vm1, %v14434_v50 }
 0x4d3   :  { %9572 = vmatmul.mubr.f32.gmra.mrb[58].mxu1 %v5831_v58  ;;  %v10354_v58 = vpack.c.bf16 %v6366_v23, %v6365_v26  ;;  %v6785_v23 = vld [vmem:[%s15059_s8 + $0x3e0] sm:$0xff] }
 0x4d4   :  { %9725 = vmatmul.mubr.f32.vlgmr.msra.gmra.mrb[76].mxu0 %v6204_v30  ;;  %9665 = vmatprep.mubr.msk.f32.mxu1 %vm10494_vm1, %v14434_v50  ;;  %v6367_v30 = vld [vmem:[%s15059_s8 + $0x270] sm:$0xff] }
 0x4d5   :  { %10361 = vmatpush3.bf16.msra.mxu0 %v10360_v55  ;;  %9727 = vmatprep.mubr.msk.f32.mxu0 %vm10494_vm1, %v14434_v50  ;;  %v6368_v55 = vld [vmem:[%s15059_s8 + $0x278] sm:$0xff] }
 0x4d6   :  { %10362 = vmatprep.subr.bf16.mxu0 %v10492_v0 }
 0x4d7   :  { %9666 = vmatmul.mubr.f32.vlgmr.msra.gmra.mrb[60].mxu1 %v6064_v14  ;;  %v10357_v14 = vpack.c.bf16 %v6368_v55, %v6367_v30  ;;  %v6349_v55 = vld [vmem:[#allocation7 + $0x2f] sm:$0xff] }
 0x4d8   :  { %9728 = vmatmul.mubr.f32.gmra.mrb[78].mxu0 %v14514_v54  ;;  %9668 = vmatprep.mubr.msk.f32.mxu1 %vm10494_vm1, %v14434_v50 }
 0x4d9   :  { %10364 = vmatpush3.bf16.msra.mxu0 %v10363_v61  ;;  %9730 = vmatprep.mubr.msk.f32.mxu0 %vm10494_vm1, %v14434_v50  ;;  %v6072_v61 = vld [vmem:[#allocation7 + $0x42] sm:$0xff] }
 0x4da   :  { %10365 = vmatprep.subr.bf16.mxu0 %v10492_v0  ;;  %10337 = vmatpush3.bf16.msra.mxu1 %v10336_v38  ;;  %v6776_v38 = vld [vmem:[%s15059_s8 + $0x398] sm:$0xff] }
 0x4db   :  { %9669 = vmatmul.mubr.f32.gmra.mrb[62].mxu1 %v6065_v42  ;;  %10338 = vmatprep.subr.bf16.mxu1 %v10492_v0  ;;  %v10384_v42 = vpack.c.bf16 %v6634_v56, %v6633_v1  ;;  %v6351_v1 = vld [vmem:[#allocation7 + $0x3f] sm:$0xff] }
 0x4dc   :  { %9731 = vmatmul.mubr.f32.gmra.mrb[80].mxu0 %v14525_v44  ;;  %9671 = vmatprep.mubr.msk.f32.mxu1 %vm10494_vm1, %v14434_v50 }
 0x4dd   :  { %10367 = vmatpush3.bf16.msra.mxu0 %v10366_v39  ;;  %9733 = vmatprep.mubr.msk.f32.mxu0 %vm10494_vm1, %v14434_v50  ;;  %v10411_v39 = vpack.c.bf16 %v6776_v38, %v6775_v32  ;;  %v6647_v32 = vld [vmem:[%s15059_s8 + $0x370] sm:$0xff]  ;;  %v6648_v38 = vld [vmem:[%s15059_s8 + $0x378] sm:$0xff] }
 0x4de   :  { %10340 = vmatpush3.bf16.msra.mxu1 %v10339_v19  ;;  %10368 = vmatprep.subr.bf16.mxu0 %v10492_v0  ;;  %v6635_v19 = vld [vmem:[%s15059_s8 + $0x310] sm:$0xff]  ;;  %v10405_v56 = vpack.c.bf16 %v6648_v38, %v6647_v32 }
 0x4df   :  { %9672 = vmatmul.mubr.f32.gmra.mrb[64].mxu1 %v6066_v18  ;;  %10341 = vmatprep.subr.bf16.mxu1 %v10492_v0  ;;  %v6345_v18 = vld [vmem:[#allocation7 + $0xf] sm:$0xff] }
 0x4e0   :  { %9734 = vmatmul.mubr.f32.gmra.mrb[82].mxu0 %v14545_v35  ;;  %9674 = vmatprep.mubr.msk.f32.mxu1 %vm10494_vm1, %v14434_v50 }
 0x4e1   :  { %10370 = vmatpush3.bf16.msra.mxu0 %v10369_v52  ;;  %9736 = vmatprep.mubr.msk.f32.mxu0 %vm10494_vm1, %v14434_v50  ;;  %v6780_v52 = vld [vmem:[%s15059_s8 + $0x3b8] sm:$0xff] }
 0x4e2   :  { %10343 = vmatpush3.bf16.msra.mxu1 %v10342_v59  ;;  %10371 = vmatprep.subr.bf16.mxu0 %v10492_v0  ;;  %v10387_v59 = vpack.c.bf16 %v6636_v27, %v6635_v19  ;;  %v6915_v27 = vld [vmem:[%s15059_s8 + $0x410] sm:$0xff] }
 0x4e3   :  { %9675 = vmatmul.mubr.f32.gmra.mrb[66].mxu1 %v6067_v5  ;;  %10344 = vmatprep.subr.bf16.mxu1 %v10492_v0 }
 0x4e4   :  { %9737 = vmatmul.mubr.f32.gmra.mrb[84].mxu0 %v14566_v9  ;;  %9677 = vmatprep.mubr.msk.f32.mxu1 %vm10494_vm1, %v14434_v50 }
 0x4e5   :  { %10373 = vmatpush3.bf16.msra.mxu0 %v10372_v25  ;;  %9739 = vmatprep.mubr.msk.f32.mxu0 %vm10494_vm1, %v14434_v50  ;;  %v6637_v25 = vld [vmem:[%s15059_s8 + $0x320] sm:$0xff] }
 0x4e6   :  { %10346 = vmatpush3.bf16.msra.mxu1 %v10345_v6  ;;  %10374 = vmatprep.subr.bf16.mxu0 %v10492_v0  ;;  %v6638_v6 = vld [vmem:[%s15059_s8 + $0x328] sm:$0xff] }
 0x4e7   :  { %9678 = vmatmul.mubr.f32.gmra.mrb[68].mxu1 %v6068_v22  ;;  %10347 = vmatprep.subr.bf16.mxu1 %v10492_v0  ;;  %v10390_v22 = vpack.c.bf16 %v6638_v6, %v6637_v25  ;;  %v6767_v25 = vld [vmem:[#allocation7 + $0x25] sm:$0xff] }
 0x4e8   :  { %9740 = vmatmul.mubr.f32.gmra.mrb[86].mxu0 %v14590_v8  ;;  %9680 = vmatprep.mubr.msk.f32.mxu1 %vm10494_vm1, %v14434_v50 }
 0x4e9   :  { %9742 = vmatprep.mubr.msk.f32.mxu0 %vm10494_vm1, %v14434_v50  ;;  %10376 = vmatpush3.bf16.msra.mxu0 %v10375_v11  ;;  %v6639_v11 = vld [vmem:[%s15059_s8 + $0x330] sm:$0xff] }
 0x4ea   :  { %10349 = vmatpush3.bf16.msra.mxu1 %v10348_v45  ;;  %10377 = vmatprep.subr.bf16.mxu0 %v10492_v0  ;;  %v6640_v45 = vld [vmem:[%s15059_s8 + $0x338] sm:$0xff] }
 0x4eb   :  { %9681 = vmatmul.mubr.f32.gmra.mrb[70].mxu1 %v6069_v17  ;;  %10350 = vmatprep.subr.bf16.mxu1 %v10492_v0  ;;  %v10393_v51 = vpack.c.bf16 %v6640_v45, %v6639_v11  ;;  %v6784_v17 = vld [vmem:[%s15059_s8 + $0x3d8] sm:$0xff]  ;;  %v6921_v11 = vld [vmem:[%s15059_s8 + $0x440] sm:$0xff]  ;;  %v6922_v45 = vld [vmem:[%s15059_s8 + $0x448] sm:$0xff] }
 0x4ec   :  { %9743 = vmatmul.mubr.f32.gmra.mrb[88].mxu0 %v14611_v60  ;;  %9683 = vmatprep.mubr.msk.f32.mxu1 %vm10494_vm1, %v14434_v50  ;;  %v10423_v57 = vpack.c.bf16 %v6784_v17, %v6783_v34  ;;  %v6769_v34 = vld [vmem:[#allocation7 + $0x35] sm:$0xff] }
 0x4ed   :  { %9745 = vmatprep.mubr.msk.f32.mxu0 %vm10494_vm1, %v14434_v50  ;;  %10379 = vmatpush3.bf16.msra.mxu0 %v10378_v10  ;;  %v6641_v10 = vld [vmem:[%s15059_s8 + $0x340] sm:$0xff]  ;;  %v6924_v17 = vld [vmem:[%s15059_s8 + $0x458] sm:$0xff] }
 0x4ee   :  { %10352 = vmatpush3.bf16.msra.mxu1 %v10351_v33  ;;  %10380 = vmatprep.subr.bf16.mxu0 %v10492_v0  ;;  %v6642_v33 = vld [vmem:[%s15059_s8 + $0x348] sm:$0xff] }
 0x4ef   :  { %9684 = vmatmul.mubr.f32.gmra.mrb[72].mxu1 %v6070_v31  ;;  %10353 = vmatprep.subr.bf16.mxu1 %v10492_v0  ;;  %v10396_v26 = vpack.c.bf16 %v6642_v33, %v6641_v10  ;;  %v6643_v31 = vld [vmem:[%s15059_s8 + $0x350] sm:$0xff]  ;;  %v6770_v10 = vld [vmem:[#allocation7 + $0x3d] sm:$0xff] }
 0x4f0   :  { %9746 = vmatmul.mubr.f32.gmra.mrb[90].mxu0 %v14631_v3  ;;  %9686 = vmatprep.mubr.msk.f32.mxu1 %vm10494_vm1, %v14434_v50 }
 0x4f1   :  { %9748 = vmatprep.mubr.msk.f32.mxu0 %vm10494_vm1, %v14434_v50  ;;  %10382 = vmatpush3.bf16.msra.mxu0 %v10381_v21  ;;  %v6786_v21 = vld [vmem:[%s15059_s8 + $0x3e8] sm:$0xff] }
 0x4f2   :  { %10355 = vmatpush3.bf16.msra.mxu1 %v10354_v58  ;;  %10407 = vmatprep.subr.bf16.mxu0 %v10492_v0  ;;  %v6644_v58 = vld [vmem:[%s15059_s8 + $0x358] sm:$0xff]  ;;  %v10426_v30 = vpack.c.bf16 %v6786_v21, %v6785_v23  ;;  %v6630_v23 = vld [vmem:[#allocation7 + $0x3c] sm:$0xff]  ;;  %v6771_v21 = vld [vmem:[#allocation7 + $0x45] sm:$0xff] }
 0x4f3   :  { %9687 = vmatmul.mubr.f32.gmra.mrb[74].mxu1 %v6071_v36  ;;  %10356 = vmatprep.subr.bf16.mxu1 %v10492_v0  ;;  %v6787_v36 = vld [vmem:[%s15059_s8 + $0x3f0] sm:$0xff] }
 0x4f4   :  { %9749 = vmatmul.mubr.f32.gmra.mrb[92].mxu0 %v14646_v28  ;;  %9689 = vmatprep.mubr.msk.f32.mxu1 %vm10494_vm1, %v14434_v50 }
 0x4f5   :  { %9842 = vmatprep.mubr.msk.f32.mxu0 %vm10494_vm1, %v14434_v50 }
 0x4f6   :  { %10358 = vmatpush3.bf16.msra.mxu1 %v10357_v14  ;;  %v6646_v14 = vld [vmem:[%s15059_s8 + $0x368] sm:$0xff] }
 0x4f7   :  { %9690 = vmatmul.mubr.f32.gmra.mrb[76].mxu1 %v6072_v61  ;;  %10383 = vmatprep.subr.bf16.mxu1 %v10492_v0  ;;  %v10429_v61 = vpack.c.bf16 %v6788_v43, %v6787_v36  ;;  %v6632_v43 = vld [vmem:[#allocation7 + $0x4c] sm:$0xff] }
 0x4f8   :  { %9843 = vmatmul.mubr.f32.vlgmr.msra.gmra.mrb[94].mxu0 %v14429_v29  ;;  %9783 = vmatprep.mubr.msk.f32.mxu1 %vm10494_vm1, %v14434_v50  ;;  %v6777_v29 = vld [vmem:[%s15059_s8 + $0x3a0] sm:$0xff] }
 0x4f9   :  { %10409 = vmatpush3.bf16.msra.mxu0 %v10408_v20  ;;  %9845 = vmatprep.mubr.msk.f32.mxu0 %vm10494_vm1, %v14434_v50  ;;  %v10414_v47 = vpack.c.bf16 %v6778_v4, %v6777_v29  ;;  %v6350_v20 = vld [vmem:[#allocation7 + $0x37] sm:$0xff]  ;;  %v6764_v4 = vld [vmem:[#allocation7 + $0xd] sm:$0xff] }
 0x4fa   :  { %10410 = vmatprep.subr.bf16.mxu0 %v10492_v0  ;;  %v6022_v7 = vpop.f32.mrb[58].mxu0  ;;  %v7128_v29 = vld [vmem:[%s15063_s12] sm:$0x1f] }
 0x4fb   :  { %9784 = vmatmul.mubr.f32.vlgmr.msra.gmra.mrb[78].mxu1 %v6344_v62  ;;  %v9608_v5 = vpop.f32.mrb[59].mxu0  ;;  %v6913_v62 = vld [vmem:[%s15059_s8 + $0x400] sm:$0xff] }
 0x4fc   :  { %9846 = vmatmul.mubr.f32.gmra.mrb[96].mxu0 %v14442_v37  ;;  %9786 = vmatprep.mubr.msk.f32.mxu1 %vm10494_vm1, %v14434_v50  ;;  %v6779_v37 = vld [vmem:[%s15059_s8 + $0x3b0] sm:$0xff]  ;;  %v5914_v46 = vpop.f32.mrb[42].mxu1  ;;  %v6626_v5 = vld [vmem:[#allocation7 + $0x1c] sm:$0xff] }
 0x4fd   :  { %10412 = vmatpush3.bf16.msra.mxu0 %v10411_v39  ;;  %9848 = vmatprep.mubr.msk.f32.mxu0 %vm10494_vm1, %v14434_v50  ;;  %v14705_v53 = vadd.f32 %v6022_v7, %v5914_v46  ;;  %v9549_v40 = vpop.f32.mrb[43].mxu1  ;;  %v10417_v2 = vpack.c.bf16 %v6780_v52, %v6779_v37  ;;  %v6352_v39 = vld [vmem:[#allocation7 + $0x47] sm:$0xff]  ;;  %v6765_v37 = vld [vmem:[#allocation7 + $0x15] sm:$0xff]  ;;  %v6766_v46 = vld [vmem:[#allocation7 + $0x1d] sm:$0xff] }
 0x4fe   :  { %10413 = vmatprep.subr.bf16.mxu0 %v10492_v0  ;;  %10385 = vmatpush3.bf16.msra.mxu1 %v10384_v42  ;;  %v6914_v42 = vld [vmem:[%s15059_s8 + $0x408] sm:$0xff]  ;;  %v6916_v52 = vld [vmem:[%s15059_s8 + $0x418] sm:$0xff] }
 0x4ff   :  { %9787 = vmatmul.mubr.f32.gmra.mrb[80].mxu1 %v6345_v18  ;;  %10386 = vmatprep.subr.bf16.mxu1 %v10492_v0  ;;  %v10432_v19 = vpack.c.bf16 %v6914_v42, %v6913_v62  ;;  %v10435_v7 = vpack.c.bf16 %v6916_v52, %v6915_v27  ;;  %v6625_v18 = vld [vmem:[#allocation7 + $0x14] sm:$0xff]  ;;  %v6918_v40 = vld [vmem:[%s15059_s8 + $0x428] sm:$0xff] }
 0x500   :  { %9849 = vmatmul.mubr.f32.gmra.mrb[98].mxu0 %v14434_v50  ;;  %9789 = vmatprep.mubr.msk.f32.mxu1 %vm10494_vm1, %v14434_v50 }
 0x501   :  { %10415 = vmatpush3.bf16.msra.mxu0 %v10414_v47  ;;  %9851 = vmatprep.mubr.msk.f32.mxu0 %vm10494_vm1, %v14434_v50  ;;  %v6624_v47 = vld [vmem:[#allocation7 + $0xc] sm:$0xff] }
 0x502   :  { %10388 = vmatpush3.bf16.msra.mxu1 %v10387_v59  ;;  %10416 = vmatprep.subr.bf16.mxu0 %v10492_v0  ;;  %v6917_v59 = vld [vmem:[%s15059_s8 + $0x420] sm:$0xff] }
 0x503   :  { %9790 = vmatmul.mubr.f32.gmra.mrb[82].mxu1 %v6346_v13  ;;  %10389 = vmatprep.subr.bf16.mxu1 %v10492_v0  ;;  %v10438_v6 = vpack.c.bf16 %v6918_v40, %v6917_v59  ;;  %v6919_v13 = vld [vmem:[%s15059_s8 + $0x430] sm:$0xff] }
 0x504   :  { %9852 = vmatmul.mubr.f32.gmra.mrb[100].mxu0 %v14434_v50  ;;  %9792 = vmatprep.mubr.msk.f32.mxu1 %vm10494_vm1, %v14434_v50 }
 0x505   :  { %10418 = vmatpush3.bf16.msra.mxu0 %v10417_v2  ;;  %9854 = vmatprep.mubr.msk.f32.mxu0 %vm10494_vm1, %v14434_v50  ;;  %v6920_v2 = vld [vmem:[%s15059_s8 + $0x438] sm:$0xff] }
 0x506   :  { %10391 = vmatpush3.bf16.msra.mxu1 %v10390_v22  ;;  %10419 = vmatprep.subr.bf16.mxu0 %v10492_v0  ;;  %v10441_v41 = vpack.c.bf16 %v6920_v2, %v6919_v13  ;;  %v6768_v22 = vld [vmem:[#allocation7 + $0x2d] sm:$0xff] }
 0x507   :  { %9793 = vmatmul.mubr.f32.gmra.mrb[84].mxu1 %v6347_v16  ;;  %10392 = vmatprep.subr.bf16.mxu1 %v10492_v0  ;;  %v10444_v16 = vpack.c.bf16 %v6922_v45, %v6921_v11 }
 0x508   :  { %9855 = vmatmul.mubr.f32.gmra.mrb[102].mxu0 %v14434_v50  ;;  %9795 = vmatprep.mubr.msk.f32.mxu1 %vm10494_vm1, %v14434_v50 }
 0x509   :  { %10421 = vmatpush3.bf16.msra.mxu0 %v10420_v12  ;;  %9857 = vmatprep.mubr.msk.f32.mxu0 %vm10494_vm1, %v14434_v50  ;;  %v6923_v12 = vld [vmem:[%s15059_s8 + $0x450] sm:$0xff] }
 0x50a   :  { %10394 = vmatpush3.bf16.msra.mxu1 %v10393_v51  ;;  %10422 = vmatprep.subr.bf16.mxu0 %v10492_v0  ;;  %v6628_v51 = vld [vmem:[#allocation7 + $0x2c] sm:$0xff]  ;;  %v10447_v33 = vpack.c.bf16 %v6924_v17, %v6923_v12 }
 0x50b   :  { %9796 = vmatmul.mubr.f32.gmra.mrb[86].mxu1 %v6348_v15  ;;  %10395 = vmatprep.subr.bf16.mxu1 %v10492_v0  ;;  %v6629_v15 = vld [vmem:[#allocation7 + $0x34] sm:$0xff] }
 0x50c   :  { %9858 = vmatmul.mubr.f32.gmra.mrb[104].mxu0 %v14468_v24  ;;  %9798 = vmatprep.mubr.msk.f32.mxu1 %vm10494_vm1, %v14434_v50  ;;  %v10399_v24 = vpack.c.bf16 %v6644_v58, %v6643_v31  ;;  %v6927_v58 = vld [vmem:[%s15059_s8 + $0x470] sm:$0xff] }
 0x50d   :  { %9860 = vmatprep.mubr.msk.f32.mxu0 %vm10494_vm1, %v14434_v50  ;;  %10424 = vmatpush3.bf16.msra.mxu0 %v10423_v57  ;;  %v6925_v57 = vld [vmem:[%s15059_s8 + $0x460] sm:$0xff] }
 0x50e   :  { %10397 = vmatpush3.bf16.msra.mxu1 %v10396_v26  ;;  %10425 = vmatprep.subr.bf16.mxu0 %v10492_v0  ;;  %v6926_v26 = vld [vmem:[%s15059_s8 + $0x468] sm:$0xff] }
 0x50f   :  { %9799 = vmatmul.mubr.f32.gmra.mrb[88].mxu1 %v6349_v55  ;;  %10398 = vmatprep.subr.bf16.mxu1 %v10492_v0  ;;  %v10450_v31 = vpack.c.bf16 %v6926_v26, %v6925_v57  ;;  %v6631_v55 = vld [vmem:[#allocation7 + $0x44] sm:$0xff] }
 0x510   :  { %9861 = vmatmul.mubr.f32.gmra.mrb[106].mxu0 %v14473_v49  ;;  %9801 = vmatprep.mubr.msk.f32.mxu1 %vm10494_vm1, %v14434_v50  ;;  %v10402_v49 = vpack.c.bf16 %v6646_v14, %v6645_v48  ;;  %v7127_v48 = vld [vmem:[%s15064_s1] sm:$0x3] }
 0x511   :  { %9863 = vmatprep.mubr.msk.f32.mxu0 %vm10494_vm1, %v14434_v50  ;;  %10427 = vmatpush3.bf16.msra.mxu0 %v10426_v30  ;;  %v6928_v30 = vld [vmem:[%s15059_s8 + $0x478] sm:$0xff] }
 0x512   :  { %10400 = vmatpush3.bf16.msra.mxu1 %v10399_v24  ;;  %10428 = vmatprep.subr.bf16.mxu0 %v10492_v0  ;;  %v6772_v24 = vld [vmem:[#allocation7 + $0x4d] sm:$0xff]  ;;  %v10453_v36 = vpack.c.bf16 %v6928_v30, %v6927_v58 }
 0x513   :  { %9802 = vmatmul.mubr.f32.gmra.mrb[90].mxu1 %v6350_v20  ;;  %10401 = vmatprep.subr.bf16.mxu1 %v10492_v0 }
 0x514   :  { %9864 = vmatmul.mubr.f32.gmra.mrb[108].mxu0 %v14434_v50  ;;  %9804 = vmatprep.mubr.msk.f32.mxu1 %vm10494_vm1, %v14434_v50 }
 0x515   :  { %9866 = vmatprep.mubr.msk.f32.mxu0 %vm10494_vm1, %v14434_v50  ;;  %10430 = vmatpush3.bf16.msra.mxu0 %v10429_v61 }
 0x516   :  { %10403 = vmatpush3.bf16.msra.mxu1 %v10402_v49  ;;  %10046 = vmatprep.subr.mxu0 %v14434_v50 }
 0x517   :  { %9805 = vmatmul.mubr.f32.gmra.mrb[92].mxu1 %v6351_v1  ;;  %10404 = vmatprep.subr.bf16.mxu1 %v10492_v0 }
 0x518   :  { %9867 = vmatmul.mubr.f32.gmra.mrb[110].mxu0 %v14434_v50  ;;  %9807 = vmatprep.mubr.msk.f32.mxu1 %vm10494_vm1, %v14434_v50 }
 0x519   :  { %9960 = vmatprep.mubr.msk.f32.mxu0 %vm10494_vm1, %v14434_v50 }
 0x51a   :  { %10406 = vmatpush3.bf16.msra.mxu1 %v10405_v56 }
 0x51b   :  { %9808 = vmatmul.mubr.f32.gmra.mrb[94].mxu1 %v6352_v39  ;;  %10431 = vmatprep.subr.bf16.mxu1 %v10492_v0 }
 0x51c   :  { %9961 = vmatmul.mubr.f32.vlgmr.msra.gmra.mrb[112].mxu0 %v6764_v4  ;;  %9901 = vmatprep.mubr.msk.f32.mxu1 %vm10494_vm1, %v14434_v50 }
 0x51d   :  { %10047 = vmatpush3.msk.msra.mxu0 %vm7140_vm6, %v7128_v29  ;;  %9963 = vmatprep.mubr.msk.f32.mxu0 %vm10494_vm1, %v14434_v50 }
 0x51e   :  { %10455 = vmatprep.subr.bf16.mxu0 %v10492_v0 }
 0x51f   :  { %9902 = vmatmul.mubr.f32.vlgmr.msra.gmra.mrb[96].mxu1 %v6624_v47  ;;  %v7215_v47 = vld [vmem:[%s15065_s14] sm:$0xff] }
 0x520   :  { %9964 = vmatmul.mubr.f32.gmra.mrb[114].mxu0 %v6765_v37  ;;  %9904 = vmatprep.mubr.msk.f32.mxu1 %vm10494_vm1, %v14434_v50  ;;  %v7216_v37 = vld [vmem:[%s15065_s14 + $0x8] sm:$0xff] }
 0x521   :  { %9966 = vmatprep.mubr.msk.f32.mxu0 %vm10494_vm1, %v14434_v50  ;;  %10433 = vmatpush3.bf16.msra.mxu1 %v10432_v19  ;;  %v10456_v52 = vpack.c.bf16 %v7216_v37, %v7215_v47 }
 0x522   :  { %10434 = vmatprep.subr.bf16.mxu1 %v10492_v0 }
 0x523   :  { %9905 = vmatmul.mubr.f32.gmra.mrb[98].mxu1 %v6625_v18 }
 0x524   :  { %9967 = vmatmul.mubr.f32.gmra.mrb[116].mxu0 %v6766_v46  ;;  %9907 = vmatprep.mubr.msk.f32.mxu1 %vm10494_vm1, %v14434_v50 }
 0x525   :  { %9969 = vmatprep.mubr.msk.f32.mxu0 %vm10494_vm1, %v14434_v50  ;;  %10436 = vmatpush3.bf16.msra.mxu1 %v10435_v7 }
 0x526   :  { %10437 = vmatprep.subr.bf16.mxu1 %v10492_v0 }
 0x527   :  { %9908 = vmatmul.mubr.f32.gmra.mrb[100].mxu1 %v6626_v5 }
 0x528   :  { %9970 = vmatmul.mubr.f32.gmra.mrb[118].mxu0 %v6767_v25  ;;  %9910 = vmatprep.mubr.msk.f32.mxu1 %vm10494_vm1, %v14434_v50 }
 0x529   :  { %9972 = vmatprep.mubr.msk.f32.mxu0 %vm10494_vm1, %v14434_v50  ;;  %10439 = vmatpush3.bf16.msra.mxu1 %v10438_v6 }
 0x52a   :  { %10440 = vmatprep.subr.bf16.mxu1 %v10492_v0 }
 0x52b   :  { %9911 = vmatmul.mubr.f32.gmra.mrb[102].mxu1 %v6627_v63 }
 0x52c   :  { %9973 = vmatmul.mubr.f32.gmra.mrb[120].mxu0 %v6768_v22  ;;  %9913 = vmatprep.mubr.msk.f32.mxu1 %vm10494_vm1, %v14434_v50 }
 0x52d   :  { %9975 = vmatprep.mubr.msk.f32.mxu0 %vm10494_vm1, %v14434_v50  ;;  %10442 = vmatpush3.bf16.msra.mxu1 %v10441_v41 }
 0x52e   :  { %10443 = vmatprep.subr.bf16.mxu1 %v10492_v0 }
 0x52f   :  { %9914 = vmatmul.mubr.f32.gmra.mrb[104].mxu1 %v6628_v51 }
 0x530   :  { %9976 = vmatmul.mubr.f32.gmra.mrb[122].mxu0 %v6769_v34  ;;  %9916 = vmatprep.mubr.msk.f32.mxu1 %vm10494_vm1, %v14434_v50 }
 0x531   :  { %9978 = vmatprep.mubr.msk.f32.mxu0 %vm10494_vm1, %v14434_v50  ;;  %10445 = vmatpush3.bf16.msra.mxu1 %v10444_v16 }
 0x532   :  { %10446 = vmatprep.subr.bf16.mxu1 %v10492_v0 }
 0x533   :  { %9917 = vmatmul.mubr.f32.gmra.mrb[106].mxu1 %v6629_v15 }
 0x534   :  { %9979 = vmatmul.mubr.f32.gmra.mrb[124].mxu0 %v6770_v10  ;;  %9919 = vmatprep.mubr.msk.f32.mxu1 %vm10494_vm1, %v14434_v50 }
 0x535   :  { %9981 = vmatprep.mubr.msk.f32.mxu0 %vm10494_vm1, %v14434_v50  ;;  %10448 = vmatpush3.bf16.msra.mxu1 %v10447_v33 }
 0x536   :  { %10449 = vmatprep.subr.bf16.mxu1 %v10492_v0 }
 0x537   :  { %9920 = vmatmul.mubr.f32.gmra.mrb[108].mxu1 %v6630_v23 }
 0x538   :  { %9982 = vmatmul.mubr.f32.gmra.mrb[126].mxu0 %v6771_v21  ;;  %9922 = vmatprep.mubr.msk.f32.mxu1 %vm10494_vm1, %v14434_v50 }
 0x539   :  { %9984 = vmatprep.mubr.msk.f32.mxu0 %vm10494_vm1, %v14434_v50  ;;  %10451 = vmatpush3.bf16.msra.mxu1 %v10450_v31 }
 0x53a   :  { %10452 = vmatprep.subr.bf16.mxu1 %v10492_v0 }
 0x53b   :  { %9923 = vmatmul.mubr.f32.gmra.mrb[110].mxu1 %v6631_v55 }
 0x53c   :  { %9985 = vmatmul.mubr.f32.gmra.mrb[128].mxu0 %v6772_v24  ;;  %9925 = vmatprep.mubr.msk.f32.mxu1 %vm10494_vm1, %v14434_v50 }
 0x53d   :  { %10048 = vmatprep.mubr.msk.f32.mxu0 %vm10494_vm1, %v14434_v50  ;;  %10454 = vmatpush3.bf16.msra.mxu1 %v10453_v36 }
 0x53e   :  { %10458 = vmatprep.subr.bf16.mxu1 %v10492_v0 }
 0x53f   :  { %9926 = vmatmul.mubr.f32.gmra.mrb[112].mxu1 %v6632_v43 }
 0x540   :  { %10049 = vmatmul.mubr.msk.f32.vlgmr.msra.gmra.mrb[130].mxu0 %vm7136_vm7, %v7127_v48  ;;  %10019 = vmatprep.mubr.msk.f32.mxu1 %vm10494_vm1, %v14434_v50 }
 0x541   :  { %10055 = vmatprep.mubr.msk.f32.mxu0 %vm10494_vm1, %v14434_v50  ;;  %10457 = vmatpush3.bf16.msra.mxu0 %v10456_v52 }
 0x543   :  { %10020 = vmatmul.mubr.f32.vlgmr.msra.gmra.mrb[114].mxu1 %v14514_v54 }
 0x544   :  { %10022 = vmatprep.mubr.msk.f32.mxu1 %vm10494_vm1, %v14434_v50 }
 0x547   :  { %10023 = vmatmul.mubr.f32.gmra.mrb[116].mxu1 %v14525_v44 }
 0x548   :  { %10025 = vmatprep.mubr.msk.f32.mxu1 %vm10494_vm1, %v14434_v50 }
 0x54b   :  { %10026 = vmatmul.mubr.f32.gmra.mrb[118].mxu1 %v14545_v35 }
 0x54c   :  { %10028 = vmatprep.mubr.msk.f32.mxu1 %vm10494_vm1, %v14434_v50 }
 0x54f   :  { %10029 = vmatmul.mubr.f32.gmra.mrb[120].mxu1 %v14566_v9 }
 0x550   :  { %10031 = vmatprep.mubr.msk.f32.mxu1 %vm10494_vm1, %v14434_v50 }
 0x553   :  { %10032 = vmatmul.mubr.f32.gmra.mrb[122].mxu1 %v14590_v8 }
 0x554   :  { %10034 = vmatprep.mubr.msk.f32.mxu1 %vm10494_vm1, %v14434_v50 }
 0x557   :  { %10035 = vmatmul.mubr.f32.gmra.mrb[124].mxu1 %v14611_v60 }
 0x558   :  { %10037 = vmatprep.mubr.msk.f32.mxu1 %vm10494_vm1, %v14434_v50 }
 0x55b   :  { %10038 = vmatmul.mubr.f32.gmra.mrb[126].mxu1 %v14631_v3 }
 0x55c   :  { %10040 = vmatprep.mubr.msk.f32.mxu1 %vm10494_vm1, %v14434_v50 }
 0x55f   :  { %10041 = vmatmul.mubr.f32.gmra.mrb[128].mxu1 %v14646_v28 }
 0x560   :  { %10043 = vmatprep.mubr.msk.f32.mxu1 %vm10494_vm1, %v14434_v50 }
 0x57e   :  { %v5919_v54 = vpop.f32.mrb[44].mxu1 }
 0x57f   :  { %v6027_v44 = vpop.f32.mrb[60].mxu0  ;;  %v9552_v9 = vpop.f32.mrb[45].mxu1 }
 0x580   :  { %v6028_v35 = vadd.f32 %v6027_v44, %v5919_v54  ;;  %v9611_v8 = vpop.f32.mrb[61].mxu0 }
 0x587   :  { %v5924_v14 = vpop.f32.mrb[46].mxu1 }
 0x588   :  { %v6032_v60 = vpop.f32.mrb[62].mxu0  ;;  %v9555_v20 = vpop.f32.mrb[47].mxu1 }
 0x589   :  { %v6033_v61 = vadd.f32 %v6032_v60, %v5924_v14  ;;  %v9614_v49 = vpop.f32.mrb[63].mxu0 }
 0x58b   :  { %v5929_v3 = vpop.f32.mrb[48].mxu1 }
 0x58c   :  { %v6037_v32 = vpop.f32.mrb[64].mxu0  ;;  %v9558_v1 = vpop.f32.mrb[49].mxu1 }
 0x58d   :  { %v9617_v38 = vpop.f32.mrb[65].mxu0 }
 0x58f   :  { %v5933_v39 = vpop.f32.mrb[50].mxu1 }
 0x590   :  { %v6041_v56 = vpop.f32.mrb[66].mxu0  ;;  %v9561_v4 = vpop.f32.mrb[51].mxu1 }
 0x591   :  { %v6042_v28 = vadd.f32 %v6041_v56, %v5933_v39  ;;  %v9620_v29 = vpop.f32.mrb[67].mxu0 }
 0x593   :  { %v5938_v62 = vpop.f32.mrb[52].mxu1 }
 0x594   :  { %v6046_v50 = vpop.f32.mrb[68].mxu0  ;;  %v9564_v27 = vpop.f32.mrb[53].mxu1 }
 0x595   :  { %v9623_v42 = vpop.f32.mrb[69].mxu0  ;;  %v6047_v19 = vadd.f32 %v6046_v50, %v5938_v62 }
 0x598   :  { %v6051_v46 = vpop.f32.mrb[70].mxu0 }
 0x599   :  { %v9626_v7 = vpop.f32.mrb[71].mxu0 }
 0x59e   :  { %v5943_v18 = vpop.f32.mrb[54].mxu1 }
 0x59f   :  { %v6056_v59 = vpop.f32.mrb[72].mxu0  ;;  %v6052_v40 = vadd.f32 %v6051_v46, %v5943_v18  ;;  %v9567_v5 = vpop.f32.mrb[55].mxu1 }
 0x5a0   :  { %v9629_v25 = vpop.f32.mrb[73].mxu0 }
 0x5a1   :  { %v14956_v25 = vld [vmem:[#allocation7] sm:$0xff] }
 0x5a2   :  { %v5948_v6 = vpop.f32.mrb[56].mxu1 }
 0x5a3   :  { %v6061_v13 = vpop.f32.mrb[74].mxu0  ;;  %v6057_v2 = vadd.f32 %v6056_v59, %v5948_v6  ;;  %v9570_v63 = vpop.f32.mrb[57].mxu1 }
 0x5a4   :  { %v9632_v41 = vpop.f32.mrb[75].mxu0 }
 0x5a6   :  { %v5953_v11 = vpop.f32.mrb[58].mxu1 }
 0x5a7   :  { %v6295_v22 = vpop.f32.mrb[76].mxu0  ;;  %v9573_v16 = vpop.f32.mrb[59].mxu1 }
 0x5a8   :  { %v9726_v45 = vpop.f32.mrb[77].mxu0 }
 0x5aa   :  { %v6155_v12 = vpop.f32.mrb[60].mxu1 }
 0x5ab   :  { %v6300_v51 = vpop.f32.mrb[78].mxu0  ;;  %v6197_v34 = vadd.f32 %v6155_v12, %v14705_v53  ;;  %v9667_v10 = vpop.f32.mrb[61].mxu1 }
 0x5ac   :  { %v9729_v17 = vpop.f32.mrb[79].mxu0 }
 0x5ad   :  { %v6337_v33 = vadd.f32 %v6295_v22, %v6197_v34 }
 0x5ae   :  { %v6160_v15 = vpop.f32.mrb[62].mxu1 }
 0x5af   :  { %v6305_v57 = vpop.f32.mrb[80].mxu0  ;;  %v6198_v26 = vadd.f32 %v6160_v15, %v6028_v35  ;;  %v9670_v23 = vpop.f32.mrb[63].mxu1  ;;  %v7300_v15 = vld [vmem:[%s15066_s17 + $0x8] sm:$0xff] }
 0x5b0   :  { %v9732_v21 = vpop.f32.mrb[81].mxu0  ;;  %v7302_v23 = vld [vmem:[%s15066_s17 + $0x18] sm:$0xff] }
 0x5b1   :  { %v6338_v31 = vadd.f32 %v6300_v51, %v6198_v26 }
 0x5b2   :  { %v6165_v58 = vpop.f32.mrb[64].mxu1 }
 0x5b3   :  { %v6310_v30 = vpop.f32.mrb[82].mxu0  ;;  %v6199_v55 = vadd.f32 %v6165_v58, %v6033_v61  ;;  %v9673_v24 = vpop.f32.mrb[65].mxu1 }
 0x5b4   :  { %v9735_v36 = vpop.f32.mrb[83].mxu0 }
 0x5b5   :  { %v6339_v43 = vadd.f32 %v6305_v57, %v6199_v55  ;;  %v7301_v57 = vld [vmem:[%s15066_s17 + $0x10] sm:$0xff]  ;;  %v7303_v36 = vld [vmem:[%s15066_s17 + $0x20] sm:$0xff] }
 0x5b6   :  { %v6170_v54 = vpop.f32.mrb[66].mxu1  ;;  %v10462_v30 = vpack.c.bf16 %v7302_v23, %v7301_v57 }
 0x5b7   :  { %v6314_v48 = vpop.f32.mrb[84].mxu0  ;;  %v9676_v9 = vpop.f32.mrb[67].mxu1 }
 0x5b8   :  { %v9738_v44 = vpop.f32.mrb[85].mxu0 }
 0x5ba   :  { %v6174_v53 = vpop.f32.mrb[68].mxu1 }
 0x5bb   :  { %v6319_v8 = vpop.f32.mrb[86].mxu0  ;;  %v6200_v14 = vadd.f32 %v6174_v53, %v6042_v28  ;;  %v9679_v20 = vpop.f32.mrb[69].mxu1 }
 0x5bc   :  { %v9741_v60 = vpop.f32.mrb[87].mxu0 }
 0x5bd   :  { %v6340_v49 = vadd.f32 %v6314_v48, %v6200_v14 }
 0x5be   :  { %v6179_v35 = vpop.f32.mrb[70].mxu1 }
 0x5bf   :  { %v6324_v32 = vpop.f32.mrb[88].mxu0  ;;  %v6201_v3 = vadd.f32 %v6179_v35, %v6047_v19  ;;  %v9682_v1 = vpop.f32.mrb[71].mxu1 }
 0x5c0   :  { %v9744_v38 = vpop.f32.mrb[89].mxu0 }
 0x5c1   :  { %v14950_v56 = vadd.f32 %v6319_v8, %v6201_v3 }
 0x5c2   :  { %v6184_v61 = vpop.f32.mrb[72].mxu1 }
 0x5c3   :  { %v6329_v39 = vpop.f32.mrb[90].mxu0  ;;  %v6202_v29 = vadd.f32 %v6184_v61, %v6052_v40  ;;  %v9685_v4 = vpop.f32.mrb[73].mxu1 }
 0x5c4   :  { %v9747_v50 = vpop.f32.mrb[91].mxu0 }
 0x5c5   :  { %v14952_v62 = vadd.f32 %v6324_v32, %v6202_v29 }
 0x5c6   :  { %v6189_v42 = vpop.f32.mrb[74].mxu1 }
 0x5c7   :  { %v6334_v27 = vpop.f32.mrb[92].mxu0  ;;  %v6203_v28 = vadd.f32 %v6189_v42, %v6057_v2  ;;  %v9688_v37 = vpop.f32.mrb[75].mxu1 }
 0x5c8   :  { %v9750_v47 = vpop.f32.mrb[93].mxu0 }
 0x5c9   :  { %v14954_v52 = vadd.f32 %v6329_v39, %v6203_v28 }
 0x5ca   :  { %v6194_v19 = vpop.f32.mrb[76].mxu1 }
 0x5cb   :  { %v6575_v46 = vpop.f32.mrb[94].mxu0  ;;  %v9691_v18 = vpop.f32.mrb[77].mxu1 }
 0x5cc   :  { %v9844_v7 = vpop.f32.mrb[95].mxu0 }
 0x5ce   :  { %v6435_v59 = vpop.f32.mrb[78].mxu1 }
 0x5cf   :  { %v6580_v5 = vpop.f32.mrb[96].mxu0  ;;  %v6477_v40 = vadd.f32 %v6435_v59, %v6337_v33  ;;  %v9785_v6 = vpop.f32.mrb[79].mxu1  ;;  %v7299_v33 = vld [vmem:[%s15066_s17] sm:$0xff] }
 0x5d0   :  { %v9847_v13 = vpop.f32.mrb[97].mxu0  ;;  %v10459_v26 = vpack.c.bf16 %v7300_v15, %v7299_v33 }
 0x5d1   :  { %v14958_v63 = vadd.f32 %v6575_v46, %v6477_v40 }
 0x5d2   :  { %v6440_v41 = vpop.f32.mrb[80].mxu1  ;;  %10460 = vmatpush3.bf16.msra.mxu1 %v10459_v26 }
 0x5d3   :  { %v6585_v2 = vpop.f32.mrb[98].mxu0  ;;  %v6478_v22 = vadd.f32 %v6440_v41, %v6338_v31  ;;  %v9788_v11 = vpop.f32.mrb[81].mxu1  ;;  %10461 = vmatprep.subr.bf16.mxu1 %v10492_v0 }
 0x5d4   :  { %v9850_v45 = vpop.f32.mrb[99].mxu0 }
 0x5d5   :  { %v14960_v16 = vadd.f32 %v6580_v5, %v6478_v22 }
 0x5d6   :  { %v6445_v12 = vpop.f32.mrb[82].mxu1  ;;  %10463 = vmatpush3.bf16.msra.mxu1 %v10462_v30 }
 0x5d7   :  { %v6590_v51 = vpop.f32.mrb[100].mxu0  ;;  %v6479_v34 = vadd.f32 %v6445_v12, %v6339_v43  ;;  %v9791_v10 = vpop.f32.mrb[83].mxu1  ;;  %v7304_v43 = vld [vmem:[%s15066_s17 + $0x28] sm:$0xff]  ;;  %10464 = vmatprep.subr.bf16.mxu1 %v10492_v0 }
 0x5d8   :  { %v9853_v17 = vpop.f32.mrb[101].mxu0  ;;  %v10465_v44 = vpack.c.bf16 %v7304_v43, %v7303_v36 }
 0x5d9   :  { %v6619_v21 = vadd.f32 %v6585_v2, %v6479_v34 }
 0x5da   :  { %v6450_v58 = vpop.f32.mrb[84].mxu1  ;;  %10466 = vmatpush3.bf16.msra.mxu1 %v10465_v44 }
 0x5db   :  { %v6594_v31 = vpop.f32.mrb[102].mxu0  ;;  %v9794_v24 = vpop.f32.mrb[85].mxu1  ;;  %10467 = vmatprep.subr.bf16.mxu1 %v10492_v0 }
 0x5dc   :  { %v9856_v55 = vpop.f32.mrb[103].mxu0 }
 0x5de   :  { %v6454_v48 = vpop.f32.mrb[86].mxu1 }
 0x5df   :  { %v6599_v54 = vpop.f32.mrb[104].mxu0  ;;  %v6480_v9 = vadd.f32 %v6454_v48, %v6340_v49  ;;  %v9797_v8 = vpop.f32.mrb[87].mxu1 }
 0x5e0   :  { %v9859_v53 = vpop.f32.mrb[105].mxu0 }
 0x5e1   :  { %v6620_v14 = vadd.f32 %v6594_v31, %v6480_v9 }
 0x5e2   :  { %v6459_v60 = vpop.f32.mrb[88].mxu1 }
 0x5e3   :  { %v6604_v20 = vpop.f32.mrb[106].mxu0  ;;  %v6481_v35 = vadd.f32 %v6459_v60, %v14950_v56  ;;  %v9800_v32 = vpop.f32.mrb[89].mxu1 }
 0x5e4   :  { %v9862_v3 = vpop.f32.mrb[107].mxu0 }
 0x5e5   :  { %v6621_v38 = vadd.f32 %v6599_v54, %v6481_v35  ;;  %v7721_v3 = vld [vmem:[%s15067_s13] ss:$0 sm:$0xff] }
 0x5e6   :  { %v6464_v1 = vpop.f32.mrb[90].mxu1 }
 0x5e7   :  { %v6609_v61 = vpop.f32.mrb[108].mxu0  ;;  %v6482_v39 = vadd.f32 %v6464_v1, %v14952_v62  ;;  %v9803_v49 = vpop.f32.mrb[91].mxu1 }
 0x5e8   :  { %v9865_v29 = vpop.f32.mrb[109].mxu0 }
 0x5e9   :  { %v6622_v4 = vadd.f32 %v6604_v20, %v6482_v39 }
 0x5ea   :  { %v6469_v50 = vpop.f32.mrb[92].mxu1 }
 0x5eb   :  { %v6614_v42 = vpop.f32.mrb[110].mxu0  ;;  %v6483_v27 = vadd.f32 %v6469_v50, %v14954_v52  ;;  %v9806_v47 = vpop.f32.mrb[93].mxu1 }
 0x5ec   :  { %v9868_v28 = vpop.f32.mrb[111].mxu0  ;;  %v15000_v42 = vld [vmem:[%s15068_s9] ss:$0 sm:$0xff] }
 0x5ed   :  { %v6623_v37 = vadd.f32 %v6609_v61, %v6483_v27 }
 0x5ee   :  { %v6474_v46 = vpop.f32.mrb[94].mxu1 }
 0x5ef   :  { %v6855_v56 = vpop.f32.mrb[112].mxu0  ;;  %v9809_v7 = vpop.f32.mrb[95].mxu1 }
 0x5f0   :  { %v9962_v19 = vpop.f32.mrb[113].mxu0  ;;  %v7065_v7 = vld [vmem:[%s15069_s16] sm:$0xff] }
 0x5f2   :  { %v6715_v0 = vpop.f32.mrb[96].mxu1 }
 0x5f3   :  { %v6860_v18 = vpop.f32.mrb[114].mxu0  ;;  %v6757_v59 = vadd.f32 %v6715_v0, %v14958_v63  ;;  %v9903_v5 = vpop.f32.mrb[97].mxu1 }
 0x5f4   :  { %v9965_v62 = vpop.f32.mrb[115].mxu0 }
 0x5f5   :  { %v6897_v40 = vadd.f32 %v6855_v56, %v6757_v59 }
 0x5f6   :  { %v6720_v6 = vpop.f32.mrb[98].mxu1 }
 0x5f7   :  { %v6865_v13 = vpop.f32.mrb[116].mxu0  ;;  %v6758_v41 = vadd.f32 %v6720_v6, %v14960_v16  ;;  %v9906_v2 = vpop.f32.mrb[99].mxu1 }
 0x5f8   :  { %v9968_v52 = vpop.f32.mrb[117].mxu0  ;;  %v7067_v2 = vld [vmem:[%s15069_s16 + $0x10] sm:$0xff] }
 0x5f9   :  { %v6898_v22 = vadd.f32 %v6860_v18, %v6758_v41  ;;  %v7066_v18 = vld [vmem:[%s15069_s16 + $0x8] sm:$0xff] }
 0x5fa   :  { %v6725_v11 = vpop.f32.mrb[100].mxu1 }
 0x5fb   :  { %v6870_v45 = vpop.f32.mrb[118].mxu0  ;;  %v6759_v12 = vadd.f32 %v6725_v11, %v6619_v21  ;;  %v9909_v34 = vpop.f32.mrb[101].mxu1 }
 0x5fc   :  { %v9971_v51 = vpop.f32.mrb[119].mxu0 }
 0x5fd   :  { %v6899_v17 = vadd.f32 %v6865_v13, %v6759_v12 }
 0x5fe   :  { %v6730_v33 = vpop.f32.mrb[102].mxu1 }
 0x5ff   :  { %v6874_v10 = vpop.f32.mrb[120].mxu0  ;;  %v9912_v63 = vpop.f32.mrb[103].mxu1 }
 0x600   :  { %v9974_v15 = vpop.f32.mrb[121].mxu0 }
 0x602   :  { %v6734_v57 = vpop.f32.mrb[104].mxu1 }
 0x603   :  { %v6879_v26 = vpop.f32.mrb[122].mxu0  ;;  %v6760_v23 = vadd.f32 %v6734_v57, %v6620_v14  ;;  %v9915_v31 = vpop.f32.mrb[105].mxu1 }
 0x604   :  { %v9977_v58 = vpop.f32.mrb[123].mxu0 }
 0x605   :  { %v6900_v30 = vadd.f32 %v6874_v10, %v6760_v23 }
 0x606   :  { %v6739_v16 = vpop.f32.mrb[106].mxu1 }
 0x607   :  { %v6884_v55 = vpop.f32.mrb[124].mxu0  ;;  %v6761_v24 = vadd.f32 %v6739_v16, %v6621_v38  ;;  %v9918_v36 = vpop.f32.mrb[107].mxu1  ;;  %v7088_v16 = vrot.slane %v7065_v7, 4 }
 0x608   :  { %v9980_v43 = vpop.f32.mrb[125].mxu0 }
 0x609   :  { %v14988_v48 = vadd.f32 %v6879_v26, %v6761_v24  ;;  %v7089_v26 = vrot.slane %v7066_v18, 4 }
 0x60a   :  { %v6744_v21 = vpop.f32.mrb[108].mxu1 }
 0x60b   :  { %v6889_v54 = vpop.f32.mrb[126].mxu0  ;;  %v6762_v44 = vadd.f32 %v6744_v21, %v6622_v4  ;;  %v9921_v53 = vpop.f32.mrb[109].mxu1 }
 0x60c   :  { %v9983_v9 = vpop.f32.mrb[127].mxu0 }
 0x60d   :  { %v14990_v8 = vadd.f32 %v6884_v55, %v6762_v44 }
 0x60e   :  { %v6749_v60 = vpop.f32.mrb[110].mxu1 }
 0x60f   :  { %v6894_v20 = vpop.f32.mrb[128].mxu0  ;;  %v6763_v14 = vadd.f32 %v6749_v60, %v6623_v37  ;;  %v9924_v32 = vpop.f32.mrb[111].mxu1 }
 0x610   :  { %v9986_v35 = vpop.f32.mrb[129].mxu0 }
 0x611   :  { %v14995_v38 = vadd.f32 %v6889_v54, %v6763_v14  ;;  %v7091_v54 = vrot.slane %v7067_v2, 4 }
 0x612   :  { %v6754_v61 = vpop.f32.mrb[112].mxu1 }
 0x613   :  { %v7210_v1 = vpop.f32.mrb[130].mxu0  ;;  %v9927_v29 = vpop.f32.mrb[113].mxu1 }
 0x614   :  { %v7211_v39 = vadd.f32 %v7721_v3, %v7210_v1  ;;  %v10050_v49 = vpop.f32.mrb[131].mxu0  ;;  %v7092_v3 = vsel %vm7087_vm10, %v7089_v26, %v7091_v54 }
 0x616   :  { %v7214_v4 = vmax.f32 %v7211_v39, 0.0  ;;  %v6995_v50 = vpop.f32.mrb[114].mxu1 }
 0x617   :  { %v7037_v27 = vadd.f32 %v6995_v50, %v6897_v40  ;;  %v10021_v28 = vpop.f32.mrb[115].mxu1 }
 0x618   :  { %10056 = vmatmul.mubr.msk.f32.vlgmr.msra.gmra.mrb[132].mxu0 %vm7224_vm9, %v7214_v4 }
 0x619   :  { %v7051_v47 = vadd.f32 %v15000_v42, %v7037_v27 }
 0x61a   :  { %v7000_v37 = vpop.f32.mrb[116].mxu1 }
 0x61b   :  { %v7058_v56 = vmax.f32 %v7051_v47, 0.0  ;;  %v7038_v46 = vadd.f32 %v7000_v37, %v6898_v22  ;;  %v10024_v19 = vpop.f32.mrb[117].mxu1 }
 0x61d   :  { %v7052_v0 = vadd.f32 %v15000_v42, %v7038_v46  ;;  %v7068_v5 = vmul.f32 %v7065_v7, %v7058_v56 }
 0x61e   :  { %v7005_v59 = vpop.f32.mrb[118].mxu1 }
 0x61f   :  { %v7059_v62 = vmax.f32 %v7052_v0, 0.0  ;;  %v7039_v40 = vadd.f32 %v7005_v59, %v6899_v17  ;;  %v10027_v6 = vpop.f32.mrb[119].mxu1  ;;  %v7071_v22 = vsel %vm64_vm0, %v7068_v5, 0.0 }
 0x621   :  { %v7069_v13 = vmul.f32 %v7066_v18, %v7059_v62  ;;  %v7053_v41 = vadd.f32 %v15000_v42, %v7039_v40 }
 0x622   :  { %v7010_v52 = vpop.f32.mrb[120].mxu1 }
 0x623   :  { %v7072_v11 = vsel %vm64_vm0, %v7069_v13, 0.0  ;;  %v7060_v45 = vmax.f32 %v7053_v41, 0.0  ;;  %v10030_v12 = vpop.f32.mrb[121].mxu1 }
 0x624   :  { %v7073_v51 = vadd.f32 %v7072_v11, %v7071_v22  ;;  %v7305_v22 = vld [vmem:[%s15066_s17 + $0x30] sm:$0xff]  ;;  %v7306_v11 = vld [vmem:[%s15066_s17 + $0x38] sm:$0xff] }
 0x625   :  { %v7070_v34 = vmul.f32 %v7067_v2, %v7060_v45  ;;  %v6912_v45 = vld [vmem:[#allocation7 + $0x4e] sm:$0xff]  ;;  %v10468_v12 = vpack.c.bf16 %v7306_v11, %v7305_v22 }
 0x626   :  { %v7014_v10 = vpop.f32.mrb[122].mxu1  ;;  %10044 = vmatmul.mubr.f32.gmra.mrb[130].mxu1 %v6912_v45 }
 0x627   :  { %v7074_v17 = vsel %vm64_vm0, %v7070_v34, 0.0  ;;  %v7040_v33 = vadd.f32 %v7014_v10, %v6900_v30  ;;  %v10033_v15 = vpop.f32.mrb[123].mxu1  ;;  %v7090_v30 = vsel %vm7087_vm10, %v7088_v16, %v7089_v26  ;;  %10074 = vmatprep.mubr.msk.f32.mxu1 %vm10494_vm1, %v14956_v25  ;;  %10469 = vmatpush3.bf16.msra.mxu1 %v10468_v12  ;;  %v7724_v34 = vld [vmem:[%s15071_s15] ss:$0 sm:$0xff] }
 0x628   :  { %v7075_v63 = vadd.f32 %v7074_v17, %v7073_v51  ;;  %v24_v51 = vstv %s15070_s18 }
 0x629   :  { %v7054_v57 = vadd.f32 %v15000_v42, %v7040_v33  ;;  %25 = vst [vmem:[#allocation9] sm:$0x1] %v24_v51 }
 0x62a   :  { %v7076_v23 = vrot.slane %v7075_v63, 4  ;;  %v7019_v31 = vpop.f32.mrb[124].mxu1 }
 0x62b   :  { %v7061_v58 = vmax.f32 %v7054_v57, 0.0  ;;  %v7041_v55 = vadd.f32 %v7019_v31, %v14988_v48  ;;  %v10036_v24 = vpop.f32.mrb[125].mxu1 }
 0x62c   :  { %v7077_v36 = vadd.f32 %v7076_v23, %v7075_v63 }
 0x62d   :  { %v7055_v43 = vadd.f32 %v15000_v42, %v7041_v55  ;;  %v7097_v9 = vmul.f32 %v7088_v16, %v7061_v58 }
 0x62e   :  { %v7078_v21 = vrot.slane %v7077_v36, 2  ;;  %v7024_v44 = vpop.f32.mrb[126].mxu1 }
 0x62f   :  { %v7062_v53 = vmax.f32 %v7055_v43, 0.0  ;;  %v7042_v60 = vadd.f32 %v7024_v44, %v14990_v8  ;;  %v10039_v20 = vpop.f32.mrb[127].mxu1  ;;  %v7105_v61 = vrot.slane %v7097_v9, 4 }
 0x630   :  { %v7079_v14 = vadd.f32 %v7078_v21, %v7077_v36  ;;  %v7727_v23 = vld [vmem:[#allocation9] ss:$0 sm:$0xff] }
 0x631   :  { %v7098_v35 = vmul.f32 %v7090_v30, %v7062_v53  ;;  %v7056_v32 = vadd.f32 %v15000_v42, %v7042_v60 }
 0x632   :  { %v7080_v48 = vrot.slane %v7079_v14, 1  ;;  %v7029_v1 = vpop.f32.mrb[128].mxu1 }
 0x633   :  { %v7106_v39 = vrot.slane %v7098_v35, 4  ;;  %v7063_v49 = vmax.f32 %v7056_v32, 0.0  ;;  %v7043_v29 = vadd.f32 %v7029_v1, %v14995_v38  ;;  %v10042_v4 = vpop.f32.mrb[129].mxu1 }
 0x634   :  { %v7081_v50 = vadd.f32 %v7080_v48, %v7079_v14 }
 0x635   :  { %v7107_v27 = vsel %vm7087_vm10, %v7105_v61, %v7106_v39  ;;  %v7099_v8 = vmul.f32 %v7092_v3, %v7063_v49  ;;  %v7057_v28 = vadd.f32 %v15000_v42, %v7043_v29 }
 0x636   :  { %7083 = vst.msk [vmem:[#allocation8] sm:$0x1] %vm7082_vm11, %v7081_v50  ;;  %v7115_v19 = vsel %vm64_vm0, %v7107_v27, 0.0 }
 0x637   :  { %v7108_v47 = vrot.slane %v7099_v8, 4  ;;  %v7064_v37 = vmax.f32 %v7057_v28, 0.0 }
 0x639   :  { %v7109_v56 = vsel %vm7087_vm10, %v7106_v39, %v7108_v47  ;;  %v7100_v46 = vmul.f32 %v7091_v54, %v7064_v37 }
 0x63a   :  { %v7116_v7 = vsel %vm64_vm0, %v7109_v56, 0.0 }
 0x63b   :  { %v7117_v0 = vadd.f32 %v7116_v7, %v7115_v19  ;;  %v7110_v38 = vrot.slane %v7100_v46, 4 }
 0x63d   :  { %v7111_v18 = vsel %vm7087_vm10, %v7108_v47, %v7110_v38 }
 0x63e   :  { %v7118_v59 = vsel %vm64_vm0, %v7111_v18, 0.0 }
 0x63f   :  { %v7119_v5 = vadd.f32 %v7118_v59, %v7117_v0 }
 0x641   :  { %v7120_v62 = vrot.slane %v7119_v5, 4 }
 0x643   :  { %v7121_v42 = vadd.f32 %v7120_v62, %v7119_v5 }
 0x645   :  { %v7122_v40 = vrot.slane %v7121_v42, 2 }
 0x647   :  { %v7123_v6 = vadd.f32 %v7122_v40, %v7121_v42 }
 0x649   :  { %v7124_v13 = vrot.slane %v7123_v6, 1 }
 0x64b   :  { %v7125_v41 = vadd.f32 %v7124_v13, %v7123_v6 }
 0x64d   :  { %7126 = vst.msk [vmem:[#allocation8 + $0x1] sm:$0x1] %vm7082_vm11, %v7125_v41 }
 0x654   :  { %v7380_v2 = vld [vmem:[#allocation8] sm:$0x3] }
 0x655   :  { %v7381_v52 = vsel %vm88_vm8, %v7380_v2, 0.0 }
 0x656   :  { %7382 = vadd.xlane.f32.xlu0 %v7381_v52 }
 0x6e3   :  { %v7383_v26 = vpop.xlane.xlu0 %7382 }
 0x6eb   :  { %v7294_v10 = vpop.f32.mrb[132].mxu0 }
 0x6ec   :  { %v7295_v17 = vadd.f32 %v7724_v34, %v7294_v10  ;;  %v10057_v33 = vpop.f32.mrb[133].mxu0 }
 0x6ee   :  { %v7298_v15 = vmax.f32 %v7295_v17, 0.0 }
 0x6f0   :  { %10075 = vmatmul.mubr.msk.f32.vlgmr.msra.gmra.mrb[132].mxu1 %vm90_vm3, %v7298_v15 }
 0x6f9   :  { %v7034_v63 = vpop.f32.mrb[130].mxu1 }
 0x6fa   :  { %v10045_v57 = vpop.f32.mrb[131].mxu1 }
 0x7c3   :  { %v7376_v25 = vpop.f32.mrb[132].mxu1 }
 0x7c4   :  { %v7384_v31 = vadd.f32 %v7383_v26, %v7376_v25  ;;  %v10076_v58 = vpop.f32.mrb[133].mxu1 }
 0x7c6   :  { %v7392_v16 = vadd.f32 %v7727_v23, %v7384_v31 }
 0x7c8   :  { %10473 = vtanh.f32 %v7392_v16 }
 0x7d2   :  { %v10474_v55 = vpop.eup %10473 }
 0x7d3   :  { %7395 = vst.msk [vmem:[%s15072_s19] sm:$0x3] %vm7394_vm12, %v10474_v55 }

</bundles_post_ra>
